<compile_context>
chip_gen: v7x
topology: tpu7x:2x2x1
jax: 0.10.0
libtpu: 0.0.40
codegen_flags: <defaults>
</compile_context>

<pallas_src>
from functools import partial

import jax
import jax.numpy as jnp
from jax import lax
from jax.experimental import pallas as pl
from jax.experimental.pallas import tpu as pltpu

# ---- problem sizes (small, consistent with the module) -----------------------
N_NODES = 16        # total words/nodes across all graphs
N_GRAPHS = 2        # number of graphs in the batch
INPUT_DIM = 8
HIDDEN_DIM = 32
OUTPUT_DIM = 4
NUM_LAYERS = 3

_F32 = jnp.float32
_W_WIDTH = 3 * HIDDEN_DIM     # 96 — widest packed weight/bias block


def _build_layout():
    """Row layout of the packed weight / bias blobs (shared by wrapper & kernel)."""
    wl, bl = {}, {}
    wrow, brow = 0, 0

    def add_w(name, rows, cols):
        nonlocal wrow
        wl[name] = (wrow, rows, cols)
        wrow += rows

    def add_b(name, rows, cols):
        nonlocal brow
        bl[name] = (brow, rows, cols)
        brow += rows

    H = HIDDEN_DIM
    add_w("wi", INPUT_DIM, H)
    add_w("wwv", H, 2 * H)                                # [w | v] fused (shared)
    for l in range(NUM_LAYERS):
        add_w(f"wih{l}", H, 3 * H)                        # gate cols [r | z | n]
    for l in range(NUM_LAYERS):
        add_w(f"whh{l}", 3 * H, H)                        # gate ROWS [r ; z ; n]
    for l in range(NUM_LAYERS):
        add_w(f"wqkv{l}", H, 3 * H)                       # [q | k | v] fused
    for l in range(NUM_LAYERS):
        add_w(f"wgnn{l}", H, H)
    add_w("wo_mean", H, OUTPUT_DIM)
    add_w("wo_max", H, OUTPUT_DIM)

    add_b("bi", 1, H)
    add_b("bwv", 1, 2 * H)
    for l in range(NUM_LAYERS):
        add_b(f"bih{l}", 1, 3 * H)
    for l in range(NUM_LAYERS):
        add_b(f"bhh{l}", 3, H)                            # gate ROWS [r ; z ; n]
    for l in range(NUM_LAYERS):
        add_b(f"bqkv{l}", 1, 3 * H)
    for l in range(NUM_LAYERS):
        add_b(f"bgnn{l}", 1, H)
    add_b("bo", 1, OUTPUT_DIM)

    w_rows = ((wrow + 7) // 8) * 8
    b_rows = ((brow + 7) // 8) * 8
    return wl, bl, w_rows, b_rows


_W_LAYOUT, _B_LAYOUT, _W_ROWS, _B_ROWS = _build_layout()


def _dot(a, b):
    return jnp.dot(a, b, preferred_element_type=_F32)


def _dot_t(a, b):  # a @ b.T without an explicit transpose (contract last dims)
    return lax.dot_general(a, b, (((1,), (1,)), ((), ())),
                           preferred_element_type=_F32)


def _make_kernel(n, din, e, g):
    """Kernel closure for n nodes, din input features, e (directed) edges, g graphs."""
    H = HIDDEN_DIM
    L = NUM_LAYERS

    def kernel(act_ref, wp_ref, bp_ref, out_ref, xbuf, gir, giz, gin):
        def w_(name):
            r, rows, cols = _W_LAYOUT[name]
            return wp_ref[r:r + rows, 0:cols]

        def b_(name):
            r, rows, cols = _B_LAYOUT[name]
            return bp_ref[r:r + rows, 0:cols]

        # ---- unpack activation blob & build dense graph structure in-kernel ----
        x = act_ref[0:n, 0:din]                           # (n, din)
        src = act_ref[n:n + 1, 0:e]                       # (1, e) float node ids
        dst = act_ref[n + 1:n + 2, 0:e]                   # (1, e)
        ew = act_ref[n + 2:n + 3, 0:e]                    # (1, e)
        bvec = act_ref[n + 3:n + 4, 0:n]                  # (1, n) graph id per node

        node_iota = lax.broadcasted_iota(jnp.int32, (n, e), 0).astype(_F32)
        s_onehot = (node_iota == src).astype(_F32)        # (n, e): 1 iff src[e] == node
        d_onehot = (node_iota == dst).astype(_F32)        # (n, e)
        # adj[d, s] = sum_e w_e * 1[dst_e==d] * 1[src_e==s]   (== scatter-add)
        adj = _dot_t(d_onehot * ew, s_onehot)             # (n, n)
        ri = lax.broadcasted_iota(jnp.int32, (n, n), 0)
        ci = lax.broadcasted_iota(jnp.int32, (n, n), 1)
        adj = adj + (ri == ci).astype(_F32)               # self loops

        g_iota = lax.broadcasted_iota(jnp.int32, (g, n), 0).astype(_F32)
        mem = (g_iota == bvec).astype(_F32)               # (g, n) graph membership

        # ---- input projection -------------------------------------------------
        xbuf[...] = _dot(x, w_("wi")) + b_("bi")

        # ---- GRU stack + SwiGLU -----------------------------------------------
        wwv = w_("wwv")                                   # (H, 2H), shared layers
        bwv = b_("bwv")
        for l in range(L):                                # static unroll (L = 3)
            wr0, _, _ = _W_LAYOUT[f"whh{l}"]
            whh_r = wp_ref[wr0:wr0 + H, 0:H]              # each (H, H), lanes 0..H-1
            whh_z = wp_ref[wr0 + H:wr0 + 2 * H, 0:H]
            whh_n = wp_ref[wr0 + 2 * H:wr0 + 3 * H, 0:H]
            br0, _, _ = _B_LAYOUT[f"bhh{l}"]
            bhh_r = bp_ref[br0:br0 + 1, 0:H]
            bhh_z = bp_ref[br0 + 1:br0 + 2, 0:H]
            bhh_n = bp_ref[br0 + 2:br0 + 3, 0:H]

            # Hoisted, batched input-gate matmul (the only x-dependent part).
            # b_hr / b_hz are folded in here (b_hn stays inside the r*(...) term,
            # matching torch.nn.GRU).  All three buffers are lane-0 aligned so the
            # per-step combines below need no XLU rotate on the serial chain.
            gi_all = _dot(xbuf[...], w_(f"wih{l}")) + b_(f"bih{l}")    # (n, 3H)
            gir[...] = gi_all[:, 0:H] + bhh_r
            giz[...] = gi_all[:, H:2 * H] + bhh_z
            gin[...] = gi_all[:, 2 * H:3 * H]

            # Sequential recurrence — fully unrolled; three tiny h-dependent dots
            # per step (issued back-to-back, overlapping in the MXU), zero rotates.
            h = jnp.zeros((1, H), _F32)
            for t in range(n):                            # static unroll (n = 16)
                rgate = jax.nn.sigmoid(gir[t:t + 1, :] + _dot(h, whh_r))
                zgate = jax.nn.sigmoid(giz[t:t + 1, :] + _dot(h, whh_z))
                ngate = jnp.tanh(gin[t:t + 1, :]
                                 + rgate * (_dot(h, whh_n) + bhh_n))
                h = ngate + zgate * (h - ngate)           # == (1-z)*n + z*h
                xbuf[t:t + 1, :] = h                      # GRU output sequence

            # swiglu(x) = w(x) * silu(v(x)); fused (H, 2H) matmul + lane slices.
            ab = _dot(xbuf[...], wwv) + bwv               # (n, 2H)
            a = ab[:, 0:H]
            bb = ab[:, H:2 * H]
            xbuf[...] = a * (bb * jax.nn.sigmoid(bb))

        # ---- attention + GNN stack ----------------------------------------------
        neigh = adj > 0.0
        deg = jnp.sum(adj, axis=-1, keepdims=True)        # (n, 1), always > 0
        adj_norm = adj * pl.reciprocal(deg, approx=True)  # hoisted out of layer loop
        inv_sqrt_h = 1.0 / (float(H) ** 0.5)
        for l in range(L):                                # static unroll
            xcur = xbuf[...]
            qkv = _dot(xcur, w_(f"wqkv{l}")) + b_(f"bqkv{l}")   # fused QKV (n, 3H)
            q = qkv[:, 0:H]
            k = qkv[:, H:2 * H]
            v = qkv[:, 2 * H:3 * H]

            # mask BEFORE exp so no inf/NaN is ever generated
            scores = jnp.where(neigh, _dot_t(q, k) * inv_sqrt_h, -1e30)  # (n, n)
            rowmax = jnp.max(scores, axis=-1, keepdims=True)
            p = jnp.exp(scores - rowmax) * adj
            attn = p / jnp.sum(p, axis=-1, keepdims=True)  # exact divide (tolerance)
            attended = _dot(attn, v)                      # (n, H)

            # WordGNN: weighted-mean aggregation -> Linear -> ReLU
            agg = _dot(adj_norm, attended)
            xbuf[...] = jnp.maximum(_dot(agg, w_(f"wgnn{l}")) + b_(f"bgnn{l}"), 0.0)

        # ---- readout: per-graph [mean ; max] pooling ----------------------------
        xcur = xbuf[...]
        counts = jnp.sum(mem, axis=-1, keepdims=True)     # (g, 1)
        mean_feat = _dot(mem, xcur) * pl.reciprocal(counts, approx=True)     # (g, H)
        masked = jnp.where(mem[:, :, None] > 0.5, xcur[None, :, :], -1e30)   # (g,n,H)
        max_feat = jnp.max(masked, axis=1)                # (g, H)

        # output_proj over concat(mean, max) == mean @ Wo[:H] + max @ Wo[H:] + bo
        out_ref[...] = (_dot(mean_feat, w_("wo_mean"))
                        + _dot(max_feat, w_("wo_max"))
                        + b_("bo"))

    return kernel


def pack_params(params):
    """Pack all parameters into two f32 blobs. Do this ONCE, outside the call path."""
    L, H = NUM_LAYERS, HIDDEN_DIM
    wpack = jnp.zeros((_W_ROWS, _W_WIDTH), _F32)
    bpack = jnp.zeros((_B_ROWS, _W_WIDTH), _F32)

    def setw(wp, name, arr):
        r, rows, cols = _W_LAYOUT[name]
        return wp.at[r:r + rows, 0:cols].set(arr.astype(_F32).reshape(rows, cols))

    def setb(bp, name, arr):
        r, rows, cols = _B_LAYOUT[name]
        return bp.at[r:r + rows, 0:cols].set(arr.astype(_F32).reshape(rows, cols))

    wpack = setw(wpack, "wi", params["wi"])
    wpack = setw(wpack, "wwv",
                 jnp.concatenate([params["ww"], params["wv"]], axis=1))
    for l in range(L):
        wpack = setw(wpack, f"wih{l}", params["g_wih"][l])
        whh = params["g_whh"][l]                          # (H, 3H), cols [r|z|n]
        wpack = setw(wpack, f"whh{l}",
                     jnp.concatenate([whh[:, 0:H], whh[:, H:2 * H],
                                      whh[:, 2 * H:3 * H]], axis=0))    # (3H, H)
        wpack = setw(wpack, f"wqkv{l}",
                     jnp.concatenate([params["a_wq"][l], params["a_wk"][l],
                                      params["a_wv"][l]], axis=1))
        wpack = setw(wpack, f"wgnn{l}", params["gnn_w"][l])
    wpack = setw(wpack, "wo_mean", params["wo_mean"])
    wpack = setw(wpack, "wo_max", params["wo_max"])

    bpack = setb(bpack, "bi", params["bi"])
    bpack = setb(bpack, "bwv",
                 jnp.concatenate([params["bw"], params["bv"]], axis=1))
    for l in range(L):
        bpack = setb(bpack, f"bih{l}", params["g_bih"][l])
        bpack = setb(bpack, f"bhh{l}", params["g_bhh"][l].reshape(3, H))
        bpack = setb(bpack, f"bqkv{l}",
                     jnp.concatenate([params["a_bq"][l], params["a_bk"][l],
                                      params["a_bv"][l]], axis=1))
        bpack = setb(bpack, f"bgnn{l}", params["gnn_b"][l])
    bpack = setb(bpack, "bo", params["bo"])
    return wpack, bpack


@partial(jax.jit, static_argnames=("num_graphs",))
def word_graph_forward(x, edge_index, edge_weight, batch, wpack, bpack, *, num_graphs):
    n, din = x.shape
    e = edge_index.shape[1]

    # Single per-call activation blob (x | edge src/dst/weight | batch) → one DMA.
    width = max(din, n, e)
    rows_pad = ((n + 4 + 7) // 8) * 8
    act = jnp.zeros((rows_pad, width), _F32)
    act = act.at[0:n, 0:din].set(x.astype(_F32))
    act = act.at[n, 0:e].set(edge_index[0].astype(_F32))
    act = act.at[n + 1, 0:e].set(edge_index[1].astype(_F32))
    act = act.at[n + 2, 0:e].set(edge_weight.astype(_F32))
    act = act.at[n + 3, 0:n].set(batch.astype(_F32))

    vmem = pl.BlockSpec(memory_space=pltpu.MemorySpace.VMEM)
    return pl.pallas_call(
        _make_kernel(n, din, e, num_graphs),
        out_shape=jax.ShapeDtypeStruct((num_graphs, OUTPUT_DIM), _F32),
        in_specs=[vmem, vmem, vmem],
        out_specs=vmem,
        scratch_shapes=[
            pltpu.VMEM((n, HIDDEN_DIM), _F32),      # xbuf (current node features)
            pltpu.VMEM((n, HIDDEN_DIM), _F32),      # hoisted GRU gate r (lane-aligned)
            pltpu.VMEM((n, HIDDEN_DIM), _F32),      # hoisted GRU gate z
            pltpu.VMEM((n, HIDDEN_DIM), _F32),      # hoisted GRU gate n
        ],
    )(act, wpack, bpack)


def init_params(key):
    H, L, Din, Dout = HIDDEN_DIM, NUM_LAYERS, INPUT_DIM, OUTPUT_DIM
    keys = iter(jax.random.split(key, 32))

    def w(shape, scale=0.1):
        return jax.random.normal(next(keys), shape, _F32) * scale

    return {
        # linear weights stored as (in, out) so the kernel computes x @ W + b
        "wi": w((Din, H)), "bi": w((1, H)),
        "ww": w((H, H)), "bw": w((1, H)),
        "wv": w((H, H)), "bv": w((1, H)),
        # stacked GRU params, gate order [r, z, n]
        "g_wih": w((L, H, 3 * H)), "g_whh": w((L, H, 3 * H)),
        "g_bih": w((L, 1, 3 * H)), "g_bhh": w((L, 1, 3 * H)),
        # stacked attention params
        "a_wq": w((L, H, H)), "a_bq": w((L, 1, H)),
        "a_wk": w((L, H, H)), "a_bk": w((L, 1, H)),
        "a_wv": w((L, H, H)), "a_bv": w((L, 1, H)),
        # stacked GNN params
        "gnn_w": w((L, H, H)), "gnn_b": w((L, 1, H)),
        # output_proj over [mean ; max] split into the two halves of its weight
        "wo_mean": w((H, Dout)), "wo_max": w((H, Dout)), "bo": w((1, Dout)),
    }


if __name__ == "__main__":
    key = jax.random.PRNGKey(0)
    k_x, k_w, k_p = jax.random.split(key, 3)

    # node features
    x = jax.random.normal(k_x, (N_NODES, INPUT_DIM), _F32)

    # ring graph inside each of the two graphs (undirected -> both directions)
    nodes_per_graph = N_NODES // N_GRAPHS
    src, dst = [], []
    for g in range(N_GRAPHS):
        base = g * nodes_per_graph
        for i in range(nodes_per_graph):
            a = base + i
            b = base + (i + 1) % nodes_per_graph
            src += [a, b]
            dst += [b, a]
    edge_index = jnp.array([src, dst], dtype=jnp.int32)          # (2, E)
    edge_weight = jax.random.uniform(k_w, (edge_index.shape[1],),
                                     minval=0.5, maxval=1.5).astype(_F32)
    batch = jnp.repeat(jnp.arange(N_GRAPHS, dtype=jnp.int32), nodes_per_graph)

    params = init_params(k_p)
    # Packed parameter blobs are built ONCE (hoisted out of the per-call path).
    wpack, bpack = pack_params(params)

    out = word_graph_forward(x, edge_index, edge_weight, batch, wpack, bpack,
                             num_graphs=N_GRAPHS)
    out = jax.block_until_ready(out)
    assert out.shape == (N_GRAPHS, OUTPUT_DIM)
    assert bool(jnp.all(jnp.isfinite(out)))
    print("KERNEL_OK")
</pallas_src>

<mosaic_0001>
module attributes {stable_mosaic.version = 11 : i64} {
  func.func @kernel(%arg0: memref<24x32xf32, #tpu.memory_space<vmem>>, %arg1: memref<680x96xf32, #tpu.memory_space<vmem>>, %arg2: memref<24x96xf32, #tpu.memory_space<vmem>>, %arg3: memref<2x4xf32, #tpu.memory_space<vmem>>, %arg4: memref<16x32xf32, #tpu.memory_space<vmem>>, %arg5: memref<16x32xf32, #tpu.memory_space<vmem>>, %arg6: memref<16x32xf32, #tpu.memory_space<vmem>>, %arg7: memref<16x32xf32, #tpu.memory_space<vmem>>) attributes {dimension_semantics = [], scalar_prefetch = 0 : i64, scratch_operands = 4 : i64, tpu.core_type = #tpu.core_type<tc>} {
    %c0 = arith.constant 0 : index
    %c0_0 = arith.constant 0 : index
    %0 = vector.load %arg0[%c0, %c0_0] : memref<24x32xf32, #tpu.memory_space<vmem>>, vector<16x8xf32>
    %c16 = arith.constant 16 : index
    %c0_1 = arith.constant 0 : index
    %1 = vector.load %arg0[%c16, %c0_1] : memref<24x32xf32, #tpu.memory_space<vmem>>, vector<1x32xf32>
    %c17 = arith.constant 17 : index
    %c0_2 = arith.constant 0 : index
    %2 = vector.load %arg0[%c17, %c0_2] : memref<24x32xf32, #tpu.memory_space<vmem>>, vector<1x32xf32>
    %c18 = arith.constant 18 : index
    %c0_3 = arith.constant 0 : index
    %3 = vector.load %arg0[%c18, %c0_3] : memref<24x32xf32, #tpu.memory_space<vmem>>, vector<1x32xf32>
    %c19 = arith.constant 19 : index
    %c0_4 = arith.constant 0 : index
    %4 = vector.load %arg0[%c19, %c0_4] : memref<24x32xf32, #tpu.memory_space<vmem>>, vector<1x16xf32>
    %5 = tpu.iota {dimensions = array<i32: 0>} : vector<16x32xi32>
    %6 = arith.sitofp %5 : vector<16x32xi32> to vector<16x32xf32>
    %7 = vector.broadcast %1 : vector<1x32xf32> to vector<16x32xf32>
    %8 = arith.cmpf oeq, %6, %7 : vector<16x32xf32>
    %9 = arith.extui %8 : vector<16x32xi1> to vector<16x32xi32>
    %10 = arith.sitofp %9 : vector<16x32xi32> to vector<16x32xf32>
    %11 = vector.broadcast %2 : vector<1x32xf32> to vector<16x32xf32>
    %12 = arith.cmpf oeq, %6, %11 : vector<16x32xf32>
    %13 = arith.extui %12 : vector<16x32xi1> to vector<16x32xi32>
    %14 = arith.sitofp %13 : vector<16x32xi32> to vector<16x32xf32>
    %15 = vector.broadcast %3 : vector<1x32xf32> to vector<16x32xf32>
    %16 = arith.mulf %14, %15 : vector<16x32xf32>
    %cst = arith.constant dense<0.000000e+00> : vector<16x16xf32>
    %17 = tpu.matmul %16, %10, %cst {dimension_numbers = #tpu.dot_dimension_numbers<[1], [1], [0], [0], [0, 0, 1, 0], [], []>} : vector<16x32xf32>, vector<16x32xf32>, vector<16x16xf32> -> vector<16x16xf32>
    %18 = tpu.iota {dimensions = array<i32: 0>} : vector<16x16xi32>
    %19 = tpu.iota {dimensions = array<i32: 1>} : vector<16x16xi32>
    %20 = arith.cmpi eq, %18, %19 : vector<16x16xi32>
    %21 = arith.extui %20 : vector<16x16xi1> to vector<16x16xi32>
    %22 = arith.sitofp %21 : vector<16x16xi32> to vector<16x16xf32>
    %23 = arith.addf %17, %22 : vector<16x16xf32>
    %24 = tpu.iota {dimensions = array<i32: 0>} : vector<2x16xi32>
    %25 = arith.sitofp %24 : vector<2x16xi32> to vector<2x16xf32>
    %26 = vector.broadcast %4 : vector<1x16xf32> to vector<2x16xf32>
    %27 = arith.cmpf oeq, %25, %26 : vector<2x16xf32>
    %28 = arith.extui %27 : vector<2x16xi1> to vector<2x16xi32>
    %29 = arith.sitofp %28 : vector<2x16xi32> to vector<2x16xf32>
    %c0_5 = arith.constant 0 : index
    %c0_6 = arith.constant 0 : index
    %30 = vector.load %arg1[%c0_5, %c0_6] : memref<680x96xf32, #tpu.memory_space<vmem>>, vector<8x32xf32>
    %cst_7 = arith.constant dense<0.000000e+00> : vector<16x32xf32>
    %31 = tpu.matmul %0, %30, %cst_7 {dimension_numbers = #tpu.dot_dimension_numbers<[1], [0], [0], [1], [0, 0, 1, 1], [], []>} : vector<16x8xf32>, vector<8x32xf32>, vector<16x32xf32> -> vector<16x32xf32>
    %c0_8 = arith.constant 0 : index
    %c0_9 = arith.constant 0 : index
    %32 = vector.load %arg2[%c0_8, %c0_9] : memref<24x96xf32, #tpu.memory_space<vmem>>, vector<1x32xf32>
    %33 = vector.broadcast %32 : vector<1x32xf32> to vector<16x32xf32>
    %34 = arith.addf %31, %33 : vector<16x32xf32>
    %c0_10 = arith.constant 0 : index
    %c0_11 = arith.constant 0 : index
    %35 = vector.load %arg4[%c0_10, %c0_11] : memref<16x32xf32, #tpu.memory_space<vmem>>, vector<16x32xf32>
    tpu.vector_store %arg4[%c0_10, %c0_11], %34 {strides = array<i32>} : memref<16x32xf32, #tpu.memory_space<vmem>>, vector<16x32xf32>,
    %c8 = arith.constant 8 : index
    %c0_12 = arith.constant 0 : index
    %36 = vector.load %arg1[%c8, %c0_12] : memref<680x96xf32, #tpu.memory_space<vmem>>, vector<32x64xf32>
    %c1 = arith.constant 1 : index
    %c0_13 = arith.constant 0 : index
    %37 = vector.load %arg2[%c1, %c0_13] : memref<24x96xf32, #tpu.memory_space<vmem>>, vector<1x64xf32>
    %c136 = arith.constant 136 : index
    %c0_14 = arith.constant 0 : index
    %38 = vector.load %arg1[%c136, %c0_14] : memref<680x96xf32, #tpu.memory_space<vmem>>, vector<32x32xf32>
    %c168 = arith.constant 168 : index
    %c0_15 = arith.constant 0 : index
    %39 = vector.load %arg1[%c168, %c0_15] : memref<680x96xf32, #tpu.memory_space<vmem>>, vector<32x32xf32>
    %c200 = arith.constant 200 : index
    %c0_16 = arith.constant 0 : index
    %40 = vector.load %arg1[%c200, %c0_16] : memref<680x96xf32, #tpu.memory_space<vmem>>, vector<32x32xf32>
    %c5 = arith.constant 5 : index
    %c0_17 = arith.constant 0 : index
    %41 = vector.load %arg2[%c5, %c0_17] : memref<24x96xf32, #tpu.memory_space<vmem>>, vector<1x32xf32>
    %c6 = arith.constant 6 : index
    %c0_18 = arith.constant 0 : index
    %42 = vector.load %arg2[%c6, %c0_18] : memref<24x96xf32, #tpu.memory_space<vmem>>, vector<1x32xf32>
    %c7 = arith.constant 7 : index
    %c0_19 = arith.constant 0 : index
    %43 = vector.load %arg2[%c7, %c0_19] : memref<24x96xf32, #tpu.memory_space<vmem>>, vector<1x32xf32>
    %c0_20 = arith.constant 0 : index
    %c0_21 = arith.constant 0 : index
    %44 = vector.load %arg4[%c0_20, %c0_21] : memref<16x32xf32, #tpu.memory_space<vmem>>, vector<16x32xf32>
    %c40 = arith.constant 40 : index
    %c0_22 = arith.constant 0 : index
    %45 = vector.load %arg1[%c40, %c0_22] : memref<680x96xf32, #tpu.memory_space<vmem>>, vector<32x96xf32>
    %cst_23 = arith.constant dense<0.000000e+00> : vector<16x96xf32>
    %46 = tpu.matmul %44, %45, %cst_23 {dimension_numbers = #tpu.dot_dimension_numbers<[1], [0], [0], [1], [0, 0, 1, 1], [], []>} : vector<16x32xf32>, vector<32x96xf32>, vector<16x96xf32> -> vector<16x96xf32>
    %c2 = arith.constant 2 : index
    %c0_24 = arith.constant 0 : index
    %47 = vector.load %arg2[%c2, %c0_24] : memref<24x96xf32, #tpu.memory_space<vmem>>, vector<1x96xf32>
    %48 = vector.broadcast %47 : vector<1x96xf32> to vector<16x96xf32>
    %49 = arith.addf %46, %48 : vector<16x96xf32>
    %50 = vector.extract_strided_slice %49 {offsets = [0, 0], sizes = [16, 32], strides = [1, 1]} : vector<16x96xf32> to vector<16x32xf32>
    %51 = vector.broadcast %41 : vector<1x32xf32> to vector<16x32xf32>
    %52 = arith.addf %50, %51 : vector<16x32xf32>
    %c0_25 = arith.constant 0 : index
    %c0_26 = arith.constant 0 : index
    %53 = vector.load %arg5[%c0_25, %c0_26] : memref<16x32xf32, #tpu.memory_space<vmem>>, vector<16x32xf32>
    tpu.vector_store %arg5[%c0_25, %c0_26], %52 {strides = array<i32>} : memref<16x32xf32, #tpu.memory_space<vmem>>, vector<16x32xf32>,
    %54 = vector.extract_strided_slice %49 {offsets = [0, 32], sizes = [16, 32], strides = [1, 1]} : vector<16x96xf32> to vector<16x32xf32>
    %55 = vector.broadcast %42 : vector<1x32xf32> to vector<16x32xf32>
    %56 = arith.addf %54, %55 : vector<16x32xf32>
    %c0_27 = arith.constant 0 : index
    %c0_28 = arith.constant 0 : index
    %57 = vector.load %arg6[%c0_27, %c0_28] : memref<16x32xf32, #tpu.memory_space<vmem>>, vector<16x32xf32>
    tpu.vector_store %arg6[%c0_27, %c0_28], %56 {strides = array<i32>} : memref<16x32xf32, #tpu.memory_space<vmem>>, vector<16x32xf32>,
    %58 = vector.extract_strided_slice %49 {offsets = [0, 64], sizes = [16, 32], strides = [1, 1]} : vector<16x96xf32> to vector<16x32xf32>
    %c0_29 = arith.constant 0 : index
    %c0_30 = arith.constant 0 : index
    %59 = vector.load %arg7[%c0_29, %c0_30] : memref<16x32xf32, #tpu.memory_space<vmem>>, vector<16x32xf32>
    tpu.vector_store %arg7[%c0_29, %c0_30], %58 {strides = array<i32>} : memref<16x32xf32, #tpu.memory_space<vmem>>, vector<16x32xf32>,
    %cst_31 = arith.constant 0.000000e+00 : f32
    %60 = vector.broadcast %cst_31 : f32 to vector<1x32xf32>
    %c0_32 = arith.constant 0 : index
    %c0_33 = arith.constant 0 : index
    %61 = vector.load %arg5[%c0_32, %c0_33] : memref<16x32xf32, #tpu.memory_space<vmem>>, vector<1x32xf32>
    %cst_34 = arith.constant dense<0.000000e+00> : vector<1x32xf32>
    %62 = tpu.matmul %60, %38, %cst_34 {dimension_numbers = #tpu.dot_dimension_numbers<[1], [0], [0], [1], [0, 0, 1, 1], [], []>} : vector<1x32xf32>, vector<32x32xf32>, vector<1x32xf32> -> vector<1x32xf32>
    %63 = arith.addf %61, %62 : vector<1x32xf32>
    %64 = arith.negf %63 : vector<1x32xf32>
    %65 = math.exp %64 : vector<1x32xf32>
    %cst_35 = arith.constant 1.000000e+00 : f32
    %66 = vector.broadcast %cst_35 : f32 to vector<1x32xf32>
    %67 = arith.addf %66, %65 : vector<1x32xf32>
    %68 = arith.divf %66, %67 : vector<1x32xf32>
    %c0_36 = arith.constant 0 : index
    %c0_37 = arith.constant 0 : index
    %69 = vector.load %arg6[%c0_36, %c0_37] : memref<16x32xf32, #tpu.memory_space<vmem>>, vector<1x32xf32>
    %cst_38 = arith.constant dense<0.000000e+00> : vector<1x32xf32>
    %70 = tpu.matmul %60, %39, %cst_38 {dimension_numbers = #tpu.dot_dimension_numbers<[1], [0], [0], [1], [0, 0, 1, 1], [], []>} : vector<1x32xf32>, vector<32x32xf32>, vector<1x32xf32> -> vector<1x32xf32>
    %71 = arith.addf %69, %70 : vector<1x32xf32>
    %72 = arith.negf %71 : vector<1x32xf32>
    %73 = math.exp %72 : vector<1x32xf32>
    %cst_39 = arith.constant 1.000000e+00 : f32
    %74 = vector.broadcast %cst_39 : f32 to vector<1x32xf32>
    %75 = arith.addf %74, %73 : vector<1x32xf32>
    %76 = arith.divf %74, %75 : vector<1x32xf32>
    %c0_40 = arith.constant 0 : index
    %c0_41 = arith.constant 0 : index
    %77 = vector.load %arg7[%c0_40, %c0_41] : memref<16x32xf32, #tpu.memory_space<vmem>>, vector<1x32xf32>
    %cst_42 = arith.constant dense<0.000000e+00> : vector<1x32xf32>
    %78 = tpu.matmul %60, %40, %cst_42 {dimension_numbers = #tpu.dot_dimension_numbers<[1], [0], [0], [1], [0, 0, 1, 1], [], []>} : vector<1x32xf32>, vector<32x32xf32>, vector<1x32xf32> -> vector<1x32xf32>
    %79 = arith.addf %78, %43 : vector<1x32xf32>
    %80 = arith.mulf %68, %79 : vector<1x32xf32>
    %81 = arith.addf %77, %80 : vector<1x32xf32>
    %82 = math.tanh %81 : vector<1x32xf32>
    %83 = arith.subf %60, %82 : vector<1x32xf32>
    %84 = arith.mulf %76, %83 : vector<1x32xf32>
    %85 = arith.addf %82, %84 : vector<1x32xf32>
    %c0_43 = arith.constant 0 : index
    %c0_44 = arith.constant 0 : index
    %86 = vector.load %arg4[%c0_43, %c0_44] : memref<16x32xf32, #tpu.memory_space<vmem>>, vector<1x32xf32>
    tpu.vector_store %arg4[%c0_43, %c0_44], %85 {strides = array<i32>} : memref<16x32xf32, #tpu.memory_space<vmem>>, vector<1x32xf32>,
    %c1_45 = arith.constant 1 : index
    %c0_46 = arith.constant 0 : index
    %87 = vector.load %arg5[%c1_45, %c0_46] : memref<16x32xf32, #tpu.memory_space<vmem>>, vector<1x32xf32>
    %cst_47 = arith.constant dense<0.000000e+00> : vector<1x32xf32>
    %88 = tpu.matmul %85, %38, %cst_47 {dimension_numbers = #tpu.dot_dimension_numbers<[1], [0], [0], [1], [0, 0, 1, 1], [], []>} : vector<1x32xf32>, vector<32x32xf32>, vector<1x32xf32> -> vector<1x32xf32>
    %89 = arith.addf %87, %88 : vector<1x32xf32>
    %90 = arith.negf %89 : vector<1x32xf32>
    %91 = math.exp %90 : vector<1x32xf32>
    %cst_48 = arith.constant 1.000000e+00 : f32
    %92 = vector.broadcast %cst_48 : f32 to vector<1x32xf32>
    %93 = arith.addf %92, %91 : vector<1x32xf32>
    %94 = arith.divf %92, %93 : vector<1x32xf32>
    %c1_49 = arith.constant 1 : index
    %c0_50 = arith.constant 0 : index
    %95 = vector.load %arg6[%c1_49, %c0_50] : memref<16x32xf32, #tpu.memory_space<vmem>>, vector<1x32xf32>
    %cst_51 = arith.constant dense<0.000000e+00> : vector<1x32xf32>
    %96 = tpu.matmul %85, %39, %cst_51 {dimension_numbers = #tpu.dot_dimension_numbers<[1], [0], [0], [1], [0, 0, 1, 1], [], []>} : vector<1x32xf32>, vector<32x32xf32>, vector<1x32xf32> -> vector<1x32xf32>
    %97 = arith.addf %95, %96 : vector<1x32xf32>
    %98 = arith.negf %97 : vector<1x32xf32>
    %99 = math.exp %98 : vector<1x32xf32>
    %cst_52 = arith.constant 1.000000e+00 : f32
    %100 = vector.broadcast %cst_52 : f32 to vector<1x32xf32>
    %101 = arith.addf %100, %99 : vector<1x32xf32>
    %102 = arith.divf %100, %101 : vector<1x32xf32>
    %c1_53 = arith.constant 1 : index
    %c0_54 = arith.constant 0 : index
    %103 = vector.load %arg7[%c1_53, %c0_54] : memref<16x32xf32, #tpu.memory_space<vmem>>, vector<1x32xf32>
    %cst_55 = arith.constant dense<0.000000e+00> : vector<1x32xf32>
    %104 = tpu.matmul %85, %40, %cst_55 {dimension_numbers = #tpu.dot_dimension_numbers<[1], [0], [0], [1], [0, 0, 1, 1], [], []>} : vector<1x32xf32>, vector<32x32xf32>, vector<1x32xf32> -> vector<1x32xf32>
    %105 = arith.addf %104, %43 : vector<1x32xf32>
    %106 = arith.mulf %94, %105 : vector<1x32xf32>
    %107 = arith.addf %103, %106 : vector<1x32xf32>
    %108 = math.tanh %107 : vector<1x32xf32>
    %109 = arith.subf %85, %108 : vector<1x32xf32>
    %110 = arith.mulf %102, %109 : vector<1x32xf32>
    %111 = arith.addf %108, %110 : vector<1x32xf32>
    %c1_56 = arith.constant 1 : index
    %c0_57 = arith.constant 0 : index
    %112 = vector.load %arg4[%c1_56, %c0_57] : memref<16x32xf32, #tpu.memory_space<vmem>>, vector<1x32xf32>
    tpu.vector_store %arg4[%c1_56, %c0_57], %111 {strides = array<i32>} : memref<16x32xf32, #tpu.memory_space<vmem>>, vector<1x32xf32>,
    %c2_58 = arith.constant 2 : index
    %c0_59 = arith.constant 0 : index
    %113 = vector.load %arg5[%c2_58, %c0_59] : memref<16x32xf32, #tpu.memory_space<vmem>>, vector<1x32xf32>
    %cst_60 = arith.constant dense<0.000000e+00> : vector<1x32xf32>
    %114 = tpu.matmul %111, %38, %cst_60 {dimension_numbers = #tpu.dot_dimension_numbers<[1], [0], [0], [1], [0, 0, 1, 1], [], []>} : vector<1x32xf32>, vector<32x32xf32>, vector<1x32xf32> -> vector<1x32xf32>
    %115 = arith.addf %113, %114 : vector<1x32xf32>
    %116 = arith.negf %115 : vector<1x32xf32>
    %117 = math.exp %116 : vector<1x32xf32>
    %cst_61 = arith.constant 1.000000e+00 : f32
    %118 = vector.broadcast %cst_61 : f32 to vector<1x32xf32>
    %119 = arith.addf %118, %117 : vector<1x32xf32>
    %120 = arith.divf %118, %119 : vector<1x32xf32>
    %c2_62 = arith.constant 2 : index
    %c0_63 = arith.constant 0 : index
    %121 = vector.load %arg6[%c2_62, %c0_63] : memref<16x32xf32, #tpu.memory_space<vmem>>, vector<1x32xf32>
    %cst_64 = arith.constant dense<0.000000e+00> : vector<1x32xf32>
    %122 = tpu.matmul %111, %39, %cst_64 {dimension_numbers = #tpu.dot_dimension_numbers<[1], [0], [0], [1], [0, 0, 1, 1], [], []>} : vector<1x32xf32>, vector<32x32xf32>, vector<1x32xf32> -> vector<1x32xf32>
    %123 = arith.addf %121, %122 : vector<1x32xf32>
    %124 = arith.negf %123 : vector<1x32xf32>
    %125 = math.exp %124 : vector<1x32xf32>
    %cst_65 = arith.constant 1.000000e+00 : f32
    %126 = vector.broadcast %cst_65 : f32 to vector<1x32xf32>
    %127 = arith.addf %126, %125 : vector<1x32xf32>
    %128 = arith.divf %126, %127 : vector<1x32xf32>
    %c2_66 = arith.constant 2 : index
    %c0_67 = arith.constant 0 : index
    %129 = vector.load %arg7[%c2_66, %c0_67] : memref<16x32xf32, #tpu.memory_space<vmem>>, vector<1x32xf32>
    %cst_68 = arith.constant dense<0.000000e+00> : vector<1x32xf32>
    %130 = tpu.matmul %111, %40, %cst_68 {dimension_numbers = #tpu.dot_dimension_numbers<[1], [0], [0], [1], [0, 0, 1, 1], [], []>} : vector<1x32xf32>, vector<32x32xf32>, vector<1x32xf32> -> vector<1x32xf32>
    %131 = arith.addf %130, %43 : vector<1x32xf32>
    %132 = arith.mulf %120, %131 : vector<1x32xf32>
    %133 = arith.addf %129, %132 : vector<1x32xf32>
    %134 = math.tanh %133 : vector<1x32xf32>
    %135 = arith.subf %111, %134 : vector<1x32xf32>
    %136 = arith.mulf %128, %135 : vector<1x32xf32>
    %137 = arith.addf %134, %136 : vector<1x32xf32>
    %c2_69 = arith.constant 2 : index
    %c0_70 = arith.constant 0 : index
    %138 = vector.load %arg4[%c2_69, %c0_70] : memref<16x32xf32, #tpu.memory_space<vmem>>, vector<1x32xf32>
    tpu.vector_store %arg4[%c2_69, %c0_70], %137 {strides = array<i32>} : memref<16x32xf32, #tpu.memory_space<vmem>>, vector<1x32xf32>,
    %c3 = arith.constant 3 : index
    %c0_71 = arith.constant 0 : index
    %139 = vector.load %arg5[%c3, %c0_71] : memref<16x32xf32, #tpu.memory_space<vmem>>, vector<1x32xf32>
    %cst_72 = arith.constant dense<0.000000e+00> : vector<1x32xf32>
    %140 = tpu.matmul %137, %38, %cst_72 {dimension_numbers = #tpu.dot_dimension_numbers<[1], [0], [0], [1], [0, 0, 1, 1], [], []>} : vector<1x32xf32>, vector<32x32xf32>, vector<1x32xf32> -> vector<1x32xf32>
    %141 = arith.addf %139, %140 : vector<1x32xf32>
    %142 = arith.negf %141 : vector<1x32xf32>
    %143 = math.exp %142 : vector<1x32xf32>
    %cst_73 = arith.constant 1.000000e+00 : f32
    %144 = vector.broadcast %cst_73 : f32 to vector<1x32xf32>
    %145 = arith.addf %144, %143 : vector<1x32xf32>
    %146 = arith.divf %144, %145 : vector<1x32xf32>
    %c3_74 = arith.constant 3 : index
    %c0_75 = arith.constant 0 : index
    %147 = vector.load %arg6[%c3_74, %c0_75] : memref<16x32xf32, #tpu.memory_space<vmem>>, vector<1x32xf32>
    %cst_76 = arith.constant dense<0.000000e+00> : vector<1x32xf32>
    %148 = tpu.matmul %137, %39, %cst_76 {dimension_numbers = #tpu.dot_dimension_numbers<[1], [0], [0], [1], [0, 0, 1, 1], [], []>} : vector<1x32xf32>, vector<32x32xf32>, vector<1x32xf32> -> vector<1x32xf32>
    %149 = arith.addf %147, %148 : vector<1x32xf32>
    %150 = arith.negf %149 : vector<1x32xf32>
    %151 = math.exp %150 : vector<1x32xf32>
    %cst_77 = arith.constant 1.000000e+00 : f32
    %152 = vector.broadcast %cst_77 : f32 to vector<1x32xf32>
    %153 = arith.addf %152, %151 : vector<1x32xf32>
    %154 = arith.divf %152, %153 : vector<1x32xf32>
    %c3_78 = arith.constant 3 : index
    %c0_79 = arith.constant 0 : index
    %155 = vector.load %arg7[%c3_78, %c0_79] : memref<16x32xf32, #tpu.memory_space<vmem>>, vector<1x32xf32>
    %cst_80 = arith.constant dense<0.000000e+00> : vector<1x32xf32>
    %156 = tpu.matmul %137, %40, %cst_80 {dimension_numbers = #tpu.dot_dimension_numbers<[1], [0], [0], [1], [0, 0, 1, 1], [], []>} : vector<1x32xf32>, vector<32x32xf32>, vector<1x32xf32> -> vector<1x32xf32>
    %157 = arith.addf %156, %43 : vector<1x32xf32>
    %158 = arith.mulf %146, %157 : vector<1x32xf32>
    %159 = arith.addf %155, %158 : vector<1x32xf32>
    %160 = math.tanh %159 : vector<1x32xf32>
    %161 = arith.subf %137, %160 : vector<1x32xf32>
    %162 = arith.mulf %154, %161 : vector<1x32xf32>
    %163 = arith.addf %160, %162 : vector<1x32xf32>
    %c3_81 = arith.constant 3 : index
    %c0_82 = arith.constant 0 : index
    %164 = vector.load %arg4[%c3_81, %c0_82] : memref<16x32xf32, #tpu.memory_space<vmem>>, vector<1x32xf32>
    tpu.vector_store %arg4[%c3_81, %c0_82], %163 {strides = array<i32>} : memref<16x32xf32, #tpu.memory_space<vmem>>, vector<1x32xf32>,
    %c4 = arith.constant 4 : index
    %c0_83 = arith.constant 0 : index
    %165 = vector.load %arg5[%c4, %c0_83] : memref<16x32xf32, #tpu.memory_space<vmem>>, vector<1x32xf32>
    %cst_84 = arith.constant dense<0.000000e+00> : vector<1x32xf32>
    %166 = tpu.matmul %163, %38, %cst_84 {dimension_numbers = #tpu.dot_dimension_numbers<[1], [0], [0], [1], [0, 0, 1, 1], [], []>} : vector<1x32xf32>, vector<32x32xf32>, vector<1x32xf32> -> vector<1x32xf32>
    %167 = arith.addf %165, %166 : vector<1x32xf32>
    %168 = arith.negf %167 : vector<1x32xf32>
    %169 = math.exp %168 : vector<1x32xf32>
    %cst_85 = arith.constant 1.000000e+00 : f32
    %170 = vector.broadcast %cst_85 : f32 to vector<1x32xf32>
    %171 = arith.addf %170, %169 : vector<1x32xf32>
    %172 = arith.divf %170, %171 : vector<1x32xf32>
    %c4_86 = arith.constant 4 : index
    %c0_87 = arith.constant 0 : index
    %173 = vector.load %arg6[%c4_86, %c0_87] : memref<16x32xf32, #tpu.memory_space<vmem>>, vector<1x32xf32>
    %cst_88 = arith.constant dense<0.000000e+00> : vector<1x32xf32>
    %174 = tpu.matmul %163, %39, %cst_88 {dimension_numbers = #tpu.dot_dimension_numbers<[1], [0], [0], [1], [0, 0, 1, 1], [], []>} : vector<1x32xf32>, vector<32x32xf32>, vector<1x32xf32> -> vector<1x32xf32>
    %175 = arith.addf %173, %174 : vector<1x32xf32>
    %176 = arith.negf %175 : vector<1x32xf32>
    %177 = math.exp %176 : vector<1x32xf32>
    %cst_89 = arith.constant 1.000000e+00 : f32
    %178 = vector.broadcast %cst_89 : f32 to vector<1x32xf32>
    %179 = arith.addf %178, %177 : vector<1x32xf32>
    %180 = arith.divf %178, %179 : vector<1x32xf32>
    %c4_90 = arith.constant 4 : index
    %c0_91 = arith.constant 0 : index
    %181 = vector.load %arg7[%c4_90, %c0_91] : memref<16x32xf32, #tpu.memory_space<vmem>>, vector<1x32xf32>
    %cst_92 = arith.constant dense<0.000000e+00> : vector<1x32xf32>
    %182 = tpu.matmul %163, %40, %cst_92 {dimension_numbers = #tpu.dot_dimension_numbers<[1], [0], [0], [1], [0, 0, 1, 1], [], []>} : vector<1x32xf32>, vector<32x32xf32>, vector<1x32xf32> -> vector<1x32xf32>
    %183 = arith.addf %182, %43 : vector<1x32xf32>
    %184 = arith.mulf %172, %183 : vector<1x32xf32>
    %185 = arith.addf %181, %184 : vector<1x32xf32>
    %186 = math.tanh %185 : vector<1x32xf32>
    %187 = arith.subf %163, %186 : vector<1x32xf32>
    %188 = arith.mulf %180, %187 : vector<1x32xf32>
    %189 = arith.addf %186, %188 : vector<1x32xf32>
    %c4_93 = arith.constant 4 : index
    %c0_94 = arith.constant 0 : index
    %190 = vector.load %arg4[%c4_93, %c0_94] : memref<16x32xf32, #tpu.memory_space<vmem>>, vector<1x32xf32>
    tpu.vector_store %arg4[%c4_93, %c0_94], %189 {strides = array<i32>} : memref<16x32xf32, #tpu.memory_space<vmem>>, vector<1x32xf32>,
    %c5_95 = arith.constant 5 : index
    %c0_96 = arith.constant 0 : index
    %191 = vector.load %arg5[%c5_95, %c0_96] : memref<16x32xf32, #tpu.memory_space<vmem>>, vector<1x32xf32>
    %cst_97 = arith.constant dense<0.000000e+00> : vector<1x32xf32>
    %192 = tpu.matmul %189, %38, %cst_97 {dimension_numbers = #tpu.dot_dimension_numbers<[1], [0], [0], [1], [0, 0, 1, 1], [], []>} : vector<1x32xf32>, vector<32x32xf32>, vector<1x32xf32> -> vector<1x32xf32>
    %193 = arith.addf %191, %192 : vector<1x32xf32>
    %194 = arith.negf %193 : vector<1x32xf32>
    %195 = math.exp %194 : vector<1x32xf32>
    %cst_98 = arith.constant 1.000000e+00 : f32
    %196 = vector.broadcast %cst_98 : f32 to vector<1x32xf32>
    %197 = arith.addf %196, %195 : vector<1x32xf32>
    %198 = arith.divf %196, %197 : vector<1x32xf32>
    %c5_99 = arith.constant 5 : index
    %c0_100 = arith.constant 0 : index
    %199 = vector.load %arg6[%c5_99, %c0_100] : memref<16x32xf32, #tpu.memory_space<vmem>>, vector<1x32xf32>
    %cst_101 = arith.constant dense<0.000000e+00> : vector<1x32xf32>
    %200 = tpu.matmul %189, %39, %cst_101 {dimension_numbers = #tpu.dot_dimension_numbers<[1], [0], [0], [1], [0, 0, 1, 1], [], []>} : vector<1x32xf32>, vector<32x32xf32>, vector<1x32xf32> -> vector<1x32xf32>
    %201 = arith.addf %199, %200 : vector<1x32xf32>
    %202 = arith.negf %201 : vector<1x32xf32>
    %203 = math.exp %202 : vector<1x32xf32>
    %cst_102 = arith.constant 1.000000e+00 : f32
    %204 = vector.broadcast %cst_102 : f32 to vector<1x32xf32>
    %205 = arith.addf %204, %203 : vector<1x32xf32>
    %206 = arith.divf %204, %205 : vector<1x32xf32>
    %c5_103 = arith.constant 5 : index
    %c0_104 = arith.constant 0 : index
    %207 = vector.load %arg7[%c5_103, %c0_104] : memref<16x32xf32, #tpu.memory_space<vmem>>, vector<1x32xf32>
    %cst_105 = arith.constant dense<0.000000e+00> : vector<1x32xf32>
    %208 = tpu.matmul %189, %40, %cst_105 {dimension_numbers = #tpu.dot_dimension_numbers<[1], [0], [0], [1], [0, 0, 1, 1], [], []>} : vector<1x32xf32>, vector<32x32xf32>, vector<1x32xf32> -> vector<1x32xf32>
    %209 = arith.addf %208, %43 : vector<1x32xf32>
    %210 = arith.mulf %198, %209 : vector<1x32xf32>
    %211 = arith.addf %207, %210 : vector<1x32xf32>
    %212 = math.tanh %211 : vector<1x32xf32>
    %213 = arith.subf %189, %212 : vector<1x32xf32>
    %214 = arith.mulf %206, %213 : vector<1x32xf32>
    %215 = arith.addf %212, %214 : vector<1x32xf32>
    %c5_106 = arith.constant 5 : index
    %c0_107 = arith.constant 0 : index
    %216 = vector.load %arg4[%c5_106, %c0_107] : memref<16x32xf32, #tpu.memory_space<vmem>>, vector<1x32xf32>
    tpu.vector_store %arg4[%c5_106, %c0_107], %215 {strides = array<i32>} : memref<16x32xf32, #tpu.memory_space<vmem>>, vector<1x32xf32>,
    %c6_108 = arith.constant 6 : index
    %c0_109 = arith.constant 0 : index
    %217 = vector.load %arg5[%c6_108, %c0_109] : memref<16x32xf32, #tpu.memory_space<vmem>>, vector<1x32xf32>
    %cst_110 = arith.constant dense<0.000000e+00> : vector<1x32xf32>
    %218 = tpu.matmul %215, %38, %cst_110 {dimension_numbers = #tpu.dot_dimension_numbers<[1], [0], [0], [1], [0, 0, 1, 1], [], []>} : vector<1x32xf32>, vector<32x32xf32>, vector<1x32xf32> -> vector<1x32xf32>
    %219 = arith.addf %217, %218 : vector<1x32xf32>
    %220 = arith.negf %219 : vector<1x32xf32>
    %221 = math.exp %220 : vector<1x32xf32>
    %cst_111 = arith.constant 1.000000e+00 : f32
    %222 = vector.broadcast %cst_111 : f32 to vector<1x32xf32>
    %223 = arith.addf %222, %221 : vector<1x32xf32>
    %224 = arith.divf %222, %223 : vector<1x32xf32>
    %c6_112 = arith.constant 6 : index
    %c0_113 = arith.constant 0 : index
    %225 = vector.load %arg6[%c6_112, %c0_113] : memref<16x32xf32, #tpu.memory_space<vmem>>, vector<1x32xf32>
    %cst_114 = arith.constant dense<0.000000e+00> : vector<1x32xf32>
    %226 = tpu.matmul %215, %39, %cst_114 {dimension_numbers = #tpu.dot_dimension_numbers<[1], [0], [0], [1], [0, 0, 1, 1], [], []>} : vector<1x32xf32>, vector<32x32xf32>, vector<1x32xf32> -> vector<1x32xf32>
    %227 = arith.addf %225, %226 : vector<1x32xf32>
    %228 = arith.negf %227 : vector<1x32xf32>
    %229 = math.exp %228 : vector<1x32xf32>
    %cst_115 = arith.constant 1.000000e+00 : f32
    %230 = vector.broadcast %cst_115 : f32 to vector<1x32xf32>
    %231 = arith.addf %230, %229 : vector<1x32xf32>
    %232 = arith.divf %230, %231 : vector<1x32xf32>
    %c6_116 = arith.constant 6 : index
    %c0_117 = arith.constant 0 : index
    %233 = vector.load %arg7[%c6_116, %c0_117] : memref<16x32xf32, #tpu.memory_space<vmem>>, vector<1x32xf32>
    %cst_118 = arith.constant dense<0.000000e+00> : vector<1x32xf32>
    %234 = tpu.matmul %215, %40, %cst_118 {dimension_numbers = #tpu.dot_dimension_numbers<[1], [0], [0], [1], [0, 0, 1, 1], [], []>} : vector<1x32xf32>, vector<32x32xf32>, vector<1x32xf32> -> vector<1x32xf32>
    %235 = arith.addf %234, %43 : vector<1x32xf32>
    %236 = arith.mulf %224, %235 : vector<1x32xf32>
    %237 = arith.addf %233, %236 : vector<1x32xf32>
    %238 = math.tanh %237 : vector<1x32xf32>
    %239 = arith.subf %215, %238 : vector<1x32xf32>
    %240 = arith.mulf %232, %239 : vector<1x32xf32>
    %241 = arith.addf %238, %240 : vector<1x32xf32>
    %c6_119 = arith.constant 6 : index
    %c0_120 = arith.constant 0 : index
    %242 = vector.load %arg4[%c6_119, %c0_120] : memref<16x32xf32, #tpu.memory_space<vmem>>, vector<1x32xf32>
    tpu.vector_store %arg4[%c6_119, %c0_120], %241 {strides = array<i32>} : memref<16x32xf32, #tpu.memory_space<vmem>>, vector<1x32xf32>,
    %c7_121 = arith.constant 7 : index
    %c0_122 = arith.constant 0 : index
    %243 = vector.load %arg5[%c7_121, %c0_122] : memref<16x32xf32, #tpu.memory_space<vmem>>, vector<1x32xf32>
    %cst_123 = arith.constant dense<0.000000e+00> : vector<1x32xf32>
    %244 = tpu.matmul %241, %38, %cst_123 {dimension_numbers = #tpu.dot_dimension_numbers<[1], [0], [0], [1], [0, 0, 1, 1], [], []>} : vector<1x32xf32>, vector<32x32xf32>, vector<1x32xf32> -> vector<1x32xf32>
    %245 = arith.addf %243, %244 : vector<1x32xf32>
    %246 = arith.negf %245 : vector<1x32xf32>
    %247 = math.exp %246 : vector<1x32xf32>
    %cst_124 = arith.constant 1.000000e+00 : f32
    %248 = vector.broadcast %cst_124 : f32 to vector<1x32xf32>
    %249 = arith.addf %248, %247 : vector<1x32xf32>
    %250 = arith.divf %248, %249 : vector<1x32xf32>
    %c7_125 = arith.constant 7 : index
    %c0_126 = arith.constant 0 : index
    %251 = vector.load %arg6[%c7_125, %c0_126] : memref<16x32xf32, #tpu.memory_space<vmem>>, vector<1x32xf32>
    %cst_127 = arith.constant dense<0.000000e+00> : vector<1x32xf32>
    %252 = tpu.matmul %241, %39, %cst_127 {dimension_numbers = #tpu.dot_dimension_numbers<[1], [0], [0], [1], [0, 0, 1, 1], [], []>} : vector<1x32xf32>, vector<32x32xf32>, vector<1x32xf32> -> vector<1x32xf32>
    %253 = arith.addf %251, %252 : vector<1x32xf32>
    %254 = arith.negf %253 : vector<1x32xf32>
    %255 = math.exp %254 : vector<1x32xf32>
    %cst_128 = arith.constant 1.000000e+00 : f32
    %256 = vector.broadcast %cst_128 : f32 to vector<1x32xf32>
    %257 = arith.addf %256, %255 : vector<1x32xf32>
    %258 = arith.divf %256, %257 : vector<1x32xf32>
    %c7_129 = arith.constant 7 : index
    %c0_130 = arith.constant 0 : index
    %259 = vector.load %arg7[%c7_129, %c0_130] : memref<16x32xf32, #tpu.memory_space<vmem>>, vector<1x32xf32>
    %cst_131 = arith.constant dense<0.000000e+00> : vector<1x32xf32>
    %260 = tpu.matmul %241, %40, %cst_131 {dimension_numbers = #tpu.dot_dimension_numbers<[1], [0], [0], [1], [0, 0, 1, 1], [], []>} : vector<1x32xf32>, vector<32x32xf32>, vector<1x32xf32> -> vector<1x32xf32>
    %261 = arith.addf %260, %43 : vector<1x32xf32>
    %262 = arith.mulf %250, %261 : vector<1x32xf32>
    %263 = arith.addf %259, %262 : vector<1x32xf32>
    %264 = math.tanh %263 : vector<1x32xf32>
    %265 = arith.subf %241, %264 : vector<1x32xf32>
    %266 = arith.mulf %258, %265 : vector<1x32xf32>
    %267 = arith.addf %264, %266 : vector<1x32xf32>
    %c7_132 = arith.constant 7 : index
    %c0_133 = arith.constant 0 : index
    %268 = vector.load %arg4[%c7_132, %c0_133] : memref<16x32xf32, #tpu.memory_space<vmem>>, vector<1x32xf32>
    tpu.vector_store %arg4[%c7_132, %c0_133], %267 {strides = array<i32>} : memref<16x32xf32, #tpu.memory_space<vmem>>, vector<1x32xf32>,
    %c8_134 = arith.constant 8 : index
    %c0_135 = arith.constant 0 : index
    %269 = vector.load %arg5[%c8_134, %c0_135] : memref<16x32xf32, #tpu.memory_space<vmem>>, vector<1x32xf32>
    %cst_136 = arith.constant dense<0.000000e+00> : vector<1x32xf32>
    %270 = tpu.matmul %267, %38, %cst_136 {dimension_numbers = #tpu.dot_dimension_numbers<[1], [0], [0], [1], [0, 0, 1, 1], [], []>} : vector<1x32xf32>, vector<32x32xf32>, vector<1x32xf32> -> vector<1x32xf32>
    %271 = arith.addf %269, %270 : vector<1x32xf32>
    %272 = arith.negf %271 : vector<1x32xf32>
    %273 = math.exp %272 : vector<1x32xf32>
    %cst_137 = arith.constant 1.000000e+00 : f32
    %274 = vector.broadcast %cst_137 : f32 to vector<1x32xf32>
    %275 = arith.addf %274, %273 : vector<1x32xf32>
    %276 = arith.divf %274, %275 : vector<1x32xf32>
    %c8_138 = arith.constant 8 : index
    %c0_139 = arith.constant 0 : index
    %277 = vector.load %arg6[%c8_138, %c0_139] : memref<16x32xf32, #tpu.memory_space<vmem>>, vector<1x32xf32>
    %cst_140 = arith.constant dense<0.000000e+00> : vector<1x32xf32>
    %278 = tpu.matmul %267, %39, %cst_140 {dimension_numbers = #tpu.dot_dimension_numbers<[1], [0], [0], [1], [0, 0, 1, 1], [], []>} : vector<1x32xf32>, vector<32x32xf32>, vector<1x32xf32> -> vector<1x32xf32>
    %279 = arith.addf %277, %278 : vector<1x32xf32>
    %280 = arith.negf %279 : vector<1x32xf32>
    %281 = math.exp %280 : vector<1x32xf32>
    %cst_141 = arith.constant 1.000000e+00 : f32
    %282 = vector.broadcast %cst_141 : f32 to vector<1x32xf32>
    %283 = arith.addf %282, %281 : vector<1x32xf32>
    %284 = arith.divf %282, %283 : vector<1x32xf32>
    %c8_142 = arith.constant 8 : index
    %c0_143 = arith.constant 0 : index
    %285 = vector.load %arg7[%c8_142, %c0_143] : memref<16x32xf32, #tpu.memory_space<vmem>>, vector<1x32xf32>
    %cst_144 = arith.constant dense<0.000000e+00> : vector<1x32xf32>
    %286 = tpu.matmul %267, %40, %cst_144 {dimension_numbers = #tpu.dot_dimension_numbers<[1], [0], [0], [1], [0, 0, 1, 1], [], []>} : vector<1x32xf32>, vector<32x32xf32>, vector<1x32xf32> -> vector<1x32xf32>
    %287 = arith.addf %286, %43 : vector<1x32xf32>
    %288 = arith.mulf %276, %287 : vector<1x32xf32>
    %289 = arith.addf %285, %288 : vector<1x32xf32>
    %290 = math.tanh %289 : vector<1x32xf32>
    %291 = arith.subf %267, %290 : vector<1x32xf32>
    %292 = arith.mulf %284, %291 : vector<1x32xf32>
    %293 = arith.addf %290, %292 : vector<1x32xf32>
    %c8_145 = arith.constant 8 : index
    %c0_146 = arith.constant 0 : index
    %294 = vector.load %arg4[%c8_145, %c0_146] : memref<16x32xf32, #tpu.memory_space<vmem>>, vector<1x32xf32>
    tpu.vector_store %arg4[%c8_145, %c0_146], %293 {strides = array<i32>} : memref<16x32xf32, #tpu.memory_space<vmem>>, vector<1x32xf32>,
    %c9 = arith.constant 9 : index
    %c0_147 = arith.constant 0 : index
    %295 = vector.load %arg5[%c9, %c0_147] : memref<16x32xf32, #tpu.memory_space<vmem>>, vector<1x32xf32>
    %cst_148 = arith.constant dense<0.000000e+00> : vector<1x32xf32>
    %296 = tpu.matmul %293, %38, %cst_148 {dimension_numbers = #tpu.dot_dimension_numbers<[1], [0], [0], [1], [0, 0, 1, 1], [], []>} : vector<1x32xf32>, vector<32x32xf32>, vector<1x32xf32> -> vector<1x32xf32>
    %297 = arith.addf %295, %296 : vector<1x32xf32>
    %298 = arith.negf %297 : vector<1x32xf32>
    %299 = math.exp %298 : vector<1x32xf32>
    %cst_149 = arith.constant 1.000000e+00 : f32
    %300 = vector.broadcast %cst_149 : f32 to vector<1x32xf32>
    %301 = arith.addf %300, %299 : vector<1x32xf32>
    %302 = arith.divf %300, %301 : vector<1x32xf32>
    %c9_150 = arith.constant 9 : index
    %c0_151 = arith.constant 0 : index
    %303 = vector.load %arg6[%c9_150, %c0_151] : memref<16x32xf32, #tpu.memory_space<vmem>>, vector<1x32xf32>
    %cst_152 = arith.constant dense<0.000000e+00> : vector<1x32xf32>
    %304 = tpu.matmul %293, %39, %cst_152 {dimension_numbers = #tpu.dot_dimension_numbers<[1], [0], [0], [1], [0, 0, 1, 1], [], []>} : vector<1x32xf32>, vector<32x32xf32>, vector<1x32xf32> -> vector<1x32xf32>
    %305 = arith.addf %303, %304 : vector<1x32xf32>
    %306 = arith.negf %305 : vector<1x32xf32>
    %307 = math.exp %306 : vector<1x32xf32>
    %cst_153 = arith.constant 1.000000e+00 : f32
    %308 = vector.broadcast %cst_153 : f32 to vector<1x32xf32>
    %309 = arith.addf %308, %307 : vector<1x32xf32>
    %310 = arith.divf %308, %309 : vector<1x32xf32>
    %c9_154 = arith.constant 9 : index
    %c0_155 = arith.constant 0 : index
    %311 = vector.load %arg7[%c9_154, %c0_155] : memref<16x32xf32, #tpu.memory_space<vmem>>, vector<1x32xf32>
    %cst_156 = arith.constant dense<0.000000e+00> : vector<1x32xf32>
    %312 = tpu.matmul %293, %40, %cst_156 {dimension_numbers = #tpu.dot_dimension_numbers<[1], [0], [0], [1], [0, 0, 1, 1], [], []>} : vector<1x32xf32>, vector<32x32xf32>, vector<1x32xf32> -> vector<1x32xf32>
    %313 = arith.addf %312, %43 : vector<1x32xf32>
    %314 = arith.mulf %302, %313 : vector<1x32xf32>
    %315 = arith.addf %311, %314 : vector<1x32xf32>
    %316 = math.tanh %315 : vector<1x32xf32>
    %317 = arith.subf %293, %316 : vector<1x32xf32>
    %318 = arith.mulf %310, %317 : vector<1x32xf32>
    %319 = arith.addf %316, %318 : vector<1x32xf32>
    %c9_157 = arith.constant 9 : index
    %c0_158 = arith.constant 0 : index
    %320 = vector.load %arg4[%c9_157, %c0_158] : memref<16x32xf32, #tpu.memory_space<vmem>>, vector<1x32xf32>
    tpu.vector_store %arg4[%c9_157, %c0_158], %319 {strides = array<i32>} : memref<16x32xf32, #tpu.memory_space<vmem>>, vector<1x32xf32>,
    %c10 = arith.constant 10 : index
    %c0_159 = arith.constant 0 : index
    %321 = vector.load %arg5[%c10, %c0_159] : memref<16x32xf32, #tpu.memory_space<vmem>>, vector<1x32xf32>
    %cst_160 = arith.constant dense<0.000000e+00> : vector<1x32xf32>
    %322 = tpu.matmul %319, %38, %cst_160 {dimension_numbers = #tpu.dot_dimension_numbers<[1], [0], [0], [1], [0, 0, 1, 1], [], []>} : vector<1x32xf32>, vector<32x32xf32>, vector<1x32xf32> -> vector<1x32xf32>
    %323 = arith.addf %321, %322 : vector<1x32xf32>
    %324 = arith.negf %323 : vector<1x32xf32>
    %325 = math.exp %324 : vector<1x32xf32>
    %cst_161 = arith.constant 1.000000e+00 : f32
    %326 = vector.broadcast %cst_161 : f32 to vector<1x32xf32>
    %327 = arith.addf %326, %325 : vector<1x32xf32>
    %328 = arith.divf %326, %327 : vector<1x32xf32>
    %c10_162 = arith.constant 10 : index
    %c0_163 = arith.constant 0 : index
    %329 = vector.load %arg6[%c10_162, %c0_163] : memref<16x32xf32, #tpu.memory_space<vmem>>, vector<1x32xf32>
    %cst_164 = arith.constant dense<0.000000e+00> : vector<1x32xf32>
    %330 = tpu.matmul %319, %39, %cst_164 {dimension_numbers = #tpu.dot_dimension_numbers<[1], [0], [0], [1], [0, 0, 1, 1], [], []>} : vector<1x32xf32>, vector<32x32xf32>, vector<1x32xf32> -> vector<1x32xf32>
    %331 = arith.addf %329, %330 : vector<1x32xf32>
    %332 = arith.negf %331 : vector<1x32xf32>
    %333 = math.exp %332 : vector<1x32xf32>
    %cst_165 = arith.constant 1.000000e+00 : f32
    %334 = vector.broadcast %cst_165 : f32 to vector<1x32xf32>
    %335 = arith.addf %334, %333 : vector<1x32xf32>
    %336 = arith.divf %334, %335 : vector<1x32xf32>
    %c10_166 = arith.constant 10 : index
    %c0_167 = arith.constant 0 : index
    %337 = vector.load %arg7[%c10_166, %c0_167] : memref<16x32xf32, #tpu.memory_space<vmem>>, vector<1x32xf32>
    %cst_168 = arith.constant dense<0.000000e+00> : vector<1x32xf32>
    %338 = tpu.matmul %319, %40, %cst_168 {dimension_numbers = #tpu.dot_dimension_numbers<[1], [0], [0], [1], [0, 0, 1, 1], [], []>} : vector<1x32xf32>, vector<32x32xf32>, vector<1x32xf32> -> vector<1x32xf32>
    %339 = arith.addf %338, %43 : vector<1x32xf32>
    %340 = arith.mulf %328, %339 : vector<1x32xf32>
    %341 = arith.addf %337, %340 : vector<1x32xf32>
    %342 = math.tanh %341 : vector<1x32xf32>
    %343 = arith.subf %319, %342 : vector<1x32xf32>
    %344 = arith.mulf %336, %343 : vector<1x32xf32>
    %345 = arith.addf %342, %344 : vector<1x32xf32>
    %c10_169 = arith.constant 10 : index
    %c0_170 = arith.constant 0 : index
    %346 = vector.load %arg4[%c10_169, %c0_170] : memref<16x32xf32, #tpu.memory_space<vmem>>, vector<1x32xf32>
    tpu.vector_store %arg4[%c10_169, %c0_170], %345 {strides = array<i32>} : memref<16x32xf32, #tpu.memory_space<vmem>>, vector<1x32xf32>,
    %c11 = arith.constant 11 : index
    %c0_171 = arith.constant 0 : index
    %347 = vector.load %arg5[%c11, %c0_171] : memref<16x32xf32, #tpu.memory_space<vmem>>, vector<1x32xf32>
    %cst_172 = arith.constant dense<0.000000e+00> : vector<1x32xf32>
    %348 = tpu.matmul %345, %38, %cst_172 {dimension_numbers = #tpu.dot_dimension_numbers<[1], [0], [0], [1], [0, 0, 1, 1], [], []>} : vector<1x32xf32>, vector<32x32xf32>, vector<1x32xf32> -> vector<1x32xf32>
    %349 = arith.addf %347, %348 : vector<1x32xf32>
    %350 = arith.negf %349 : vector<1x32xf32>
    %351 = math.exp %350 : vector<1x32xf32>
    %cst_173 = arith.constant 1.000000e+00 : f32
    %352 = vector.broadcast %cst_173 : f32 to vector<1x32xf32>
    %353 = arith.addf %352, %351 : vector<1x32xf32>
    %354 = arith.divf %352, %353 : vector<1x32xf32>
    %c11_174 = arith.constant 11 : index
    %c0_175 = arith.constant 0 : index
    %355 = vector.load %arg6[%c11_174, %c0_175] : memref<16x32xf32, #tpu.memory_space<vmem>>, vector<1x32xf32>
    %cst_176 = arith.constant dense<0.000000e+00> : vector<1x32xf32>
    %356 = tpu.matmul %345, %39, %cst_176 {dimension_numbers = #tpu.dot_dimension_numbers<[1], [0], [0], [1], [0, 0, 1, 1], [], []>} : vector<1x32xf32>, vector<32x32xf32>, vector<1x32xf32> -> vector<1x32xf32>
    %357 = arith.addf %355, %356 : vector<1x32xf32>
    %358 = arith.negf %357 : vector<1x32xf32>
    %359 = math.exp %358 : vector<1x32xf32>
    %cst_177 = arith.constant 1.000000e+00 : f32
    %360 = vector.broadcast %cst_177 : f32 to vector<1x32xf32>
    %361 = arith.addf %360, %359 : vector<1x32xf32>
    %362 = arith.divf %360, %361 : vector<1x32xf32>
    %c11_178 = arith.constant 11 : index
    %c0_179 = arith.constant 0 : index
    %363 = vector.load %arg7[%c11_178, %c0_179] : memref<16x32xf32, #tpu.memory_space<vmem>>, vector<1x32xf32>
    %cst_180 = arith.constant dense<0.000000e+00> : vector<1x32xf32>
    %364 = tpu.matmul %345, %40, %cst_180 {dimension_numbers = #tpu.dot_dimension_numbers<[1], [0], [0], [1], [0, 0, 1, 1], [], []>} : vector<1x32xf32>, vector<32x32xf32>, vector<1x32xf32> -> vector<1x32xf32>
    %365 = arith.addf %364, %43 : vector<1x32xf32>
    %366 = arith.mulf %354, %365 : vector<1x32xf32>
    %367 = arith.addf %363, %366 : vector<1x32xf32>
    %368 = math.tanh %367 : vector<1x32xf32>
    %369 = arith.subf %345, %368 : vector<1x32xf32>
    %370 = arith.mulf %362, %369 : vector<1x32xf32>
    %371 = arith.addf %368, %370 : vector<1x32xf32>
    %c11_181 = arith.constant 11 : index
    %c0_182 = arith.constant 0 : index
    %372 = vector.load %arg4[%c11_181, %c0_182] : memref<16x32xf32, #tpu.memory_space<vmem>>, vector<1x32xf32>
    tpu.vector_store %arg4[%c11_181, %c0_182], %371 {strides = array<i32>} : memref<16x32xf32, #tpu.memory_space<vmem>>, vector<1x32xf32>,
    %c12 = arith.constant 12 : index
    %c0_183 = arith.constant 0 : index
    %373 = vector.load %arg5[%c12, %c0_183] : memref<16x32xf32, #tpu.memory_space<vmem>>, vector<1x32xf32>
    %cst_184 = arith.constant dense<0.000000e+00> : vector<1x32xf32>
    %374 = tpu.matmul %371, %38, %cst_184 {dimension_numbers = #tpu.dot_dimension_numbers<[1], [0], [0], [1], [0, 0, 1, 1], [], []>} : vector<1x32xf32>, vector<32x32xf32>, vector<1x32xf32> -> vector<1x32xf32>
    %375 = arith.addf %373, %374 : vector<1x32xf32>
    %376 = arith.negf %375 : vector<1x32xf32>
    %377 = math.exp %376 : vector<1x32xf32>
    %cst_185 = arith.constant 1.000000e+00 : f32
    %378 = vector.broadcast %cst_185 : f32 to vector<1x32xf32>
    %379 = arith.addf %378, %377 : vector<1x32xf32>
    %380 = arith.divf %378, %379 : vector<1x32xf32>
    %c12_186 = arith.constant 12 : index
    %c0_187 = arith.constant 0 : index
    %381 = vector.load %arg6[%c12_186, %c0_187] : memref<16x32xf32, #tpu.memory_space<vmem>>, vector<1x32xf32>
    %cst_188 = arith.constant dense<0.000000e+00> : vector<1x32xf32>
    %382 = tpu.matmul %371, %39, %cst_188 {dimension_numbers = #tpu.dot_dimension_numbers<[1], [0], [0], [1], [0, 0, 1, 1], [], []>} : vector<1x32xf32>, vector<32x32xf32>, vector<1x32xf32> -> vector<1x32xf32>
    %383 = arith.addf %381, %382 : vector<1x32xf32>
    %384 = arith.negf %383 : vector<1x32xf32>
    %385 = math.exp %384 : vector<1x32xf32>
    %cst_189 = arith.constant 1.000000e+00 : f32
    %386 = vector.broadcast %cst_189 : f32 to vector<1x32xf32>
    %387 = arith.addf %386, %385 : vector<1x32xf32>
    %388 = arith.divf %386, %387 : vector<1x32xf32>
    %c12_190 = arith.constant 12 : index
    %c0_191 = arith.constant 0 : index
    %389 = vector.load %arg7[%c12_190, %c0_191] : memref<16x32xf32, #tpu.memory_space<vmem>>, vector<1x32xf32>
    %cst_192 = arith.constant dense<0.000000e+00> : vector<1x32xf32>
    %390 = tpu.matmul %371, %40, %cst_192 {dimension_numbers = #tpu.dot_dimension_numbers<[1], [0], [0], [1], [0, 0, 1, 1], [], []>} : vector<1x32xf32>, vector<32x32xf32>, vector<1x32xf32> -> vector<1x32xf32>
    %391 = arith.addf %390, %43 : vector<1x32xf32>
    %392 = arith.mulf %380, %391 : vector<1x32xf32>
    %393 = arith.addf %389, %392 : vector<1x32xf32>
    %394 = math.tanh %393 : vector<1x32xf32>
    %395 = arith.subf %371, %394 : vector<1x32xf32>
    %396 = arith.mulf %388, %395 : vector<1x32xf32>
    %397 = arith.addf %394, %396 : vector<1x32xf32>
    %c12_193 = arith.constant 12 : index
    %c0_194 = arith.constant 0 : index
    %398 = vector.load %arg4[%c12_193, %c0_194] : memref<16x32xf32, #tpu.memory_space<vmem>>, vector<1x32xf32>
    tpu.vector_store %arg4[%c12_193, %c0_194], %397 {strides = array<i32>} : memref<16x32xf32, #tpu.memory_space<vmem>>, vector<1x32xf32>,
    %c13 = arith.constant 13 : index
    %c0_195 = arith.constant 0 : index
    %399 = vector.load %arg5[%c13, %c0_195] : memref<16x32xf32, #tpu.memory_space<vmem>>, vector<1x32xf32>
    %cst_196 = arith.constant dense<0.000000e+00> : vector<1x32xf32>
    %400 = tpu.matmul %397, %38, %cst_196 {dimension_numbers = #tpu.dot_dimension_numbers<[1], [0], [0], [1], [0, 0, 1, 1], [], []>} : vector<1x32xf32>, vector<32x32xf32>, vector<1x32xf32> -> vector<1x32xf32>
    %401 = arith.addf %399, %400 : vector<1x32xf32>
    %402 = arith.negf %401 : vector<1x32xf32>
    %403 = math.exp %402 : vector<1x32xf32>
    %cst_197 = arith.constant 1.000000e+00 : f32
    %404 = vector.broadcast %cst_197 : f32 to vector<1x32xf32>
    %405 = arith.addf %404, %403 : vector<1x32xf32>
    %406 = arith.divf %404, %405 : vector<1x32xf32>
    %c13_198 = arith.constant 13 : index
    %c0_199 = arith.constant 0 : index
    %407 = vector.load %arg6[%c13_198, %c0_199] : memref<16x32xf32, #tpu.memory_space<vmem>>, vector<1x32xf32>
    %cst_200 = arith.constant dense<0.000000e+00> : vector<1x32xf32>
    %408 = tpu.matmul %397, %39, %cst_200 {dimension_numbers = #tpu.dot_dimension_numbers<[1], [0], [0], [1], [0, 0, 1, 1], [], []>} : vector<1x32xf32>, vector<32x32xf32>, vector<1x32xf32> -> vector<1x32xf32>
    %409 = arith.addf %407, %408 : vector<1x32xf32>
    %410 = arith.negf %409 : vector<1x32xf32>
    %411 = math.exp %410 : vector<1x32xf32>
    %cst_201 = arith.constant 1.000000e+00 : f32
    %412 = vector.broadcast %cst_201 : f32 to vector<1x32xf32>
    %413 = arith.addf %412, %411 : vector<1x32xf32>
    %414 = arith.divf %412, %413 : vector<1x32xf32>
    %c13_202 = arith.constant 13 : index
    %c0_203 = arith.constant 0 : index
    %415 = vector.load %arg7[%c13_202, %c0_203] : memref<16x32xf32, #tpu.memory_space<vmem>>, vector<1x32xf32>
    %cst_204 = arith.constant dense<0.000000e+00> : vector<1x32xf32>
    %416 = tpu.matmul %397, %40, %cst_204 {dimension_numbers = #tpu.dot_dimension_numbers<[1], [0], [0], [1], [0, 0, 1, 1], [], []>} : vector<1x32xf32>, vector<32x32xf32>, vector<1x32xf32> -> vector<1x32xf32>
    %417 = arith.addf %416, %43 : vector<1x32xf32>
    %418 = arith.mulf %406, %417 : vector<1x32xf32>
    %419 = arith.addf %415, %418 : vector<1x32xf32>
    %420 = math.tanh %419 : vector<1x32xf32>
    %421 = arith.subf %397, %420 : vector<1x32xf32>
    %422 = arith.mulf %414, %421 : vector<1x32xf32>
    %423 = arith.addf %420, %422 : vector<1x32xf32>
    %c13_205 = arith.constant 13 : index
    %c0_206 = arith.constant 0 : index
    %424 = vector.load %arg4[%c13_205, %c0_206] : memref<16x32xf32, #tpu.memory_space<vmem>>, vector<1x32xf32>
    tpu.vector_store %arg4[%c13_205, %c0_206], %423 {strides = array<i32>} : memref<16x32xf32, #tpu.memory_space<vmem>>, vector<1x32xf32>,
    %c14 = arith.constant 14 : index
    %c0_207 = arith.constant 0 : index
    %425 = vector.load %arg5[%c14, %c0_207] : memref<16x32xf32, #tpu.memory_space<vmem>>, vector<1x32xf32>
    %cst_208 = arith.constant dense<0.000000e+00> : vector<1x32xf32>
    %426 = tpu.matmul %423, %38, %cst_208 {dimension_numbers = #tpu.dot_dimension_numbers<[1], [0], [0], [1], [0, 0, 1, 1], [], []>} : vector<1x32xf32>, vector<32x32xf32>, vector<1x32xf32> -> vector<1x32xf32>
    %427 = arith.addf %425, %426 : vector<1x32xf32>
    %428 = arith.negf %427 : vector<1x32xf32>
    %429 = math.exp %428 : vector<1x32xf32>
    %cst_209 = arith.constant 1.000000e+00 : f32
    %430 = vector.broadcast %cst_209 : f32 to vector<1x32xf32>
    %431 = arith.addf %430, %429 : vector<1x32xf32>
    %432 = arith.divf %430, %431 : vector<1x32xf32>
    %c14_210 = arith.constant 14 : index
    %c0_211 = arith.constant 0 : index
    %433 = vector.load %arg6[%c14_210, %c0_211] : memref<16x32xf32, #tpu.memory_space<vmem>>, vector<1x32xf32>
    %cst_212 = arith.constant dense<0.000000e+00> : vector<1x32xf32>
    %434 = tpu.matmul %423, %39, %cst_212 {dimension_numbers = #tpu.dot_dimension_numbers<[1], [0], [0], [1], [0, 0, 1, 1], [], []>} : vector<1x32xf32>, vector<32x32xf32>, vector<1x32xf32> -> vector<1x32xf32>
    %435 = arith.addf %433, %434 : vector<1x32xf32>
    %436 = arith.negf %435 : vector<1x32xf32>
    %437 = math.exp %436 : vector<1x32xf32>
    %cst_213 = arith.constant 1.000000e+00 : f32
    %438 = vector.broadcast %cst_213 : f32 to vector<1x32xf32>
    %439 = arith.addf %438, %437 : vector<1x32xf32>
    %440 = arith.divf %438, %439 : vector<1x32xf32>
    %c14_214 = arith.constant 14 : index
    %c0_215 = arith.constant 0 : index
    %441 = vector.load %arg7[%c14_214, %c0_215] : memref<16x32xf32, #tpu.memory_space<vmem>>, vector<1x32xf32>
    %cst_216 = arith.constant dense<0.000000e+00> : vector<1x32xf32>
    %442 = tpu.matmul %423, %40, %cst_216 {dimension_numbers = #tpu.dot_dimension_numbers<[1], [0], [0], [1], [0, 0, 1, 1], [], []>} : vector<1x32xf32>, vector<32x32xf32>, vector<1x32xf32> -> vector<1x32xf32>
    %443 = arith.addf %442, %43 : vector<1x32xf32>
    %444 = arith.mulf %432, %443 : vector<1x32xf32>
    %445 = arith.addf %441, %444 : vector<1x32xf32>
    %446 = math.tanh %445 : vector<1x32xf32>
    %447 = arith.subf %423, %446 : vector<1x32xf32>
    %448 = arith.mulf %440, %447 : vector<1x32xf32>
    %449 = arith.addf %446, %448 : vector<1x32xf32>
    %c14_217 = arith.constant 14 : index
    %c0_218 = arith.constant 0 : index
    %450 = vector.load %arg4[%c14_217, %c0_218] : memref<16x32xf32, #tpu.memory_space<vmem>>, vector<1x32xf32>
    tpu.vector_store %arg4[%c14_217, %c0_218], %449 {strides = array<i32>} : memref<16x32xf32, #tpu.memory_space<vmem>>, vector<1x32xf32>,
    %c15 = arith.constant 15 : index
    %c0_219 = arith.constant 0 : index
    %451 = vector.load %arg5[%c15, %c0_219] : memref<16x32xf32, #tpu.memory_space<vmem>>, vector<1x32xf32>
    %cst_220 = arith.constant dense<0.000000e+00> : vector<1x32xf32>
    %452 = tpu.matmul %449, %38, %cst_220 {dimension_numbers = #tpu.dot_dimension_numbers<[1], [0], [0], [1], [0, 0, 1, 1], [], []>} : vector<1x32xf32>, vector<32x32xf32>, vector<1x32xf32> -> vector<1x32xf32>
    %453 = arith.addf %451, %452 : vector<1x32xf32>
    %454 = arith.negf %453 : vector<1x32xf32>
    %455 = math.exp %454 : vector<1x32xf32>
    %cst_221 = arith.constant 1.000000e+00 : f32
    %456 = vector.broadcast %cst_221 : f32 to vector<1x32xf32>
    %457 = arith.addf %456, %455 : vector<1x32xf32>
    %458 = arith.divf %456, %457 : vector<1x32xf32>
    %c15_222 = arith.constant 15 : index
    %c0_223 = arith.constant 0 : index
    %459 = vector.load %arg6[%c15_222, %c0_223] : memref<16x32xf32, #tpu.memory_space<vmem>>, vector<1x32xf32>
    %cst_224 = arith.constant dense<0.000000e+00> : vector<1x32xf32>
    %460 = tpu.matmul %449, %39, %cst_224 {dimension_numbers = #tpu.dot_dimension_numbers<[1], [0], [0], [1], [0, 0, 1, 1], [], []>} : vector<1x32xf32>, vector<32x32xf32>, vector<1x32xf32> -> vector<1x32xf32>
    %461 = arith.addf %459, %460 : vector<1x32xf32>
    %462 = arith.negf %461 : vector<1x32xf32>
    %463 = math.exp %462 : vector<1x32xf32>
    %cst_225 = arith.constant 1.000000e+00 : f32
    %464 = vector.broadcast %cst_225 : f32 to vector<1x32xf32>
    %465 = arith.addf %464, %463 : vector<1x32xf32>
    %466 = arith.divf %464, %465 : vector<1x32xf32>
    %c15_226 = arith.constant 15 : index
    %c0_227 = arith.constant 0 : index
    %467 = vector.load %arg7[%c15_226, %c0_227] : memref<16x32xf32, #tpu.memory_space<vmem>>, vector<1x32xf32>
    %cst_228 = arith.constant dense<0.000000e+00> : vector<1x32xf32>
    %468 = tpu.matmul %449, %40, %cst_228 {dimension_numbers = #tpu.dot_dimension_numbers<[1], [0], [0], [1], [0, 0, 1, 1], [], []>} : vector<1x32xf32>, vector<32x32xf32>, vector<1x32xf32> -> vector<1x32xf32>
    %469 = arith.addf %468, %43 : vector<1x32xf32>
    %470 = arith.mulf %458, %469 : vector<1x32xf32>
    %471 = arith.addf %467, %470 : vector<1x32xf32>
    %472 = math.tanh %471 : vector<1x32xf32>
    %473 = arith.subf %449, %472 : vector<1x32xf32>
    %474 = arith.mulf %466, %473 : vector<1x32xf32>
    %475 = arith.addf %472, %474 : vector<1x32xf32>
    %c15_229 = arith.constant 15 : index
    %c0_230 = arith.constant 0 : index
    %476 = vector.load %arg4[%c15_229, %c0_230] : memref<16x32xf32, #tpu.memory_space<vmem>>, vector<1x32xf32>
    tpu.vector_store %arg4[%c15_229, %c0_230], %475 {strides = array<i32>} : memref<16x32xf32, #tpu.memory_space<vmem>>, vector<1x32xf32>,
    %c0_231 = arith.constant 0 : index
    %c0_232 = arith.constant 0 : index
    %477 = vector.load %arg4[%c0_231, %c0_232] : memref<16x32xf32, #tpu.memory_space<vmem>>, vector<16x32xf32>
    %cst_233 = arith.constant dense<0.000000e+00> : vector<16x64xf32>
    %478 = tpu.matmul %477, %36, %cst_233 {dimension_numbers = #tpu.dot_dimension_numbers<[1], [0], [0], [1], [0, 0, 1, 1], [], []>} : vector<16x32xf32>, vector<32x64xf32>, vector<16x64xf32> -> vector<16x64xf32>
    %479 = vector.broadcast %37 : vector<1x64xf32> to vector<16x64xf32>
    %480 = arith.addf %478, %479 : vector<16x64xf32>
    %481 = vector.extract_strided_slice %480 {offsets = [0, 0], sizes = [16, 32], strides = [1, 1]} : vector<16x64xf32> to vector<16x32xf32>
    %482 = vector.extract_strided_slice %480 {offsets = [0, 32], sizes = [16, 32], strides = [1, 1]} : vector<16x64xf32> to vector<16x32xf32>
    %483 = arith.negf %482 : vector<16x32xf32>
    %484 = math.exp %483 : vector<16x32xf32>
    %cst_234 = arith.constant 1.000000e+00 : f32
    %485 = vector.broadcast %cst_234 : f32 to vector<16x32xf32>
    %486 = arith.addf %485, %484 : vector<16x32xf32>
    %487 = arith.divf %485, %486 : vector<16x32xf32>
    %488 = arith.mulf %482, %487 : vector<16x32xf32>
    %489 = arith.mulf %481, %488 : vector<16x32xf32>
    %c0_235 = arith.constant 0 : index
    %c0_236 = arith.constant 0 : index
    %490 = vector.load %arg4[%c0_235, %c0_236] : memref<16x32xf32, #tpu.memory_space<vmem>>, vector<16x32xf32>
    tpu.vector_store %arg4[%c0_235, %c0_236], %489 {strides = array<i32>} : memref<16x32xf32, #tpu.memory_space<vmem>>, vector<16x32xf32>,
    %c232 = arith.constant 232 : index
    %c0_237 = arith.constant 0 : index
    %491 = vector.load %arg1[%c232, %c0_237] : memref<680x96xf32, #tpu.memory_space<vmem>>, vector<32x32xf32>
    %c264 = arith.constant 264 : index
    %c0_238 = arith.constant 0 : index
    %492 = vector.load %arg1[%c264, %c0_238] : memref<680x96xf32, #tpu.memory_space<vmem>>, vector<32x32xf32>
    %c296 = arith.constant 296 : index
    %c0_239 = arith.constant 0 : index
    %493 = vector.load %arg1[%c296, %c0_239] : memref<680x96xf32, #tpu.memory_space<vmem>>, vector<32x32xf32>
    %c8_240 = arith.constant 8 : index
    %c0_241 = arith.constant 0 : index
    %494 = vector.load %arg2[%c8_240, %c0_241] : memref<24x96xf32, #tpu.memory_space<vmem>>, vector<1x32xf32>
    %c9_242 = arith.constant 9 : index
    %c0_243 = arith.constant 0 : index
    %495 = vector.load %arg2[%c9_242, %c0_243] : memref<24x96xf32, #tpu.memory_space<vmem>>, vector<1x32xf32>
    %c10_244 = arith.constant 10 : index
    %c0_245 = arith.constant 0 : index
    %496 = vector.load %arg2[%c10_244, %c0_245] : memref<24x96xf32, #tpu.memory_space<vmem>>, vector<1x32xf32>
    %c0_246 = arith.constant 0 : index
    %c0_247 = arith.constant 0 : index
    %497 = vector.load %arg4[%c0_246, %c0_247] : memref<16x32xf32, #tpu.memory_space<vmem>>, vector<16x32xf32>
    %c72 = arith.constant 72 : index
    %c0_248 = arith.constant 0 : index
    %498 = vector.load %arg1[%c72, %c0_248] : memref<680x96xf32, #tpu.memory_space<vmem>>, vector<32x96xf32>
    %cst_249 = arith.constant dense<0.000000e+00> : vector<16x96xf32>
    %499 = tpu.matmul %497, %498, %cst_249 {dimension_numbers = #tpu.dot_dimension_numbers<[1], [0], [0], [1], [0, 0, 1, 1], [], []>} : vector<16x32xf32>, vector<32x96xf32>, vector<16x96xf32> -> vector<16x96xf32>
    %c3_250 = arith.constant 3 : index
    %c0_251 = arith.constant 0 : index
    %500 = vector.load %arg2[%c3_250, %c0_251] : memref<24x96xf32, #tpu.memory_space<vmem>>, vector<1x96xf32>
    %501 = vector.broadcast %500 : vector<1x96xf32> to vector<16x96xf32>
    %502 = arith.addf %499, %501 : vector<16x96xf32>
    %503 = vector.extract_strided_slice %502 {offsets = [0, 0], sizes = [16, 32], strides = [1, 1]} : vector<16x96xf32> to vector<16x32xf32>
    %504 = vector.broadcast %494 : vector<1x32xf32> to vector<16x32xf32>
    %505 = arith.addf %503, %504 : vector<16x32xf32>
    %c0_252 = arith.constant 0 : index
    %c0_253 = arith.constant 0 : index
    %506 = vector.load %arg5[%c0_252, %c0_253] : memref<16x32xf32, #tpu.memory_space<vmem>>, vector<16x32xf32>
    tpu.vector_store %arg5[%c0_252, %c0_253], %505 {strides = array<i32>} : memref<16x32xf32, #tpu.memory_space<vmem>>, vector<16x32xf32>,
    %507 = vector.extract_strided_slice %502 {offsets = [0, 32], sizes = [16, 32], strides = [1, 1]} : vector<16x96xf32> to vector<16x32xf32>
    %508 = vector.broadcast %495 : vector<1x32xf32> to vector<16x32xf32>
    %509 = arith.addf %507, %508 : vector<16x32xf32>
    %c0_254 = arith.constant 0 : index
    %c0_255 = arith.constant 0 : index
    %510 = vector.load %arg6[%c0_254, %c0_255] : memref<16x32xf32, #tpu.memory_space<vmem>>, vector<16x32xf32>
    tpu.vector_store %arg6[%c0_254, %c0_255], %509 {strides = array<i32>} : memref<16x32xf32, #tpu.memory_space<vmem>>, vector<16x32xf32>,
    %511 = vector.extract_strided_slice %502 {offsets = [0, 64], sizes = [16, 32], strides = [1, 1]} : vector<16x96xf32> to vector<16x32xf32>
    %c0_256 = arith.constant 0 : index
    %c0_257 = arith.constant 0 : index
    %512 = vector.load %arg7[%c0_256, %c0_257] : memref<16x32xf32, #tpu.memory_space<vmem>>, vector<16x32xf32>
    tpu.vector_store %arg7[%c0_256, %c0_257], %511 {strides = array<i32>} : memref<16x32xf32, #tpu.memory_space<vmem>>, vector<16x32xf32>,
    %cst_258 = arith.constant 0.000000e+00 : f32
    %513 = vector.broadcast %cst_258 : f32 to vector<1x32xf32>
    %c0_259 = arith.constant 0 : index
    %c0_260 = arith.constant 0 : index
    %514 = vector.load %arg5[%c0_259, %c0_260] : memref<16x32xf32, #tpu.memory_space<vmem>>, vector<1x32xf32>
    %cst_261 = arith.constant dense<0.000000e+00> : vector<1x32xf32>
    %515 = tpu.matmul %513, %491, %cst_261 {dimension_numbers = #tpu.dot_dimension_numbers<[1], [0], [0], [1], [0, 0, 1, 1], [], []>} : vector<1x32xf32>, vector<32x32xf32>, vector<1x32xf32> -> vector<1x32xf32>
    %516 = arith.addf %514, %515 : vector<1x32xf32>
    %517 = arith.negf %516 : vector<1x32xf32>
    %518 = math.exp %517 : vector<1x32xf32>
    %cst_262 = arith.constant 1.000000e+00 : f32
    %519 = vector.broadcast %cst_262 : f32 to vector<1x32xf32>
    %520 = arith.addf %519, %518 : vector<1x32xf32>
    %521 = arith.divf %519, %520 : vector<1x32xf32>
    %c0_263 = arith.constant 0 : index
    %c0_264 = arith.constant 0 : index
    %522 = vector.load %arg6[%c0_263, %c0_264] : memref<16x32xf32, #tpu.memory_space<vmem>>, vector<1x32xf32>
    %cst_265 = arith.constant dense<0.000000e+00> : vector<1x32xf32>
    %523 = tpu.matmul %513, %492, %cst_265 {dimension_numbers = #tpu.dot_dimension_numbers<[1], [0], [0], [1], [0, 0, 1, 1], [], []>} : vector<1x32xf32>, vector<32x32xf32>, vector<1x32xf32> -> vector<1x32xf32>
    %524 = arith.addf %522, %523 : vector<1x32xf32>
    %525 = arith.negf %524 : vector<1x32xf32>
    %526 = math.exp %525 : vector<1x32xf32>
    %cst_266 = arith.constant 1.000000e+00 : f32
    %527 = vector.broadcast %cst_266 : f32 to vector<1x32xf32>
    %528 = arith.addf %527, %526 : vector<1x32xf32>
    %529 = arith.divf %527, %528 : vector<1x32xf32>
    %c0_267 = arith.constant 0 : index
    %c0_268 = arith.constant 0 : index
    %530 = vector.load %arg7[%c0_267, %c0_268] : memref<16x32xf32, #tpu.memory_space<vmem>>, vector<1x32xf32>
    %cst_269 = arith.constant dense<0.000000e+00> : vector<1x32xf32>
    %531 = tpu.matmul %513, %493, %cst_269 {dimension_numbers = #tpu.dot_dimension_numbers<[1], [0], [0], [1], [0, 0, 1, 1], [], []>} : vector<1x32xf32>, vector<32x32xf32>, vector<1x32xf32> -> vector<1x32xf32>
    %532 = arith.addf %531, %496 : vector<1x32xf32>
    %533 = arith.mulf %521, %532 : vector<1x32xf32>
    %534 = arith.addf %530, %533 : vector<1x32xf32>
    %535 = math.tanh %534 : vector<1x32xf32>
    %536 = arith.subf %513, %535 : vector<1x32xf32>
    %537 = arith.mulf %529, %536 : vector<1x32xf32>
    %538 = arith.addf %535, %537 : vector<1x32xf32>
    %c0_270 = arith.constant 0 : index
    %c0_271 = arith.constant 0 : index
    %539 = vector.load %arg4[%c0_270, %c0_271] : memref<16x32xf32, #tpu.memory_space<vmem>>, vector<1x32xf32>
    tpu.vector_store %arg4[%c0_270, %c0_271], %538 {strides = array<i32>} : memref<16x32xf32, #tpu.memory_space<vmem>>, vector<1x32xf32>,
    %c1_272 = arith.constant 1 : index
    %c0_273 = arith.constant 0 : index
    %540 = vector.load %arg5[%c1_272, %c0_273] : memref<16x32xf32, #tpu.memory_space<vmem>>, vector<1x32xf32>
    %cst_274 = arith.constant dense<0.000000e+00> : vector<1x32xf32>
    %541 = tpu.matmul %538, %491, %cst_274 {dimension_numbers = #tpu.dot_dimension_numbers<[1], [0], [0], [1], [0, 0, 1, 1], [], []>} : vector<1x32xf32>, vector<32x32xf32>, vector<1x32xf32> -> vector<1x32xf32>
    %542 = arith.addf %540, %541 : vector<1x32xf32>
    %543 = arith.negf %542 : vector<1x32xf32>
    %544 = math.exp %543 : vector<1x32xf32>
    %cst_275 = arith.constant 1.000000e+00 : f32
    %545 = vector.broadcast %cst_275 : f32 to vector<1x32xf32>
    %546 = arith.addf %545, %544 : vector<1x32xf32>
    %547 = arith.divf %545, %546 : vector<1x32xf32>
    %c1_276 = arith.constant 1 : index
    %c0_277 = arith.constant 0 : index
    %548 = vector.load %arg6[%c1_276, %c0_277] : memref<16x32xf32, #tpu.memory_space<vmem>>, vector<1x32xf32>
    %cst_278 = arith.constant dense<0.000000e+00> : vector<1x32xf32>
    %549 = tpu.matmul %538, %492, %cst_278 {dimension_numbers = #tpu.dot_dimension_numbers<[1], [0], [0], [1], [0, 0, 1, 1], [], []>} : vector<1x32xf32>, vector<32x32xf32>, vector<1x32xf32> -> vector<1x32xf32>
    %550 = arith.addf %548, %549 : vector<1x32xf32>
    %551 = arith.negf %550 : vector<1x32xf32>
    %552 = math.exp %551 : vector<1x32xf32>
    %cst_279 = arith.constant 1.000000e+00 : f32
    %553 = vector.broadcast %cst_279 : f32 to vector<1x32xf32>
    %554 = arith.addf %553, %552 : vector<1x32xf32>
    %555 = arith.divf %553, %554 : vector<1x32xf32>
    %c1_280 = arith.constant 1 : index
    %c0_281 = arith.constant 0 : index
    %556 = vector.load %arg7[%c1_280, %c0_281] : memref<16x32xf32, #tpu.memory_space<vmem>>, vector<1x32xf32>
    %cst_282 = arith.constant dense<0.000000e+00> : vector<1x32xf32>
    %557 = tpu.matmul %538, %493, %cst_282 {dimension_numbers = #tpu.dot_dimension_numbers<[1], [0], [0], [1], [0, 0, 1, 1], [], []>} : vector<1x32xf32>, vector<32x32xf32>, vector<1x32xf32> -> vector<1x32xf32>
    %558 = arith.addf %557, %496 : vector<1x32xf32>
    %559 = arith.mulf %547, %558 : vector<1x32xf32>
    %560 = arith.addf %556, %559 : vector<1x32xf32>
    %561 = math.tanh %560 : vector<1x32xf32>
    %562 = arith.subf %538, %561 : vector<1x32xf32>
    %563 = arith.mulf %555, %562 : vector<1x32xf32>
    %564 = arith.addf %561, %563 : vector<1x32xf32>
    %c1_283 = arith.constant 1 : index
    %c0_284 = arith.constant 0 : index
    %565 = vector.load %arg4[%c1_283, %c0_284] : memref<16x32xf32, #tpu.memory_space<vmem>>, vector<1x32xf32>
    tpu.vector_store %arg4[%c1_283, %c0_284], %564 {strides = array<i32>} : memref<16x32xf32, #tpu.memory_space<vmem>>, vector<1x32xf32>,
    %c2_285 = arith.constant 2 : index
    %c0_286 = arith.constant 0 : index
    %566 = vector.load %arg5[%c2_285, %c0_286] : memref<16x32xf32, #tpu.memory_space<vmem>>, vector<1x32xf32>
    %cst_287 = arith.constant dense<0.000000e+00> : vector<1x32xf32>
    %567 = tpu.matmul %564, %491, %cst_287 {dimension_numbers = #tpu.dot_dimension_numbers<[1], [0], [0], [1], [0, 0, 1, 1], [], []>} : vector<1x32xf32>, vector<32x32xf32>, vector<1x32xf32> -> vector<1x32xf32>
    %568 = arith.addf %566, %567 : vector<1x32xf32>
    %569 = arith.negf %568 : vector<1x32xf32>
    %570 = math.exp %569 : vector<1x32xf32>
    %cst_288 = arith.constant 1.000000e+00 : f32
    %571 = vector.broadcast %cst_288 : f32 to vector<1x32xf32>
    %572 = arith.addf %571, %570 : vector<1x32xf32>
    %573 = arith.divf %571, %572 : vector<1x32xf32>
    %c2_289 = arith.constant 2 : index
    %c0_290 = arith.constant 0 : index
    %574 = vector.load %arg6[%c2_289, %c0_290] : memref<16x32xf32, #tpu.memory_space<vmem>>, vector<1x32xf32>
    %cst_291 = arith.constant dense<0.000000e+00> : vector<1x32xf32>
    %575 = tpu.matmul %564, %492, %cst_291 {dimension_numbers = #tpu.dot_dimension_numbers<[1], [0], [0], [1], [0, 0, 1, 1], [], []>} : vector<1x32xf32>, vector<32x32xf32>, vector<1x32xf32> -> vector<1x32xf32>
    %576 = arith.addf %574, %575 : vector<1x32xf32>
    %577 = arith.negf %576 : vector<1x32xf32>
    %578 = math.exp %577 : vector<1x32xf32>
    %cst_292 = arith.constant 1.000000e+00 : f32
    %579 = vector.broadcast %cst_292 : f32 to vector<1x32xf32>
    %580 = arith.addf %579, %578 : vector<1x32xf32>
    %581 = arith.divf %579, %580 : vector<1x32xf32>
    %c2_293 = arith.constant 2 : index
    %c0_294 = arith.constant 0 : index
    %582 = vector.load %arg7[%c2_293, %c0_294] : memref<16x32xf32, #tpu.memory_space<vmem>>, vector<1x32xf32>
    %cst_295 = arith.constant dense<0.000000e+00> : vector<1x32xf32>
    %583 = tpu.matmul %564, %493, %cst_295 {dimension_numbers = #tpu.dot_dimension_numbers<[1], [0], [0], [1], [0, 0, 1, 1], [], []>} : vector<1x32xf32>, vector<32x32xf32>, vector<1x32xf32> -> vector<1x32xf32>
    %584 = arith.addf %583, %496 : vector<1x32xf32>
    %585 = arith.mulf %573, %584 : vector<1x32xf32>
    %586 = arith.addf %582, %585 : vector<1x32xf32>
    %587 = math.tanh %586 : vector<1x32xf32>
    %588 = arith.subf %564, %587 : vector<1x32xf32>
    %589 = arith.mulf %581, %588 : vector<1x32xf32>
    %590 = arith.addf %587, %589 : vector<1x32xf32>
    %c2_296 = arith.constant 2 : index
    %c0_297 = arith.constant 0 : index
    %591 = vector.load %arg4[%c2_296, %c0_297] : memref<16x32xf32, #tpu.memory_space<vmem>>, vector<1x32xf32>
    tpu.vector_store %arg4[%c2_296, %c0_297], %590 {strides = array<i32>} : memref<16x32xf32, #tpu.memory_space<vmem>>, vector<1x32xf32>,
    %c3_298 = arith.constant 3 : index
    %c0_299 = arith.constant 0 : index
    %592 = vector.load %arg5[%c3_298, %c0_299] : memref<16x32xf32, #tpu.memory_space<vmem>>, vector<1x32xf32>
    %cst_300 = arith.constant dense<0.000000e+00> : vector<1x32xf32>
    %593 = tpu.matmul %590, %491, %cst_300 {dimension_numbers = #tpu.dot_dimension_numbers<[1], [0], [0], [1], [0, 0, 1, 1], [], []>} : vector<1x32xf32>, vector<32x32xf32>, vector<1x32xf32> -> vector<1x32xf32>
    %594 = arith.addf %592, %593 : vector<1x32xf32>
    %595 = arith.negf %594 : vector<1x32xf32>
    %596 = math.exp %595 : vector<1x32xf32>
    %cst_301 = arith.constant 1.000000e+00 : f32
    %597 = vector.broadcast %cst_301 : f32 to vector<1x32xf32>
    %598 = arith.addf %597, %596 : vector<1x32xf32>
    %599 = arith.divf %597, %598 : vector<1x32xf32>
    %c3_302 = arith.constant 3 : index
    %c0_303 = arith.constant 0 : index
    %600 = vector.load %arg6[%c3_302, %c0_303] : memref<16x32xf32, #tpu.memory_space<vmem>>, vector<1x32xf32>
    %cst_304 = arith.constant dense<0.000000e+00> : vector<1x32xf32>
    %601 = tpu.matmul %590, %492, %cst_304 {dimension_numbers = #tpu.dot_dimension_numbers<[1], [0], [0], [1], [0, 0, 1, 1], [], []>} : vector<1x32xf32>, vector<32x32xf32>, vector<1x32xf32> -> vector<1x32xf32>
    %602 = arith.addf %600, %601 : vector<1x32xf32>
    %603 = arith.negf %602 : vector<1x32xf32>
    %604 = math.exp %603 : vector<1x32xf32>
    %cst_305 = arith.constant 1.000000e+00 : f32
    %605 = vector.broadcast %cst_305 : f32 to vector<1x32xf32>
    %606 = arith.addf %605, %604 : vector<1x32xf32>
    %607 = arith.divf %605, %606 : vector<1x32xf32>
    %c3_306 = arith.constant 3 : index
    %c0_307 = arith.constant 0 : index
    %608 = vector.load %arg7[%c3_306, %c0_307] : memref<16x32xf32, #tpu.memory_space<vmem>>, vector<1x32xf32>
    %cst_308 = arith.constant dense<0.000000e+00> : vector<1x32xf32>
    %609 = tpu.matmul %590, %493, %cst_308 {dimension_numbers = #tpu.dot_dimension_numbers<[1], [0], [0], [1], [0, 0, 1, 1], [], []>} : vector<1x32xf32>, vector<32x32xf32>, vector<1x32xf32> -> vector<1x32xf32>
    %610 = arith.addf %609, %496 : vector<1x32xf32>
    %611 = arith.mulf %599, %610 : vector<1x32xf32>
    %612 = arith.addf %608, %611 : vector<1x32xf32>
    %613 = math.tanh %612 : vector<1x32xf32>
    %614 = arith.subf %590, %613 : vector<1x32xf32>
    %615 = arith.mulf %607, %614 : vector<1x32xf32>
    %616 = arith.addf %613, %615 : vector<1x32xf32>
    %c3_309 = arith.constant 3 : index
    %c0_310 = arith.constant 0 : index
    %617 = vector.load %arg4[%c3_309, %c0_310] : memref<16x32xf32, #tpu.memory_space<vmem>>, vector<1x32xf32>
    tpu.vector_store %arg4[%c3_309, %c0_310], %616 {strides = array<i32>} : memref<16x32xf32, #tpu.memory_space<vmem>>, vector<1x32xf32>,
    %c4_311 = arith.constant 4 : index
    %c0_312 = arith.constant 0 : index
    %618 = vector.load %arg5[%c4_311, %c0_312] : memref<16x32xf32, #tpu.memory_space<vmem>>, vector<1x32xf32>
    %cst_313 = arith.constant dense<0.000000e+00> : vector<1x32xf32>
    %619 = tpu.matmul %616, %491, %cst_313 {dimension_numbers = #tpu.dot_dimension_numbers<[1], [0], [0], [1], [0, 0, 1, 1], [], []>} : vector<1x32xf32>, vector<32x32xf32>, vector<1x32xf32> -> vector<1x32xf32>
    %620 = arith.addf %618, %619 : vector<1x32xf32>
    %621 = arith.negf %620 : vector<1x32xf32>
    %622 = math.exp %621 : vector<1x32xf32>
    %cst_314 = arith.constant 1.000000e+00 : f32
    %623 = vector.broadcast %cst_314 : f32 to vector<1x32xf32>
    %624 = arith.addf %623, %622 : vector<1x32xf32>
    %625 = arith.divf %623, %624 : vector<1x32xf32>
    %c4_315 = arith.constant 4 : index
    %c0_316 = arith.constant 0 : index
    %626 = vector.load %arg6[%c4_315, %c0_316] : memref<16x32xf32, #tpu.memory_space<vmem>>, vector<1x32xf32>
    %cst_317 = arith.constant dense<0.000000e+00> : vector<1x32xf32>
    %627 = tpu.matmul %616, %492, %cst_317 {dimension_numbers = #tpu.dot_dimension_numbers<[1], [0], [0], [1], [0, 0, 1, 1], [], []>} : vector<1x32xf32>, vector<32x32xf32>, vector<1x32xf32> -> vector<1x32xf32>
    %628 = arith.addf %626, %627 : vector<1x32xf32>
    %629 = arith.negf %628 : vector<1x32xf32>
    %630 = math.exp %629 : vector<1x32xf32>
    %cst_318 = arith.constant 1.000000e+00 : f32
    %631 = vector.broadcast %cst_318 : f32 to vector<1x32xf32>
    %632 = arith.addf %631, %630 : vector<1x32xf32>
    %633 = arith.divf %631, %632 : vector<1x32xf32>
    %c4_319 = arith.constant 4 : index
    %c0_320 = arith.constant 0 : index
    %634 = vector.load %arg7[%c4_319, %c0_320] : memref<16x32xf32, #tpu.memory_space<vmem>>, vector<1x32xf32>
    %cst_321 = arith.constant dense<0.000000e+00> : vector<1x32xf32>
    %635 = tpu.matmul %616, %493, %cst_321 {dimension_numbers = #tpu.dot_dimension_numbers<[1], [0], [0], [1], [0, 0, 1, 1], [], []>} : vector<1x32xf32>, vector<32x32xf32>, vector<1x32xf32> -> vector<1x32xf32>
    %636 = arith.addf %635, %496 : vector<1x32xf32>
    %637 = arith.mulf %625, %636 : vector<1x32xf32>
    %638 = arith.addf %634, %637 : vector<1x32xf32>
    %639 = math.tanh %638 : vector<1x32xf32>
    %640 = arith.subf %616, %639 : vector<1x32xf32>
    %641 = arith.mulf %633, %640 : vector<1x32xf32>
    %642 = arith.addf %639, %641 : vector<1x32xf32>
    %c4_322 = arith.constant 4 : index
    %c0_323 = arith.constant 0 : index
    %643 = vector.load %arg4[%c4_322, %c0_323] : memref<16x32xf32, #tpu.memory_space<vmem>>, vector<1x32xf32>
    tpu.vector_store %arg4[%c4_322, %c0_323], %642 {strides = array<i32>} : memref<16x32xf32, #tpu.memory_space<vmem>>, vector<1x32xf32>,
    %c5_324 = arith.constant 5 : index
    %c0_325 = arith.constant 0 : index
    %644 = vector.load %arg5[%c5_324, %c0_325] : memref<16x32xf32, #tpu.memory_space<vmem>>, vector<1x32xf32>
    %cst_326 = arith.constant dense<0.000000e+00> : vector<1x32xf32>
    %645 = tpu.matmul %642, %491, %cst_326 {dimension_numbers = #tpu.dot_dimension_numbers<[1], [0], [0], [1], [0, 0, 1, 1], [], []>} : vector<1x32xf32>, vector<32x32xf32>, vector<1x32xf32> -> vector<1x32xf32>
    %646 = arith.addf %644, %645 : vector<1x32xf32>
    %647 = arith.negf %646 : vector<1x32xf32>
    %648 = math.exp %647 : vector<1x32xf32>
    %cst_327 = arith.constant 1.000000e+00 : f32
    %649 = vector.broadcast %cst_327 : f32 to vector<1x32xf32>
    %650 = arith.addf %649, %648 : vector<1x32xf32>
    %651 = arith.divf %649, %650 : vector<1x32xf32>
    %c5_328 = arith.constant 5 : index
    %c0_329 = arith.constant 0 : index
    %652 = vector.load %arg6[%c5_328, %c0_329] : memref<16x32xf32, #tpu.memory_space<vmem>>, vector<1x32xf32>
    %cst_330 = arith.constant dense<0.000000e+00> : vector<1x32xf32>
    %653 = tpu.matmul %642, %492, %cst_330 {dimension_numbers = #tpu.dot_dimension_numbers<[1], [0], [0], [1], [0, 0, 1, 1], [], []>} : vector<1x32xf32>, vector<32x32xf32>, vector<1x32xf32> -> vector<1x32xf32>
    %654 = arith.addf %652, %653 : vector<1x32xf32>
    %655 = arith.negf %654 : vector<1x32xf32>
    %656 = math.exp %655 : vector<1x32xf32>
    %cst_331 = arith.constant 1.000000e+00 : f32
    %657 = vector.broadcast %cst_331 : f32 to vector<1x32xf32>
    %658 = arith.addf %657, %656 : vector<1x32xf32>
    %659 = arith.divf %657, %658 : vector<1x32xf32>
    %c5_332 = arith.constant 5 : index
    %c0_333 = arith.constant 0 : index
    %660 = vector.load %arg7[%c5_332, %c0_333] : memref<16x32xf32, #tpu.memory_space<vmem>>, vector<1x32xf32>
    %cst_334 = arith.constant dense<0.000000e+00> : vector<1x32xf32>
    %661 = tpu.matmul %642, %493, %cst_334 {dimension_numbers = #tpu.dot_dimension_numbers<[1], [0], [0], [1], [0, 0, 1, 1], [], []>} : vector<1x32xf32>, vector<32x32xf32>, vector<1x32xf32> -> vector<1x32xf32>
    %662 = arith.addf %661, %496 : vector<1x32xf32>
    %663 = arith.mulf %651, %662 : vector<1x32xf32>
    %664 = arith.addf %660, %663 : vector<1x32xf32>
    %665 = math.tanh %664 : vector<1x32xf32>
    %666 = arith.subf %642, %665 : vector<1x32xf32>
    %667 = arith.mulf %659, %666 : vector<1x32xf32>
    %668 = arith.addf %665, %667 : vector<1x32xf32>
    %c5_335 = arith.constant 5 : index
    %c0_336 = arith.constant 0 : index
    %669 = vector.load %arg4[%c5_335, %c0_336] : memref<16x32xf32, #tpu.memory_space<vmem>>, vector<1x32xf32>
    tpu.vector_store %arg4[%c5_335, %c0_336], %668 {strides = array<i32>} : memref<16x32xf32, #tpu.memory_space<vmem>>, vector<1x32xf32>,
    %c6_337 = arith.constant 6 : index
    %c0_338 = arith.constant 0 : index
    %670 = vector.load %arg5[%c6_337, %c0_338] : memref<16x32xf32, #tpu.memory_space<vmem>>, vector<1x32xf32>
    %cst_339 = arith.constant dense<0.000000e+00> : vector<1x32xf32>
    %671 = tpu.matmul %668, %491, %cst_339 {dimension_numbers = #tpu.dot_dimension_numbers<[1], [0], [0], [1], [0, 0, 1, 1], [], []>} : vector<1x32xf32>, vector<32x32xf32>, vector<1x32xf32> -> vector<1x32xf32>
    %672 = arith.addf %670, %671 : vector<1x32xf32>
    %673 = arith.negf %672 : vector<1x32xf32>
    %674 = math.exp %673 : vector<1x32xf32>
    %cst_340 = arith.constant 1.000000e+00 : f32
    %675 = vector.broadcast %cst_340 : f32 to vector<1x32xf32>
    %676 = arith.addf %675, %674 : vector<1x32xf32>
    %677 = arith.divf %675, %676 : vector<1x32xf32>
    %c6_341 = arith.constant 6 : index
    %c0_342 = arith.constant 0 : index
    %678 = vector.load %arg6[%c6_341, %c0_342] : memref<16x32xf32, #tpu.memory_space<vmem>>, vector<1x32xf32>
    %cst_343 = arith.constant dense<0.000000e+00> : vector<1x32xf32>
    %679 = tpu.matmul %668, %492, %cst_343 {dimension_numbers = #tpu.dot_dimension_numbers<[1], [0], [0], [1], [0, 0, 1, 1], [], []>} : vector<1x32xf32>, vector<32x32xf32>, vector<1x32xf32> -> vector<1x32xf32>
    %680 = arith.addf %678, %679 : vector<1x32xf32>
    %681 = arith.negf %680 : vector<1x32xf32>
    %682 = math.exp %681 : vector<1x32xf32>
    %cst_344 = arith.constant 1.000000e+00 : f32
    %683 = vector.broadcast %cst_344 : f32 to vector<1x32xf32>
    %684 = arith.addf %683, %682 : vector<1x32xf32>
    %685 = arith.divf %683, %684 : vector<1x32xf32>
    %c6_345 = arith.constant 6 : index
    %c0_346 = arith.constant 0 : index
    %686 = vector.load %arg7[%c6_345, %c0_346] : memref<16x32xf32, #tpu.memory_space<vmem>>, vector<1x32xf32>
    %cst_347 = arith.constant dense<0.000000e+00> : vector<1x32xf32>
    %687 = tpu.matmul %668, %493, %cst_347 {dimension_numbers = #tpu.dot_dimension_numbers<[1], [0], [0], [1], [0, 0, 1, 1], [], []>} : vector<1x32xf32>, vector<32x32xf32>, vector<1x32xf32> -> vector<1x32xf32>
    %688 = arith.addf %687, %496 : vector<1x32xf32>
    %689 = arith.mulf %677, %688 : vector<1x32xf32>
    %690 = arith.addf %686, %689 : vector<1x32xf32>
    %691 = math.tanh %690 : vector<1x32xf32>
    %692 = arith.subf %668, %691 : vector<1x32xf32>
    %693 = arith.mulf %685, %692 : vector<1x32xf32>
    %694 = arith.addf %691, %693 : vector<1x32xf32>
    %c6_348 = arith.constant 6 : index
    %c0_349 = arith.constant 0 : index
    %695 = vector.load %arg4[%c6_348, %c0_349] : memref<16x32xf32, #tpu.memory_space<vmem>>, vector<1x32xf32>
    tpu.vector_store %arg4[%c6_348, %c0_349], %694 {strides = array<i32>} : memref<16x32xf32, #tpu.memory_space<vmem>>, vector<1x32xf32>,
    %c7_350 = arith.constant 7 : index
    %c0_351 = arith.constant 0 : index
    %696 = vector.load %arg5[%c7_350, %c0_351] : memref<16x32xf32, #tpu.memory_space<vmem>>, vector<1x32xf32>
    %cst_352 = arith.constant dense<0.000000e+00> : vector<1x32xf32>
    %697 = tpu.matmul %694, %491, %cst_352 {dimension_numbers = #tpu.dot_dimension_numbers<[1], [0], [0], [1], [0, 0, 1, 1], [], []>} : vector<1x32xf32>, vector<32x32xf32>, vector<1x32xf32> -> vector<1x32xf32>
    %698 = arith.addf %696, %697 : vector<1x32xf32>
    %699 = arith.negf %698 : vector<1x32xf32>
    %700 = math.exp %699 : vector<1x32xf32>
    %cst_353 = arith.constant 1.000000e+00 : f32
    %701 = vector.broadcast %cst_353 : f32 to vector<1x32xf32>
    %702 = arith.addf %701, %700 : vector<1x32xf32>
    %703 = arith.divf %701, %702 : vector<1x32xf32>
    %c7_354 = arith.constant 7 : index
    %c0_355 = arith.constant 0 : index
    %704 = vector.load %arg6[%c7_354, %c0_355] : memref<16x32xf32, #tpu.memory_space<vmem>>, vector<1x32xf32>
    %cst_356 = arith.constant dense<0.000000e+00> : vector<1x32xf32>
    %705 = tpu.matmul %694, %492, %cst_356 {dimension_numbers = #tpu.dot_dimension_numbers<[1], [0], [0], [1], [0, 0, 1, 1], [], []>} : vector<1x32xf32>, vector<32x32xf32>, vector<1x32xf32> -> vector<1x32xf32>
    %706 = arith.addf %704, %705 : vector<1x32xf32>
    %707 = arith.negf %706 : vector<1x32xf32>
    %708 = math.exp %707 : vector<1x32xf32>
    %cst_357 = arith.constant 1.000000e+00 : f32
    %709 = vector.broadcast %cst_357 : f32 to vector<1x32xf32>
    %710 = arith.addf %709, %708 : vector<1x32xf32>
    %711 = arith.divf %709, %710 : vector<1x32xf32>
    %c7_358 = arith.constant 7 : index
    %c0_359 = arith.constant 0 : index
    %712 = vector.load %arg7[%c7_358, %c0_359] : memref<16x32xf32, #tpu.memory_space<vmem>>, vector<1x32xf32>
    %cst_360 = arith.constant dense<0.000000e+00> : vector<1x32xf32>
    %713 = tpu.matmul %694, %493, %cst_360 {dimension_numbers = #tpu.dot_dimension_numbers<[1], [0], [0], [1], [0, 0, 1, 1], [], []>} : vector<1x32xf32>, vector<32x32xf32>, vector<1x32xf32> -> vector<1x32xf32>
    %714 = arith.addf %713, %496 : vector<1x32xf32>
    %715 = arith.mulf %703, %714 : vector<1x32xf32>
    %716 = arith.addf %712, %715 : vector<1x32xf32>
    %717 = math.tanh %716 : vector<1x32xf32>
    %718 = arith.subf %694, %717 : vector<1x32xf32>
    %719 = arith.mulf %711, %718 : vector<1x32xf32>
    %720 = arith.addf %717, %719 : vector<1x32xf32>
    %c7_361 = arith.constant 7 : index
    %c0_362 = arith.constant 0 : index
    %721 = vector.load %arg4[%c7_361, %c0_362] : memref<16x32xf32, #tpu.memory_space<vmem>>, vector<1x32xf32>
    tpu.vector_store %arg4[%c7_361, %c0_362], %720 {strides = array<i32>} : memref<16x32xf32, #tpu.memory_space<vmem>>, vector<1x32xf32>,
    %c8_363 = arith.constant 8 : index
    %c0_364 = arith.constant 0 : index
    %722 = vector.load %arg5[%c8_363, %c0_364] : memref<16x32xf32, #tpu.memory_space<vmem>>, vector<1x32xf32>
    %cst_365 = arith.constant dense<0.000000e+00> : vector<1x32xf32>
    %723 = tpu.matmul %720, %491, %cst_365 {dimension_numbers = #tpu.dot_dimension_numbers<[1], [0], [0], [1], [0, 0, 1, 1], [], []>} : vector<1x32xf32>, vector<32x32xf32>, vector<1x32xf32> -> vector<1x32xf32>
    %724 = arith.addf %722, %723 : vector<1x32xf32>
    %725 = arith.negf %724 : vector<1x32xf32>
    %726 = math.exp %725 : vector<1x32xf32>
    %cst_366 = arith.constant 1.000000e+00 : f32
    %727 = vector.broadcast %cst_366 : f32 to vector<1x32xf32>
    %728 = arith.addf %727, %726 : vector<1x32xf32>
    %729 = arith.divf %727, %728 : vector<1x32xf32>
    %c8_367 = arith.constant 8 : index
    %c0_368 = arith.constant 0 : index
    %730 = vector.load %arg6[%c8_367, %c0_368] : memref<16x32xf32, #tpu.memory_space<vmem>>, vector<1x32xf32>
    %cst_369 = arith.constant dense<0.000000e+00> : vector<1x32xf32>
    %731 = tpu.matmul %720, %492, %cst_369 {dimension_numbers = #tpu.dot_dimension_numbers<[1], [0], [0], [1], [0, 0, 1, 1], [], []>} : vector<1x32xf32>, vector<32x32xf32>, vector<1x32xf32> -> vector<1x32xf32>
    %732 = arith.addf %730, %731 : vector<1x32xf32>
    %733 = arith.negf %732 : vector<1x32xf32>
    %734 = math.exp %733 : vector<1x32xf32>
    %cst_370 = arith.constant 1.000000e+00 : f32
    %735 = vector.broadcast %cst_370 : f32 to vector<1x32xf32>
    %736 = arith.addf %735, %734 : vector<1x32xf32>
    %737 = arith.divf %735, %736 : vector<1x32xf32>
    %c8_371 = arith.constant 8 : index
    %c0_372 = arith.constant 0 : index
    %738 = vector.load %arg7[%c8_371, %c0_372] : memref<16x32xf32, #tpu.memory_space<vmem>>, vector<1x32xf32>
    %cst_373 = arith.constant dense<0.000000e+00> : vector<1x32xf32>
    %739 = tpu.matmul %720, %493, %cst_373 {dimension_numbers = #tpu.dot_dimension_numbers<[1], [0], [0], [1], [0, 0, 1, 1], [], []>} : vector<1x32xf32>, vector<32x32xf32>, vector<1x32xf32> -> vector<1x32xf32>
    %740 = arith.addf %739, %496 : vector<1x32xf32>
    %741 = arith.mulf %729, %740 : vector<1x32xf32>
    %742 = arith.addf %738, %741 : vector<1x32xf32>
    %743 = math.tanh %742 : vector<1x32xf32>
    %744 = arith.subf %720, %743 : vector<1x32xf32>
    %745 = arith.mulf %737, %744 : vector<1x32xf32>
    %746 = arith.addf %743, %745 : vector<1x32xf32>
    %c8_374 = arith.constant 8 : index
    %c0_375 = arith.constant 0 : index
    %747 = vector.load %arg4[%c8_374, %c0_375] : memref<16x32xf32, #tpu.memory_space<vmem>>, vector<1x32xf32>
    tpu.vector_store %arg4[%c8_374, %c0_375], %746 {strides = array<i32>} : memref<16x32xf32, #tpu.memory_space<vmem>>, vector<1x32xf32>,
    %c9_376 = arith.constant 9 : index
    %c0_377 = arith.constant 0 : index
    %748 = vector.load %arg5[%c9_376, %c0_377] : memref<16x32xf32, #tpu.memory_space<vmem>>, vector<1x32xf32>
    %cst_378 = arith.constant dense<0.000000e+00> : vector<1x32xf32>
    %749 = tpu.matmul %746, %491, %cst_378 {dimension_numbers = #tpu.dot_dimension_numbers<[1], [0], [0], [1], [0, 0, 1, 1], [], []>} : vector<1x32xf32>, vector<32x32xf32>, vector<1x32xf32> -> vector<1x32xf32>
    %750 = arith.addf %748, %749 : vector<1x32xf32>
    %751 = arith.negf %750 : vector<1x32xf32>
    %752 = math.exp %751 : vector<1x32xf32>
    %cst_379 = arith.constant 1.000000e+00 : f32
    %753 = vector.broadcast %cst_379 : f32 to vector<1x32xf32>
    %754 = arith.addf %753, %752 : vector<1x32xf32>
    %755 = arith.divf %753, %754 : vector<1x32xf32>
    %c9_380 = arith.constant 9 : index
    %c0_381 = arith.constant 0 : index
    %756 = vector.load %arg6[%c9_380, %c0_381] : memref<16x32xf32, #tpu.memory_space<vmem>>, vector<1x32xf32>
    %cst_382 = arith.constant dense<0.000000e+00> : vector<1x32xf32>
    %757 = tpu.matmul %746, %492, %cst_382 {dimension_numbers = #tpu.dot_dimension_numbers<[1], [0], [0], [1], [0, 0, 1, 1], [], []>} : vector<1x32xf32>, vector<32x32xf32>, vector<1x32xf32> -> vector<1x32xf32>
    %758 = arith.addf %756, %757 : vector<1x32xf32>
    %759 = arith.negf %758 : vector<1x32xf32>
    %760 = math.exp %759 : vector<1x32xf32>
    %cst_383 = arith.constant 1.000000e+00 : f32
    %761 = vector.broadcast %cst_383 : f32 to vector<1x32xf32>
    %762 = arith.addf %761, %760 : vector<1x32xf32>
    %763 = arith.divf %761, %762 : vector<1x32xf32>
    %c9_384 = arith.constant 9 : index
    %c0_385 = arith.constant 0 : index
    %764 = vector.load %arg7[%c9_384, %c0_385] : memref<16x32xf32, #tpu.memory_space<vmem>>, vector<1x32xf32>
    %cst_386 = arith.constant dense<0.000000e+00> : vector<1x32xf32>
    %765 = tpu.matmul %746, %493, %cst_386 {dimension_numbers = #tpu.dot_dimension_numbers<[1], [0], [0], [1], [0, 0, 1, 1], [], []>} : vector<1x32xf32>, vector<32x32xf32>, vector<1x32xf32> -> vector<1x32xf32>
    %766 = arith.addf %765, %496 : vector<1x32xf32>
    %767 = arith.mulf %755, %766 : vector<1x32xf32>
    %768 = arith.addf %764, %767 : vector<1x32xf32>
    %769 = math.tanh %768 : vector<1x32xf32>
    %770 = arith.subf %746, %769 : vector<1x32xf32>
    %771 = arith.mulf %763, %770 : vector<1x32xf32>
    %772 = arith.addf %769, %771 : vector<1x32xf32>
    %c9_387 = arith.constant 9 : index
    %c0_388 = arith.constant 0 : index
    %773 = vector.load %arg4[%c9_387, %c0_388] : memref<16x32xf32, #tpu.memory_space<vmem>>, vector<1x32xf32>
    tpu.vector_store %arg4[%c9_387, %c0_388], %772 {strides = array<i32>} : memref<16x32xf32, #tpu.memory_space<vmem>>, vector<1x32xf32>,
    %c10_389 = arith.constant 10 : index
    %c0_390 = arith.constant 0 : index
    %774 = vector.load %arg5[%c10_389, %c0_390] : memref<16x32xf32, #tpu.memory_space<vmem>>, vector<1x32xf32>
    %cst_391 = arith.constant dense<0.000000e+00> : vector<1x32xf32>
    %775 = tpu.matmul %772, %491, %cst_391 {dimension_numbers = #tpu.dot_dimension_numbers<[1], [0], [0], [1], [0, 0, 1, 1], [], []>} : vector<1x32xf32>, vector<32x32xf32>, vector<1x32xf32> -> vector<1x32xf32>
    %776 = arith.addf %774, %775 : vector<1x32xf32>
    %777 = arith.negf %776 : vector<1x32xf32>
    %778 = math.exp %777 : vector<1x32xf32>
    %cst_392 = arith.constant 1.000000e+00 : f32
    %779 = vector.broadcast %cst_392 : f32 to vector<1x32xf32>
    %780 = arith.addf %779, %778 : vector<1x32xf32>
    %781 = arith.divf %779, %780 : vector<1x32xf32>
    %c10_393 = arith.constant 10 : index
    %c0_394 = arith.constant 0 : index
    %782 = vector.load %arg6[%c10_393, %c0_394] : memref<16x32xf32, #tpu.memory_space<vmem>>, vector<1x32xf32>
    %cst_395 = arith.constant dense<0.000000e+00> : vector<1x32xf32>
    %783 = tpu.matmul %772, %492, %cst_395 {dimension_numbers = #tpu.dot_dimension_numbers<[1], [0], [0], [1], [0, 0, 1, 1], [], []>} : vector<1x32xf32>, vector<32x32xf32>, vector<1x32xf32> -> vector<1x32xf32>
    %784 = arith.addf %782, %783 : vector<1x32xf32>
    %785 = arith.negf %784 : vector<1x32xf32>
    %786 = math.exp %785 : vector<1x32xf32>
    %cst_396 = arith.constant 1.000000e+00 : f32
    %787 = vector.broadcast %cst_396 : f32 to vector<1x32xf32>
    %788 = arith.addf %787, %786 : vector<1x32xf32>
    %789 = arith.divf %787, %788 : vector<1x32xf32>
    %c10_397 = arith.constant 10 : index
    %c0_398 = arith.constant 0 : index
    %790 = vector.load %arg7[%c10_397, %c0_398] : memref<16x32xf32, #tpu.memory_space<vmem>>, vector<1x32xf32>
    %cst_399 = arith.constant dense<0.000000e+00> : vector<1x32xf32>
    %791 = tpu.matmul %772, %493, %cst_399 {dimension_numbers = #tpu.dot_dimension_numbers<[1], [0], [0], [1], [0, 0, 1, 1], [], []>} : vector<1x32xf32>, vector<32x32xf32>, vector<1x32xf32> -> vector<1x32xf32>
    %792 = arith.addf %791, %496 : vector<1x32xf32>
    %793 = arith.mulf %781, %792 : vector<1x32xf32>
    %794 = arith.addf %790, %793 : vector<1x32xf32>
    %795 = math.tanh %794 : vector<1x32xf32>
    %796 = arith.subf %772, %795 : vector<1x32xf32>
    %797 = arith.mulf %789, %796 : vector<1x32xf32>
    %798 = arith.addf %795, %797 : vector<1x32xf32>
    %c10_400 = arith.constant 10 : index
    %c0_401 = arith.constant 0 : index
    %799 = vector.load %arg4[%c10_400, %c0_401] : memref<16x32xf32, #tpu.memory_space<vmem>>, vector<1x32xf32>
    tpu.vector_store %arg4[%c10_400, %c0_401], %798 {strides = array<i32>} : memref<16x32xf32, #tpu.memory_space<vmem>>, vector<1x32xf32>,
    %c11_402 = arith.constant 11 : index
    %c0_403 = arith.constant 0 : index
    %800 = vector.load %arg5[%c11_402, %c0_403] : memref<16x32xf32, #tpu.memory_space<vmem>>, vector<1x32xf32>
    %cst_404 = arith.constant dense<0.000000e+00> : vector<1x32xf32>
    %801 = tpu.matmul %798, %491, %cst_404 {dimension_numbers = #tpu.dot_dimension_numbers<[1], [0], [0], [1], [0, 0, 1, 1], [], []>} : vector<1x32xf32>, vector<32x32xf32>, vector<1x32xf32> -> vector<1x32xf32>
    %802 = arith.addf %800, %801 : vector<1x32xf32>
    %803 = arith.negf %802 : vector<1x32xf32>
    %804 = math.exp %803 : vector<1x32xf32>
    %cst_405 = arith.constant 1.000000e+00 : f32
    %805 = vector.broadcast %cst_405 : f32 to vector<1x32xf32>
    %806 = arith.addf %805, %804 : vector<1x32xf32>
    %807 = arith.divf %805, %806 : vector<1x32xf32>
    %c11_406 = arith.constant 11 : index
    %c0_407 = arith.constant 0 : index
    %808 = vector.load %arg6[%c11_406, %c0_407] : memref<16x32xf32, #tpu.memory_space<vmem>>, vector<1x32xf32>
    %cst_408 = arith.constant dense<0.000000e+00> : vector<1x32xf32>
    %809 = tpu.matmul %798, %492, %cst_408 {dimension_numbers = #tpu.dot_dimension_numbers<[1], [0], [0], [1], [0, 0, 1, 1], [], []>} : vector<1x32xf32>, vector<32x32xf32>, vector<1x32xf32> -> vector<1x32xf32>
    %810 = arith.addf %808, %809 : vector<1x32xf32>
    %811 = arith.negf %810 : vector<1x32xf32>
    %812 = math.exp %811 : vector<1x32xf32>
    %cst_409 = arith.constant 1.000000e+00 : f32
    %813 = vector.broadcast %cst_409 : f32 to vector<1x32xf32>
    %814 = arith.addf %813, %812 : vector<1x32xf32>
    %815 = arith.divf %813, %814 : vector<1x32xf32>
    %c11_410 = arith.constant 11 : index
    %c0_411 = arith.constant 0 : index
    %816 = vector.load %arg7[%c11_410, %c0_411] : memref<16x32xf32, #tpu.memory_space<vmem>>, vector<1x32xf32>
    %cst_412 = arith.constant dense<0.000000e+00> : vector<1x32xf32>
    %817 = tpu.matmul %798, %493, %cst_412 {dimension_numbers = #tpu.dot_dimension_numbers<[1], [0], [0], [1], [0, 0, 1, 1], [], []>} : vector<1x32xf32>, vector<32x32xf32>, vector<1x32xf32> -> vector<1x32xf32>
    %818 = arith.addf %817, %496 : vector<1x32xf32>
    %819 = arith.mulf %807, %818 : vector<1x32xf32>
    %820 = arith.addf %816, %819 : vector<1x32xf32>
    %821 = math.tanh %820 : vector<1x32xf32>
    %822 = arith.subf %798, %821 : vector<1x32xf32>
    %823 = arith.mulf %815, %822 : vector<1x32xf32>
    %824 = arith.addf %821, %823 : vector<1x32xf32>
    %c11_413 = arith.constant 11 : index
    %c0_414 = arith.constant 0 : index
    %825 = vector.load %arg4[%c11_413, %c0_414] : memref<16x32xf32, #tpu.memory_space<vmem>>, vector<1x32xf32>
    tpu.vector_store %arg4[%c11_413, %c0_414], %824 {strides = array<i32>} : memref<16x32xf32, #tpu.memory_space<vmem>>, vector<1x32xf32>,
    %c12_415 = arith.constant 12 : index
    %c0_416 = arith.constant 0 : index
    %826 = vector.load %arg5[%c12_415, %c0_416] : memref<16x32xf32, #tpu.memory_space<vmem>>, vector<1x32xf32>
    %cst_417 = arith.constant dense<0.000000e+00> : vector<1x32xf32>
    %827 = tpu.matmul %824, %491, %cst_417 {dimension_numbers = #tpu.dot_dimension_numbers<[1], [0], [0], [1], [0, 0, 1, 1], [], []>} : vector<1x32xf32>, vector<32x32xf32>, vector<1x32xf32> -> vector<1x32xf32>
    %828 = arith.addf %826, %827 : vector<1x32xf32>
    %829 = arith.negf %828 : vector<1x32xf32>
    %830 = math.exp %829 : vector<1x32xf32>
    %cst_418 = arith.constant 1.000000e+00 : f32
    %831 = vector.broadcast %cst_418 : f32 to vector<1x32xf32>
    %832 = arith.addf %831, %830 : vector<1x32xf32>
    %833 = arith.divf %831, %832 : vector<1x32xf32>
    %c12_419 = arith.constant 12 : index
    %c0_420 = arith.constant 0 : index
    %834 = vector.load %arg6[%c12_419, %c0_420] : memref<16x32xf32, #tpu.memory_space<vmem>>, vector<1x32xf32>
    %cst_421 = arith.constant dense<0.000000e+00> : vector<1x32xf32>
    %835 = tpu.matmul %824, %492, %cst_421 {dimension_numbers = #tpu.dot_dimension_numbers<[1], [0], [0], [1], [0, 0, 1, 1], [], []>} : vector<1x32xf32>, vector<32x32xf32>, vector<1x32xf32> -> vector<1x32xf32>
    %836 = arith.addf %834, %835 : vector<1x32xf32>
    %837 = arith.negf %836 : vector<1x32xf32>
    %838 = math.exp %837 : vector<1x32xf32>
    %cst_422 = arith.constant 1.000000e+00 : f32
    %839 = vector.broadcast %cst_422 : f32 to vector<1x32xf32>
    %840 = arith.addf %839, %838 : vector<1x32xf32>
    %841 = arith.divf %839, %840 : vector<1x32xf32>
    %c12_423 = arith.constant 12 : index
    %c0_424 = arith.constant 0 : index
    %842 = vector.load %arg7[%c12_423, %c0_424] : memref<16x32xf32, #tpu.memory_space<vmem>>, vector<1x32xf32>
    %cst_425 = arith.constant dense<0.000000e+00> : vector<1x32xf32>
    %843 = tpu.matmul %824, %493, %cst_425 {dimension_numbers = #tpu.dot_dimension_numbers<[1], [0], [0], [1], [0, 0, 1, 1], [], []>} : vector<1x32xf32>, vector<32x32xf32>, vector<1x32xf32> -> vector<1x32xf32>
    %844 = arith.addf %843, %496 : vector<1x32xf32>
    %845 = arith.mulf %833, %844 : vector<1x32xf32>
    %846 = arith.addf %842, %845 : vector<1x32xf32>
    %847 = math.tanh %846 : vector<1x32xf32>
    %848 = arith.subf %824, %847 : vector<1x32xf32>
    %849 = arith.mulf %841, %848 : vector<1x32xf32>
    %850 = arith.addf %847, %849 : vector<1x32xf32>
    %c12_426 = arith.constant 12 : index
    %c0_427 = arith.constant 0 : index
    %851 = vector.load %arg4[%c12_426, %c0_427] : memref<16x32xf32, #tpu.memory_space<vmem>>, vector<1x32xf32>
    tpu.vector_store %arg4[%c12_426, %c0_427], %850 {strides = array<i32>} : memref<16x32xf32, #tpu.memory_space<vmem>>, vector<1x32xf32>,
    %c13_428 = arith.constant 13 : index
    %c0_429 = arith.constant 0 : index
    %852 = vector.load %arg5[%c13_428, %c0_429] : memref<16x32xf32, #tpu.memory_space<vmem>>, vector<1x32xf32>
    %cst_430 = arith.constant dense<0.000000e+00> : vector<1x32xf32>
    %853 = tpu.matmul %850, %491, %cst_430 {dimension_numbers = #tpu.dot_dimension_numbers<[1], [0], [0], [1], [0, 0, 1, 1], [], []>} : vector<1x32xf32>, vector<32x32xf32>, vector<1x32xf32> -> vector<1x32xf32>
    %854 = arith.addf %852, %853 : vector<1x32xf32>
    %855 = arith.negf %854 : vector<1x32xf32>
    %856 = math.exp %855 : vector<1x32xf32>
    %cst_431 = arith.constant 1.000000e+00 : f32
    %857 = vector.broadcast %cst_431 : f32 to vector<1x32xf32>
    %858 = arith.addf %857, %856 : vector<1x32xf32>
    %859 = arith.divf %857, %858 : vector<1x32xf32>
    %c13_432 = arith.constant 13 : index
    %c0_433 = arith.constant 0 : index
    %860 = vector.load %arg6[%c13_432, %c0_433] : memref<16x32xf32, #tpu.memory_space<vmem>>, vector<1x32xf32>
    %cst_434 = arith.constant dense<0.000000e+00> : vector<1x32xf32>
    %861 = tpu.matmul %850, %492, %cst_434 {dimension_numbers = #tpu.dot_dimension_numbers<[1], [0], [0], [1], [0, 0, 1, 1], [], []>} : vector<1x32xf32>, vector<32x32xf32>, vector<1x32xf32> -> vector<1x32xf32>
    %862 = arith.addf %860, %861 : vector<1x32xf32>
    %863 = arith.negf %862 : vector<1x32xf32>
    %864 = math.exp %863 : vector<1x32xf32>
    %cst_435 = arith.constant 1.000000e+00 : f32
    %865 = vector.broadcast %cst_435 : f32 to vector<1x32xf32>
    %866 = arith.addf %865, %864 : vector<1x32xf32>
    %867 = arith.divf %865, %866 : vector<1x32xf32>
    %c13_436 = arith.constant 13 : index
    %c0_437 = arith.constant 0 : index
    %868 = vector.load %arg7[%c13_436, %c0_437] : memref<16x32xf32, #tpu.memory_space<vmem>>, vector<1x32xf32>
    %cst_438 = arith.constant dense<0.000000e+00> : vector<1x32xf32>
    %869 = tpu.matmul %850, %493, %cst_438 {dimension_numbers = #tpu.dot_dimension_numbers<[1], [0], [0], [1], [0, 0, 1, 1], [], []>} : vector<1x32xf32>, vector<32x32xf32>, vector<1x32xf32> -> vector<1x32xf32>
    %870 = arith.addf %869, %496 : vector<1x32xf32>
    %871 = arith.mulf %859, %870 : vector<1x32xf32>
    %872 = arith.addf %868, %871 : vector<1x32xf32>
    %873 = math.tanh %872 : vector<1x32xf32>
    %874 = arith.subf %850, %873 : vector<1x32xf32>
    %875 = arith.mulf %867, %874 : vector<1x32xf32>
    %876 = arith.addf %873, %875 : vector<1x32xf32>
    %c13_439 = arith.constant 13 : index
    %c0_440 = arith.constant 0 : index
    %877 = vector.load %arg4[%c13_439, %c0_440] : memref<16x32xf32, #tpu.memory_space<vmem>>, vector<1x32xf32>
    tpu.vector_store %arg4[%c13_439, %c0_440], %876 {strides = array<i32>} : memref<16x32xf32, #tpu.memory_space<vmem>>, vector<1x32xf32>,
    %c14_441 = arith.constant 14 : index
    %c0_442 = arith.constant 0 : index
    %878 = vector.load %arg5[%c14_441, %c0_442] : memref<16x32xf32, #tpu.memory_space<vmem>>, vector<1x32xf32>
    %cst_443 = arith.constant dense<0.000000e+00> : vector<1x32xf32>
    %879 = tpu.matmul %876, %491, %cst_443 {dimension_numbers = #tpu.dot_dimension_numbers<[1], [0], [0], [1], [0, 0, 1, 1], [], []>} : vector<1x32xf32>, vector<32x32xf32>, vector<1x32xf32> -> vector<1x32xf32>
    %880 = arith.addf %878, %879 : vector<1x32xf32>
    %881 = arith.negf %880 : vector<1x32xf32>
    %882 = math.exp %881 : vector<1x32xf32>
    %cst_444 = arith.constant 1.000000e+00 : f32
    %883 = vector.broadcast %cst_444 : f32 to vector<1x32xf32>
    %884 = arith.addf %883, %882 : vector<1x32xf32>
    %885 = arith.divf %883, %884 : vector<1x32xf32>
    %c14_445 = arith.constant 14 : index
    %c0_446 = arith.constant 0 : index
    %886 = vector.load %arg6[%c14_445, %c0_446] : memref<16x32xf32, #tpu.memory_space<vmem>>, vector<1x32xf32>
    %cst_447 = arith.constant dense<0.000000e+00> : vector<1x32xf32>
    %887 = tpu.matmul %876, %492, %cst_447 {dimension_numbers = #tpu.dot_dimension_numbers<[1], [0], [0], [1], [0, 0, 1, 1], [], []>} : vector<1x32xf32>, vector<32x32xf32>, vector<1x32xf32> -> vector<1x32xf32>
    %888 = arith.addf %886, %887 : vector<1x32xf32>
    %889 = arith.negf %888 : vector<1x32xf32>
    %890 = math.exp %889 : vector<1x32xf32>
    %cst_448 = arith.constant 1.000000e+00 : f32
    %891 = vector.broadcast %cst_448 : f32 to vector<1x32xf32>
    %892 = arith.addf %891, %890 : vector<1x32xf32>
    %893 = arith.divf %891, %892 : vector<1x32xf32>
    %c14_449 = arith.constant 14 : index
    %c0_450 = arith.constant 0 : index
    %894 = vector.load %arg7[%c14_449, %c0_450] : memref<16x32xf32, #tpu.memory_space<vmem>>, vector<1x32xf32>
    %cst_451 = arith.constant dense<0.000000e+00> : vector<1x32xf32>
    %895 = tpu.matmul %876, %493, %cst_451 {dimension_numbers = #tpu.dot_dimension_numbers<[1], [0], [0], [1], [0, 0, 1, 1], [], []>} : vector<1x32xf32>, vector<32x32xf32>, vector<1x32xf32> -> vector<1x32xf32>
    %896 = arith.addf %895, %496 : vector<1x32xf32>
    %897 = arith.mulf %885, %896 : vector<1x32xf32>
    %898 = arith.addf %894, %897 : vector<1x32xf32>
    %899 = math.tanh %898 : vector<1x32xf32>
    %900 = arith.subf %876, %899 : vector<1x32xf32>
    %901 = arith.mulf %893, %900 : vector<1x32xf32>
    %902 = arith.addf %899, %901 : vector<1x32xf32>
    %c14_452 = arith.constant 14 : index
    %c0_453 = arith.constant 0 : index
    %903 = vector.load %arg4[%c14_452, %c0_453] : memref<16x32xf32, #tpu.memory_space<vmem>>, vector<1x32xf32>
    tpu.vector_store %arg4[%c14_452, %c0_453], %902 {strides = array<i32>} : memref<16x32xf32, #tpu.memory_space<vmem>>, vector<1x32xf32>,
    %c15_454 = arith.constant 15 : index
    %c0_455 = arith.constant 0 : index
    %904 = vector.load %arg5[%c15_454, %c0_455] : memref<16x32xf32, #tpu.memory_space<vmem>>, vector<1x32xf32>
    %cst_456 = arith.constant dense<0.000000e+00> : vector<1x32xf32>
    %905 = tpu.matmul %902, %491, %cst_456 {dimension_numbers = #tpu.dot_dimension_numbers<[1], [0], [0], [1], [0, 0, 1, 1], [], []>} : vector<1x32xf32>, vector<32x32xf32>, vector<1x32xf32> -> vector<1x32xf32>
    %906 = arith.addf %904, %905 : vector<1x32xf32>
    %907 = arith.negf %906 : vector<1x32xf32>
    %908 = math.exp %907 : vector<1x32xf32>
    %cst_457 = arith.constant 1.000000e+00 : f32
    %909 = vector.broadcast %cst_457 : f32 to vector<1x32xf32>
    %910 = arith.addf %909, %908 : vector<1x32xf32>
    %911 = arith.divf %909, %910 : vector<1x32xf32>
    %c15_458 = arith.constant 15 : index
    %c0_459 = arith.constant 0 : index
    %912 = vector.load %arg6[%c15_458, %c0_459] : memref<16x32xf32, #tpu.memory_space<vmem>>, vector<1x32xf32>
    %cst_460 = arith.constant dense<0.000000e+00> : vector<1x32xf32>
    %913 = tpu.matmul %902, %492, %cst_460 {dimension_numbers = #tpu.dot_dimension_numbers<[1], [0], [0], [1], [0, 0, 1, 1], [], []>} : vector<1x32xf32>, vector<32x32xf32>, vector<1x32xf32> -> vector<1x32xf32>
    %914 = arith.addf %912, %913 : vector<1x32xf32>
    %915 = arith.negf %914 : vector<1x32xf32>
    %916 = math.exp %915 : vector<1x32xf32>
    %cst_461 = arith.constant 1.000000e+00 : f32
    %917 = vector.broadcast %cst_461 : f32 to vector<1x32xf32>
    %918 = arith.addf %917, %916 : vector<1x32xf32>
    %919 = arith.divf %917, %918 : vector<1x32xf32>
    %c15_462 = arith.constant 15 : index
    %c0_463 = arith.constant 0 : index
    %920 = vector.load %arg7[%c15_462, %c0_463] : memref<16x32xf32, #tpu.memory_space<vmem>>, vector<1x32xf32>
    %cst_464 = arith.constant dense<0.000000e+00> : vector<1x32xf32>
    %921 = tpu.matmul %902, %493, %cst_464 {dimension_numbers = #tpu.dot_dimension_numbers<[1], [0], [0], [1], [0, 0, 1, 1], [], []>} : vector<1x32xf32>, vector<32x32xf32>, vector<1x32xf32> -> vector<1x32xf32>
    %922 = arith.addf %921, %496 : vector<1x32xf32>
    %923 = arith.mulf %911, %922 : vector<1x32xf32>
    %924 = arith.addf %920, %923 : vector<1x32xf32>
    %925 = math.tanh %924 : vector<1x32xf32>
    %926 = arith.subf %902, %925 : vector<1x32xf32>
    %927 = arith.mulf %919, %926 : vector<1x32xf32>
    %928 = arith.addf %925, %927 : vector<1x32xf32>
    %c15_465 = arith.constant 15 : index
    %c0_466 = arith.constant 0 : index
    %929 = vector.load %arg4[%c15_465, %c0_466] : memref<16x32xf32, #tpu.memory_space<vmem>>, vector<1x32xf32>
    tpu.vector_store %arg4[%c15_465, %c0_466], %928 {strides = array<i32>} : memref<16x32xf32, #tpu.memory_space<vmem>>, vector<1x32xf32>,
    %c0_467 = arith.constant 0 : index
    %c0_468 = arith.constant 0 : index
    %930 = vector.load %arg4[%c0_467, %c0_468] : memref<16x32xf32, #tpu.memory_space<vmem>>, vector<16x32xf32>
    %cst_469 = arith.constant dense<0.000000e+00> : vector<16x64xf32>
    %931 = tpu.matmul %930, %36, %cst_469 {dimension_numbers = #tpu.dot_dimension_numbers<[1], [0], [0], [1], [0, 0, 1, 1], [], []>} : vector<16x32xf32>, vector<32x64xf32>, vector<16x64xf32> -> vector<16x64xf32>
    %932 = vector.broadcast %37 : vector<1x64xf32> to vector<16x64xf32>
    %933 = arith.addf %931, %932 : vector<16x64xf32>
    %934 = vector.extract_strided_slice %933 {offsets = [0, 0], sizes = [16, 32], strides = [1, 1]} : vector<16x64xf32> to vector<16x32xf32>
    %935 = vector.extract_strided_slice %933 {offsets = [0, 32], sizes = [16, 32], strides = [1, 1]} : vector<16x64xf32> to vector<16x32xf32>
    %936 = arith.negf %935 : vector<16x32xf32>
    %937 = math.exp %936 : vector<16x32xf32>
    %cst_470 = arith.constant 1.000000e+00 : f32
    %938 = vector.broadcast %cst_470 : f32 to vector<16x32xf32>
    %939 = arith.addf %938, %937 : vector<16x32xf32>
    %940 = arith.divf %938, %939 : vector<16x32xf32>
    %941 = arith.mulf %935, %940 : vector<16x32xf32>
    %942 = arith.mulf %934, %941 : vector<16x32xf32>
    %c0_471 = arith.constant 0 : index
    %c0_472 = arith.constant 0 : index
    %943 = vector.load %arg4[%c0_471, %c0_472] : memref<16x32xf32, #tpu.memory_space<vmem>>, vector<16x32xf32>
    tpu.vector_store %arg4[%c0_471, %c0_472], %942 {strides = array<i32>} : memref<16x32xf32, #tpu.memory_space<vmem>>, vector<16x32xf32>,
    %c328 = arith.constant 328 : index
    %c0_473 = arith.constant 0 : index
    %944 = vector.load %arg1[%c328, %c0_473] : memref<680x96xf32, #tpu.memory_space<vmem>>, vector<32x32xf32>
    %c360 = arith.constant 360 : index
    %c0_474 = arith.constant 0 : index
    %945 = vector.load %arg1[%c360, %c0_474] : memref<680x96xf32, #tpu.memory_space<vmem>>, vector<32x32xf32>
    %c392 = arith.constant 392 : index
    %c0_475 = arith.constant 0 : index
    %946 = vector.load %arg1[%c392, %c0_475] : memref<680x96xf32, #tpu.memory_space<vmem>>, vector<32x32xf32>
    %c11_476 = arith.constant 11 : index
    %c0_477 = arith.constant 0 : index
    %947 = vector.load %arg2[%c11_476, %c0_477] : memref<24x96xf32, #tpu.memory_space<vmem>>, vector<1x32xf32>
    %c12_478 = arith.constant 12 : index
    %c0_479 = arith.constant 0 : index
    %948 = vector.load %arg2[%c12_478, %c0_479] : memref<24x96xf32, #tpu.memory_space<vmem>>, vector<1x32xf32>
    %c13_480 = arith.constant 13 : index
    %c0_481 = arith.constant 0 : index
    %949 = vector.load %arg2[%c13_480, %c0_481] : memref<24x96xf32, #tpu.memory_space<vmem>>, vector<1x32xf32>
    %c0_482 = arith.constant 0 : index
    %c0_483 = arith.constant 0 : index
    %950 = vector.load %arg4[%c0_482, %c0_483] : memref<16x32xf32, #tpu.memory_space<vmem>>, vector<16x32xf32>
    %c104 = arith.constant 104 : index
    %c0_484 = arith.constant 0 : index
    %951 = vector.load %arg1[%c104, %c0_484] : memref<680x96xf32, #tpu.memory_space<vmem>>, vector<32x96xf32>
    %cst_485 = arith.constant dense<0.000000e+00> : vector<16x96xf32>
    %952 = tpu.matmul %950, %951, %cst_485 {dimension_numbers = #tpu.dot_dimension_numbers<[1], [0], [0], [1], [0, 0, 1, 1], [], []>} : vector<16x32xf32>, vector<32x96xf32>, vector<16x96xf32> -> vector<16x96xf32>
    %c4_486 = arith.constant 4 : index
    %c0_487 = arith.constant 0 : index
    %953 = vector.load %arg2[%c4_486, %c0_487] : memref<24x96xf32, #tpu.memory_space<vmem>>, vector<1x96xf32>
    %954 = vector.broadcast %953 : vector<1x96xf32> to vector<16x96xf32>
    %955 = arith.addf %952, %954 : vector<16x96xf32>
    %956 = vector.extract_strided_slice %955 {offsets = [0, 0], sizes = [16, 32], strides = [1, 1]} : vector<16x96xf32> to vector<16x32xf32>
    %957 = vector.broadcast %947 : vector<1x32xf32> to vector<16x32xf32>
    %958 = arith.addf %956, %957 : vector<16x32xf32>
    %c0_488 = arith.constant 0 : index
    %c0_489 = arith.constant 0 : index
    %959 = vector.load %arg5[%c0_488, %c0_489] : memref<16x32xf32, #tpu.memory_space<vmem>>, vector<16x32xf32>
    tpu.vector_store %arg5[%c0_488, %c0_489], %958 {strides = array<i32>} : memref<16x32xf32, #tpu.memory_space<vmem>>, vector<16x32xf32>,
    %960 = vector.extract_strided_slice %955 {offsets = [0, 32], sizes = [16, 32], strides = [1, 1]} : vector<16x96xf32> to vector<16x32xf32>
    %961 = vector.broadcast %948 : vector<1x32xf32> to vector<16x32xf32>
    %962 = arith.addf %960, %961 : vector<16x32xf32>
    %c0_490 = arith.constant 0 : index
    %c0_491 = arith.constant 0 : index
    %963 = vector.load %arg6[%c0_490, %c0_491] : memref<16x32xf32, #tpu.memory_space<vmem>>, vector<16x32xf32>
    tpu.vector_store %arg6[%c0_490, %c0_491], %962 {strides = array<i32>} : memref<16x32xf32, #tpu.memory_space<vmem>>, vector<16x32xf32>,
    %964 = vector.extract_strided_slice %955 {offsets = [0, 64], sizes = [16, 32], strides = [1, 1]} : vector<16x96xf32> to vector<16x32xf32>
    %c0_492 = arith.constant 0 : index
    %c0_493 = arith.constant 0 : index
    %965 = vector.load %arg7[%c0_492, %c0_493] : memref<16x32xf32, #tpu.memory_space<vmem>>, vector<16x32xf32>
    tpu.vector_store %arg7[%c0_492, %c0_493], %964 {strides = array<i32>} : memref<16x32xf32, #tpu.memory_space<vmem>>, vector<16x32xf32>,
    %cst_494 = arith.constant 0.000000e+00 : f32
    %966 = vector.broadcast %cst_494 : f32 to vector<1x32xf32>
    %c0_495 = arith.constant 0 : index
    %c0_496 = arith.constant 0 : index
    %967 = vector.load %arg5[%c0_495, %c0_496] : memref<16x32xf32, #tpu.memory_space<vmem>>, vector<1x32xf32>
    %cst_497 = arith.constant dense<0.000000e+00> : vector<1x32xf32>
    %968 = tpu.matmul %966, %944, %cst_497 {dimension_numbers = #tpu.dot_dimension_numbers<[1], [0], [0], [1], [0, 0, 1, 1], [], []>} : vector<1x32xf32>, vector<32x32xf32>, vector<1x32xf32> -> vector<1x32xf32>
    %969 = arith.addf %967, %968 : vector<1x32xf32>
    %970 = arith.negf %969 : vector<1x32xf32>
    %971 = math.exp %970 : vector<1x32xf32>
    %cst_498 = arith.constant 1.000000e+00 : f32
    %972 = vector.broadcast %cst_498 : f32 to vector<1x32xf32>
    %973 = arith.addf %972, %971 : vector<1x32xf32>
    %974 = arith.divf %972, %973 : vector<1x32xf32>
    %c0_499 = arith.constant 0 : index
    %c0_500 = arith.constant 0 : index
    %975 = vector.load %arg6[%c0_499, %c0_500] : memref<16x32xf32, #tpu.memory_space<vmem>>, vector<1x32xf32>
    %cst_501 = arith.constant dense<0.000000e+00> : vector<1x32xf32>
    %976 = tpu.matmul %966, %945, %cst_501 {dimension_numbers = #tpu.dot_dimension_numbers<[1], [0], [0], [1], [0, 0, 1, 1], [], []>} : vector<1x32xf32>, vector<32x32xf32>, vector<1x32xf32> -> vector<1x32xf32>
    %977 = arith.addf %975, %976 : vector<1x32xf32>
    %978 = arith.negf %977 : vector<1x32xf32>
    %979 = math.exp %978 : vector<1x32xf32>
    %cst_502 = arith.constant 1.000000e+00 : f32
    %980 = vector.broadcast %cst_502 : f32 to vector<1x32xf32>
    %981 = arith.addf %980, %979 : vector<1x32xf32>
    %982 = arith.divf %980, %981 : vector<1x32xf32>
    %c0_503 = arith.constant 0 : index
    %c0_504 = arith.constant 0 : index
    %983 = vector.load %arg7[%c0_503, %c0_504] : memref<16x32xf32, #tpu.memory_space<vmem>>, vector<1x32xf32>
    %cst_505 = arith.constant dense<0.000000e+00> : vector<1x32xf32>
    %984 = tpu.matmul %966, %946, %cst_505 {dimension_numbers = #tpu.dot_dimension_numbers<[1], [0], [0], [1], [0, 0, 1, 1], [], []>} : vector<1x32xf32>, vector<32x32xf32>, vector<1x32xf32> -> vector<1x32xf32>
    %985 = arith.addf %984, %949 : vector<1x32xf32>
    %986 = arith.mulf %974, %985 : vector<1x32xf32>
    %987 = arith.addf %983, %986 : vector<1x32xf32>
    %988 = math.tanh %987 : vector<1x32xf32>
    %989 = arith.subf %966, %988 : vector<1x32xf32>
    %990 = arith.mulf %982, %989 : vector<1x32xf32>
    %991 = arith.addf %988, %990 : vector<1x32xf32>
    %c0_506 = arith.constant 0 : index
    %c0_507 = arith.constant 0 : index
    %992 = vector.load %arg4[%c0_506, %c0_507] : memref<16x32xf32, #tpu.memory_space<vmem>>, vector<1x32xf32>
    tpu.vector_store %arg4[%c0_506, %c0_507], %991 {strides = array<i32>} : memref<16x32xf32, #tpu.memory_space<vmem>>, vector<1x32xf32>,
    %c1_508 = arith.constant 1 : index
    %c0_509 = arith.constant 0 : index
    %993 = vector.load %arg5[%c1_508, %c0_509] : memref<16x32xf32, #tpu.memory_space<vmem>>, vector<1x32xf32>
    %cst_510 = arith.constant dense<0.000000e+00> : vector<1x32xf32>
    %994 = tpu.matmul %991, %944, %cst_510 {dimension_numbers = #tpu.dot_dimension_numbers<[1], [0], [0], [1], [0, 0, 1, 1], [], []>} : vector<1x32xf32>, vector<32x32xf32>, vector<1x32xf32> -> vector<1x32xf32>
    %995 = arith.addf %993, %994 : vector<1x32xf32>
    %996 = arith.negf %995 : vector<1x32xf32>
    %997 = math.exp %996 : vector<1x32xf32>
    %cst_511 = arith.constant 1.000000e+00 : f32
    %998 = vector.broadcast %cst_511 : f32 to vector<1x32xf32>
    %999 = arith.addf %998, %997 : vector<1x32xf32>
    %1000 = arith.divf %998, %999 : vector<1x32xf32>
    %c1_512 = arith.constant 1 : index
    %c0_513 = arith.constant 0 : index
    %1001 = vector.load %arg6[%c1_512, %c0_513] : memref<16x32xf32, #tpu.memory_space<vmem>>, vector<1x32xf32>
    %cst_514 = arith.constant dense<0.000000e+00> : vector<1x32xf32>
    %1002 = tpu.matmul %991, %945, %cst_514 {dimension_numbers = #tpu.dot_dimension_numbers<[1], [0], [0], [1], [0, 0, 1, 1], [], []>} : vector<1x32xf32>, vector<32x32xf32>, vector<1x32xf32> -> vector<1x32xf32>
    %1003 = arith.addf %1001, %1002 : vector<1x32xf32>
    %1004 = arith.negf %1003 : vector<1x32xf32>
    %1005 = math.exp %1004 : vector<1x32xf32>
    %cst_515 = arith.constant 1.000000e+00 : f32
    %1006 = vector.broadcast %cst_515 : f32 to vector<1x32xf32>
    %1007 = arith.addf %1006, %1005 : vector<1x32xf32>
    %1008 = arith.divf %1006, %1007 : vector<1x32xf32>
    %c1_516 = arith.constant 1 : index
    %c0_517 = arith.constant 0 : index
    %1009 = vector.load %arg7[%c1_516, %c0_517] : memref<16x32xf32, #tpu.memory_space<vmem>>, vector<1x32xf32>
    %cst_518 = arith.constant dense<0.000000e+00> : vector<1x32xf32>
    %1010 = tpu.matmul %991, %946, %cst_518 {dimension_numbers = #tpu.dot_dimension_numbers<[1], [0], [0], [1], [0, 0, 1, 1], [], []>} : vector<1x32xf32>, vector<32x32xf32>, vector<1x32xf32> -> vector<1x32xf32>
    %1011 = arith.addf %1010, %949 : vector<1x32xf32>
    %1012 = arith.mulf %1000, %1011 : vector<1x32xf32>
    %1013 = arith.addf %1009, %1012 : vector<1x32xf32>
    %1014 = math.tanh %1013 : vector<1x32xf32>
    %1015 = arith.subf %991, %1014 : vector<1x32xf32>
    %1016 = arith.mulf %1008, %1015 : vector<1x32xf32>
    %1017 = arith.addf %1014, %1016 : vector<1x32xf32>
    %c1_519 = arith.constant 1 : index
    %c0_520 = arith.constant 0 : index
    %1018 = vector.load %arg4[%c1_519, %c0_520] : memref<16x32xf32, #tpu.memory_space<vmem>>, vector<1x32xf32>
    tpu.vector_store %arg4[%c1_519, %c0_520], %1017 {strides = array<i32>} : memref<16x32xf32, #tpu.memory_space<vmem>>, vector<1x32xf32>,
    %c2_521 = arith.constant 2 : index
    %c0_522 = arith.constant 0 : index
    %1019 = vector.load %arg5[%c2_521, %c0_522] : memref<16x32xf32, #tpu.memory_space<vmem>>, vector<1x32xf32>
    %cst_523 = arith.constant dense<0.000000e+00> : vector<1x32xf32>
    %1020 = tpu.matmul %1017, %944, %cst_523 {dimension_numbers = #tpu.dot_dimension_numbers<[1], [0], [0], [1], [0, 0, 1, 1], [], []>} : vector<1x32xf32>, vector<32x32xf32>, vector<1x32xf32> -> vector<1x32xf32>
    %1021 = arith.addf %1019, %1020 : vector<1x32xf32>
    %1022 = arith.negf %1021 : vector<1x32xf32>
    %1023 = math.exp %1022 : vector<1x32xf32>
    %cst_524 = arith.constant 1.000000e+00 : f32
    %1024 = vector.broadcast %cst_524 : f32 to vector<1x32xf32>
    %1025 = arith.addf %1024, %1023 : vector<1x32xf32>
    %1026 = arith.divf %1024, %1025 : vector<1x32xf32>
    %c2_525 = arith.constant 2 : index
    %c0_526 = arith.constant 0 : index
    %1027 = vector.load %arg6[%c2_525, %c0_526] : memref<16x32xf32, #tpu.memory_space<vmem>>, vector<1x32xf32>
    %cst_527 = arith.constant dense<0.000000e+00> : vector<1x32xf32>
    %1028 = tpu.matmul %1017, %945, %cst_527 {dimension_numbers = #tpu.dot_dimension_numbers<[1], [0], [0], [1], [0, 0, 1, 1], [], []>} : vector<1x32xf32>, vector<32x32xf32>, vector<1x32xf32> -> vector<1x32xf32>
    %1029 = arith.addf %1027, %1028 : vector<1x32xf32>
    %1030 = arith.negf %1029 : vector<1x32xf32>
    %1031 = math.exp %1030 : vector<1x32xf32>
    %cst_528 = arith.constant 1.000000e+00 : f32
    %1032 = vector.broadcast %cst_528 : f32 to vector<1x32xf32>
    %1033 = arith.addf %1032, %1031 : vector<1x32xf32>
    %1034 = arith.divf %1032, %1033 : vector<1x32xf32>
    %c2_529 = arith.constant 2 : index
    %c0_530 = arith.constant 0 : index
    %1035 = vector.load %arg7[%c2_529, %c0_530] : memref<16x32xf32, #tpu.memory_space<vmem>>, vector<1x32xf32>
    %cst_531 = arith.constant dense<0.000000e+00> : vector<1x32xf32>
    %1036 = tpu.matmul %1017, %946, %cst_531 {dimension_numbers = #tpu.dot_dimension_numbers<[1], [0], [0], [1], [0, 0, 1, 1], [], []>} : vector<1x32xf32>, vector<32x32xf32>, vector<1x32xf32> -> vector<1x32xf32>
    %1037 = arith.addf %1036, %949 : vector<1x32xf32>
    %1038 = arith.mulf %1026, %1037 : vector<1x32xf32>
    %1039 = arith.addf %1035, %1038 : vector<1x32xf32>
    %1040 = math.tanh %1039 : vector<1x32xf32>
    %1041 = arith.subf %1017, %1040 : vector<1x32xf32>
    %1042 = arith.mulf %1034, %1041 : vector<1x32xf32>
    %1043 = arith.addf %1040, %1042 : vector<1x32xf32>
    %c2_532 = arith.constant 2 : index
    %c0_533 = arith.constant 0 : index
    %1044 = vector.load %arg4[%c2_532, %c0_533] : memref<16x32xf32, #tpu.memory_space<vmem>>, vector<1x32xf32>
    tpu.vector_store %arg4[%c2_532, %c0_533], %1043 {strides = array<i32>} : memref<16x32xf32, #tpu.memory_space<vmem>>, vector<1x32xf32>,
    %c3_534 = arith.constant 3 : index
    %c0_535 = arith.constant 0 : index
    %1045 = vector.load %arg5[%c3_534, %c0_535] : memref<16x32xf32, #tpu.memory_space<vmem>>, vector<1x32xf32>
    %cst_536 = arith.constant dense<0.000000e+00> : vector<1x32xf32>
    %1046 = tpu.matmul %1043, %944, %cst_536 {dimension_numbers = #tpu.dot_dimension_numbers<[1], [0], [0], [1], [0, 0, 1, 1], [], []>} : vector<1x32xf32>, vector<32x32xf32>, vector<1x32xf32> -> vector<1x32xf32>
    %1047 = arith.addf %1045, %1046 : vector<1x32xf32>
    %1048 = arith.negf %1047 : vector<1x32xf32>
    %1049 = math.exp %1048 : vector<1x32xf32>
    %cst_537 = arith.constant 1.000000e+00 : f32
    %1050 = vector.broadcast %cst_537 : f32 to vector<1x32xf32>
    %1051 = arith.addf %1050, %1049 : vector<1x32xf32>
    %1052 = arith.divf %1050, %1051 : vector<1x32xf32>
    %c3_538 = arith.constant 3 : index
    %c0_539 = arith.constant 0 : index
    %1053 = vector.load %arg6[%c3_538, %c0_539] : memref<16x32xf32, #tpu.memory_space<vmem>>, vector<1x32xf32>
    %cst_540 = arith.constant dense<0.000000e+00> : vector<1x32xf32>
    %1054 = tpu.matmul %1043, %945, %cst_540 {dimension_numbers = #tpu.dot_dimension_numbers<[1], [0], [0], [1], [0, 0, 1, 1], [], []>} : vector<1x32xf32>, vector<32x32xf32>, vector<1x32xf32> -> vector<1x32xf32>
    %1055 = arith.addf %1053, %1054 : vector<1x32xf32>
    %1056 = arith.negf %1055 : vector<1x32xf32>
    %1057 = math.exp %1056 : vector<1x32xf32>
    %cst_541 = arith.constant 1.000000e+00 : f32
    %1058 = vector.broadcast %cst_541 : f32 to vector<1x32xf32>
    %1059 = arith.addf %1058, %1057 : vector<1x32xf32>
    %1060 = arith.divf %1058, %1059 : vector<1x32xf32>
    %c3_542 = arith.constant 3 : index
    %c0_543 = arith.constant 0 : index
    %1061 = vector.load %arg7[%c3_542, %c0_543] : memref<16x32xf32, #tpu.memory_space<vmem>>, vector<1x32xf32>
    %cst_544 = arith.constant dense<0.000000e+00> : vector<1x32xf32>
    %1062 = tpu.matmul %1043, %946, %cst_544 {dimension_numbers = #tpu.dot_dimension_numbers<[1], [0], [0], [1], [0, 0, 1, 1], [], []>} : vector<1x32xf32>, vector<32x32xf32>, vector<1x32xf32> -> vector<1x32xf32>
    %1063 = arith.addf %1062, %949 : vector<1x32xf32>
    %1064 = arith.mulf %1052, %1063 : vector<1x32xf32>
    %1065 = arith.addf %1061, %1064 : vector<1x32xf32>
    %1066 = math.tanh %1065 : vector<1x32xf32>
    %1067 = arith.subf %1043, %1066 : vector<1x32xf32>
    %1068 = arith.mulf %1060, %1067 : vector<1x32xf32>
    %1069 = arith.addf %1066, %1068 : vector<1x32xf32>
    %c3_545 = arith.constant 3 : index
    %c0_546 = arith.constant 0 : index
    %1070 = vector.load %arg4[%c3_545, %c0_546] : memref<16x32xf32, #tpu.memory_space<vmem>>, vector<1x32xf32>
    tpu.vector_store %arg4[%c3_545, %c0_546], %1069 {strides = array<i32>} : memref<16x32xf32, #tpu.memory_space<vmem>>, vector<1x32xf32>,
    %c4_547 = arith.constant 4 : index
    %c0_548 = arith.constant 0 : index
    %1071 = vector.load %arg5[%c4_547, %c0_548] : memref<16x32xf32, #tpu.memory_space<vmem>>, vector<1x32xf32>
    %cst_549 = arith.constant dense<0.000000e+00> : vector<1x32xf32>
    %1072 = tpu.matmul %1069, %944, %cst_549 {dimension_numbers = #tpu.dot_dimension_numbers<[1], [0], [0], [1], [0, 0, 1, 1], [], []>} : vector<1x32xf32>, vector<32x32xf32>, vector<1x32xf32> -> vector<1x32xf32>
    %1073 = arith.addf %1071, %1072 : vector<1x32xf32>
    %1074 = arith.negf %1073 : vector<1x32xf32>
    %1075 = math.exp %1074 : vector<1x32xf32>
    %cst_550 = arith.constant 1.000000e+00 : f32
    %1076 = vector.broadcast %cst_550 : f32 to vector<1x32xf32>
    %1077 = arith.addf %1076, %1075 : vector<1x32xf32>
    %1078 = arith.divf %1076, %1077 : vector<1x32xf32>
    %c4_551 = arith.constant 4 : index
    %c0_552 = arith.constant 0 : index
    %1079 = vector.load %arg6[%c4_551, %c0_552] : memref<16x32xf32, #tpu.memory_space<vmem>>, vector<1x32xf32>
    %cst_553 = arith.constant dense<0.000000e+00> : vector<1x32xf32>
    %1080 = tpu.matmul %1069, %945, %cst_553 {dimension_numbers = #tpu.dot_dimension_numbers<[1], [0], [0], [1], [0, 0, 1, 1], [], []>} : vector<1x32xf32>, vector<32x32xf32>, vector<1x32xf32> -> vector<1x32xf32>
    %1081 = arith.addf %1079, %1080 : vector<1x32xf32>
    %1082 = arith.negf %1081 : vector<1x32xf32>
    %1083 = math.exp %1082 : vector<1x32xf32>
    %cst_554 = arith.constant 1.000000e+00 : f32
    %1084 = vector.broadcast %cst_554 : f32 to vector<1x32xf32>
    %1085 = arith.addf %1084, %1083 : vector<1x32xf32>
    %1086 = arith.divf %1084, %1085 : vector<1x32xf32>
    %c4_555 = arith.constant 4 : index
    %c0_556 = arith.constant 0 : index
    %1087 = vector.load %arg7[%c4_555, %c0_556] : memref<16x32xf32, #tpu.memory_space<vmem>>, vector<1x32xf32>
    %cst_557 = arith.constant dense<0.000000e+00> : vector<1x32xf32>
    %1088 = tpu.matmul %1069, %946, %cst_557 {dimension_numbers = #tpu.dot_dimension_numbers<[1], [0], [0], [1], [0, 0, 1, 1], [], []>} : vector<1x32xf32>, vector<32x32xf32>, vector<1x32xf32> -> vector<1x32xf32>
    %1089 = arith.addf %1088, %949 : vector<1x32xf32>
    %1090 = arith.mulf %1078, %1089 : vector<1x32xf32>
    %1091 = arith.addf %1087, %1090 : vector<1x32xf32>
    %1092 = math.tanh %1091 : vector<1x32xf32>
    %1093 = arith.subf %1069, %1092 : vector<1x32xf32>
    %1094 = arith.mulf %1086, %1093 : vector<1x32xf32>
    %1095 = arith.addf %1092, %1094 : vector<1x32xf32>
    %c4_558 = arith.constant 4 : index
    %c0_559 = arith.constant 0 : index
    %1096 = vector.load %arg4[%c4_558, %c0_559] : memref<16x32xf32, #tpu.memory_space<vmem>>, vector<1x32xf32>
    tpu.vector_store %arg4[%c4_558, %c0_559], %1095 {strides = array<i32>} : memref<16x32xf32, #tpu.memory_space<vmem>>, vector<1x32xf32>,
    %c5_560 = arith.constant 5 : index
    %c0_561 = arith.constant 0 : index
    %1097 = vector.load %arg5[%c5_560, %c0_561] : memref<16x32xf32, #tpu.memory_space<vmem>>, vector<1x32xf32>
    %cst_562 = arith.constant dense<0.000000e+00> : vector<1x32xf32>
    %1098 = tpu.matmul %1095, %944, %cst_562 {dimension_numbers = #tpu.dot_dimension_numbers<[1], [0], [0], [1], [0, 0, 1, 1], [], []>} : vector<1x32xf32>, vector<32x32xf32>, vector<1x32xf32> -> vector<1x32xf32>
    %1099 = arith.addf %1097, %1098 : vector<1x32xf32>
    %1100 = arith.negf %1099 : vector<1x32xf32>
    %1101 = math.exp %1100 : vector<1x32xf32>
    %cst_563 = arith.constant 1.000000e+00 : f32
    %1102 = vector.broadcast %cst_563 : f32 to vector<1x32xf32>
    %1103 = arith.addf %1102, %1101 : vector<1x32xf32>
    %1104 = arith.divf %1102, %1103 : vector<1x32xf32>
    %c5_564 = arith.constant 5 : index
    %c0_565 = arith.constant 0 : index
    %1105 = vector.load %arg6[%c5_564, %c0_565] : memref<16x32xf32, #tpu.memory_space<vmem>>, vector<1x32xf32>
    %cst_566 = arith.constant dense<0.000000e+00> : vector<1x32xf32>
    %1106 = tpu.matmul %1095, %945, %cst_566 {dimension_numbers = #tpu.dot_dimension_numbers<[1], [0], [0], [1], [0, 0, 1, 1], [], []>} : vector<1x32xf32>, vector<32x32xf32>, vector<1x32xf32> -> vector<1x32xf32>
    %1107 = arith.addf %1105, %1106 : vector<1x32xf32>
    %1108 = arith.negf %1107 : vector<1x32xf32>
    %1109 = math.exp %1108 : vector<1x32xf32>
    %cst_567 = arith.constant 1.000000e+00 : f32
    %1110 = vector.broadcast %cst_567 : f32 to vector<1x32xf32>
    %1111 = arith.addf %1110, %1109 : vector<1x32xf32>
    %1112 = arith.divf %1110, %1111 : vector<1x32xf32>
    %c5_568 = arith.constant 5 : index
    %c0_569 = arith.constant 0 : index
    %1113 = vector.load %arg7[%c5_568, %c0_569] : memref<16x32xf32, #tpu.memory_space<vmem>>, vector<1x32xf32>
    %cst_570 = arith.constant dense<0.000000e+00> : vector<1x32xf32>
    %1114 = tpu.matmul %1095, %946, %cst_570 {dimension_numbers = #tpu.dot_dimension_numbers<[1], [0], [0], [1], [0, 0, 1, 1], [], []>} : vector<1x32xf32>, vector<32x32xf32>, vector<1x32xf32> -> vector<1x32xf32>
    %1115 = arith.addf %1114, %949 : vector<1x32xf32>
    %1116 = arith.mulf %1104, %1115 : vector<1x32xf32>
    %1117 = arith.addf %1113, %1116 : vector<1x32xf32>
    %1118 = math.tanh %1117 : vector<1x32xf32>
    %1119 = arith.subf %1095, %1118 : vector<1x32xf32>
    %1120 = arith.mulf %1112, %1119 : vector<1x32xf32>
    %1121 = arith.addf %1118, %1120 : vector<1x32xf32>
    %c5_571 = arith.constant 5 : index
    %c0_572 = arith.constant 0 : index
    %1122 = vector.load %arg4[%c5_571, %c0_572] : memref<16x32xf32, #tpu.memory_space<vmem>>, vector<1x32xf32>
    tpu.vector_store %arg4[%c5_571, %c0_572], %1121 {strides = array<i32>} : memref<16x32xf32, #tpu.memory_space<vmem>>, vector<1x32xf32>,
    %c6_573 = arith.constant 6 : index
    %c0_574 = arith.constant 0 : index
    %1123 = vector.load %arg5[%c6_573, %c0_574] : memref<16x32xf32, #tpu.memory_space<vmem>>, vector<1x32xf32>
    %cst_575 = arith.constant dense<0.000000e+00> : vector<1x32xf32>
    %1124 = tpu.matmul %1121, %944, %cst_575 {dimension_numbers = #tpu.dot_dimension_numbers<[1], [0], [0], [1], [0, 0, 1, 1], [], []>} : vector<1x32xf32>, vector<32x32xf32>, vector<1x32xf32> -> vector<1x32xf32>
    %1125 = arith.addf %1123, %1124 : vector<1x32xf32>
    %1126 = arith.negf %1125 : vector<1x32xf32>
    %1127 = math.exp %1126 : vector<1x32xf32>
    %cst_576 = arith.constant 1.000000e+00 : f32
    %1128 = vector.broadcast %cst_576 : f32 to vector<1x32xf32>
    %1129 = arith.addf %1128, %1127 : vector<1x32xf32>
    %1130 = arith.divf %1128, %1129 : vector<1x32xf32>
    %c6_577 = arith.constant 6 : index
    %c0_578 = arith.constant 0 : index
    %1131 = vector.load %arg6[%c6_577, %c0_578] : memref<16x32xf32, #tpu.memory_space<vmem>>, vector<1x32xf32>
    %cst_579 = arith.constant dense<0.000000e+00> : vector<1x32xf32>
    %1132 = tpu.matmul %1121, %945, %cst_579 {dimension_numbers = #tpu.dot_dimension_numbers<[1], [0], [0], [1], [0, 0, 1, 1], [], []>} : vector<1x32xf32>, vector<32x32xf32>, vector<1x32xf32> -> vector<1x32xf32>
    %1133 = arith.addf %1131, %1132 : vector<1x32xf32>
    %1134 = arith.negf %1133 : vector<1x32xf32>
    %1135 = math.exp %1134 : vector<1x32xf32>
    %cst_580 = arith.constant 1.000000e+00 : f32
    %1136 = vector.broadcast %cst_580 : f32 to vector<1x32xf32>
    %1137 = arith.addf %1136, %1135 : vector<1x32xf32>
    %1138 = arith.divf %1136, %1137 : vector<1x32xf32>
    %c6_581 = arith.constant 6 : index
    %c0_582 = arith.constant 0 : index
    %1139 = vector.load %arg7[%c6_581, %c0_582] : memref<16x32xf32, #tpu.memory_space<vmem>>, vector<1x32xf32>
    %cst_583 = arith.constant dense<0.000000e+00> : vector<1x32xf32>
    %1140 = tpu.matmul %1121, %946, %cst_583 {dimension_numbers = #tpu.dot_dimension_numbers<[1], [0], [0], [1], [0, 0, 1, 1], [], []>} : vector<1x32xf32>, vector<32x32xf32>, vector<1x32xf32> -> vector<1x32xf32>
    %1141 = arith.addf %1140, %949 : vector<1x32xf32>
    %1142 = arith.mulf %1130, %1141 : vector<1x32xf32>
    %1143 = arith.addf %1139, %1142 : vector<1x32xf32>
    %1144 = math.tanh %1143 : vector<1x32xf32>
    %1145 = arith.subf %1121, %1144 : vector<1x32xf32>
    %1146 = arith.mulf %1138, %1145 : vector<1x32xf32>
    %1147 = arith.addf %1144, %1146 : vector<1x32xf32>
    %c6_584 = arith.constant 6 : index
    %c0_585 = arith.constant 0 : index
    %1148 = vector.load %arg4[%c6_584, %c0_585] : memref<16x32xf32, #tpu.memory_space<vmem>>, vector<1x32xf32>
    tpu.vector_store %arg4[%c6_584, %c0_585], %1147 {strides = array<i32>} : memref<16x32xf32, #tpu.memory_space<vmem>>, vector<1x32xf32>,
    %c7_586 = arith.constant 7 : index
    %c0_587 = arith.constant 0 : index
    %1149 = vector.load %arg5[%c7_586, %c0_587] : memref<16x32xf32, #tpu.memory_space<vmem>>, vector<1x32xf32>
    %cst_588 = arith.constant dense<0.000000e+00> : vector<1x32xf32>
    %1150 = tpu.matmul %1147, %944, %cst_588 {dimension_numbers = #tpu.dot_dimension_numbers<[1], [0], [0], [1], [0, 0, 1, 1], [], []>} : vector<1x32xf32>, vector<32x32xf32>, vector<1x32xf32> -> vector<1x32xf32>
    %1151 = arith.addf %1149, %1150 : vector<1x32xf32>
    %1152 = arith.negf %1151 : vector<1x32xf32>
    %1153 = math.exp %1152 : vector<1x32xf32>
    %cst_589 = arith.constant 1.000000e+00 : f32
    %1154 = vector.broadcast %cst_589 : f32 to vector<1x32xf32>
    %1155 = arith.addf %1154, %1153 : vector<1x32xf32>
    %1156 = arith.divf %1154, %1155 : vector<1x32xf32>
    %c7_590 = arith.constant 7 : index
    %c0_591 = arith.constant 0 : index
    %1157 = vector.load %arg6[%c7_590, %c0_591] : memref<16x32xf32, #tpu.memory_space<vmem>>, vector<1x32xf32>
    %cst_592 = arith.constant dense<0.000000e+00> : vector<1x32xf32>
    %1158 = tpu.matmul %1147, %945, %cst_592 {dimension_numbers = #tpu.dot_dimension_numbers<[1], [0], [0], [1], [0, 0, 1, 1], [], []>} : vector<1x32xf32>, vector<32x32xf32>, vector<1x32xf32> -> vector<1x32xf32>
    %1159 = arith.addf %1157, %1158 : vector<1x32xf32>
    %1160 = arith.negf %1159 : vector<1x32xf32>
    %1161 = math.exp %1160 : vector<1x32xf32>
    %cst_593 = arith.constant 1.000000e+00 : f32
    %1162 = vector.broadcast %cst_593 : f32 to vector<1x32xf32>
    %1163 = arith.addf %1162, %1161 : vector<1x32xf32>
    %1164 = arith.divf %1162, %1163 : vector<1x32xf32>
    %c7_594 = arith.constant 7 : index
    %c0_595 = arith.constant 0 : index
    %1165 = vector.load %arg7[%c7_594, %c0_595] : memref<16x32xf32, #tpu.memory_space<vmem>>, vector<1x32xf32>
    %cst_596 = arith.constant dense<0.000000e+00> : vector<1x32xf32>
    %1166 = tpu.matmul %1147, %946, %cst_596 {dimension_numbers = #tpu.dot_dimension_numbers<[1], [0], [0], [1], [0, 0, 1, 1], [], []>} : vector<1x32xf32>, vector<32x32xf32>, vector<1x32xf32> -> vector<1x32xf32>
    %1167 = arith.addf %1166, %949 : vector<1x32xf32>
    %1168 = arith.mulf %1156, %1167 : vector<1x32xf32>
    %1169 = arith.addf %1165, %1168 : vector<1x32xf32>
    %1170 = math.tanh %1169 : vector<1x32xf32>
    %1171 = arith.subf %1147, %1170 : vector<1x32xf32>
    %1172 = arith.mulf %1164, %1171 : vector<1x32xf32>
    %1173 = arith.addf %1170, %1172 : vector<1x32xf32>
    %c7_597 = arith.constant 7 : index
    %c0_598 = arith.constant 0 : index
    %1174 = vector.load %arg4[%c7_597, %c0_598] : memref<16x32xf32, #tpu.memory_space<vmem>>, vector<1x32xf32>
    tpu.vector_store %arg4[%c7_597, %c0_598], %1173 {strides = array<i32>} : memref<16x32xf32, #tpu.memory_space<vmem>>, vector<1x32xf32>,
    %c8_599 = arith.constant 8 : index
    %c0_600 = arith.constant 0 : index
    %1175 = vector.load %arg5[%c8_599, %c0_600] : memref<16x32xf32, #tpu.memory_space<vmem>>, vector<1x32xf32>
    %cst_601 = arith.constant dense<0.000000e+00> : vector<1x32xf32>
    %1176 = tpu.matmul %1173, %944, %cst_601 {dimension_numbers = #tpu.dot_dimension_numbers<[1], [0], [0], [1], [0, 0, 1, 1], [], []>} : vector<1x32xf32>, vector<32x32xf32>, vector<1x32xf32> -> vector<1x32xf32>
    %1177 = arith.addf %1175, %1176 : vector<1x32xf32>
    %1178 = arith.negf %1177 : vector<1x32xf32>
    %1179 = math.exp %1178 : vector<1x32xf32>
    %cst_602 = arith.constant 1.000000e+00 : f32
    %1180 = vector.broadcast %cst_602 : f32 to vector<1x32xf32>
    %1181 = arith.addf %1180, %1179 : vector<1x32xf32>
    %1182 = arith.divf %1180, %1181 : vector<1x32xf32>
    %c8_603 = arith.constant 8 : index
    %c0_604 = arith.constant 0 : index
    %1183 = vector.load %arg6[%c8_603, %c0_604] : memref<16x32xf32, #tpu.memory_space<vmem>>, vector<1x32xf32>
    %cst_605 = arith.constant dense<0.000000e+00> : vector<1x32xf32>
    %1184 = tpu.matmul %1173, %945, %cst_605 {dimension_numbers = #tpu.dot_dimension_numbers<[1], [0], [0], [1], [0, 0, 1, 1], [], []>} : vector<1x32xf32>, vector<32x32xf32>, vector<1x32xf32> -> vector<1x32xf32>
    %1185 = arith.addf %1183, %1184 : vector<1x32xf32>
    %1186 = arith.negf %1185 : vector<1x32xf32>
    %1187 = math.exp %1186 : vector<1x32xf32>
    %cst_606 = arith.constant 1.000000e+00 : f32
    %1188 = vector.broadcast %cst_606 : f32 to vector<1x32xf32>
    %1189 = arith.addf %1188, %1187 : vector<1x32xf32>
    %1190 = arith.divf %1188, %1189 : vector<1x32xf32>
    %c8_607 = arith.constant 8 : index
    %c0_608 = arith.constant 0 : index
    %1191 = vector.load %arg7[%c8_607, %c0_608] : memref<16x32xf32, #tpu.memory_space<vmem>>, vector<1x32xf32>
    %cst_609 = arith.constant dense<0.000000e+00> : vector<1x32xf32>
    %1192 = tpu.matmul %1173, %946, %cst_609 {dimension_numbers = #tpu.dot_dimension_numbers<[1], [0], [0], [1], [0, 0, 1, 1], [], []>} : vector<1x32xf32>, vector<32x32xf32>, vector<1x32xf32> -> vector<1x32xf32>
    %1193 = arith.addf %1192, %949 : vector<1x32xf32>
    %1194 = arith.mulf %1182, %1193 : vector<1x32xf32>
    %1195 = arith.addf %1191, %1194 : vector<1x32xf32>
    %1196 = math.tanh %1195 : vector<1x32xf32>
    %1197 = arith.subf %1173, %1196 : vector<1x32xf32>
    %1198 = arith.mulf %1190, %1197 : vector<1x32xf32>
    %1199 = arith.addf %1196, %1198 : vector<1x32xf32>
    %c8_610 = arith.constant 8 : index
    %c0_611 = arith.constant 0 : index
    %1200 = vector.load %arg4[%c8_610, %c0_611] : memref<16x32xf32, #tpu.memory_space<vmem>>, vector<1x32xf32>
    tpu.vector_store %arg4[%c8_610, %c0_611], %1199 {strides = array<i32>} : memref<16x32xf32, #tpu.memory_space<vmem>>, vector<1x32xf32>,
    %c9_612 = arith.constant 9 : index
    %c0_613 = arith.constant 0 : index
    %1201 = vector.load %arg5[%c9_612, %c0_613] : memref<16x32xf32, #tpu.memory_space<vmem>>, vector<1x32xf32>
    %cst_614 = arith.constant dense<0.000000e+00> : vector<1x32xf32>
    %1202 = tpu.matmul %1199, %944, %cst_614 {dimension_numbers = #tpu.dot_dimension_numbers<[1], [0], [0], [1], [0, 0, 1, 1], [], []>} : vector<1x32xf32>, vector<32x32xf32>, vector<1x32xf32> -> vector<1x32xf32>
    %1203 = arith.addf %1201, %1202 : vector<1x32xf32>
    %1204 = arith.negf %1203 : vector<1x32xf32>
    %1205 = math.exp %1204 : vector<1x32xf32>
    %cst_615 = arith.constant 1.000000e+00 : f32
    %1206 = vector.broadcast %cst_615 : f32 to vector<1x32xf32>
    %1207 = arith.addf %1206, %1205 : vector<1x32xf32>
    %1208 = arith.divf %1206, %1207 : vector<1x32xf32>
    %c9_616 = arith.constant 9 : index
    %c0_617 = arith.constant 0 : index
    %1209 = vector.load %arg6[%c9_616, %c0_617] : memref<16x32xf32, #tpu.memory_space<vmem>>, vector<1x32xf32>
    %cst_618 = arith.constant dense<0.000000e+00> : vector<1x32xf32>
    %1210 = tpu.matmul %1199, %945, %cst_618 {dimension_numbers = #tpu.dot_dimension_numbers<[1], [0], [0], [1], [0, 0, 1, 1], [], []>} : vector<1x32xf32>, vector<32x32xf32>, vector<1x32xf32> -> vector<1x32xf32>
    %1211 = arith.addf %1209, %1210 : vector<1x32xf32>
    %1212 = arith.negf %1211 : vector<1x32xf32>
    %1213 = math.exp %1212 : vector<1x32xf32>
    %cst_619 = arith.constant 1.000000e+00 : f32
    %1214 = vector.broadcast %cst_619 : f32 to vector<1x32xf32>
    %1215 = arith.addf %1214, %1213 : vector<1x32xf32>
    %1216 = arith.divf %1214, %1215 : vector<1x32xf32>
    %c9_620 = arith.constant 9 : index
    %c0_621 = arith.constant 0 : index
    %1217 = vector.load %arg7[%c9_620, %c0_621] : memref<16x32xf32, #tpu.memory_space<vmem>>, vector<1x32xf32>
    %cst_622 = arith.constant dense<0.000000e+00> : vector<1x32xf32>
    %1218 = tpu.matmul %1199, %946, %cst_622 {dimension_numbers = #tpu.dot_dimension_numbers<[1], [0], [0], [1], [0, 0, 1, 1], [], []>} : vector<1x32xf32>, vector<32x32xf32>, vector<1x32xf32> -> vector<1x32xf32>
    %1219 = arith.addf %1218, %949 : vector<1x32xf32>
    %1220 = arith.mulf %1208, %1219 : vector<1x32xf32>
    %1221 = arith.addf %1217, %1220 : vector<1x32xf32>
    %1222 = math.tanh %1221 : vector<1x32xf32>
    %1223 = arith.subf %1199, %1222 : vector<1x32xf32>
    %1224 = arith.mulf %1216, %1223 : vector<1x32xf32>
    %1225 = arith.addf %1222, %1224 : vector<1x32xf32>
    %c9_623 = arith.constant 9 : index
    %c0_624 = arith.constant 0 : index
    %1226 = vector.load %arg4[%c9_623, %c0_624] : memref<16x32xf32, #tpu.memory_space<vmem>>, vector<1x32xf32>
    tpu.vector_store %arg4[%c9_623, %c0_624], %1225 {strides = array<i32>} : memref<16x32xf32, #tpu.memory_space<vmem>>, vector<1x32xf32>,
    %c10_625 = arith.constant 10 : index
    %c0_626 = arith.constant 0 : index
    %1227 = vector.load %arg5[%c10_625, %c0_626] : memref<16x32xf32, #tpu.memory_space<vmem>>, vector<1x32xf32>
    %cst_627 = arith.constant dense<0.000000e+00> : vector<1x32xf32>
    %1228 = tpu.matmul %1225, %944, %cst_627 {dimension_numbers = #tpu.dot_dimension_numbers<[1], [0], [0], [1], [0, 0, 1, 1], [], []>} : vector<1x32xf32>, vector<32x32xf32>, vector<1x32xf32> -> vector<1x32xf32>
    %1229 = arith.addf %1227, %1228 : vector<1x32xf32>
    %1230 = arith.negf %1229 : vector<1x32xf32>
    %1231 = math.exp %1230 : vector<1x32xf32>
    %cst_628 = arith.constant 1.000000e+00 : f32
    %1232 = vector.broadcast %cst_628 : f32 to vector<1x32xf32>
    %1233 = arith.addf %1232, %1231 : vector<1x32xf32>
    %1234 = arith.divf %1232, %1233 : vector<1x32xf32>
    %c10_629 = arith.constant 10 : index
    %c0_630 = arith.constant 0 : index
    %1235 = vector.load %arg6[%c10_629, %c0_630] : memref<16x32xf32, #tpu.memory_space<vmem>>, vector<1x32xf32>
    %cst_631 = arith.constant dense<0.000000e+00> : vector<1x32xf32>
    %1236 = tpu.matmul %1225, %945, %cst_631 {dimension_numbers = #tpu.dot_dimension_numbers<[1], [0], [0], [1], [0, 0, 1, 1], [], []>} : vector<1x32xf32>, vector<32x32xf32>, vector<1x32xf32> -> vector<1x32xf32>
    %1237 = arith.addf %1235, %1236 : vector<1x32xf32>
    %1238 = arith.negf %1237 : vector<1x32xf32>
    %1239 = math.exp %1238 : vector<1x32xf32>
    %cst_632 = arith.constant 1.000000e+00 : f32
    %1240 = vector.broadcast %cst_632 : f32 to vector<1x32xf32>
    %1241 = arith.addf %1240, %1239 : vector<1x32xf32>
    %1242 = arith.divf %1240, %1241 : vector<1x32xf32>
    %c10_633 = arith.constant 10 : index
    %c0_634 = arith.constant 0 : index
    %1243 = vector.load %arg7[%c10_633, %c0_634] : memref<16x32xf32, #tpu.memory_space<vmem>>, vector<1x32xf32>
    %cst_635 = arith.constant dense<0.000000e+00> : vector<1x32xf32>
    %1244 = tpu.matmul %1225, %946, %cst_635 {dimension_numbers = #tpu.dot_dimension_numbers<[1], [0], [0], [1], [0, 0, 1, 1], [], []>} : vector<1x32xf32>, vector<32x32xf32>, vector<1x32xf32> -> vector<1x32xf32>
    %1245 = arith.addf %1244, %949 : vector<1x32xf32>
    %1246 = arith.mulf %1234, %1245 : vector<1x32xf32>
    %1247 = arith.addf %1243, %1246 : vector<1x32xf32>
    %1248 = math.tanh %1247 : vector<1x32xf32>
    %1249 = arith.subf %1225, %1248 : vector<1x32xf32>
    %1250 = arith.mulf %1242, %1249 : vector<1x32xf32>
    %1251 = arith.addf %1248, %1250 : vector<1x32xf32>
    %c10_636 = arith.constant 10 : index
    %c0_637 = arith.constant 0 : index
    %1252 = vector.load %arg4[%c10_636, %c0_637] : memref<16x32xf32, #tpu.memory_space<vmem>>, vector<1x32xf32>
    tpu.vector_store %arg4[%c10_636, %c0_637], %1251 {strides = array<i32>} : memref<16x32xf32, #tpu.memory_space<vmem>>, vector<1x32xf32>,
    %c11_638 = arith.constant 11 : index
    %c0_639 = arith.constant 0 : index
    %1253 = vector.load %arg5[%c11_638, %c0_639] : memref<16x32xf32, #tpu.memory_space<vmem>>, vector<1x32xf32>
    %cst_640 = arith.constant dense<0.000000e+00> : vector<1x32xf32>
    %1254 = tpu.matmul %1251, %944, %cst_640 {dimension_numbers = #tpu.dot_dimension_numbers<[1], [0], [0], [1], [0, 0, 1, 1], [], []>} : vector<1x32xf32>, vector<32x32xf32>, vector<1x32xf32> -> vector<1x32xf32>
    %1255 = arith.addf %1253, %1254 : vector<1x32xf32>
    %1256 = arith.negf %1255 : vector<1x32xf32>
    %1257 = math.exp %1256 : vector<1x32xf32>
    %cst_641 = arith.constant 1.000000e+00 : f32
    %1258 = vector.broadcast %cst_641 : f32 to vector<1x32xf32>
    %1259 = arith.addf %1258, %1257 : vector<1x32xf32>
    %1260 = arith.divf %1258, %1259 : vector<1x32xf32>
    %c11_642 = arith.constant 11 : index
    %c0_643 = arith.constant 0 : index
    %1261 = vector.load %arg6[%c11_642, %c0_643] : memref<16x32xf32, #tpu.memory_space<vmem>>, vector<1x32xf32>
    %cst_644 = arith.constant dense<0.000000e+00> : vector<1x32xf32>
    %1262 = tpu.matmul %1251, %945, %cst_644 {dimension_numbers = #tpu.dot_dimension_numbers<[1], [0], [0], [1], [0, 0, 1, 1], [], []>} : vector<1x32xf32>, vector<32x32xf32>, vector<1x32xf32> -> vector<1x32xf32>
    %1263 = arith.addf %1261, %1262 : vector<1x32xf32>
    %1264 = arith.negf %1263 : vector<1x32xf32>
    %1265 = math.exp %1264 : vector<1x32xf32>
    %cst_645 = arith.constant 1.000000e+00 : f32
    %1266 = vector.broadcast %cst_645 : f32 to vector<1x32xf32>
    %1267 = arith.addf %1266, %1265 : vector<1x32xf32>
    %1268 = arith.divf %1266, %1267 : vector<1x32xf32>
    %c11_646 = arith.constant 11 : index
    %c0_647 = arith.constant 0 : index
    %1269 = vector.load %arg7[%c11_646, %c0_647] : memref<16x32xf32, #tpu.memory_space<vmem>>, vector<1x32xf32>
    %cst_648 = arith.constant dense<0.000000e+00> : vector<1x32xf32>
    %1270 = tpu.matmul %1251, %946, %cst_648 {dimension_numbers = #tpu.dot_dimension_numbers<[1], [0], [0], [1], [0, 0, 1, 1], [], []>} : vector<1x32xf32>, vector<32x32xf32>, vector<1x32xf32> -> vector<1x32xf32>
    %1271 = arith.addf %1270, %949 : vector<1x32xf32>
    %1272 = arith.mulf %1260, %1271 : vector<1x32xf32>
    %1273 = arith.addf %1269, %1272 : vector<1x32xf32>
    %1274 = math.tanh %1273 : vector<1x32xf32>
    %1275 = arith.subf %1251, %1274 : vector<1x32xf32>
    %1276 = arith.mulf %1268, %1275 : vector<1x32xf32>
    %1277 = arith.addf %1274, %1276 : vector<1x32xf32>
    %c11_649 = arith.constant 11 : index
    %c0_650 = arith.constant 0 : index
    %1278 = vector.load %arg4[%c11_649, %c0_650] : memref<16x32xf32, #tpu.memory_space<vmem>>, vector<1x32xf32>
    tpu.vector_store %arg4[%c11_649, %c0_650], %1277 {strides = array<i32>} : memref<16x32xf32, #tpu.memory_space<vmem>>, vector<1x32xf32>,
    %c12_651 = arith.constant 12 : index
    %c0_652 = arith.constant 0 : index
    %1279 = vector.load %arg5[%c12_651, %c0_652] : memref<16x32xf32, #tpu.memory_space<vmem>>, vector<1x32xf32>
    %cst_653 = arith.constant dense<0.000000e+00> : vector<1x32xf32>
    %1280 = tpu.matmul %1277, %944, %cst_653 {dimension_numbers = #tpu.dot_dimension_numbers<[1], [0], [0], [1], [0, 0, 1, 1], [], []>} : vector<1x32xf32>, vector<32x32xf32>, vector<1x32xf32> -> vector<1x32xf32>
    %1281 = arith.addf %1279, %1280 : vector<1x32xf32>
    %1282 = arith.negf %1281 : vector<1x32xf32>
    %1283 = math.exp %1282 : vector<1x32xf32>
    %cst_654 = arith.constant 1.000000e+00 : f32
    %1284 = vector.broadcast %cst_654 : f32 to vector<1x32xf32>
    %1285 = arith.addf %1284, %1283 : vector<1x32xf32>
    %1286 = arith.divf %1284, %1285 : vector<1x32xf32>
    %c12_655 = arith.constant 12 : index
    %c0_656 = arith.constant 0 : index
    %1287 = vector.load %arg6[%c12_655, %c0_656] : memref<16x32xf32, #tpu.memory_space<vmem>>, vector<1x32xf32>
    %cst_657 = arith.constant dense<0.000000e+00> : vector<1x32xf32>
    %1288 = tpu.matmul %1277, %945, %cst_657 {dimension_numbers = #tpu.dot_dimension_numbers<[1], [0], [0], [1], [0, 0, 1, 1], [], []>} : vector<1x32xf32>, vector<32x32xf32>, vector<1x32xf32> -> vector<1x32xf32>
    %1289 = arith.addf %1287, %1288 : vector<1x32xf32>
    %1290 = arith.negf %1289 : vector<1x32xf32>
    %1291 = math.exp %1290 : vector<1x32xf32>
    %cst_658 = arith.constant 1.000000e+00 : f32
    %1292 = vector.broadcast %cst_658 : f32 to vector<1x32xf32>
    %1293 = arith.addf %1292, %1291 : vector<1x32xf32>
    %1294 = arith.divf %1292, %1293 : vector<1x32xf32>
    %c12_659 = arith.constant 12 : index
    %c0_660 = arith.constant 0 : index
    %1295 = vector.load %arg7[%c12_659, %c0_660] : memref<16x32xf32, #tpu.memory_space<vmem>>, vector<1x32xf32>
    %cst_661 = arith.constant dense<0.000000e+00> : vector<1x32xf32>
    %1296 = tpu.matmul %1277, %946, %cst_661 {dimension_numbers = #tpu.dot_dimension_numbers<[1], [0], [0], [1], [0, 0, 1, 1], [], []>} : vector<1x32xf32>, vector<32x32xf32>, vector<1x32xf32> -> vector<1x32xf32>
    %1297 = arith.addf %1296, %949 : vector<1x32xf32>
    %1298 = arith.mulf %1286, %1297 : vector<1x32xf32>
    %1299 = arith.addf %1295, %1298 : vector<1x32xf32>
    %1300 = math.tanh %1299 : vector<1x32xf32>
    %1301 = arith.subf %1277, %1300 : vector<1x32xf32>
    %1302 = arith.mulf %1294, %1301 : vector<1x32xf32>
    %1303 = arith.addf %1300, %1302 : vector<1x32xf32>
    %c12_662 = arith.constant 12 : index
    %c0_663 = arith.constant 0 : index
    %1304 = vector.load %arg4[%c12_662, %c0_663] : memref<16x32xf32, #tpu.memory_space<vmem>>, vector<1x32xf32>
    tpu.vector_store %arg4[%c12_662, %c0_663], %1303 {strides = array<i32>} : memref<16x32xf32, #tpu.memory_space<vmem>>, vector<1x32xf32>,
    %c13_664 = arith.constant 13 : index
    %c0_665 = arith.constant 0 : index
    %1305 = vector.load %arg5[%c13_664, %c0_665] : memref<16x32xf32, #tpu.memory_space<vmem>>, vector<1x32xf32>
    %cst_666 = arith.constant dense<0.000000e+00> : vector<1x32xf32>
    %1306 = tpu.matmul %1303, %944, %cst_666 {dimension_numbers = #tpu.dot_dimension_numbers<[1], [0], [0], [1], [0, 0, 1, 1], [], []>} : vector<1x32xf32>, vector<32x32xf32>, vector<1x32xf32> -> vector<1x32xf32>
    %1307 = arith.addf %1305, %1306 : vector<1x32xf32>
    %1308 = arith.negf %1307 : vector<1x32xf32>
    %1309 = math.exp %1308 : vector<1x32xf32>
    %cst_667 = arith.constant 1.000000e+00 : f32
    %1310 = vector.broadcast %cst_667 : f32 to vector<1x32xf32>
    %1311 = arith.addf %1310, %1309 : vector<1x32xf32>
    %1312 = arith.divf %1310, %1311 : vector<1x32xf32>
    %c13_668 = arith.constant 13 : index
    %c0_669 = arith.constant 0 : index
    %1313 = vector.load %arg6[%c13_668, %c0_669] : memref<16x32xf32, #tpu.memory_space<vmem>>, vector<1x32xf32>
    %cst_670 = arith.constant dense<0.000000e+00> : vector<1x32xf32>
    %1314 = tpu.matmul %1303, %945, %cst_670 {dimension_numbers = #tpu.dot_dimension_numbers<[1], [0], [0], [1], [0, 0, 1, 1], [], []>} : vector<1x32xf32>, vector<32x32xf32>, vector<1x32xf32> -> vector<1x32xf32>
    %1315 = arith.addf %1313, %1314 : vector<1x32xf32>
    %1316 = arith.negf %1315 : vector<1x32xf32>
    %1317 = math.exp %1316 : vector<1x32xf32>
    %cst_671 = arith.constant 1.000000e+00 : f32
    %1318 = vector.broadcast %cst_671 : f32 to vector<1x32xf32>
    %1319 = arith.addf %1318, %1317 : vector<1x32xf32>
    %1320 = arith.divf %1318, %1319 : vector<1x32xf32>
    %c13_672 = arith.constant 13 : index
    %c0_673 = arith.constant 0 : index
    %1321 = vector.load %arg7[%c13_672, %c0_673] : memref<16x32xf32, #tpu.memory_space<vmem>>, vector<1x32xf32>
    %cst_674 = arith.constant dense<0.000000e+00> : vector<1x32xf32>
    %1322 = tpu.matmul %1303, %946, %cst_674 {dimension_numbers = #tpu.dot_dimension_numbers<[1], [0], [0], [1], [0, 0, 1, 1], [], []>} : vector<1x32xf32>, vector<32x32xf32>, vector<1x32xf32> -> vector<1x32xf32>
    %1323 = arith.addf %1322, %949 : vector<1x32xf32>
    %1324 = arith.mulf %1312, %1323 : vector<1x32xf32>
    %1325 = arith.addf %1321, %1324 : vector<1x32xf32>
    %1326 = math.tanh %1325 : vector<1x32xf32>
    %1327 = arith.subf %1303, %1326 : vector<1x32xf32>
    %1328 = arith.mulf %1320, %1327 : vector<1x32xf32>
    %1329 = arith.addf %1326, %1328 : vector<1x32xf32>
    %c13_675 = arith.constant 13 : index
    %c0_676 = arith.constant 0 : index
    %1330 = vector.load %arg4[%c13_675, %c0_676] : memref<16x32xf32, #tpu.memory_space<vmem>>, vector<1x32xf32>
    tpu.vector_store %arg4[%c13_675, %c0_676], %1329 {strides = array<i32>} : memref<16x32xf32, #tpu.memory_space<vmem>>, vector<1x32xf32>,
    %c14_677 = arith.constant 14 : index
    %c0_678 = arith.constant 0 : index
    %1331 = vector.load %arg5[%c14_677, %c0_678] : memref<16x32xf32, #tpu.memory_space<vmem>>, vector<1x32xf32>
    %cst_679 = arith.constant dense<0.000000e+00> : vector<1x32xf32>
    %1332 = tpu.matmul %1329, %944, %cst_679 {dimension_numbers = #tpu.dot_dimension_numbers<[1], [0], [0], [1], [0, 0, 1, 1], [], []>} : vector<1x32xf32>, vector<32x32xf32>, vector<1x32xf32> -> vector<1x32xf32>
    %1333 = arith.addf %1331, %1332 : vector<1x32xf32>
    %1334 = arith.negf %1333 : vector<1x32xf32>
    %1335 = math.exp %1334 : vector<1x32xf32>
    %cst_680 = arith.constant 1.000000e+00 : f32
    %1336 = vector.broadcast %cst_680 : f32 to vector<1x32xf32>
    %1337 = arith.addf %1336, %1335 : vector<1x32xf32>
    %1338 = arith.divf %1336, %1337 : vector<1x32xf32>
    %c14_681 = arith.constant 14 : index
    %c0_682 = arith.constant 0 : index
    %1339 = vector.load %arg6[%c14_681, %c0_682] : memref<16x32xf32, #tpu.memory_space<vmem>>, vector<1x32xf32>
    %cst_683 = arith.constant dense<0.000000e+00> : vector<1x32xf32>
    %1340 = tpu.matmul %1329, %945, %cst_683 {dimension_numbers = #tpu.dot_dimension_numbers<[1], [0], [0], [1], [0, 0, 1, 1], [], []>} : vector<1x32xf32>, vector<32x32xf32>, vector<1x32xf32> -> vector<1x32xf32>
    %1341 = arith.addf %1339, %1340 : vector<1x32xf32>
    %1342 = arith.negf %1341 : vector<1x32xf32>
    %1343 = math.exp %1342 : vector<1x32xf32>
    %cst_684 = arith.constant 1.000000e+00 : f32
    %1344 = vector.broadcast %cst_684 : f32 to vector<1x32xf32>
    %1345 = arith.addf %1344, %1343 : vector<1x32xf32>
    %1346 = arith.divf %1344, %1345 : vector<1x32xf32>
    %c14_685 = arith.constant 14 : index
    %c0_686 = arith.constant 0 : index
    %1347 = vector.load %arg7[%c14_685, %c0_686] : memref<16x32xf32, #tpu.memory_space<vmem>>, vector<1x32xf32>
    %cst_687 = arith.constant dense<0.000000e+00> : vector<1x32xf32>
    %1348 = tpu.matmul %1329, %946, %cst_687 {dimension_numbers = #tpu.dot_dimension_numbers<[1], [0], [0], [1], [0, 0, 1, 1], [], []>} : vector<1x32xf32>, vector<32x32xf32>, vector<1x32xf32> -> vector<1x32xf32>
    %1349 = arith.addf %1348, %949 : vector<1x32xf32>
    %1350 = arith.mulf %1338, %1349 : vector<1x32xf32>
    %1351 = arith.addf %1347, %1350 : vector<1x32xf32>
    %1352 = math.tanh %1351 : vector<1x32xf32>
    %1353 = arith.subf %1329, %1352 : vector<1x32xf32>
    %1354 = arith.mulf %1346, %1353 : vector<1x32xf32>
    %1355 = arith.addf %1352, %1354 : vector<1x32xf32>
    %c14_688 = arith.constant 14 : index
    %c0_689 = arith.constant 0 : index
    %1356 = vector.load %arg4[%c14_688, %c0_689] : memref<16x32xf32, #tpu.memory_space<vmem>>, vector<1x32xf32>
    tpu.vector_store %arg4[%c14_688, %c0_689], %1355 {strides = array<i32>} : memref<16x32xf32, #tpu.memory_space<vmem>>, vector<1x32xf32>,
    %c15_690 = arith.constant 15 : index
    %c0_691 = arith.constant 0 : index
    %1357 = vector.load %arg5[%c15_690, %c0_691] : memref<16x32xf32, #tpu.memory_space<vmem>>, vector<1x32xf32>
    %cst_692 = arith.constant dense<0.000000e+00> : vector<1x32xf32>
    %1358 = tpu.matmul %1355, %944, %cst_692 {dimension_numbers = #tpu.dot_dimension_numbers<[1], [0], [0], [1], [0, 0, 1, 1], [], []>} : vector<1x32xf32>, vector<32x32xf32>, vector<1x32xf32> -> vector<1x32xf32>
    %1359 = arith.addf %1357, %1358 : vector<1x32xf32>
    %1360 = arith.negf %1359 : vector<1x32xf32>
    %1361 = math.exp %1360 : vector<1x32xf32>
    %cst_693 = arith.constant 1.000000e+00 : f32
    %1362 = vector.broadcast %cst_693 : f32 to vector<1x32xf32>
    %1363 = arith.addf %1362, %1361 : vector<1x32xf32>
    %1364 = arith.divf %1362, %1363 : vector<1x32xf32>
    %c15_694 = arith.constant 15 : index
    %c0_695 = arith.constant 0 : index
    %1365 = vector.load %arg6[%c15_694, %c0_695] : memref<16x32xf32, #tpu.memory_space<vmem>>, vector<1x32xf32>
    %cst_696 = arith.constant dense<0.000000e+00> : vector<1x32xf32>
    %1366 = tpu.matmul %1355, %945, %cst_696 {dimension_numbers = #tpu.dot_dimension_numbers<[1], [0], [0], [1], [0, 0, 1, 1], [], []>} : vector<1x32xf32>, vector<32x32xf32>, vector<1x32xf32> -> vector<1x32xf32>
    %1367 = arith.addf %1365, %1366 : vector<1x32xf32>
    %1368 = arith.negf %1367 : vector<1x32xf32>
    %1369 = math.exp %1368 : vector<1x32xf32>
    %cst_697 = arith.constant 1.000000e+00 : f32
    %1370 = vector.broadcast %cst_697 : f32 to vector<1x32xf32>
    %1371 = arith.addf %1370, %1369 : vector<1x32xf32>
    %1372 = arith.divf %1370, %1371 : vector<1x32xf32>
    %c15_698 = arith.constant 15 : index
    %c0_699 = arith.constant 0 : index
    %1373 = vector.load %arg7[%c15_698, %c0_699] : memref<16x32xf32, #tpu.memory_space<vmem>>, vector<1x32xf32>
    %cst_700 = arith.constant dense<0.000000e+00> : vector<1x32xf32>
    %1374 = tpu.matmul %1355, %946, %cst_700 {dimension_numbers = #tpu.dot_dimension_numbers<[1], [0], [0], [1], [0, 0, 1, 1], [], []>} : vector<1x32xf32>, vector<32x32xf32>, vector<1x32xf32> -> vector<1x32xf32>
    %1375 = arith.addf %1374, %949 : vector<1x32xf32>
    %1376 = arith.mulf %1364, %1375 : vector<1x32xf32>
    %1377 = arith.addf %1373, %1376 : vector<1x32xf32>
    %1378 = math.tanh %1377 : vector<1x32xf32>
    %1379 = arith.subf %1355, %1378 : vector<1x32xf32>
    %1380 = arith.mulf %1372, %1379 : vector<1x32xf32>
    %1381 = arith.addf %1378, %1380 : vector<1x32xf32>
    %c15_701 = arith.constant 15 : index
    %c0_702 = arith.constant 0 : index
    %1382 = vector.load %arg4[%c15_701, %c0_702] : memref<16x32xf32, #tpu.memory_space<vmem>>, vector<1x32xf32>
    tpu.vector_store %arg4[%c15_701, %c0_702], %1381 {strides = array<i32>} : memref<16x32xf32, #tpu.memory_space<vmem>>, vector<1x32xf32>,
    %c0_703 = arith.constant 0 : index
    %c0_704 = arith.constant 0 : index
    %1383 = vector.load %arg4[%c0_703, %c0_704] : memref<16x32xf32, #tpu.memory_space<vmem>>, vector<16x32xf32>
    %cst_705 = arith.constant dense<0.000000e+00> : vector<16x64xf32>
    %1384 = tpu.matmul %1383, %36, %cst_705 {dimension_numbers = #tpu.dot_dimension_numbers<[1], [0], [0], [1], [0, 0, 1, 1], [], []>} : vector<16x32xf32>, vector<32x64xf32>, vector<16x64xf32> -> vector<16x64xf32>
    %1385 = vector.broadcast %37 : vector<1x64xf32> to vector<16x64xf32>
    %1386 = arith.addf %1384, %1385 : vector<16x64xf32>
    %1387 = vector.extract_strided_slice %1386 {offsets = [0, 0], sizes = [16, 32], strides = [1, 1]} : vector<16x64xf32> to vector<16x32xf32>
    %1388 = vector.extract_strided_slice %1386 {offsets = [0, 32], sizes = [16, 32], strides = [1, 1]} : vector<16x64xf32> to vector<16x32xf32>
    %1389 = arith.negf %1388 : vector<16x32xf32>
    %1390 = math.exp %1389 : vector<16x32xf32>
    %cst_706 = arith.constant 1.000000e+00 : f32
    %1391 = vector.broadcast %cst_706 : f32 to vector<16x32xf32>
    %1392 = arith.addf %1391, %1390 : vector<16x32xf32>
    %1393 = arith.divf %1391, %1392 : vector<16x32xf32>
    %1394 = arith.mulf %1388, %1393 : vector<16x32xf32>
    %1395 = arith.mulf %1387, %1394 : vector<16x32xf32>
    %c0_707 = arith.constant 0 : index
    %c0_708 = arith.constant 0 : index
    %1396 = vector.load %arg4[%c0_707, %c0_708] : memref<16x32xf32, #tpu.memory_space<vmem>>, vector<16x32xf32>
    tpu.vector_store %arg4[%c0_707, %c0_708], %1395 {strides = array<i32>} : memref<16x32xf32, #tpu.memory_space<vmem>>, vector<16x32xf32>,
    %cst_709 = arith.constant 0.000000e+00 : f32
    %1397 = vector.broadcast %cst_709 : f32 to vector<16x16xf32>
    %1398 = arith.cmpf ogt, %23, %1397 : vector<16x16xf32>
    %cst_710 = arith.constant dense<0.000000e+00> : vector<16xf32>
    %1399 = vector.multi_reduction <add>, %23, %cst_710 [1] : vector<16x16xf32> to vector<16xf32>
    %1400 = vector.shape_cast %1399 : vector<16xf32> to vector<16x1xf32>
    %1401 = tpu.reciprocal %1400 {approx = true} : vector<16x1xf32> -> vector<16x1xf32>
    %1402 = vector.broadcast %1401 : vector<16x1xf32> to vector<16x16xf32>
    %1403 = arith.mulf %23, %1402 : vector<16x16xf32>
    %c0_711 = arith.constant 0 : index
    %c0_712 = arith.constant 0 : index
    %1404 = vector.load %arg4[%c0_711, %c0_712] : memref<16x32xf32, #tpu.memory_space<vmem>>, vector<16x32xf32>
    %c424 = arith.constant 424 : index
    %c0_713 = arith.constant 0 : index
    %1405 = vector.load %arg1[%c424, %c0_713] : memref<680x96xf32, #tpu.memory_space<vmem>>, vector<32x96xf32>
    %cst_714 = arith.constant dense<0.000000e+00> : vector<16x96xf32>
    %1406 = tpu.matmul %1404, %1405, %cst_714 {dimension_numbers = #tpu.dot_dimension_numbers<[1], [0], [0], [1], [0, 0, 1, 1], [], []>} : vector<16x32xf32>, vector<32x96xf32>, vector<16x96xf32> -> vector<16x96xf32>
    %c14_715 = arith.constant 14 : index
    %c0_716 = arith.constant 0 : index
    %1407 = vector.load %arg2[%c14_715, %c0_716] : memref<24x96xf32, #tpu.memory_space<vmem>>, vector<1x96xf32>
    %1408 = vector.broadcast %1407 : vector<1x96xf32> to vector<16x96xf32>
    %1409 = arith.addf %1406, %1408 : vector<16x96xf32>
    %1410 = vector.extract_strided_slice %1409 {offsets = [0, 0], sizes = [16, 32], strides = [1, 1]} : vector<16x96xf32> to vector<16x32xf32>
    %1411 = vector.extract_strided_slice %1409 {offsets = [0, 32], sizes = [16, 32], strides = [1, 1]} : vector<16x96xf32> to vector<16x32xf32>
    %1412 = vector.extract_strided_slice %1409 {offsets = [0, 64], sizes = [16, 32], strides = [1, 1]} : vector<16x96xf32> to vector<16x32xf32>
    %cst_717 = arith.constant dense<0.000000e+00> : vector<16x16xf32>
    %1413 = tpu.matmul %1410, %1411, %cst_717 {dimension_numbers = #tpu.dot_dimension_numbers<[1], [1], [0], [0], [0, 0, 1, 0], [], []>} : vector<16x32xf32>, vector<16x32xf32>, vector<16x16xf32> -> vector<16x16xf32>
    %cst_718 = arith.constant 0.176776692 : f32
    %1414 = vector.broadcast %cst_718 : f32 to vector<16x16xf32>
    %1415 = arith.mulf %1413, %1414 : vector<16x16xf32>
    %cst_719 = arith.constant -1.000000e+30 : f32
    %1416 = vector.broadcast %cst_719 : f32 to vector<16x16xf32>
    %1417 = arith.select %1398, %1415, %1416 : vector<16x16xi1>, vector<16x16xf32>
    %cst_720 = arith.constant dense<0xFF800000> : vector<16xf32>
    %1418 = vector.multi_reduction <maximumf>, %1417, %cst_720 [1] : vector<16x16xf32> to vector<16xf32>
    %1419 = vector.shape_cast %1418 : vector<16xf32> to vector<16x1xf32>
    %1420 = vector.broadcast %1419 : vector<16x1xf32> to vector<16x16xf32>
    %1421 = arith.subf %1417, %1420 : vector<16x16xf32>
    %1422 = math.exp %1421 : vector<16x16xf32>
    %1423 = arith.mulf %1422, %23 : vector<16x16xf32>
    %cst_721 = arith.constant dense<0.000000e+00> : vector<16xf32>
    %1424 = vector.multi_reduction <add>, %1423, %cst_721 [1] : vector<16x16xf32> to vector<16xf32>
    %1425 = vector.shape_cast %1424 : vector<16xf32> to vector<16x1xf32>
    %1426 = vector.broadcast %1425 : vector<16x1xf32> to vector<16x16xf32>
    %1427 = arith.divf %1423, %1426 : vector<16x16xf32>
    %cst_722 = arith.constant dense<0.000000e+00> : vector<16x32xf32>
    %1428 = tpu.matmul %1427, %1412, %cst_722 {dimension_numbers = #tpu.dot_dimension_numbers<[1], [0], [0], [1], [0, 0, 1, 1], [], []>} : vector<16x16xf32>, vector<16x32xf32>, vector<16x32xf32> -> vector<16x32xf32>
    %cst_723 = arith.constant dense<0.000000e+00> : vector<16x32xf32>
    %1429 = tpu.matmul %1403, %1428, %cst_723 {dimension_numbers = #tpu.dot_dimension_numbers<[1], [0], [0], [1], [0, 0, 1, 1], [], []>} : vector<16x16xf32>, vector<16x32xf32>, vector<16x32xf32> -> vector<16x32xf32>
    %c520 = arith.constant 520 : index
    %c0_724 = arith.constant 0 : index
    %1430 = vector.load %arg1[%c520, %c0_724] : memref<680x96xf32, #tpu.memory_space<vmem>>, vector<32x32xf32>
    %cst_725 = arith.constant dense<0.000000e+00> : vector<16x32xf32>
    %1431 = tpu.matmul %1429, %1430, %cst_725 {dimension_numbers = #tpu.dot_dimension_numbers<[1], [0], [0], [1], [0, 0, 1, 1], [], []>} : vector<16x32xf32>, vector<32x32xf32>, vector<16x32xf32> -> vector<16x32xf32>
    %c17_726 = arith.constant 17 : index
    %c0_727 = arith.constant 0 : index
    %1432 = vector.load %arg2[%c17_726, %c0_727] : memref<24x96xf32, #tpu.memory_space<vmem>>, vector<1x32xf32>
    %1433 = vector.broadcast %1432 : vector<1x32xf32> to vector<16x32xf32>
    %1434 = arith.addf %1431, %1433 : vector<16x32xf32>
    %cst_728 = arith.constant 0.000000e+00 : f32
    %1435 = vector.broadcast %cst_728 : f32 to vector<16x32xf32>
    %1436 = arith.maximumf %1434, %1435 : vector<16x32xf32>
    %c0_729 = arith.constant 0 : index
    %c0_730 = arith.constant 0 : index
    %1437 = vector.load %arg4[%c0_729, %c0_730] : memref<16x32xf32, #tpu.memory_space<vmem>>, vector<16x32xf32>
    tpu.vector_store %arg4[%c0_729, %c0_730], %1436 {strides = array<i32>} : memref<16x32xf32, #tpu.memory_space<vmem>>, vector<16x32xf32>,
    %c0_731 = arith.constant 0 : index
    %c0_732 = arith.constant 0 : index
    %1438 = vector.load %arg4[%c0_731, %c0_732] : memref<16x32xf32, #tpu.memory_space<vmem>>, vector<16x32xf32>
    %c456 = arith.constant 456 : index
    %c0_733 = arith.constant 0 : index
    %1439 = vector.load %arg1[%c456, %c0_733] : memref<680x96xf32, #tpu.memory_space<vmem>>, vector<32x96xf32>
    %cst_734 = arith.constant dense<0.000000e+00> : vector<16x96xf32>
    %1440 = tpu.matmul %1438, %1439, %cst_734 {dimension_numbers = #tpu.dot_dimension_numbers<[1], [0], [0], [1], [0, 0, 1, 1], [], []>} : vector<16x32xf32>, vector<32x96xf32>, vector<16x96xf32> -> vector<16x96xf32>
    %c15_735 = arith.constant 15 : index
    %c0_736 = arith.constant 0 : index
    %1441 = vector.load %arg2[%c15_735, %c0_736] : memref<24x96xf32, #tpu.memory_space<vmem>>, vector<1x96xf32>
    %1442 = vector.broadcast %1441 : vector<1x96xf32> to vector<16x96xf32>
    %1443 = arith.addf %1440, %1442 : vector<16x96xf32>
    %1444 = vector.extract_strided_slice %1443 {offsets = [0, 0], sizes = [16, 32], strides = [1, 1]} : vector<16x96xf32> to vector<16x32xf32>
    %1445 = vector.extract_strided_slice %1443 {offsets = [0, 32], sizes = [16, 32], strides = [1, 1]} : vector<16x96xf32> to vector<16x32xf32>
    %1446 = vector.extract_strided_slice %1443 {offsets = [0, 64], sizes = [16, 32], strides = [1, 1]} : vector<16x96xf32> to vector<16x32xf32>
    %cst_737 = arith.constant dense<0.000000e+00> : vector<16x16xf32>
    %1447 = tpu.matmul %1444, %1445, %cst_737 {dimension_numbers = #tpu.dot_dimension_numbers<[1], [1], [0], [0], [0, 0, 1, 0], [], []>} : vector<16x32xf32>, vector<16x32xf32>, vector<16x16xf32> -> vector<16x16xf32>
    %cst_738 = arith.constant 0.176776692 : f32
    %1448 = vector.broadcast %cst_738 : f32 to vector<16x16xf32>
    %1449 = arith.mulf %1447, %1448 : vector<16x16xf32>
    %cst_739 = arith.constant -1.000000e+30 : f32
    %1450 = vector.broadcast %cst_739 : f32 to vector<16x16xf32>
    %1451 = arith.select %1398, %1449, %1450 : vector<16x16xi1>, vector<16x16xf32>
    %cst_740 = arith.constant dense<0xFF800000> : vector<16xf32>
    %1452 = vector.multi_reduction <maximumf>, %1451, %cst_740 [1] : vector<16x16xf32> to vector<16xf32>
    %1453 = vector.shape_cast %1452 : vector<16xf32> to vector<16x1xf32>
    %1454 = vector.broadcast %1453 : vector<16x1xf32> to vector<16x16xf32>
    %1455 = arith.subf %1451, %1454 : vector<16x16xf32>
    %1456 = math.exp %1455 : vector<16x16xf32>
    %1457 = arith.mulf %1456, %23 : vector<16x16xf32>
    %cst_741 = arith.constant dense<0.000000e+00> : vector<16xf32>
    %1458 = vector.multi_reduction <add>, %1457, %cst_741 [1] : vector<16x16xf32> to vector<16xf32>
    %1459 = vector.shape_cast %1458 : vector<16xf32> to vector<16x1xf32>
    %1460 = vector.broadcast %1459 : vector<16x1xf32> to vector<16x16xf32>
    %1461 = arith.divf %1457, %1460 : vector<16x16xf32>
    %cst_742 = arith.constant dense<0.000000e+00> : vector<16x32xf32>
    %1462 = tpu.matmul %1461, %1446, %cst_742 {dimension_numbers = #tpu.dot_dimension_numbers<[1], [0], [0], [1], [0, 0, 1, 1], [], []>} : vector<16x16xf32>, vector<16x32xf32>, vector<16x32xf32> -> vector<16x32xf32>
    %cst_743 = arith.constant dense<0.000000e+00> : vector<16x32xf32>
    %1463 = tpu.matmul %1403, %1462, %cst_743 {dimension_numbers = #tpu.dot_dimension_numbers<[1], [0], [0], [1], [0, 0, 1, 1], [], []>} : vector<16x16xf32>, vector<16x32xf32>, vector<16x32xf32> -> vector<16x32xf32>
    %c552 = arith.constant 552 : index
    %c0_744 = arith.constant 0 : index
    %1464 = vector.load %arg1[%c552, %c0_744] : memref<680x96xf32, #tpu.memory_space<vmem>>, vector<32x32xf32>
    %cst_745 = arith.constant dense<0.000000e+00> : vector<16x32xf32>
    %1465 = tpu.matmul %1463, %1464, %cst_745 {dimension_numbers = #tpu.dot_dimension_numbers<[1], [0], [0], [1], [0, 0, 1, 1], [], []>} : vector<16x32xf32>, vector<32x32xf32>, vector<16x32xf32> -> vector<16x32xf32>
    %c18_746 = arith.constant 18 : index
    %c0_747 = arith.constant 0 : index
    %1466 = vector.load %arg2[%c18_746, %c0_747] : memref<24x96xf32, #tpu.memory_space<vmem>>, vector<1x32xf32>
    %1467 = vector.broadcast %1466 : vector<1x32xf32> to vector<16x32xf32>
    %1468 = arith.addf %1465, %1467 : vector<16x32xf32>
    %cst_748 = arith.constant 0.000000e+00 : f32
    %1469 = vector.broadcast %cst_748 : f32 to vector<16x32xf32>
    %1470 = arith.maximumf %1468, %1469 : vector<16x32xf32>
    %c0_749 = arith.constant 0 : index
    %c0_750 = arith.constant 0 : index
    %1471 = vector.load %arg4[%c0_749, %c0_750] : memref<16x32xf32, #tpu.memory_space<vmem>>, vector<16x32xf32>
    tpu.vector_store %arg4[%c0_749, %c0_750], %1470 {strides = array<i32>} : memref<16x32xf32, #tpu.memory_space<vmem>>, vector<16x32xf32>,
    %c0_751 = arith.constant 0 : index
    %c0_752 = arith.constant 0 : index
    %1472 = vector.load %arg4[%c0_751, %c0_752] : memref<16x32xf32, #tpu.memory_space<vmem>>, vector<16x32xf32>
    %c488 = arith.constant 488 : index
    %c0_753 = arith.constant 0 : index
    %1473 = vector.load %arg1[%c488, %c0_753] : memref<680x96xf32, #tpu.memory_space<vmem>>, vector<32x96xf32>
    %cst_754 = arith.constant dense<0.000000e+00> : vector<16x96xf32>
    %1474 = tpu.matmul %1472, %1473, %cst_754 {dimension_numbers = #tpu.dot_dimension_numbers<[1], [0], [0], [1], [0, 0, 1, 1], [], []>} : vector<16x32xf32>, vector<32x96xf32>, vector<16x96xf32> -> vector<16x96xf32>
    %c16_755 = arith.constant 16 : index
    %c0_756 = arith.constant 0 : index
    %1475 = vector.load %arg2[%c16_755, %c0_756] : memref<24x96xf32, #tpu.memory_space<vmem>>, vector<1x96xf32>
    %1476 = vector.broadcast %1475 : vector<1x96xf32> to vector<16x96xf32>
    %1477 = arith.addf %1474, %1476 : vector<16x96xf32>
    %1478 = vector.extract_strided_slice %1477 {offsets = [0, 0], sizes = [16, 32], strides = [1, 1]} : vector<16x96xf32> to vector<16x32xf32>
    %1479 = vector.extract_strided_slice %1477 {offsets = [0, 32], sizes = [16, 32], strides = [1, 1]} : vector<16x96xf32> to vector<16x32xf32>
    %1480 = vector.extract_strided_slice %1477 {offsets = [0, 64], sizes = [16, 32], strides = [1, 1]} : vector<16x96xf32> to vector<16x32xf32>
    %cst_757 = arith.constant dense<0.000000e+00> : vector<16x16xf32>
    %1481 = tpu.matmul %1478, %1479, %cst_757 {dimension_numbers = #tpu.dot_dimension_numbers<[1], [1], [0], [0], [0, 0, 1, 0], [], []>} : vector<16x32xf32>, vector<16x32xf32>, vector<16x16xf32> -> vector<16x16xf32>
    %cst_758 = arith.constant 0.176776692 : f32
    %1482 = vector.broadcast %cst_758 : f32 to vector<16x16xf32>
    %1483 = arith.mulf %1481, %1482 : vector<16x16xf32>
    %cst_759 = arith.constant -1.000000e+30 : f32
    %1484 = vector.broadcast %cst_759 : f32 to vector<16x16xf32>
    %1485 = arith.select %1398, %1483, %1484 : vector<16x16xi1>, vector<16x16xf32>
    %cst_760 = arith.constant dense<0xFF800000> : vector<16xf32>
    %1486 = vector.multi_reduction <maximumf>, %1485, %cst_760 [1] : vector<16x16xf32> to vector<16xf32>
    %1487 = vector.shape_cast %1486 : vector<16xf32> to vector<16x1xf32>
    %1488 = vector.broadcast %1487 : vector<16x1xf32> to vector<16x16xf32>
    %1489 = arith.subf %1485, %1488 : vector<16x16xf32>
    %1490 = math.exp %1489 : vector<16x16xf32>
    %1491 = arith.mulf %1490, %23 : vector<16x16xf32>
    %cst_761 = arith.constant dense<0.000000e+00> : vector<16xf32>
    %1492 = vector.multi_reduction <add>, %1491, %cst_761 [1] : vector<16x16xf32> to vector<16xf32>
    %1493 = vector.shape_cast %1492 : vector<16xf32> to vector<16x1xf32>
    %1494 = vector.broadcast %1493 : vector<16x1xf32> to vector<16x16xf32>
    %1495 = arith.divf %1491, %1494 : vector<16x16xf32>
    %cst_762 = arith.constant dense<0.000000e+00> : vector<16x32xf32>
    %1496 = tpu.matmul %1495, %1480, %cst_762 {dimension_numbers = #tpu.dot_dimension_numbers<[1], [0], [0], [1], [0, 0, 1, 1], [], []>} : vector<16x16xf32>, vector<16x32xf32>, vector<16x32xf32> -> vector<16x32xf32>
    %cst_763 = arith.constant dense<0.000000e+00> : vector<16x32xf32>
    %1497 = tpu.matmul %1403, %1496, %cst_763 {dimension_numbers = #tpu.dot_dimension_numbers<[1], [0], [0], [1], [0, 0, 1, 1], [], []>} : vector<16x16xf32>, vector<16x32xf32>, vector<16x32xf32> -> vector<16x32xf32>
    %c584 = arith.constant 584 : index
    %c0_764 = arith.constant 0 : index
    %1498 = vector.load %arg1[%c584, %c0_764] : memref<680x96xf32, #tpu.memory_space<vmem>>, vector<32x32xf32>
    %cst_765 = arith.constant dense<0.000000e+00> : vector<16x32xf32>
    %1499 = tpu.matmul %1497, %1498, %cst_765 {dimension_numbers = #tpu.dot_dimension_numbers<[1], [0], [0], [1], [0, 0, 1, 1], [], []>} : vector<16x32xf32>, vector<32x32xf32>, vector<16x32xf32> -> vector<16x32xf32>
    %c19_766 = arith.constant 19 : index
    %c0_767 = arith.constant 0 : index
    %1500 = vector.load %arg2[%c19_766, %c0_767] : memref<24x96xf32, #tpu.memory_space<vmem>>, vector<1x32xf32>
    %1501 = vector.broadcast %1500 : vector<1x32xf32> to vector<16x32xf32>
    %1502 = arith.addf %1499, %1501 : vector<16x32xf32>
    %cst_768 = arith.constant 0.000000e+00 : f32
    %1503 = vector.broadcast %cst_768 : f32 to vector<16x32xf32>
    %1504 = arith.maximumf %1502, %1503 : vector<16x32xf32>
    %c0_769 = arith.constant 0 : index
    %c0_770 = arith.constant 0 : index
    %1505 = vector.load %arg4[%c0_769, %c0_770] : memref<16x32xf32, #tpu.memory_space<vmem>>, vector<16x32xf32>
    tpu.vector_store %arg4[%c0_769, %c0_770], %1504 {strides = array<i32>} : memref<16x32xf32, #tpu.memory_space<vmem>>, vector<16x32xf32>,
    %c0_771 = arith.constant 0 : index
    %c0_772 = arith.constant 0 : index
    %1506 = vector.load %arg4[%c0_771, %c0_772] : memref<16x32xf32, #tpu.memory_space<vmem>>, vector<16x32xf32>
    %cst_773 = arith.constant dense<0.000000e+00> : vector<2xf32>
    %1507 = vector.multi_reduction <add>, %29, %cst_773 [1] : vector<2x16xf32> to vector<2xf32>
    %1508 = vector.shape_cast %1507 : vector<2xf32> to vector<2x1xf32>
    %cst_774 = arith.constant dense<0.000000e+00> : vector<2x32xf32>
    %1509 = tpu.matmul %29, %1506, %cst_774 {dimension_numbers = #tpu.dot_dimension_numbers<[1], [0], [0], [1], [0, 0, 1, 1], [], []>} : vector<2x16xf32>, vector<16x32xf32>, vector<2x32xf32> -> vector<2x32xf32>
    %1510 = tpu.reciprocal %1508 {approx = true} : vector<2x1xf32> -> vector<2x1xf32>
    %1511 = vector.broadcast %1510 : vector<2x1xf32> to vector<2x32xf32>
    %1512 = arith.mulf %1509, %1511 : vector<2x32xf32>
    %1513 = vector.shape_cast %29 : vector<2x16xf32> to vector<2x16x1xf32>
    %cst_775 = arith.constant 5.000000e-01 : f32
    %1514 = vector.broadcast %cst_775 : f32 to vector<2x16x1xf32>
    %1515 = arith.cmpf ogt, %1513, %1514 : vector<2x16x1xf32>
    %1516 = vector.shape_cast %1506 : vector<16x32xf32> to vector<1x16x32xf32>
    %cst_776 = arith.constant -1.000000e+30 : f32
    %1517 = vector.shape_cast %1515 : vector<2x16x1xi1> to vector<2x16x1xi1>
    %1518 = vector.broadcast %1517 : vector<2x16x1xi1> to vector<2x16x32xi1>
    %1519 = vector.shape_cast %1516 : vector<1x16x32xf32> to vector<1x16x32xf32>
    %1520 = vector.broadcast %1519 : vector<1x16x32xf32> to vector<2x16x32xf32>
    %1521 = vector.broadcast %cst_776 : f32 to vector<2x16x32xf32>
    %1522 = arith.select %1518, %1520, %1521 : vector<2x16x32xi1>, vector<2x16x32xf32>
    %cst_777 = arith.constant dense<0xFF800000> : vector<2x32xf32>
    %1523 = vector.multi_reduction <maximumf>, %1522, %cst_777 [1] : vector<2x16x32xf32> to vector<2x32xf32>
    %c616 = arith.constant 616 : index
    %c0_778 = arith.constant 0 : index
    %1524 = vector.load %arg1[%c616, %c0_778] : memref<680x96xf32, #tpu.memory_space<vmem>>, vector<32x4xf32>
    %cst_779 = arith.constant dense<0.000000e+00> : vector<2x4xf32>
    %1525 = tpu.matmul %1512, %1524, %cst_779 {dimension_numbers = #tpu.dot_dimension_numbers<[1], [0], [0], [1], [0, 0, 1, 1], [], []>} : vector<2x32xf32>, vector<32x4xf32>, vector<2x4xf32> -> vector<2x4xf32>
    %c648 = arith.constant 648 : index
    %c0_780 = arith.constant 0 : index
    %1526 = vector.load %arg1[%c648, %c0_780] : memref<680x96xf32, #tpu.memory_space<vmem>>, vector<32x4xf32>
    %cst_781 = arith.constant dense<0.000000e+00> : vector<2x4xf32>
    %1527 = tpu.matmul %1523, %1526, %cst_781 {dimension_numbers = #tpu.dot_dimension_numbers<[1], [0], [0], [1], [0, 0, 1, 1], [], []>} : vector<2x32xf32>, vector<32x4xf32>, vector<2x4xf32> -> vector<2x4xf32>
    %1528 = arith.addf %1525, %1527 : vector<2x4xf32>
    %c20 = arith.constant 20 : index
    %c0_782 = arith.constant 0 : index
    %1529 = vector.load %arg2[%c20, %c0_782] : memref<24x96xf32, #tpu.memory_space<vmem>>, vector<1x4xf32>
    %1530 = vector.broadcast %1529 : vector<1x4xf32> to vector<2x4xf32>
    %1531 = arith.addf %1528, %1530 : vector<2x4xf32>
    %c0_783 = arith.constant 0 : index
    %c0_784 = arith.constant 0 : index
    %1532 = vector.load %arg3[%c0_783, %c0_784] : memref<2x4xf32, #tpu.memory_space<vmem>>, vector<2x4xf32>
    tpu.vector_store %arg3[%c0_783, %c0_784], %1531 {strides = array<i32>} : memref<2x4xf32, #tpu.memory_space<vmem>>, vector<2x4xf32>,
    return
  }
}

</mosaic_0001>

<bundles_post_ra>
// kernel: word_graph_forward.1
= control target key start
LH: loop header
LB: loop body
LE: loop exit
PB: predicated region body
PF: predicated region fallthrough
CT: control target
= control target key end

     0   :  { %vm161_vm0 = vcmask 64512   ;;  %s20535_s0 = inlined_call_operand.vmem [shape: f32[24,32], index: 0, kind: input, shape index: {}]   ;;  %s20536_s1 = inlined_call_operand.vmem [shape: f32[680,96], index: 1, kind: input, shape index: {}]   ;;  %s20537_s2 = inlined_call_operand.vmem [shape: f32[24,96], index: 2, kind: input, shape index: {}]   ;;  %s20538_s3 = inlined_call_operand.hbm [shape: f32[2,4], index: 3, kind: output, shape index: {}]  }
   0x1   :  { %v155_v0 = vld [vmem:[%s20536_s1] sm:$0xff]  ;;  %v16_v2 = vld [vmem:[%s20535_s0 + $0x8] sm:$0xff] }
   0x2   :  { %v15_v1 = vld [vmem:[%s20535_s0] sm:$0xff]  ;;  %15295 = vmatprep.subr.mxu1 %v155_v0 }
   0x3   :  { %15297 = vmatprep.mubr.msk.f32.mxu1 %vm161_vm0, %v15_v1 }
   0x4   :  { %8 = vsyncpa [#allocation7], 0  ;;  %15296 = vmatpush3.msra.mxu1 %v155_v0  ;;  %v21_v3 = vlaneseq  ;;  %v267_v5 = vld [vmem:[%s20536_s1 + $0x28] sm:$0xff]  ;;  %v268_v6 = vld [vmem:[%s20536_s1 + $0x30] sm:$0xff]  ;;  %vm60_vm1 = vcmask 261120   ;;  %v18731_v15 = vmov 0.0  }
   0x5   :  { %15298 = vmatmul.mubr.msk.f32.vlgmr.msra.gmra.mrb[0].mxu1 %vm161_vm0, %v16_v2  ;;  %v17114_v8 = vpack.c.bf16 %v268_v6, %v267_v5  ;;  %v269_v9 = vld [vmem:[%s20536_s1 + $0x38] sm:$0xff]  ;;  %v270_v10 = vld [vmem:[%s20536_s1 + $0x40] sm:$0xff]  ;;  %v14117_v11 = vld [vmem:[%s20535_s0 + $0x10] ss:$0 sm:$0xff]  ;;  %v18732_v23 = vmov 0.0|0.0   ;;  %s18733_s15 = smov 32  }
   0x6   :  { %v18768_v4 = vshrl.u32 %v21_v3, 7  ;;  %v17118_v14 = vpack.c.bf16 %v270_v10, %v269_v9  ;;  %vm18797_vm4 = vmpackc.low %vm60_vm1, %vm60_vm1  ;;  %v14120_v20 = vld [vmem:[%s20535_s0 + $0x11] ss:$0 sm:$0xff]  ;;  %v14123_v21 = vld [vmem:[%s20535_s0 + $0x12] ss:$0 sm:$0xff]  ;;  %vm18734_vm7 = vmmov 0  }
   0x7   :  { %17115 = vmatprep.subr.bf16.mxu1 %v17114_v8  ;;  %v250_v22 = vld [vmem:[%s20536_s1 + $0x88] sm:$0xff]  ;;  %v251_v24 = vld [vmem:[%s20536_s1 + $0x90] sm:$0xff]  ;;  %v14139_v30 = vld [vmem:[%s20537_s2 + $0x6] ss:$0 sm:$0xff]  ;;  %s18735_s11 = smov 64   ;;  %s18736_s12 = smov 96  }
   0x8   :  { %v18777_v7 = vadd.s32 8, %v18768_v4  ;;  %v18789_v12 = vcvt.s32.f32 %v18768_v4  ;;  %17117 = vmatpush3.bf16.msra.mxu1 %v17114_v8  ;;  %v18822_v29 = vpack.c.bf16 %v251_v24, %v250_v22  ;;  %v252_v31 = vld [vmem:[%s20536_s1 + $0x98] sm:$0xff]  ;;  %v253_v32 = vld [vmem:[%s20536_s1 + $0xa0] sm:$0xff]  ;;  %370 = vrot.lane.b32.xlu0 %v14139_v30, %s18733_s15  ;;  %v258_v34 = vld [vmem:[%s20536_s1 + $0xc8] sm:$0xff]  ;;  %vm631_vm8 = vcmask 253952   ;;  %s18737_s19 = smov [#allocation6]  }
   0x9   :  { %17119 = vmatprep.subr.bf16.mxu1 %v17118_v14  ;;  %v18837_v33 = vpack.c.bf16 %v253_v32, %v252_v31  ;;  %v259_v35 = vld [vmem:[%s20536_s1 + $0xd0] sm:$0xff]  ;;  %v260_v37 = vld [vmem:[%s20536_s1 + $0xd8] sm:$0xff]  ;;  %v261_v38 = vld [vmem:[%s20536_s1 + $0xe0] sm:$0xff]  ;;  %vm12389_vm12 = vcmask 130048   ;;  %vm13803_vm14 = vcmask 123904   ;;  %s14109_s20 = sshll.u32 %s18737_s19, 4  ;;  %s14110_s20 = int_to_ptr.vmem [resolvable:$true] %s14109_s20 }
   0xa   :  { %v25_v13 = vcvt.s32.f32 %v18777_v7  ;;  %vm30_vm2 = vcmp.eq.f32.partialorder %v18789_v12, %v14117_v11  ;;  %vm40_vm5 = vcmp.eq.f32.partialorder %v18789_v12, %v14120_v20  ;;  %v18849_v36 = vpack.c.bf16 %v259_v35, %v258_v34  ;;  %v254_v40 = vld [vmem:[%s20536_s1 + $0xa8] sm:$0xff]  ;;  %v255_v41 = vld [vmem:[%s20536_s1 + $0xb0] sm:$0xff]  ;;  %v256_v43 = vld [vmem:[%s20536_s1 + $0xb8] sm:$0xff]  ;;  %p18712_p1 = scmp.lt.s32.totalorder %s14110_s20, %s14110_s20 }
   0xb   :  { %v14118_v16 = vsel %vm30_vm2, 1.0, %v18731_v15  ;;  %v14121_v25 = vsel %vm40_vm5, 1.0, %v18731_v15  ;;  %v18860_v39 = vpack.c.bf16 %v261_v38, %v260_v37  ;;  %v18873_v42 = vpack.c.bf16 %v255_v41, %v254_v40  ;;  %v257_v44 = vld [vmem:[%s20536_s1 + $0xc0] sm:$0xff] }
   0xc   :  { %vm31_vm3 = vcmp.eq.f32.partialorder %v25_v13, %v14117_v11  ;;  %17121 = vmatpush3.bf16.msra.mxu1 %v17118_v14  ;;  %vm41_vm6 = vcmp.eq.f32.partialorder %v25_v13, %v14120_v20  ;;  %v50_v27 = vmul.f32 %v14123_v21, %v14121_v25  ;;  %v18886_v45 = vpack.c.bf16 %v257_v44, %v256_v43  ;;  %v14132_v46 = vld [vmem:[%s20537_s2] ss:$0 sm:$0xff]  ;;  %v14135_v59 = vld [vmem:[%s20537_s2 + $0x2] ss:$0 sm:$0xff]  ;;  %v14138_v60 = vld [vmem:[%s20537_s2 + $0x5] ss:$0 sm:$0xff] }
   0xd   :  { %v14119_v17 = vsel %vm31_vm3, 1.0, %v18731_v15  ;;  %17128 = vmatprep.subr.bf16.mxu1 %v18732_v23  ;;  %v14122_v26 = vsel %vm41_vm6, 1.0, %v18731_v15  ;;  %vm13948_vm5 = vcmask 1041409   ;;  %vm14101_vm6 = vcmask 25600  }
   0xe   :  { %v17108_v19 = vpack.c.bf16 %v14119_v17, %v14118_v16  ;;  %v51_v28 = vmul.f32 %v14123_v21, %v14122_v26  ;;  %15292 = vmatprep.mubr.msk.f32.mxu0 %vm60_vm1, %v50_v27 }
  0x10   :  { %17110 = vmatprep.subr.msk.bf16.mxu0 %vm18797_vm4, %v17108_v19 }
  0x11   :  { %17113 = vmatpush3.bf16.xpose.msk.msra.mxu0 %vm18797_vm4, %v17108_v19  ;;  %v18929_v19 = vld [vmem:[%s20537_s2 + $0x7] sm:$0x1] }
  0x12   :  { %17122 = vmatprep.subr.bf16.mxu0 %v18732_v23 }
  0x18   :  { %15293 = vmatmul.mubr.msk.f32.vlgmr.msra.gmra.mrb[0].mxu0 %vm60_vm1, %v51_v28 }
  0x19   :  { %17124 = vmatpush3.bf16.msra.mxu0 %v18822_v29  ;;  %15319 = vmatprep.mubr.msk.f32.mxu0 %vm18734_vm7, %v18731_v15 }
  0x1a   :  { %17125 = vmatprep.subr.bf16.mxu0 %v18732_v23 }
  0x1d   :  { %17127 = vmatpush3.bf16.msra.mxu0 %v18837_v33 }
  0x1e   :  { %17134 = vmatprep.subr.bf16.mxu0 %v18732_v23 }
  0x20   :  { %15320 = vmatmul.mubr.f32.vlgmr.msra.gmra.mrb[2].mxu0 %v18731_v15 }
  0x21   :  { %17136 = vmatpush3.bf16.msra.mxu0 %v18849_v36  ;;  %15341 = vmatprep.mubr.msk.f32.mxu0 %vm18734_vm7, %v18731_v15 }
  0x22   :  { %17137 = vmatprep.subr.bf16.mxu0 %v18732_v23 }
  0x25   :  { %17139 = vmatpush3.bf16.msra.mxu0 %v18860_v39 }
  0x26   :  { %17146 = vmatprep.subr.bf16.mxu0 %v18732_v23 }
  0x28   :  { %15342 = vmatmul.mubr.f32.vlgmr.msra.gmra.mrb[4].mxu0 %v18731_v15 }
  0x29   :  { %17148 = vmatpush3.bf16.msra.mxu0 %v18873_v42  ;;  %15363 = vmatprep.mubr.msk.f32.mxu0 %vm18734_vm7, %v18731_v15 }
  0x2a   :  { %17149 = vmatprep.subr.bf16.mxu0 %v18732_v23 }
  0x2d   :  { %17151 = vmatpush3.bf16.msra.mxu0 %v18886_v45 }
  0x2e   :  { %17158 = vmatprep.subr.bf16.mxu0 %v18732_v23 }
  0x7a   :  { %v371_v0 = vpop.permute.xlu0 %370 }
  0xd8   :  { %v15299_v47 = vpop.f32.mrb[0].mxu1 }
  0xd9   :  { %v240_v48 = vadd.f32 %v15299_v47, %v14132_v46  ;;  %v234_v49 = vpop.f32.mrb[1].mxu1 }
  0xda   :  { %v235_v50 = vadd.f32 %v14132_v46, %v234_v49 }
  0xdb   :  { %244 = vst.msk [vmem:[#allocation2 + $0x8] sm:$0xff] %vm60_vm1, %v240_v48 }
  0xdc   :  { %243 = vst.msk [vmem:[#allocation2] sm:$0xff] %vm60_vm1, %v235_v50 }
  0xe2   :  { %v266_v52 = vld [vmem:[#allocation2 + $0x8] sm:$0xff] }
  0xe3   :  { %v265_v51 = vld [vmem:[#allocation2] sm:$0xff] }
  0xe4   :  { %15308 = vmatprep.mubr.msk.f32.mxu1 %vm60_vm1, %v265_v51 }
  0xe5   :  { %15309 = vmatmul.mubr.msk.f32.vlgmr.msra.gmra.mrb[2].mxu1 %vm60_vm1, %v266_v52 }
  0xe6   :  { %17130 = vmatpush3.bf16.msra.mxu1 %v18873_v42  ;;  %15330 = vmatprep.mubr.msk.f32.mxu1 %vm18734_vm7, %v18731_v15 }
  0xe7   :  { %17131 = vmatprep.subr.bf16.mxu1 %v18732_v23 }
  0xea   :  { %17133 = vmatpush3.bf16.msra.mxu1 %v18886_v45 }
  0xeb   :  { %17140 = vmatprep.subr.bf16.mxu1 %v18732_v23  ;;  %v18910_v53 = vpop.f32.mrb[0].mxu0 }
  0xec   :  { %v18912_v54 = vpop.f32.mrb[1].mxu0 }
  0xed   :  { %15331 = vmatmul.mubr.f32.vlgmr.msra.gmra.mrb[4].mxu1 %v18731_v15 }
  0xee   :  { %17142 = vmatpush3.bf16.msra.mxu1 %v18822_v29  ;;  %15352 = vmatprep.mubr.msk.f32.mxu1 %vm18734_vm7, %v18731_v15 }
  0xef   :  { %17143 = vmatprep.subr.bf16.mxu1 %v18732_v23 }
  0xf2   :  { %17145 = vmatpush3.bf16.msra.mxu1 %v18837_v33 }
  0xf3   :  { %17152 = vmatprep.subr.bf16.mxu1 %v18732_v23  ;;  %v465_v55 = vpop.f32.mrb[2].mxu0 }
  0xf4   :  { %v15321_v56 = vpop.f32.mrb[3].mxu0 }
  0xfb   :  { %v621_v57 = vpop.f32.mrb[4].mxu0 }
  0xfc   :  { %v15343_v58 = vpop.f32.mrb[5].mxu0  ;;  %v622_v20 = vadd.f32 %v621_v57, %v18929_v19 }
 0x1b8   :  { %v15310_v61 = vpop.f32.mrb[2].mxu1 }
 0x1b9   :  { %v354_v62 = vadd.f32 %v15310_v61, %v14135_v59  ;;  %v348_v63 = vpop.f32.mrb[3].mxu1 }
 0x1ba   :  { %v349_v1 = vadd.f32 %v14135_v59, %v348_v63 }
 0x1bb   :  { %v362_v2 = vadd.f32 %v14138_v60, %v354_v62  ;;  %v374_v8 = vadd.f32 %v371_v0, %v354_v62 }
 0x1bc   :  { %v361_v5 = vadd.f32 %v14138_v60, %v349_v1  ;;  %v373_v6 = vadd.f32 %v371_v0, %v349_v1  ;;  %387 = vrot.lane.b32.xlu1 %v349_v1, %s18735_s11 }
 0x1bd   :  { %364 = vst.msk [vmem:[#allocation3 + $0x8] sm:$0xff] %vm60_vm1, %v362_v2 }
 0x1be   :  { %363 = vst.msk [vmem:[#allocation3] sm:$0xff] %vm60_vm1, %v361_v5  ;;  %377 = vrot.lane.b32.xlu0 %v373_v6, %s18736_s12 }
 0x1c0   :  { %379 = vrot.lane.b32.xlu1 %v374_v8, %s18736_s12  ;;  %v543_v9 = vpop.f32.mrb[4].mxu1 }
 0x1c1   :  { %v15332_v10 = vpop.f32.mrb[5].mxu1 }
 0x1c2   :  { %389 = vrot.lane.b32.xlu0 %v354_v62, %s18735_s11 }
 0x1c5   :  { %v395_v11 = vld [vmem:[#allocation3] sm:$0x1]  ;;  %v633_v46 = vld [vmem:[#allocation3 + $0x1] sm:$0x1] }
 0x1c6   :  { %v469_v13 = vadd.f32 %v465_v55, %v395_v11 }
 0x1c8   :  { %v14140_v14 = vmul.f32 -1.442695, %v469_v13 }
 0x1ca   :  { %18168 = vpow2.f32 %v14140_v14  ;;  %v870_v14 = vld [vmem:[#allocation3 + $0x2] sm:$0x1] }
 0x1d4   :  { %v18169_v16 = vpop.eup %18168 }
 0x1d5   :  { %v473_v17 = vadd.f32 1.0, %v18169_v16 }
 0x1d7   :  { %18170 = vrcp.f32 %v473_v17 }
 0x1e1   :  { %v18171_v21 = vpop.eup %18170 }
 0x1e2   :  { %v625_v22 = vmul.f32 %v18171_v21, %v622_v20 }
 0x22e   :  { %v388_v24 = vpop.permute.xlu1 %387 }
 0x22f   :  { %393 = vst.msk [vmem:[#allocation5] sm:$0xff] %vm60_vm1, %v388_v24 }
 0x230   :  { %v378_v25 = vpop.permute.xlu0 %377 }
 0x231   :  { %383 = vst.msk [vmem:[#allocation4] sm:$0xff] %vm60_vm1, %v378_v25 }
 0x232   :  { %v380_v26 = vpop.permute.xlu1 %379 }
 0x233   :  { %384 = vst.msk [vmem:[#allocation4 + $0x8] sm:$0xff] %vm60_vm1, %v380_v26 }
 0x234   :  { %v390_v27 = vpop.permute.xlu0 %389 }
 0x235   :  { %394 = vst.msk [vmem:[#allocation5 + $0x8] sm:$0xff] %vm60_vm1, %v390_v27 }
 0x236   :  { %v554_v32 = vld [vmem:[#allocation5] sm:$0x1]  ;;  %v792_v2 = vld [vmem:[#allocation5 + $0x1] sm:$0x1] }
 0x237   :  { %v626_v34 = vadd.f32 %v625_v22, %v554_v32 }
 0x238   :  { %v476_v28 = vld [vmem:[#allocation4] sm:$0x1]  ;;  %v714_v55 = vld [vmem:[#allocation4 + $0x1] sm:$0x1]  ;;  %v951_v25 = vld [vmem:[#allocation4 + $0x2] sm:$0x1] }
 0x239   :  { %v547_v30 = vadd.f32 %v543_v9, %v476_v28 }
 0x23b   :  { %v14141_v31 = vmul.f32 -1.442695, %v547_v30 }
 0x23d   :  { %18172 = vpow2.f32 %v14141_v31 }
 0x23e   :  { %18174 = vtanh.f32 %v626_v34 }
 0x247   :  { %v18173_v35 = vpop.eup %18172 }
 0x248   :  { %v551_v37 = vadd.f32 1.0, %v18173_v35  ;;  %v18175_v38 = vpop.eup %18174 }
 0x249   :  { %v628_v40 = vsub.f32 0.0, %v18175_v38 }
 0x24a   :  { %18176 = vrcp.f32 %v551_v37 }
 0x254   :  { %v18177_v41 = vpop.eup %18176 }
 0x255   :  { %v629_v43 = vmul.f32 %v18177_v41, %v628_v40  ;;  %v1029_v40 = vld [vmem:[#allocation5 + $0x2] sm:$0x1] }
 0x257   :  { %v630_v44 = vadd.f32 %v18175_v38, %v629_v43 }
 0x259   :  { %632 = vst.msk [vmem:[#allocation2] sm:$0x1] %vm631_vm8, %v630_v44  ;;  %15353 = vmatmul.mubr.msk.f32.vlgmr.msra.gmra.mrb[6].mxu1 %vm60_vm1, %v630_v44  ;;  %15364 = vmatmul.mubr.msk.f32.vlgmr.msra.gmra.mrb[6].mxu0 %vm60_vm1, %v630_v44 }
 0x25a   :  { %17154 = vmatpush3.bf16.msra.mxu1 %v18849_v36  ;;  %15374 = vmatprep.mubr.msk.f32.mxu1 %vm18734_vm7, %v18731_v15 }
 0x25b   :  { %17155 = vmatprep.subr.bf16.mxu1 %v18732_v23  ;;  %17160 = vmatpush3.bf16.msra.mxu0 %v18822_v29 }
 0x25c   :  { %17161 = vmatprep.subr.bf16.mxu0 %v18732_v23  ;;  %15385 = vmatprep.mubr.msk.f32.mxu0 %vm18734_vm7, %v18731_v15 }
 0x25e   :  { %17157 = vmatpush3.bf16.msra.mxu1 %v18860_v39 }
 0x25f   :  { %17164 = vmatprep.subr.bf16.mxu1 %v18732_v23  ;;  %17163 = vmatpush3.bf16.msra.mxu0 %v18837_v33 }
 0x260   :  { %17170 = vmatprep.subr.bf16.mxu0 %v18732_v23 }
 0x261   :  { %15375 = vmatmul.mubr.msk.f32.vlgmr.msra.gmra.mrb[8].mxu1 %vm60_vm1, %v630_v44 }
 0x262   :  { %17166 = vmatpush3.bf16.msra.mxu1 %v18873_v42  ;;  %15396 = vmatprep.mubr.msk.f32.mxu1 %vm18734_vm7, %v18731_v15 }
 0x263   :  { %17167 = vmatprep.subr.bf16.mxu1 %v18732_v23 }
 0x266   :  { %17169 = vmatpush3.bf16.msra.mxu1 %v18886_v45 }
 0x267   :  { %17176 = vmatprep.subr.bf16.mxu1 %v18732_v23 }
 0x32c   :  { %v703_v47 = vpop.f32.mrb[6].mxu1  ;;  %v781_v48 = vpop.f32.mrb[6].mxu0 }
 0x32d   :  { %v707_v49 = vadd.f32 %v703_v47, %v633_v46  ;;  %v15354_v50 = vpop.f32.mrb[7].mxu1  ;;  %v15365_v51 = vpop.f32.mrb[7].mxu0  ;;  %v785_v57 = vadd.f32 %v781_v48, %v714_v55 }
 0x32e   :  { %v1107_v50 = vld [vmem:[#allocation3 + $0x3] sm:$0x1] }
 0x32f   :  { %v14143_v52 = vmul.f32 -1.442695, %v707_v49  ;;  %v14145_v59 = vmul.f32 -1.442695, %v785_v57 }
 0x331   :  { %18178 = vpow2.f32 %v14143_v52 }
 0x332   :  { %18180 = vpow2.f32 %v14145_v59  ;;  %v1188_v59 = vld [vmem:[#allocation4 + $0x3] sm:$0x1] }
 0x334   :  { %v859_v56 = vpop.f32.mrb[8].mxu1 }
 0x335   :  { %v15376_v58 = vpop.f32.mrb[9].mxu1  ;;  %v860_v63 = vadd.f32 %v859_v56, %v18929_v19 }
 0x33b   :  { %v18179_v60 = vpop.eup %18178 }
 0x33c   :  { %v711_v61 = vadd.f32 1.0, %v18179_v60  ;;  %v18181_v62 = vpop.eup %18180 }
 0x33d   :  { %v789_v5 = vadd.f32 1.0, %v18181_v62 }
 0x33e   :  { %18182 = vrcp.f32 %v711_v61 }
 0x348   :  { %v18183_v0 = vpop.eup %18182 }
 0x349   :  { %v863_v1 = vmul.f32 %v18183_v0, %v860_v63 }
 0x34b   :  { %v864_v6 = vadd.f32 %v863_v1, %v792_v2 }
 0x34d   :  { %18184 = vtanh.f32 %v864_v6 }
 0x34e   :  { %18186 = vrcp.f32 %v789_v5 }
 0x357   :  { %v18185_v8 = vpop.eup %18184 }
 0x358   :  { %v866_v9 = vsub.f32 %v630_v44, %v18185_v8  ;;  %v18187_v10 = vpop.eup %18186 }
 0x35a   :  { %v867_v11 = vmul.f32 %v18187_v10, %v866_v9  ;;  %v1266_v9 = vld [vmem:[#allocation5 + $0x3] sm:$0x1] }
 0x35c   :  { %v868_v13 = vadd.f32 %v18185_v8, %v867_v11 }
 0x35e   :  { %869 = vst.msk [vmem:[#allocation2 + $0x1] sm:$0x1] %vm631_vm8, %v868_v13  ;;  %15386 = vmatmul.mubr.msk.f32.vlgmr.msra.gmra.mrb[8].mxu0 %vm60_vm1, %v868_v13  ;;  %15397 = vmatmul.mubr.msk.f32.vlgmr.msra.gmra.mrb[10].mxu1 %vm60_vm1, %v868_v13 }
 0x35f   :  { %17172 = vmatpush3.bf16.msra.mxu0 %v18849_v36  ;;  %15407 = vmatprep.mubr.msk.f32.mxu0 %vm18734_vm7, %v18731_v15 }
 0x360   :  { %17173 = vmatprep.subr.bf16.mxu0 %v18732_v23  ;;  %17178 = vmatpush3.bf16.msra.mxu1 %v18822_v29 }
 0x361   :  { %17179 = vmatprep.subr.bf16.mxu1 %v18732_v23  ;;  %15418 = vmatprep.mubr.msk.f32.mxu1 %vm18734_vm7, %v18731_v15 }
 0x363   :  { %17175 = vmatpush3.bf16.msra.mxu0 %v18860_v39 }
 0x364   :  { %17182 = vmatprep.subr.bf16.mxu0 %v18732_v23  ;;  %17181 = vmatpush3.bf16.msra.mxu1 %v18837_v33 }
 0x365   :  { %17188 = vmatprep.subr.bf16.mxu1 %v18732_v23 }
 0x366   :  { %15408 = vmatmul.mubr.msk.f32.vlgmr.msra.gmra.mrb[10].mxu0 %vm60_vm1, %v868_v13 }
 0x367   :  { %17184 = vmatpush3.bf16.msra.mxu0 %v18873_v42  ;;  %15429 = vmatprep.mubr.msk.f32.mxu0 %vm18734_vm7, %v18731_v15 }
 0x368   :  { %17185 = vmatprep.subr.bf16.mxu0 %v18732_v23 }
 0x36b   :  { %17187 = vmatpush3.bf16.msra.mxu0 %v18886_v45 }
 0x36c   :  { %17194 = vmatprep.subr.bf16.mxu0 %v18732_v23 }
 0x431   :  { %v940_v16 = vpop.f32.mrb[8].mxu0  ;;  %v1018_v17 = vpop.f32.mrb[10].mxu1 }
 0x432   :  { %v944_v20 = vadd.f32 %v940_v16, %v870_v14  ;;  %v15387_v21 = vpop.f32.mrb[9].mxu0  ;;  %v15398_v22 = vpop.f32.mrb[11].mxu1  ;;  %v1022_v27 = vadd.f32 %v1018_v17, %v951_v25 }
 0x433   :  { %v1344_v21 = vld [vmem:[#allocation3 + $0x4] sm:$0x1] }
 0x434   :  { %v14148_v24 = vmul.f32 -1.442695, %v944_v20  ;;  %v14150_v30 = vmul.f32 -1.442695, %v1022_v27 }
 0x436   :  { %18188 = vpow2.f32 %v14148_v24 }
 0x437   :  { %18190 = vpow2.f32 %v14150_v30  ;;  %v1425_v30 = vld [vmem:[#allocation4 + $0x4] sm:$0x1] }
 0x439   :  { %v1096_v26 = vpop.f32.mrb[10].mxu0 }
 0x43a   :  { %v15409_v28 = vpop.f32.mrb[11].mxu0  ;;  %v1097_v35 = vadd.f32 %v1096_v26, %v18929_v19 }
 0x440   :  { %v18189_v31 = vpop.eup %18188 }
 0x441   :  { %v948_v32 = vadd.f32 1.0, %v18189_v31  ;;  %v18191_v34 = vpop.eup %18190 }
 0x442   :  { %v1026_v41 = vadd.f32 1.0, %v18191_v34 }
 0x443   :  { %18192 = vrcp.f32 %v948_v32 }
 0x44d   :  { %v18193_v37 = vpop.eup %18192 }
 0x44e   :  { %v1100_v38 = vmul.f32 %v18193_v37, %v1097_v35 }
 0x450   :  { %v1101_v43 = vadd.f32 %v1100_v38, %v1029_v40 }
 0x452   :  { %18194 = vtanh.f32 %v1101_v43 }
 0x453   :  { %18196 = vrcp.f32 %v1026_v41 }
 0x45c   :  { %v18195_v44 = vpop.eup %18194 }
 0x45d   :  { %v1103_v46 = vsub.f32 %v868_v13, %v18195_v44  ;;  %v18197_v47 = vpop.eup %18196 }
 0x45f   :  { %v1104_v48 = vmul.f32 %v18197_v47, %v1103_v46  ;;  %v1503_v46 = vld [vmem:[#allocation5 + $0x4] sm:$0x1] }
 0x461   :  { %v1105_v49 = vadd.f32 %v18195_v44, %v1104_v48 }
 0x463   :  { %1106 = vst.msk [vmem:[#allocation2 + $0x2] sm:$0x1] %vm631_vm8, %v1105_v49  ;;  %15419 = vmatmul.mubr.msk.f32.vlgmr.msra.gmra.mrb[12].mxu1 %vm60_vm1, %v1105_v49  ;;  %15430 = vmatmul.mubr.msk.f32.vlgmr.msra.gmra.mrb[12].mxu0 %vm60_vm1, %v1105_v49 }
 0x464   :  { %17190 = vmatpush3.bf16.msra.mxu1 %v18849_v36  ;;  %15440 = vmatprep.mubr.msk.f32.mxu1 %vm18734_vm7, %v18731_v15 }
 0x465   :  { %17191 = vmatprep.subr.bf16.mxu1 %v18732_v23  ;;  %17196 = vmatpush3.bf16.msra.mxu0 %v18822_v29 }
 0x466   :  { %17197 = vmatprep.subr.bf16.mxu0 %v18732_v23  ;;  %15451 = vmatprep.mubr.msk.f32.mxu0 %vm18734_vm7, %v18731_v15 }
 0x468   :  { %17193 = vmatpush3.bf16.msra.mxu1 %v18860_v39 }
 0x469   :  { %17200 = vmatprep.subr.bf16.mxu1 %v18732_v23  ;;  %17199 = vmatpush3.bf16.msra.mxu0 %v18837_v33 }
 0x46a   :  { %17206 = vmatprep.subr.bf16.mxu0 %v18732_v23 }
 0x46b   :  { %15441 = vmatmul.mubr.msk.f32.vlgmr.msra.gmra.mrb[14].mxu1 %vm60_vm1, %v1105_v49 }
 0x46c   :  { %17202 = vmatpush3.bf16.msra.mxu1 %v18873_v42  ;;  %15462 = vmatprep.mubr.msk.f32.mxu1 %vm18734_vm7, %v18731_v15 }
 0x46d   :  { %17203 = vmatprep.subr.bf16.mxu1 %v18732_v23 }
 0x470   :  { %17205 = vmatpush3.bf16.msra.mxu1 %v18886_v45 }
 0x471   :  { %17212 = vmatprep.subr.bf16.mxu1 %v18732_v23 }
 0x536   :  { %v1177_v51 = vpop.f32.mrb[12].mxu1  ;;  %v1255_v52 = vpop.f32.mrb[12].mxu0 }
 0x537   :  { %v1181_v55 = vadd.f32 %v1177_v51, %v1107_v50  ;;  %v15420_v56 = vpop.f32.mrb[13].mxu1  ;;  %v15431_v57 = vpop.f32.mrb[13].mxu0  ;;  %v1259_v61 = vadd.f32 %v1255_v52, %v1188_v59 }
 0x538   :  { %v1581_v56 = vld [vmem:[#allocation3 + $0x5] sm:$0x1] }
 0x539   :  { %v14153_v58 = vmul.f32 -1.442695, %v1181_v55  ;;  %v14155_v63 = vmul.f32 -1.442695, %v1259_v61 }
 0x53b   :  { %18198 = vpow2.f32 %v14153_v58 }
 0x53c   :  { %18200 = vpow2.f32 %v14155_v63  ;;  %v1662_v63 = vld [vmem:[#allocation4 + $0x5] sm:$0x1] }
 0x53e   :  { %v1333_v60 = vpop.f32.mrb[14].mxu1 }
 0x53f   :  { %v15442_v62 = vpop.f32.mrb[15].mxu1  ;;  %v1334_v5 = vadd.f32 %v1333_v60, %v18929_v19 }
 0x545   :  { %v18199_v0 = vpop.eup %18198 }
 0x546   :  { %v1185_v1 = vadd.f32 1.0, %v18199_v0  ;;  %v18201_v2 = vpop.eup %18200 }
 0x547   :  { %v1263_v10 = vadd.f32 1.0, %v18201_v2 }
 0x548   :  { %18202 = vrcp.f32 %v1185_v1 }
 0x552   :  { %v18203_v6 = vpop.eup %18202 }
 0x553   :  { %v1337_v8 = vmul.f32 %v18203_v6, %v1334_v5 }
 0x555   :  { %v1338_v11 = vadd.f32 %v1337_v8, %v1266_v9 }
 0x557   :  { %18204 = vtanh.f32 %v1338_v11 }
 0x558   :  { %18206 = vrcp.f32 %v1263_v10 }
 0x561   :  { %v18205_v13 = vpop.eup %18204 }
 0x562   :  { %v1340_v14 = vsub.f32 %v1105_v49, %v18205_v13  ;;  %v18207_v16 = vpop.eup %18206 }
 0x564   :  { %v1341_v17 = vmul.f32 %v18207_v16, %v1340_v14  ;;  %v1740_v14 = vld [vmem:[#allocation5 + $0x5] sm:$0x1] }
 0x566   :  { %v1342_v20 = vadd.f32 %v18205_v13, %v1341_v17 }
 0x568   :  { %1343 = vst.msk [vmem:[#allocation2 + $0x3] sm:$0x1] %vm631_vm8, %v1342_v20  ;;  %15452 = vmatmul.mubr.msk.f32.vlgmr.msra.gmra.mrb[14].mxu0 %vm60_vm1, %v1342_v20  ;;  %15463 = vmatmul.mubr.msk.f32.vlgmr.msra.gmra.mrb[16].mxu1 %vm60_vm1, %v1342_v20 }
 0x569   :  { %17208 = vmatpush3.bf16.msra.mxu0 %v18849_v36  ;;  %15473 = vmatprep.mubr.msk.f32.mxu0 %vm18734_vm7, %v18731_v15 }
 0x56a   :  { %17209 = vmatprep.subr.bf16.mxu0 %v18732_v23  ;;  %17214 = vmatpush3.bf16.msra.mxu1 %v18822_v29 }
 0x56b   :  { %17215 = vmatprep.subr.bf16.mxu1 %v18732_v23  ;;  %15484 = vmatprep.mubr.msk.f32.mxu1 %vm18734_vm7, %v18731_v15 }
 0x56d   :  { %17211 = vmatpush3.bf16.msra.mxu0 %v18860_v39 }
 0x56e   :  { %17218 = vmatprep.subr.bf16.mxu0 %v18732_v23  ;;  %17217 = vmatpush3.bf16.msra.mxu1 %v18837_v33 }
 0x56f   :  { %17224 = vmatprep.subr.bf16.mxu1 %v18732_v23 }
 0x570   :  { %15474 = vmatmul.mubr.msk.f32.vlgmr.msra.gmra.mrb[16].mxu0 %vm60_vm1, %v1342_v20 }
 0x571   :  { %17220 = vmatpush3.bf16.msra.mxu0 %v18873_v42  ;;  %15495 = vmatprep.mubr.msk.f32.mxu0 %vm18734_vm7, %v18731_v15 }
 0x572   :  { %17221 = vmatprep.subr.bf16.mxu0 %v18732_v23 }
 0x575   :  { %17223 = vmatpush3.bf16.msra.mxu0 %v18886_v45 }
 0x576   :  { %17230 = vmatprep.subr.bf16.mxu0 %v18732_v23 }
 0x63b   :  { %v1414_v22 = vpop.f32.mrb[14].mxu0  ;;  %v1492_v24 = vpop.f32.mrb[16].mxu1 }
 0x63c   :  { %v1418_v25 = vadd.f32 %v1414_v22, %v1344_v21  ;;  %v15453_v26 = vpop.f32.mrb[15].mxu0  ;;  %v15464_v27 = vpop.f32.mrb[17].mxu1  ;;  %v1496_v32 = vadd.f32 %v1492_v24, %v1425_v30 }
 0x63d   :  { %v1818_v26 = vld [vmem:[#allocation3 + $0x6] sm:$0x1] }
 0x63e   :  { %v14158_v28 = vmul.f32 -1.442695, %v1418_v25  ;;  %v14160_v35 = vmul.f32 -1.442695, %v1496_v32 }
 0x640   :  { %18208 = vpow2.f32 %v14158_v28 }
 0x641   :  { %18210 = vpow2.f32 %v14160_v35  ;;  %v1899_v35 = vld [vmem:[#allocation4 + $0x6] sm:$0x1] }
 0x643   :  { %v1570_v31 = vpop.f32.mrb[16].mxu0 }
 0x644   :  { %v15475_v34 = vpop.f32.mrb[17].mxu0  ;;  %v1571_v41 = vadd.f32 %v1570_v31, %v18929_v19 }
 0x64a   :  { %v18209_v37 = vpop.eup %18208 }
 0x64b   :  { %v1422_v38 = vadd.f32 1.0, %v18209_v37  ;;  %v18211_v40 = vpop.eup %18210 }
 0x64c   :  { %v1500_v47 = vadd.f32 1.0, %v18211_v40 }
 0x64d   :  { %18212 = vrcp.f32 %v1422_v38 }
 0x657   :  { %v18213_v43 = vpop.eup %18212 }
 0x658   :  { %v1574_v44 = vmul.f32 %v18213_v43, %v1571_v41 }
 0x65a   :  { %v1575_v48 = vadd.f32 %v1574_v44, %v1503_v46 }
 0x65c   :  { %18214 = vtanh.f32 %v1575_v48 }
 0x65d   :  { %18216 = vrcp.f32 %v1500_v47 }
 0x666   :  { %v18215_v49 = vpop.eup %18214 }
 0x667   :  { %v1577_v50 = vsub.f32 %v1342_v20, %v18215_v49  ;;  %v18217_v51 = vpop.eup %18216 }
 0x669   :  { %v1578_v52 = vmul.f32 %v18217_v51, %v1577_v50  ;;  %v1977_v50 = vld [vmem:[#allocation5 + $0x6] sm:$0x1] }
 0x66b   :  { %v1579_v55 = vadd.f32 %v18215_v49, %v1578_v52 }
 0x66d   :  { %1580 = vst.msk [vmem:[#allocation2 + $0x4] sm:$0x1] %vm631_vm8, %v1579_v55  ;;  %15485 = vmatmul.mubr.msk.f32.vlgmr.msra.gmra.mrb[18].mxu1 %vm60_vm1, %v1579_v55  ;;  %15496 = vmatmul.mubr.msk.f32.vlgmr.msra.gmra.mrb[18].mxu0 %vm60_vm1, %v1579_v55 }
 0x66e   :  { %17226 = vmatpush3.bf16.msra.mxu1 %v18849_v36  ;;  %15506 = vmatprep.mubr.msk.f32.mxu1 %vm18734_vm7, %v18731_v15 }
 0x66f   :  { %17227 = vmatprep.subr.bf16.mxu1 %v18732_v23  ;;  %17232 = vmatpush3.bf16.msra.mxu0 %v18822_v29 }
 0x670   :  { %17233 = vmatprep.subr.bf16.mxu0 %v18732_v23  ;;  %15517 = vmatprep.mubr.msk.f32.mxu0 %vm18734_vm7, %v18731_v15 }
 0x672   :  { %17229 = vmatpush3.bf16.msra.mxu1 %v18860_v39 }
 0x673   :  { %17236 = vmatprep.subr.bf16.mxu1 %v18732_v23  ;;  %17235 = vmatpush3.bf16.msra.mxu0 %v18837_v33 }
 0x674   :  { %17242 = vmatprep.subr.bf16.mxu0 %v18732_v23 }
 0x675   :  { %15507 = vmatmul.mubr.msk.f32.vlgmr.msra.gmra.mrb[20].mxu1 %vm60_vm1, %v1579_v55 }
 0x676   :  { %17238 = vmatpush3.bf16.msra.mxu1 %v18873_v42  ;;  %15528 = vmatprep.mubr.msk.f32.mxu1 %vm18734_vm7, %v18731_v15 }
 0x677   :  { %17239 = vmatprep.subr.bf16.mxu1 %v18732_v23 }
 0x67a   :  { %17241 = vmatpush3.bf16.msra.mxu1 %v18886_v45 }
 0x67b   :  { %17248 = vmatprep.subr.bf16.mxu1 %v18732_v23 }
 0x740   :  { %v1651_v57 = vpop.f32.mrb[18].mxu1  ;;  %v1729_v58 = vpop.f32.mrb[18].mxu0 }
 0x741   :  { %v1655_v59 = vadd.f32 %v1651_v57, %v1581_v56  ;;  %v15486_v60 = vpop.f32.mrb[19].mxu1  ;;  %v15497_v61 = vpop.f32.mrb[19].mxu0  ;;  %v1733_v1 = vadd.f32 %v1729_v58, %v1662_v63 }
 0x742   :  { %v2055_v60 = vld [vmem:[#allocation3 + $0x7] sm:$0x1] }
 0x743   :  { %v14163_v62 = vmul.f32 -1.442695, %v1655_v59  ;;  %v14165_v5 = vmul.f32 -1.442695, %v1733_v1 }
 0x745   :  { %18218 = vpow2.f32 %v14163_v62 }
 0x746   :  { %18220 = vpow2.f32 %v14165_v5  ;;  %v2136_v5 = vld [vmem:[#allocation4 + $0x7] sm:$0x1] }
 0x748   :  { %v1807_v0 = vpop.f32.mrb[20].mxu1 }
 0x749   :  { %v15508_v2 = vpop.f32.mrb[21].mxu1  ;;  %v1808_v10 = vadd.f32 %v1807_v0, %v18929_v19 }
 0x74f   :  { %v18219_v6 = vpop.eup %18218 }
 0x750   :  { %v1659_v8 = vadd.f32 1.0, %v18219_v6  ;;  %v18221_v9 = vpop.eup %18220 }
 0x751   :  { %v1737_v16 = vadd.f32 1.0, %v18221_v9 }
 0x752   :  { %18222 = vrcp.f32 %v1659_v8 }
 0x75c   :  { %v18223_v11 = vpop.eup %18222 }
 0x75d   :  { %v1811_v13 = vmul.f32 %v18223_v11, %v1808_v10 }
 0x75f   :  { %v1812_v17 = vadd.f32 %v1811_v13, %v1740_v14 }
 0x761   :  { %18224 = vtanh.f32 %v1812_v17 }
 0x762   :  { %18226 = vrcp.f32 %v1737_v16 }
 0x76b   :  { %v18225_v20 = vpop.eup %18224 }
 0x76c   :  { %v1814_v21 = vsub.f32 %v1579_v55, %v18225_v20  ;;  %v18227_v22 = vpop.eup %18226 }
 0x76e   :  { %v1815_v24 = vmul.f32 %v18227_v22, %v1814_v21  ;;  %v2214_v21 = vld [vmem:[#allocation5 + $0x7] sm:$0x1] }
 0x770   :  { %v1816_v25 = vadd.f32 %v18225_v20, %v1815_v24 }
 0x772   :  { %1817 = vst.msk [vmem:[#allocation2 + $0x5] sm:$0x1] %vm631_vm8, %v1816_v25  ;;  %15518 = vmatmul.mubr.msk.f32.vlgmr.msra.gmra.mrb[20].mxu0 %vm60_vm1, %v1816_v25  ;;  %15529 = vmatmul.mubr.msk.f32.vlgmr.msra.gmra.mrb[22].mxu1 %vm60_vm1, %v1816_v25 }
 0x773   :  { %17244 = vmatpush3.bf16.msra.mxu0 %v18849_v36  ;;  %15539 = vmatprep.mubr.msk.f32.mxu0 %vm18734_vm7, %v18731_v15 }
 0x774   :  { %17245 = vmatprep.subr.bf16.mxu0 %v18732_v23  ;;  %17250 = vmatpush3.bf16.msra.mxu1 %v18822_v29 }
 0x775   :  { %17251 = vmatprep.subr.bf16.mxu1 %v18732_v23  ;;  %15550 = vmatprep.mubr.msk.f32.mxu1 %vm18734_vm7, %v18731_v15 }
 0x777   :  { %17247 = vmatpush3.bf16.msra.mxu0 %v18860_v39 }
 0x778   :  { %17254 = vmatprep.subr.bf16.mxu0 %v18732_v23  ;;  %17253 = vmatpush3.bf16.msra.mxu1 %v18837_v33 }
 0x779   :  { %17260 = vmatprep.subr.bf16.mxu1 %v18732_v23 }
 0x77a   :  { %15540 = vmatmul.mubr.msk.f32.vlgmr.msra.gmra.mrb[22].mxu0 %vm60_vm1, %v1816_v25 }
 0x77b   :  { %17256 = vmatpush3.bf16.msra.mxu0 %v18873_v42  ;;  %15561 = vmatprep.mubr.msk.f32.mxu0 %vm18734_vm7, %v18731_v15 }
 0x77c   :  { %17257 = vmatprep.subr.bf16.mxu0 %v18732_v23 }
 0x77f   :  { %17259 = vmatpush3.bf16.msra.mxu0 %v18886_v45 }
 0x780   :  { %17266 = vmatprep.subr.bf16.mxu0 %v18732_v23 }
 0x845   :  { %v1888_v27 = vpop.f32.mrb[20].mxu0  ;;  %v1966_v28 = vpop.f32.mrb[22].mxu1 }
 0x846   :  { %v1892_v30 = vadd.f32 %v1888_v27, %v1818_v26  ;;  %v15519_v31 = vpop.f32.mrb[21].mxu0  ;;  %v15530_v32 = vpop.f32.mrb[23].mxu1  ;;  %v1970_v38 = vadd.f32 %v1966_v28, %v1899_v35 }
 0x847   :  { %v2292_v31 = vld [vmem:[#allocation3 + $0x8] sm:$0x1] }
 0x848   :  { %v14168_v34 = vmul.f32 -1.442695, %v1892_v30  ;;  %v14170_v41 = vmul.f32 -1.442695, %v1970_v38 }
 0x84a   :  { %18228 = vpow2.f32 %v14168_v34 }
 0x84b   :  { %18230 = vpow2.f32 %v14170_v41  ;;  %v2373_v41 = vld [vmem:[#allocation4 + $0x8] sm:$0x1] }
 0x84d   :  { %v2044_v37 = vpop.f32.mrb[22].mxu0 }
 0x84e   :  { %v15541_v40 = vpop.f32.mrb[23].mxu0  ;;  %v2045_v47 = vadd.f32 %v2044_v37, %v18929_v19 }
 0x854   :  { %v18229_v43 = vpop.eup %18228 }
 0x855   :  { %v1896_v44 = vadd.f32 1.0, %v18229_v43  ;;  %v18231_v46 = vpop.eup %18230 }
 0x856   :  { %v1974_v51 = vadd.f32 1.0, %v18231_v46 }
 0x857   :  { %18232 = vrcp.f32 %v1896_v44 }
 0x861   :  { %v18233_v48 = vpop.eup %18232 }
 0x862   :  { %v2048_v49 = vmul.f32 %v18233_v48, %v2045_v47 }
 0x864   :  { %v2049_v52 = vadd.f32 %v2048_v49, %v1977_v50 }
 0x866   :  { %18234 = vtanh.f32 %v2049_v52 }
 0x867   :  { %18236 = vrcp.f32 %v1974_v51 }
 0x870   :  { %v18235_v55 = vpop.eup %18234 }
 0x871   :  { %v2051_v56 = vsub.f32 %v1816_v25, %v18235_v55  ;;  %v18237_v57 = vpop.eup %18236 }
 0x873   :  { %v2052_v58 = vmul.f32 %v18237_v57, %v2051_v56  ;;  %v2451_v56 = vld [vmem:[#allocation5 + $0x8] sm:$0x1] }
 0x875   :  { %v2053_v59 = vadd.f32 %v18235_v55, %v2052_v58 }
 0x877   :  { %2054 = vst.msk [vmem:[#allocation2 + $0x6] sm:$0x1] %vm631_vm8, %v2053_v59  ;;  %15551 = vmatmul.mubr.msk.f32.vlgmr.msra.gmra.mrb[24].mxu1 %vm60_vm1, %v2053_v59  ;;  %15562 = vmatmul.mubr.msk.f32.vlgmr.msra.gmra.mrb[24].mxu0 %vm60_vm1, %v2053_v59 }
 0x878   :  { %17262 = vmatpush3.bf16.msra.mxu1 %v18849_v36  ;;  %15572 = vmatprep.mubr.msk.f32.mxu1 %vm18734_vm7, %v18731_v15 }
 0x879   :  { %17263 = vmatprep.subr.bf16.mxu1 %v18732_v23  ;;  %17268 = vmatpush3.bf16.msra.mxu0 %v18822_v29 }
 0x87a   :  { %17269 = vmatprep.subr.bf16.mxu0 %v18732_v23  ;;  %15583 = vmatprep.mubr.msk.f32.mxu0 %vm18734_vm7, %v18731_v15 }
 0x87c   :  { %17265 = vmatpush3.bf16.msra.mxu1 %v18860_v39 }
 0x87d   :  { %17272 = vmatprep.subr.bf16.mxu1 %v18732_v23  ;;  %17271 = vmatpush3.bf16.msra.mxu0 %v18837_v33 }
 0x87e   :  { %17278 = vmatprep.subr.bf16.mxu0 %v18732_v23 }
 0x87f   :  { %15573 = vmatmul.mubr.msk.f32.vlgmr.msra.gmra.mrb[26].mxu1 %vm60_vm1, %v2053_v59 }
 0x880   :  { %17274 = vmatpush3.bf16.msra.mxu1 %v18873_v42  ;;  %15594 = vmatprep.mubr.msk.f32.mxu1 %vm18734_vm7, %v18731_v15 }
 0x881   :  { %17275 = vmatprep.subr.bf16.mxu1 %v18732_v23 }
 0x884   :  { %17277 = vmatpush3.bf16.msra.mxu1 %v18886_v45 }
 0x885   :  { %17284 = vmatprep.subr.bf16.mxu1 %v18732_v23 }
 0x94a   :  { %v2125_v61 = vpop.f32.mrb[24].mxu1  ;;  %v2203_v62 = vpop.f32.mrb[24].mxu0 }
 0x94b   :  { %v2129_v63 = vadd.f32 %v2125_v61, %v2055_v60  ;;  %v15552_v0 = vpop.f32.mrb[25].mxu1  ;;  %v15563_v1 = vpop.f32.mrb[25].mxu0  ;;  %v2207_v8 = vadd.f32 %v2203_v62, %v2136_v5 }
 0x94c   :  { %v2529_v0 = vld [vmem:[#allocation3 + $0x9] sm:$0x1] }
 0x94d   :  { %v14173_v2 = vmul.f32 -1.442695, %v2129_v63  ;;  %v14175_v10 = vmul.f32 -1.442695, %v2207_v8 }
 0x94f   :  { %18238 = vpow2.f32 %v14173_v2 }
 0x950   :  { %18240 = vpow2.f32 %v14175_v10  ;;  %v2610_v10 = vld [vmem:[#allocation4 + $0x9] sm:$0x1] }
 0x952   :  { %v2281_v6 = vpop.f32.mrb[26].mxu1 }
 0x953   :  { %v15574_v9 = vpop.f32.mrb[27].mxu1  ;;  %v2282_v16 = vadd.f32 %v2281_v6, %v18929_v19 }
 0x959   :  { %v18239_v11 = vpop.eup %18238 }
 0x95a   :  { %v2133_v13 = vadd.f32 1.0, %v18239_v11  ;;  %v18241_v14 = vpop.eup %18240 }
 0x95b   :  { %v2211_v22 = vadd.f32 1.0, %v18241_v14 }
 0x95c   :  { %18242 = vrcp.f32 %v2133_v13 }
 0x966   :  { %v18243_v17 = vpop.eup %18242 }
 0x967   :  { %v2285_v20 = vmul.f32 %v18243_v17, %v2282_v16 }
 0x969   :  { %v2286_v24 = vadd.f32 %v2285_v20, %v2214_v21 }
 0x96b   :  { %18244 = vtanh.f32 %v2286_v24 }
 0x96c   :  { %18246 = vrcp.f32 %v2211_v22 }
 0x975   :  { %v18245_v25 = vpop.eup %18244 }
 0x976   :  { %v2288_v26 = vsub.f32 %v2053_v59, %v18245_v25  ;;  %v18247_v27 = vpop.eup %18246 }
 0x978   :  { %v2289_v28 = vmul.f32 %v18247_v27, %v2288_v26  ;;  %v2688_v26 = vld [vmem:[#allocation5 + $0x9] sm:$0x1] }
 0x97a   :  { %v2290_v30 = vadd.f32 %v18245_v25, %v2289_v28 }
 0x97c   :  { %2291 = vst.msk [vmem:[#allocation2 + $0x7] sm:$0x1] %vm631_vm8, %v2290_v30  ;;  %15584 = vmatmul.mubr.msk.f32.vlgmr.msra.gmra.mrb[26].mxu0 %vm60_vm1, %v2290_v30  ;;  %15595 = vmatmul.mubr.msk.f32.vlgmr.msra.gmra.mrb[28].mxu1 %vm60_vm1, %v2290_v30 }
 0x97d   :  { %17280 = vmatpush3.bf16.msra.mxu0 %v18849_v36  ;;  %15605 = vmatprep.mubr.msk.f32.mxu0 %vm18734_vm7, %v18731_v15 }
 0x97e   :  { %17281 = vmatprep.subr.bf16.mxu0 %v18732_v23  ;;  %17286 = vmatpush3.bf16.msra.mxu1 %v18822_v29 }
 0x97f   :  { %17287 = vmatprep.subr.bf16.mxu1 %v18732_v23  ;;  %15616 = vmatprep.mubr.msk.f32.mxu1 %vm18734_vm7, %v18731_v15 }
 0x981   :  { %17283 = vmatpush3.bf16.msra.mxu0 %v18860_v39 }
 0x982   :  { %17290 = vmatprep.subr.bf16.mxu0 %v18732_v23  ;;  %17289 = vmatpush3.bf16.msra.mxu1 %v18837_v33 }
 0x983   :  { %17296 = vmatprep.subr.bf16.mxu1 %v18732_v23 }
 0x984   :  { %15606 = vmatmul.mubr.msk.f32.vlgmr.msra.gmra.mrb[28].mxu0 %vm60_vm1, %v2290_v30 }
 0x985   :  { %17292 = vmatpush3.bf16.msra.mxu0 %v18873_v42  ;;  %15627 = vmatprep.mubr.msk.f32.mxu0 %vm18734_vm7, %v18731_v15 }
 0x986   :  { %17293 = vmatprep.subr.bf16.mxu0 %v18732_v23 }
 0x989   :  { %17295 = vmatpush3.bf16.msra.mxu0 %v18886_v45 }
 0x98a   :  { %17302 = vmatprep.subr.bf16.mxu0 %v18732_v23 }
 0xa4f   :  { %v2362_v32 = vpop.f32.mrb[26].mxu0  ;;  %v2440_v34 = vpop.f32.mrb[28].mxu1 }
 0xa50   :  { %v2366_v35 = vadd.f32 %v2362_v32, %v2292_v31  ;;  %v15585_v37 = vpop.f32.mrb[27].mxu0  ;;  %v15596_v38 = vpop.f32.mrb[29].mxu1  ;;  %v2444_v44 = vadd.f32 %v2440_v34, %v2373_v41 }
 0xa52   :  { %v14178_v40 = vmul.f32 -1.442695, %v2366_v35  ;;  %v14180_v47 = vmul.f32 -1.442695, %v2444_v44 }
 0xa54   :  { %18248 = vpow2.f32 %v14178_v40 }
 0xa55   :  { %18250 = vpow2.f32 %v14180_v47 }
 0xa57   :  { %v2518_v43 = vpop.f32.mrb[28].mxu0 }
 0xa58   :  { %v15607_v46 = vpop.f32.mrb[29].mxu0  ;;  %v2519_v51 = vadd.f32 %v2518_v43, %v18929_v19 }
 0xa59   :  { %v2847_v46 = vld [vmem:[#allocation4 + $0xa] sm:$0x1] }
 0xa5e   :  { %v18249_v48 = vpop.eup %18248 }
 0xa5f   :  { %v2370_v49 = vadd.f32 1.0, %v18249_v48  ;;  %v18251_v50 = vpop.eup %18250 }
 0xa60   :  { %v2448_v57 = vadd.f32 1.0, %v18251_v50 }
 0xa61   :  { %18252 = vrcp.f32 %v2370_v49 }
 0xa6b   :  { %v18253_v52 = vpop.eup %18252 }
 0xa6c   :  { %v2522_v55 = vmul.f32 %v18253_v52, %v2519_v51 }
 0xa6e   :  { %v2523_v58 = vadd.f32 %v2522_v55, %v2451_v56  ;;  %v19168_v56 = vld [vmem:[%s20537_s2 + $0x7] sm:$0x1] }
 0xa70   :  { %18254 = vtanh.f32 %v2523_v58 }
 0xa71   :  { %18256 = vrcp.f32 %v2448_v57 }
 0xa7a   :  { %v18255_v59 = vpop.eup %18254 }
 0xa7b   :  { %v2525_v60 = vsub.f32 %v2290_v30, %v18255_v59  ;;  %v18257_v61 = vpop.eup %18256 }
 0xa7d   :  { %v2526_v62 = vmul.f32 %v18257_v61, %v2525_v60  ;;  %v2925_v60 = vld [vmem:[#allocation5 + $0xa] sm:$0x1] }
 0xa7f   :  { %v2527_v63 = vadd.f32 %v18255_v59, %v2526_v62 }
 0xa81   :  { %2528 = vst.msk [vmem:[#allocation2 + $0x8] sm:$0x1] %vm631_vm8, %v2527_v63  ;;  %15617 = vmatmul.mubr.msk.f32.vlgmr.msra.gmra.mrb[30].mxu1 %vm60_vm1, %v2527_v63  ;;  %15628 = vmatmul.mubr.msk.f32.vlgmr.msra.gmra.mrb[30].mxu0 %vm60_vm1, %v2527_v63 }
 0xa82   :  { %17298 = vmatpush3.bf16.msra.mxu1 %v18849_v36  ;;  %15638 = vmatprep.mubr.msk.f32.mxu1 %vm18734_vm7, %v18731_v15 }
 0xa83   :  { %17299 = vmatprep.subr.bf16.mxu1 %v18732_v23  ;;  %17304 = vmatpush3.bf16.msra.mxu0 %v18822_v29 }
 0xa84   :  { %17305 = vmatprep.subr.bf16.mxu0 %v18732_v23  ;;  %15649 = vmatprep.mubr.msk.f32.mxu0 %vm18734_vm7, %v18731_v15 }
 0xa86   :  { %17301 = vmatpush3.bf16.msra.mxu1 %v18860_v39 }
 0xa87   :  { %17308 = vmatprep.subr.bf16.mxu1 %v18732_v23  ;;  %17307 = vmatpush3.bf16.msra.mxu0 %v18837_v33 }
 0xa88   :  { %17314 = vmatprep.subr.bf16.mxu0 %v18732_v23 }
 0xa89   :  { %15639 = vmatmul.mubr.msk.f32.vlgmr.msra.gmra.mrb[32].mxu1 %vm60_vm1, %v2527_v63 }
 0xa8a   :  { %17310 = vmatpush3.bf16.msra.mxu1 %v18873_v42  ;;  %15660 = vmatprep.mubr.msk.f32.mxu1 %vm18734_vm7, %v18731_v15 }
 0xa8b   :  { %17311 = vmatprep.subr.bf16.mxu1 %v18732_v23 }
 0xa8e   :  { %17313 = vmatpush3.bf16.msra.mxu1 %v18886_v45 }
 0xa8f   :  { %17320 = vmatprep.subr.bf16.mxu1 %v18732_v23 }
 0xb54   :  { %v2599_v1 = vpop.f32.mrb[30].mxu1  ;;  %v2677_v2 = vpop.f32.mrb[30].mxu0 }
 0xb55   :  { %v2603_v5 = vadd.f32 %v2599_v1, %v2529_v0  ;;  %v15618_v6 = vpop.f32.mrb[31].mxu1  ;;  %v15629_v8 = vpop.f32.mrb[31].mxu0  ;;  %v2681_v13 = vadd.f32 %v2677_v2, %v2610_v10 }
 0xb56   :  { %v3003_v6 = vld [vmem:[#allocation3 + $0xb] sm:$0x1] }
 0xb57   :  { %v14183_v9 = vmul.f32 -1.442695, %v2603_v5  ;;  %v14185_v16 = vmul.f32 -1.442695, %v2681_v13 }
 0xb59   :  { %18258 = vpow2.f32 %v14183_v9 }
 0xb5a   :  { %18260 = vpow2.f32 %v14185_v16  ;;  %v3084_v16 = vld [vmem:[#allocation4 + $0xb] sm:$0x1] }
 0xb5c   :  { %v2755_v11 = vpop.f32.mrb[32].mxu1 }
 0xb5d   :  { %v15640_v14 = vpop.f32.mrb[33].mxu1  ;;  %v2756_v22 = vadd.f32 %v2755_v11, %v18929_v19  ;;  %v2766_v19 = vld [vmem:[#allocation3 + $0xa] sm:$0x1] }
 0xb63   :  { %v18259_v17 = vpop.eup %18258 }
 0xb64   :  { %v2607_v20 = vadd.f32 1.0, %v18259_v17  ;;  %v18261_v21 = vpop.eup %18260 }
 0xb65   :  { %v2685_v27 = vadd.f32 1.0, %v18261_v21 }
 0xb66   :  { %18262 = vrcp.f32 %v2607_v20 }
 0xb70   :  { %v18263_v24 = vpop.eup %18262 }
 0xb71   :  { %v2759_v25 = vmul.f32 %v18263_v24, %v2756_v22 }
 0xb73   :  { %v2760_v28 = vadd.f32 %v2759_v25, %v2688_v26 }
 0xb75   :  { %18264 = vtanh.f32 %v2760_v28 }
 0xb76   :  { %18266 = vrcp.f32 %v2685_v27 }
 0xb7f   :  { %v18265_v30 = vpop.eup %18264 }
 0xb80   :  { %v2762_v31 = vsub.f32 %v2527_v63, %v18265_v30  ;;  %v18267_v32 = vpop.eup %18266 }
 0xb82   :  { %v2763_v34 = vmul.f32 %v18267_v32, %v2762_v31  ;;  %v3162_v31 = vld [vmem:[#allocation5 + $0xb] sm:$0x1] }
 0xb84   :  { %v2764_v35 = vadd.f32 %v18265_v30, %v2763_v34 }
 0xb86   :  { %2765 = vst.msk [vmem:[#allocation2 + $0x9] sm:$0x1] %vm631_vm8, %v2764_v35  ;;  %15650 = vmatmul.mubr.msk.f32.vlgmr.msra.gmra.mrb[32].mxu0 %vm60_vm1, %v2764_v35  ;;  %15661 = vmatmul.mubr.msk.f32.vlgmr.msra.gmra.mrb[34].mxu1 %vm60_vm1, %v2764_v35 }
 0xb87   :  { %17316 = vmatpush3.bf16.msra.mxu0 %v18849_v36  ;;  %15671 = vmatprep.mubr.msk.f32.mxu0 %vm18734_vm7, %v18731_v15 }
 0xb88   :  { %17317 = vmatprep.subr.bf16.mxu0 %v18732_v23  ;;  %17322 = vmatpush3.bf16.msra.mxu1 %v18822_v29 }
 0xb89   :  { %17323 = vmatprep.subr.bf16.mxu1 %v18732_v23  ;;  %15682 = vmatprep.mubr.msk.f32.mxu1 %vm18734_vm7, %v18731_v15 }
 0xb8b   :  { %17319 = vmatpush3.bf16.msra.mxu0 %v18860_v39 }
 0xb8c   :  { %17326 = vmatprep.subr.bf16.mxu0 %v18732_v23  ;;  %17325 = vmatpush3.bf16.msra.mxu1 %v18837_v33 }
 0xb8d   :  { %17332 = vmatprep.subr.bf16.mxu1 %v18732_v23 }
 0xb8e   :  { %15672 = vmatmul.mubr.msk.f32.vlgmr.msra.gmra.mrb[34].mxu0 %vm60_vm1, %v2764_v35 }
 0xb8f   :  { %17328 = vmatpush3.bf16.msra.mxu0 %v18873_v42  ;;  %15693 = vmatprep.mubr.msk.f32.mxu0 %vm18734_vm7, %v18731_v15 }
 0xb90   :  { %17329 = vmatprep.subr.bf16.mxu0 %v18732_v23 }
 0xb93   :  { %17331 = vmatpush3.bf16.msra.mxu0 %v18886_v45 }
 0xb94   :  { %17338 = vmatprep.subr.bf16.mxu0 %v18732_v23 }
 0xc59   :  { %v2836_v37 = vpop.f32.mrb[32].mxu0  ;;  %v2914_v38 = vpop.f32.mrb[34].mxu1 }
 0xc5a   :  { %v2840_v40 = vadd.f32 %v2836_v37, %v2766_v19  ;;  %v15651_v41 = vpop.f32.mrb[33].mxu0  ;;  %v15662_v43 = vpop.f32.mrb[35].mxu1  ;;  %v2918_v48 = vadd.f32 %v2914_v38, %v2847_v46 }
 0xc5b   :  { %v3240_v41 = vld [vmem:[#allocation3 + $0xc] sm:$0x1] }
 0xc5c   :  { %v14188_v44 = vmul.f32 -1.442695, %v2840_v40  ;;  %v14190_v50 = vmul.f32 -1.442695, %v2918_v48 }
 0xc5e   :  { %18268 = vpow2.f32 %v14188_v44 }
 0xc5f   :  { %18270 = vpow2.f32 %v14190_v50  ;;  %v3321_v50 = vld [vmem:[#allocation4 + $0xc] sm:$0x1] }
 0xc61   :  { %v2992_v47 = vpop.f32.mrb[34].mxu0 }
 0xc62   :  { %v15673_v49 = vpop.f32.mrb[35].mxu0  ;;  %v2993_v57 = vadd.f32 %v19168_v56, %v2992_v47 }
 0xc68   :  { %v18269_v51 = vpop.eup %18268 }
 0xc69   :  { %v2844_v52 = vadd.f32 1.0, %v18269_v51  ;;  %v18271_v55 = vpop.eup %18270 }
 0xc6a   :  { %v2922_v61 = vadd.f32 1.0, %v18271_v55 }
 0xc6b   :  { %18272 = vrcp.f32 %v2844_v52 }
 0xc75   :  { %v18273_v58 = vpop.eup %18272 }
 0xc76   :  { %v2996_v59 = vmul.f32 %v18273_v58, %v2993_v57 }
 0xc78   :  { %v2997_v62 = vadd.f32 %v2996_v59, %v2925_v60 }
 0xc7a   :  { %18274 = vtanh.f32 %v2997_v62 }
 0xc7b   :  { %18276 = vrcp.f32 %v2922_v61 }
 0xc84   :  { %v18275_v63 = vpop.eup %18274 }
 0xc85   :  { %v2999_v0 = vsub.f32 %v2764_v35, %v18275_v63  ;;  %v18277_v1 = vpop.eup %18276 }
 0xc87   :  { %v3000_v2 = vmul.f32 %v18277_v1, %v2999_v0  ;;  %v3399_v0 = vld [vmem:[#allocation5 + $0xc] sm:$0x1] }
 0xc89   :  { %v3001_v5 = vadd.f32 %v18275_v63, %v3000_v2 }
 0xc8b   :  { %3002 = vst.msk [vmem:[#allocation2 + $0xa] sm:$0x1] %vm631_vm8, %v3001_v5  ;;  %15683 = vmatmul.mubr.msk.f32.vlgmr.msra.gmra.mrb[36].mxu1 %vm60_vm1, %v3001_v5  ;;  %15694 = vmatmul.mubr.msk.f32.vlgmr.msra.gmra.mrb[36].mxu0 %vm60_vm1, %v3001_v5 }
 0xc8c   :  { %17334 = vmatpush3.bf16.msra.mxu1 %v18849_v36  ;;  %15704 = vmatprep.mubr.msk.f32.mxu1 %vm18734_vm7, %v18731_v15 }
 0xc8d   :  { %17335 = vmatprep.subr.bf16.mxu1 %v18732_v23  ;;  %17340 = vmatpush3.bf16.msra.mxu0 %v18822_v29 }
 0xc8e   :  { %17341 = vmatprep.subr.bf16.mxu0 %v18732_v23  ;;  %15715 = vmatprep.mubr.msk.f32.mxu0 %vm18734_vm7, %v18731_v15 }
 0xc90   :  { %17337 = vmatpush3.bf16.msra.mxu1 %v18860_v39 }
 0xc91   :  { %17344 = vmatprep.subr.bf16.mxu1 %v18732_v23  ;;  %17343 = vmatpush3.bf16.msra.mxu0 %v18837_v33 }
 0xc92   :  { %17350 = vmatprep.subr.bf16.mxu0 %v18732_v23 }
 0xc93   :  { %15705 = vmatmul.mubr.msk.f32.vlgmr.msra.gmra.mrb[38].mxu1 %vm60_vm1, %v3001_v5 }
 0xc94   :  { %17346 = vmatpush3.bf16.msra.mxu1 %v18873_v42  ;;  %15726 = vmatprep.mubr.msk.f32.mxu1 %vm18734_vm7, %v18731_v15 }
 0xc95   :  { %17347 = vmatprep.subr.bf16.mxu1 %v18732_v23 }
 0xc98   :  { %17349 = vmatpush3.bf16.msra.mxu1 %v18886_v45 }
 0xc99   :  { %17356 = vmatprep.subr.bf16.mxu1 %v18732_v23 }
 0xd5e   :  { %v3073_v8 = vpop.f32.mrb[36].mxu1  ;;  %v3151_v9 = vpop.f32.mrb[36].mxu0 }
 0xd5f   :  { %v3077_v10 = vadd.f32 %v3073_v8, %v3003_v6  ;;  %v15684_v11 = vpop.f32.mrb[37].mxu1  ;;  %v15695_v13 = vpop.f32.mrb[37].mxu0  ;;  %v3155_v20 = vadd.f32 %v3151_v9, %v3084_v16 }
 0xd60   :  { %v3477_v11 = vld [vmem:[#allocation3 + $0xd] sm:$0x1] }
 0xd61   :  { %v14193_v14 = vmul.f32 -1.442695, %v3077_v10  ;;  %v14195_v22 = vmul.f32 -1.442695, %v3155_v20 }
 0xd63   :  { %18278 = vpow2.f32 %v14193_v14 }
 0xd64   :  { %18280 = vpow2.f32 %v14195_v22  ;;  %v3558_v22 = vld [vmem:[#allocation4 + $0xd] sm:$0x1] }
 0xd66   :  { %v3229_v17 = vpop.f32.mrb[38].mxu1 }
 0xd67   :  { %v15706_v21 = vpop.f32.mrb[39].mxu1  ;;  %v3230_v27 = vadd.f32 %v19168_v56, %v3229_v17 }
 0xd6d   :  { %v18279_v24 = vpop.eup %18278 }
 0xd6e   :  { %v3081_v25 = vadd.f32 1.0, %v18279_v24  ;;  %v18281_v26 = vpop.eup %18280 }
 0xd6f   :  { %v3159_v32 = vadd.f32 1.0, %v18281_v26 }
 0xd70   :  { %18282 = vrcp.f32 %v3081_v25 }
 0xd7a   :  { %v18283_v28 = vpop.eup %18282 }
 0xd7b   :  { %v3233_v30 = vmul.f32 %v18283_v28, %v3230_v27 }
 0xd7d   :  { %v3234_v34 = vadd.f32 %v3233_v30, %v3162_v31 }
 0xd7f   :  { %18284 = vtanh.f32 %v3234_v34 }
 0xd80   :  { %18286 = vrcp.f32 %v3159_v32 }
 0xd89   :  { %v18285_v35 = vpop.eup %18284 }
 0xd8a   :  { %v3236_v19 = vsub.f32 %v3001_v5, %v18285_v35  ;;  %v18287_v37 = vpop.eup %18286 }
 0xd8c   :  { %v3237_v38 = vmul.f32 %v18287_v37, %v3236_v19  ;;  %v3636_v19 = vld [vmem:[#allocation5 + $0xd] sm:$0x1] }
 0xd8e   :  { %v3238_v40 = vadd.f32 %v18285_v35, %v3237_v38 }
 0xd90   :  { %3239 = vst.msk [vmem:[#allocation2 + $0xb] sm:$0x1] %vm631_vm8, %v3238_v40  ;;  %15716 = vmatmul.mubr.msk.f32.vlgmr.msra.gmra.mrb[38].mxu0 %vm60_vm1, %v3238_v40  ;;  %15727 = vmatmul.mubr.msk.f32.vlgmr.msra.gmra.mrb[40].mxu1 %vm60_vm1, %v3238_v40 }
 0xd91   :  { %17352 = vmatpush3.bf16.msra.mxu0 %v18849_v36  ;;  %15737 = vmatprep.mubr.msk.f32.mxu0 %vm18734_vm7, %v18731_v15 }
 0xd92   :  { %17353 = vmatprep.subr.bf16.mxu0 %v18732_v23  ;;  %17358 = vmatpush3.bf16.msra.mxu1 %v18822_v29 }
 0xd93   :  { %17359 = vmatprep.subr.bf16.mxu1 %v18732_v23  ;;  %15748 = vmatprep.mubr.msk.f32.mxu1 %vm18734_vm7, %v18731_v15 }
 0xd95   :  { %17355 = vmatpush3.bf16.msra.mxu0 %v18860_v39 }
 0xd96   :  { %17362 = vmatprep.subr.bf16.mxu0 %v18732_v23  ;;  %17361 = vmatpush3.bf16.msra.mxu1 %v18837_v33 }
 0xd97   :  { %17368 = vmatprep.subr.bf16.mxu1 %v18732_v23 }
 0xd98   :  { %15738 = vmatmul.mubr.msk.f32.vlgmr.msra.gmra.mrb[40].mxu0 %vm60_vm1, %v3238_v40 }
 0xd99   :  { %17364 = vmatpush3.bf16.msra.mxu0 %v18873_v42  ;;  %15759 = vmatprep.mubr.msk.f32.mxu0 %vm18734_vm7, %v18731_v15 }
 0xd9a   :  { %17365 = vmatprep.subr.bf16.mxu0 %v18732_v23 }
 0xd9d   :  { %17367 = vmatpush3.bf16.msra.mxu0 %v18886_v45 }
 0xd9e   :  { %17374 = vmatprep.subr.bf16.mxu0 %v18732_v23 }
 0xe63   :  { %v3310_v43 = vpop.f32.mrb[38].mxu0  ;;  %v3388_v44 = vpop.f32.mrb[40].mxu1 }
 0xe64   :  { %v3314_v46 = vadd.f32 %v3310_v43, %v3240_v41  ;;  %v15717_v47 = vpop.f32.mrb[39].mxu0  ;;  %v15728_v48 = vpop.f32.mrb[41].mxu1  ;;  %v3392_v52 = vadd.f32 %v3388_v44, %v3321_v50 }
 0xe66   :  { %v14198_v49 = vmul.f32 -1.442695, %v3314_v46  ;;  %v14200_v57 = vmul.f32 -1.442695, %v3392_v52  ;;  %v3795_v52 = vld [vmem:[#allocation4 + $0xe] sm:$0x1] }
 0xe68   :  { %18288 = vpow2.f32 %v14198_v49 }
 0xe69   :  { %18290 = vpow2.f32 %v14200_v57 }
 0xe6b   :  { %v3466_v51 = vpop.f32.mrb[40].mxu0 }
 0xe6c   :  { %v15739_v55 = vpop.f32.mrb[41].mxu0  ;;  %v3467_v61 = vadd.f32 %v19168_v56, %v3466_v51 }
 0xe72   :  { %v18289_v58 = vpop.eup %18288 }
 0xe73   :  { %v3318_v59 = vadd.f32 1.0, %v18289_v58  ;;  %v18291_v60 = vpop.eup %18290 }
 0xe74   :  { %v3396_v1 = vadd.f32 1.0, %v18291_v60 }
 0xe75   :  { %18292 = vrcp.f32 %v3318_v59 }
 0xe7f   :  { %v18293_v62 = vpop.eup %18292 }
 0xe80   :  { %v3470_v63 = vmul.f32 %v18293_v62, %v3467_v61 }
 0xe82   :  { %v3471_v2 = vadd.f32 %v3470_v63, %v3399_v0  ;;  %v3873_v0 = vld [vmem:[#allocation5 + $0xe] sm:$0x1] }
 0xe84   :  { %18294 = vtanh.f32 %v3471_v2 }
 0xe85   :  { %18296 = vrcp.f32 %v3396_v1 }
 0xe8e   :  { %v18295_v5 = vpop.eup %18294 }
 0xe8f   :  { %v3473_v6 = vsub.f32 %v3238_v40, %v18295_v5  ;;  %v18297_v8 = vpop.eup %18296 }
 0xe91   :  { %v3474_v9 = vmul.f32 %v18297_v8, %v3473_v6 }
 0xe93   :  { %v3475_v10 = vadd.f32 %v18295_v5, %v3474_v9 }
 0xe95   :  { %3476 = vst.msk [vmem:[#allocation2 + $0xc] sm:$0x1] %vm631_vm8, %v3475_v10  ;;  %15749 = vmatmul.mubr.msk.f32.vlgmr.msra.gmra.mrb[42].mxu1 %vm60_vm1, %v3475_v10  ;;  %15760 = vmatmul.mubr.msk.f32.vlgmr.msra.gmra.mrb[42].mxu0 %vm60_vm1, %v3475_v10 }
 0xe96   :  { %17370 = vmatpush3.bf16.msra.mxu1 %v18849_v36  ;;  %15770 = vmatprep.mubr.msk.f32.mxu1 %vm18734_vm7, %v18731_v15 }
 0xe97   :  { %17371 = vmatprep.subr.bf16.mxu1 %v18732_v23  ;;  %17376 = vmatpush3.bf16.msra.mxu0 %v18822_v29 }
 0xe98   :  { %17377 = vmatprep.subr.bf16.mxu0 %v18732_v23  ;;  %15781 = vmatprep.mubr.msk.f32.mxu0 %vm18734_vm7, %v18731_v15 }
 0xe9a   :  { %17373 = vmatpush3.bf16.msra.mxu1 %v18860_v39 }
 0xe9b   :  { %17380 = vmatprep.subr.bf16.mxu1 %v18732_v23  ;;  %17379 = vmatpush3.bf16.msra.mxu0 %v18837_v33 }
 0xe9c   :  { %17386 = vmatprep.subr.bf16.mxu0 %v18732_v23 }
 0xe9d   :  { %15771 = vmatmul.mubr.msk.f32.vlgmr.msra.gmra.mrb[44].mxu1 %vm60_vm1, %v3475_v10 }
 0xe9e   :  { %17382 = vmatpush3.bf16.msra.mxu1 %v18873_v42  ;;  %15792 = vmatprep.mubr.msk.f32.mxu1 %vm18734_vm7, %v18731_v15 }
 0xe9f   :  { %17383 = vmatprep.subr.bf16.mxu1 %v18732_v23 }
 0xea2   :  { %17385 = vmatpush3.bf16.msra.mxu1 %v18886_v45 }
 0xea3   :  { %17392 = vmatprep.subr.bf16.mxu1 %v18732_v23 }
 0xf68   :  { %v3547_v13 = vpop.f32.mrb[42].mxu1  ;;  %v3625_v14 = vpop.f32.mrb[42].mxu0 }
 0xf69   :  { %v3551_v16 = vadd.f32 %v3547_v13, %v3477_v11  ;;  %v15750_v17 = vpop.f32.mrb[43].mxu1  ;;  %v15761_v20 = vpop.f32.mrb[43].mxu0  ;;  %v3629_v25 = vadd.f32 %v3625_v14, %v3558_v22  ;;  %v4188_v11 = vld [vmem:[#allocation2] sm:$0xff]  ;;  %v245_v13 = vld [vmem:[%s20536_s1 + $0x8] sm:$0xff]  ;;  %v246_v14 = vld [vmem:[%s20536_s1 + $0x10] sm:$0xff] }
 0xf6a   :  { %v3951_v20 = vld [vmem:[#allocation3 + $0xf] sm:$0x1] }
 0xf6b   :  { %v14203_v21 = vmul.f32 -1.442695, %v3551_v16  ;;  %v14205_v27 = vmul.f32 -1.442695, %v3629_v25  ;;  %v19281_v16 = vpack.c.bf16 %v246_v14, %v245_v13  ;;  %v4302_v13 = vld [vmem:[%s20536_s1 + $0xf0] sm:$0xff]  ;;  %v4303_v14 = vld [vmem:[%s20536_s1 + $0xf8] sm:$0xff] }
 0xf6d   :  { %18298 = vpow2.f32 %v14203_v21 }
 0xf6e   :  { %18300 = vpow2.f32 %v14205_v27 }
 0xf70   :  { %v3703_v24 = vpop.f32.mrb[44].mxu1 }
 0xf71   :  { %v15772_v26 = vpop.f32.mrb[45].mxu1  ;;  %v3704_v32 = vadd.f32 %v19168_v56, %v3703_v24 }
 0xf77   :  { %v18299_v28 = vpop.eup %18298 }
 0xf78   :  { %v3555_v30 = vadd.f32 1.0, %v18299_v28  ;;  %v18301_v31 = vpop.eup %18300  ;;  %v4032_v28 = vld [vmem:[#allocation4 + $0xf] sm:$0x1] }
 0xf79   :  { %v3633_v37 = vadd.f32 1.0, %v18301_v31 }
 0xf7a   :  { %18302 = vrcp.f32 %v3555_v30 }
 0xf84   :  { %v18303_v34 = vpop.eup %18302 }
 0xf85   :  { %v3707_v35 = vmul.f32 %v18303_v34, %v3704_v32 }
 0xf87   :  { %v3708_v38 = vadd.f32 %v3707_v35, %v3636_v19 }
 0xf89   :  { %18304 = vtanh.f32 %v3708_v38 }
 0xf8a   :  { %18306 = vrcp.f32 %v3633_v37 }
 0xf93   :  { %v18305_v40 = vpop.eup %18304 }
 0xf94   :  { %v3710_v41 = vsub.f32 %v3475_v10, %v18305_v40  ;;  %v18307_v43 = vpop.eup %18306 }
 0xf96   :  { %v3711_v44 = vmul.f32 %v18307_v43, %v3710_v41  ;;  %v4110_v43 = vld [vmem:[#allocation5 + $0xf] sm:$0x1] }
 0xf98   :  { %v3712_v46 = vadd.f32 %v18305_v40, %v3711_v44 }
 0xf9a   :  { %3713 = vst.msk [vmem:[#allocation2 + $0xd] sm:$0x1] %vm631_vm8, %v3712_v46  ;;  %15782 = vmatmul.mubr.msk.f32.vlgmr.msra.gmra.mrb[44].mxu0 %vm60_vm1, %v3712_v46  ;;  %15793 = vmatmul.mubr.msk.f32.vlgmr.msra.gmra.mrb[46].mxu1 %vm60_vm1, %v3712_v46 }
 0xf9b   :  { %17388 = vmatpush3.bf16.msra.mxu0 %v18849_v36  ;;  %15803 = vmatprep.mubr.msk.f32.mxu0 %vm18734_vm7, %v18731_v15 }
 0xf9c   :  { %17389 = vmatprep.subr.bf16.mxu0 %v18732_v23  ;;  %17394 = vmatpush3.bf16.msra.mxu1 %v18822_v29  ;;  %v3714_v29 = vld [vmem:[#allocation3 + $0xe] sm:$0x1] }
 0xf9d   :  { %17395 = vmatprep.subr.bf16.mxu1 %v18732_v23  ;;  %15814 = vmatprep.mubr.msk.f32.mxu1 %vm18734_vm7, %v18731_v15 }
 0xf9f   :  { %17391 = vmatpush3.bf16.msra.mxu0 %v18860_v39 }
 0xfa0   :  { %17398 = vmatprep.subr.bf16.mxu0 %v18732_v23  ;;  %17397 = vmatpush3.bf16.msra.mxu1 %v18837_v33 }
 0xfa1   :  { %17404 = vmatprep.subr.bf16.mxu1 %v18732_v23 }
 0xfa2   :  { %15804 = vmatmul.mubr.msk.f32.vlgmr.msra.gmra.mrb[46].mxu0 %vm60_vm1, %v3712_v46 }
 0xfa3   :  { %17400 = vmatpush3.bf16.msra.mxu0 %v18873_v42  ;;  %15825 = vmatprep.mubr.msk.f32.mxu0 %vm18734_vm7, %v18731_v15 }
 0xfa4   :  { %17401 = vmatprep.subr.bf16.mxu0 %v18732_v23 }
 0xfa7   :  { %17403 = vmatpush3.bf16.msra.mxu0 %v18886_v45 }
 0xfa8   :  { %17411 = vmatprep.subr.bf16.mxu0 %v19281_v16 }
0x106d   :  { %v3784_v47 = vpop.f32.mrb[44].mxu0  ;;  %v3862_v48 = vpop.f32.mrb[46].mxu1 }
0x106e   :  { %v3788_v49 = vadd.f32 %v3784_v47, %v3714_v29  ;;  %v15783_v50 = vpop.f32.mrb[45].mxu0  ;;  %v15794_v51 = vpop.f32.mrb[47].mxu1  ;;  %v3866_v57 = vadd.f32 %v3862_v48, %v3795_v52 }
0x1070   :  { %v14208_v33 = vmul.f32 -1.442695, %v3788_v49  ;;  %v14210_v42 = vmul.f32 -1.442695, %v3866_v57 }
0x1072   :  { %18308 = vpow2.f32 %v14208_v33 }
0x1073   :  { %18310 = vpow2.f32 %v14210_v42 }
0x1075   :  { %v3940_v55 = vpop.f32.mrb[46].mxu0 }
0x1076   :  { %v15805_v58 = vpop.f32.mrb[47].mxu0  ;;  %v3941_v45 = vadd.f32 %v19168_v56, %v3940_v55 }
0x107c   :  { %v18309_v59 = vpop.eup %18308 }
0x107d   :  { %v3792_v60 = vadd.f32 1.0, %v18309_v59  ;;  %v18311_v61 = vpop.eup %18310 }
0x107e   :  { %v3870_v1 = vadd.f32 1.0, %v18311_v61 }
0x107f   :  { %18312 = vrcp.f32 %v3792_v60 }
0x1089   :  { %v18313_v62 = vpop.eup %18312 }
0x108a   :  { %v3944_v63 = vmul.f32 %v18313_v62, %v3941_v45  ;;  %v4318_v62 = vld [vmem:[%s20536_s1 + $0x48] sm:$0xff] }
0x108c   :  { %v3945_v2 = vadd.f32 %v3944_v63, %v3873_v0  ;;  %v4319_v63 = vld [vmem:[%s20536_s1 + $0x50] sm:$0xff]  ;;  %v4320_v0 = vld [vmem:[%s20536_s1 + $0x58] sm:$0xff] }
0x108e   :  { %18314 = vtanh.f32 %v3945_v2  ;;  %v4321_v2 = vld [vmem:[%s20536_s1 + $0x60] sm:$0xff] }
0x108f   :  { %18316 = vrcp.f32 %v3870_v1  ;;  %v17418_v1 = vpack.c.bf16 %v4319_v63, %v4318_v62 }
0x1098   :  { %v18315_v5 = vpop.eup %18314 }
0x1099   :  { %v3947_v6 = vsub.f32 %v3712_v46, %v18315_v5  ;;  %v18317_v8 = vpop.eup %18316 }
0x109b   :  { %v3948_v9 = vmul.f32 %v18317_v8, %v3947_v6 }
0x109d   :  { %v3949_v10 = vadd.f32 %v18315_v5, %v3948_v9  ;;  %v17422_v5 = vpack.c.bf16 %v4321_v2, %v4320_v0  ;;  %v19428_v2 = vld [vmem:[%s20537_s2 + $0xa] sm:$0x1] }
0x109f   :  { %3950 = vst.msk [vmem:[#allocation2 + $0xe] sm:$0x1] %vm631_vm8, %v3949_v10  ;;  %15815 = vmatmul.mubr.msk.f32.vlgmr.msra.gmra.mrb[48].mxu1 %vm60_vm1, %v3949_v10  ;;  %15826 = vmatmul.mubr.msk.f32.vlgmr.msra.gmra.mrb[48].mxu0 %vm60_vm1, %v3949_v10 }
0x10a0   :  { %17406 = vmatpush3.bf16.msra.mxu1 %v18849_v36  ;;  %15847 = vmatprep.mubr.msk.f32.mxu0 %vm60_vm1, %v4188_v11  ;;  %v247_v36 = vld [vmem:[%s20536_s1 + $0x18] sm:$0xff]  ;;  %v4301_v11 = vld [vmem:[%s20536_s1 + $0xe8] sm:$0xff] }
0x10a1   :  { %17407 = vmatprep.subr.bf16.mxu1 %v18732_v23  ;;  %15836 = vmatprep.mubr.msk.f32.mxu1 %vm18734_vm7, %v18731_v15 }
0x10a2   :  { %17413 = vmatpush3.bf16.msra.mxu0 %v19281_v16 }
0x10a4   :  { %17409 = vmatpush3.bf16.msra.mxu1 %v18860_v39  ;;  %v248_v39 = vld [vmem:[%s20536_s1 + $0x20] sm:$0xff] }
0x10a5   :  { %v19286_v17 = vpack.c.bf16 %v248_v39, %v247_v36  ;;  %17419 = vmatprep.subr.bf16.mxu1 %v17418_v1  ;;  %v19332_v36 = vpack.c.bf16 %v4302_v13, %v4301_v11  ;;  %v4304_v39 = vld [vmem:[%s20536_s1 + $0x100] sm:$0xff] }
0x10a7   :  { %15837 = vmatmul.mubr.msk.f32.vlgmr.msra.gmra.mrb[50].mxu1 %vm60_vm1, %v3949_v10  ;;  %17415 = vmatprep.subr.bf16.mxu0 %v19286_v17 }
0x10a8   :  { %17417 = vmatpush3.bf16.msra.mxu0 %v19286_v17  ;;  %17421 = vmatpush3.bf16.msra.mxu1 %v17418_v1 }
0x10a9   :  { %17426 = vmatprep.subr.bf16.mxu0 %v18732_v23  ;;  %17423 = vmatprep.subr.bf16.mxu1 %v17422_v5 }
0x10ac   :  { %17425 = vmatpush3.bf16.msra.mxu1 %v17422_v5 }
0x10ad   :  { %17432 = vmatprep.subr.bf16.mxu1 %v18732_v23 }
0x1172   :  { %v4021_v21 = vpop.f32.mrb[48].mxu1  ;;  %v4099_v22 = vpop.f32.mrb[48].mxu0 }
0x1173   :  { %v4025_v24 = vadd.f32 %v4021_v21, %v3951_v20  ;;  %v15816_v25 = vpop.f32.mrb[49].mxu1  ;;  %v15827_v26 = vpop.f32.mrb[49].mxu0  ;;  %v4103_v31 = vadd.f32 %v4099_v22, %v4032_v28  ;;  %v19339_v20 = vpack.c.bf16 %v4304_v39, %v4303_v14  ;;  %v14226_v21 = vld [vmem:[%s20537_s2 + $0x9] ss:$0 sm:$0xff] }
0x1174   :  { %v4309_v22 = vld [vmem:[%s20536_s1 + $0x128] sm:$0xff]  ;;  %v4311_v26 = vld [vmem:[%s20536_s1 + $0x138] sm:$0xff] }
0x1175   :  { %v14213_v27 = vmul.f32 -1.442695, %v4025_v24  ;;  %v14215_v34 = vmul.f32 -1.442695, %v4103_v31  ;;  %v4310_v24 = vld [vmem:[%s20536_s1 + $0x130] sm:$0xff] }
0x1176   :  { %v19353_v25 = vpack.c.bf16 %v4310_v24, %v4309_v22  ;;  %v4306_v31 = vld [vmem:[%s20536_s1 + $0x110] sm:$0xff] }
0x1177   :  { %18318 = vpow2.f32 %v14213_v27  ;;  %v4312_v27 = vld [vmem:[%s20536_s1 + $0x140] sm:$0xff] }
0x1178   :  { %18320 = vpow2.f32 %v14215_v34  ;;  %v19364_v28 = vpack.c.bf16 %v4312_v27, %v4311_v26  ;;  %v4307_v34 = vld [vmem:[%s20536_s1 + $0x118] sm:$0xff] }
0x117a   :  { %v4177_v30 = vpop.f32.mrb[50].mxu1 }
0x117b   :  { %v15838_v32 = vpop.f32.mrb[51].mxu1  ;;  %v4178_v38 = vadd.f32 %v19168_v56, %v4177_v30  ;;  %v14217_v56 = vld [vmem:[%s20537_s2 + $0x1] ss:$0 sm:$0xff]  ;;  %v4305_v30 = vld [vmem:[%s20536_s1 + $0x108] sm:$0xff] }
0x117c   :  { %v19377_v32 = vpack.c.bf16 %v4306_v31, %v4305_v30 }
0x1181   :  { %v18319_v35 = vpop.eup %18318 }
0x1182   :  { %v4029_v19 = vadd.f32 1.0, %v18319_v35  ;;  %v18321_v37 = vpop.eup %18320  ;;  %v4308_v35 = vld [vmem:[%s20536_s1 + $0x120] sm:$0xff] }
0x1183   :  { %v4107_v44 = vadd.f32 1.0, %v18321_v37 }
0x1184   :  { %18322 = vrcp.f32 %v4029_v19  ;;  %v19390_v19 = vpack.c.bf16 %v4308_v35, %v4307_v34 }
0x118e   :  { %v18323_v40 = vpop.eup %18322 }
0x118f   :  { %v4181_v41 = vmul.f32 %v18323_v40, %v4178_v38 }
0x1191   :  { %v4182_v46 = vadd.f32 %v4181_v41, %v4110_v43 }
0x1193   :  { %18324 = vtanh.f32 %v4182_v46 }
0x1194   :  { %18326 = vrcp.f32 %v4107_v44 }
0x119d   :  { %v18325_v29 = vpop.eup %18324 }
0x119e   :  { %v4184_v47 = vsub.f32 %v3949_v10, %v18325_v29  ;;  %v18327_v48 = vpop.eup %18326 }
0x11a0   :  { %v4185_v49 = vmul.f32 %v18327_v48, %v4184_v47 }
0x11a2   :  { %v4186_v50 = vadd.f32 %v18325_v29, %v4185_v49  ;;  %v14222_v49 = vld [vmem:[%s20537_s2 + $0x3] ss:$0 sm:$0xff] }
0x11a4   :  { %4187 = vst.msk [vmem:[#allocation2 + $0xf] sm:$0x1] %vm631_vm8, %v4186_v50  ;;  %v14225_v50 = vld [vmem:[%s20537_s2 + $0x8] ss:$0 sm:$0xff] }
0x11ab   :  { %v4189_v51 = vld [vmem:[#allocation2 + $0x8] sm:$0xff] }
0x11ac   :  { %15848 = vmatmul.mubr.msk.f32.vlgmr.msra.gmra.mrb[50].mxu0 %vm60_vm1, %v4189_v51 }
0x11ad   :  { %15869 = vmatprep.mubr.msk.f32.mxu0 %vm18734_vm7, %v18731_v15  ;;  %17428 = vmatpush3.bf16.msra.mxu0 %v19332_v36 }
0x11ae   :  { %17429 = vmatprep.subr.bf16.mxu0 %v18732_v23 }
0x11b1   :  { %17431 = vmatpush3.bf16.msra.mxu0 %v19339_v20 }
0x11b2   :  { %17438 = vmatprep.subr.bf16.mxu0 %v18732_v23 }
0x11b4   :  { %15870 = vmatmul.mubr.f32.vlgmr.msra.gmra.mrb[52].mxu0 %v18731_v15 }
0x11b5   :  { %17440 = vmatpush3.bf16.msra.mxu0 %v19353_v25  ;;  %15891 = vmatprep.mubr.msk.f32.mxu0 %vm18734_vm7, %v18731_v15 }
0x11b6   :  { %17441 = vmatprep.subr.bf16.mxu0 %v18732_v23 }
0x11b9   :  { %17443 = vmatpush3.bf16.msra.mxu0 %v19364_v28 }
0x11ba   :  { %17450 = vmatprep.subr.bf16.mxu0 %v18732_v23 }
0x11bc   :  { %15892 = vmatmul.mubr.f32.vlgmr.msra.gmra.mrb[54].mxu0 %v18731_v15 }
0x11bd   :  { %17452 = vmatpush3.bf16.msra.mxu0 %v19377_v32  ;;  %15913 = vmatprep.mubr.msk.f32.mxu0 %vm18734_vm7, %v18731_v15 }
0x11be   :  { %17453 = vmatprep.subr.bf16.mxu0 %v18732_v23 }
0x11c1   :  { %17455 = vmatpush3.bf16.msra.mxu0 %v19390_v19 }
0x11c2   :  { %17462 = vmatprep.subr.bf16.mxu0 %v18732_v23 }
0x127f   :  { %v15849_v33 = vpop.f32.mrb[50].mxu0 }
0x1280   :  { %v19301_v52 = vadd.f32 %v15849_v33, %v14217_v56  ;;  %v4266_v55 = vpop.f32.mrb[51].mxu0 }
0x1281   :  { %v19303_v57 = vadd.f32 %v14217_v56, %v4266_v55 }
0x1282   :  { %v14221_v58 = vmul.f32 -1.442695, %v19301_v52 }
0x1283   :  { %v14220_v42 = vmul.f32 -1.442695, %v19303_v57 }
0x1284   :  { %18328 = vpow2.f32 %v14221_v58 }
0x1285   :  { %18330 = vpow2.f32 %v14220_v42 }
0x1287   :  { %v4513_v46 = vpop.f32.mrb[52].mxu0 }
0x1288   :  { %v15871_v29 = vpop.f32.mrb[53].mxu0 }
0x128e   :  { %v18329_v59 = vpop.eup %18328 }
0x128f   :  { %v18331_v60 = vpop.eup %18330  ;;  %v4282_v61 = vadd.f32 1.0, %v18329_v59  ;;  %v4669_v47 = vpop.f32.mrb[54].mxu0 }
0x1290   :  { %v4281_v45 = vadd.f32 1.0, %v18331_v60  ;;  %v15893_v48 = vpop.f32.mrb[55].mxu0  ;;  %v4670_v5 = vadd.f32 %v4669_v47, %v19428_v2 }
0x1291   :  { %18332 = vrcp.f32 %v4282_v61 }
0x1292   :  { %18334 = vrcp.f32 %v4281_v45 }
0x129b   :  { %v18333_v6 = vpop.eup %18332 }
0x129c   :  { %v18335_v8 = vpop.eup %18334  ;;  %v4288_v9 = vmul.f32 %v18333_v6, %v19301_v52 }
0x129d   :  { %v4287_v10 = vmul.f32 %v18335_v8, %v19303_v57 }
0x129e   :  { %4293 = vrot.lane.b32.xlu0 %v4288_v9, %s18736_s12 }
0x129f   :  { %4291 = vrot.lane.b32.xlu1 %v4287_v10, %s18736_s12 }
0x12a3   :  { %4421 = vrot.lane.b32.xlu1 %v14226_v21, %s18733_s15 }
0x1310   :  { %v4294_v37 = vpop.permute.xlu0 %4293 }
0x1311   :  { %v4298_v38 = vmul.f32 %v4294_v37, %v19301_v52  ;;  %v4292_v40 = vpop.permute.xlu1 %4291 }
0x1312   :  { %v4297_v41 = vmul.f32 %v4292_v40, %v19303_v57 }
0x1313   :  { %4300 = vst.msk [vmem:[#allocation2 + $0x8] sm:$0xff] %vm60_vm1, %v4298_v38 }
0x1314   :  { %4299 = vst.msk [vmem:[#allocation2] sm:$0xff] %vm60_vm1, %v4297_v41 }
0x1315   :  { %v4422_v52 = vpop.permute.xlu1 %4421 }
0x131a   :  { %v4317_v44 = vld [vmem:[#allocation2 + $0x8] sm:$0xff] }
0x131b   :  { %v4316_v43 = vld [vmem:[#allocation2] sm:$0xff] }
0x131c   :  { %15858 = vmatprep.mubr.msk.f32.mxu1 %vm60_vm1, %v4316_v43 }
0x131d   :  { %15859 = vmatmul.mubr.msk.f32.vlgmr.msra.gmra.mrb[52].mxu1 %vm60_vm1, %v4317_v44 }
0x131e   :  { %17434 = vmatpush3.bf16.msra.mxu1 %v19377_v32  ;;  %15880 = vmatprep.mubr.msk.f32.mxu1 %vm18734_vm7, %v18731_v15 }
0x131f   :  { %17435 = vmatprep.subr.bf16.mxu1 %v18732_v23 }
0x1322   :  { %17437 = vmatpush3.bf16.msra.mxu1 %v19390_v19 }
0x1323   :  { %17444 = vmatprep.subr.bf16.mxu1 %v18732_v23 }
0x1325   :  { %15881 = vmatmul.mubr.f32.vlgmr.msra.gmra.mrb[54].mxu1 %v18731_v15 }
0x1326   :  { %17446 = vmatpush3.bf16.msra.mxu1 %v19332_v36  ;;  %15902 = vmatprep.mubr.msk.f32.mxu1 %vm18734_vm7, %v18731_v15 }
0x1327   :  { %17447 = vmatprep.subr.bf16.mxu1 %v18732_v23 }
0x132a   :  { %17449 = vmatpush3.bf16.msra.mxu1 %v19339_v20 }
0x132b   :  { %17456 = vmatprep.subr.bf16.mxu1 %v18732_v23 }
0x13f0   :  { %v15860_v51 = vpop.f32.mrb[52].mxu1 }
0x13f1   :  { %v4405_v56 = vadd.f32 %v15860_v51, %v14222_v49  ;;  %v4399_v33 = vpop.f32.mrb[53].mxu1 }
0x13f2   :  { %v4400_v55 = vadd.f32 %v14222_v49, %v4399_v33 }
0x13f3   :  { %v4413_v57 = vadd.f32 %v14225_v50, %v4405_v56  ;;  %v4425_v59 = vadd.f32 %v4422_v52, %v4405_v56 }
0x13f4   :  { %v4412_v58 = vadd.f32 %v14225_v50, %v4400_v55  ;;  %v4424_v42 = vadd.f32 %v4422_v52, %v4400_v55  ;;  %4438 = vrot.lane.b32.xlu1 %v4400_v55, %s18735_s11 }
0x13f5   :  { %4415 = vst.msk [vmem:[#allocation3 + $0x8] sm:$0xff] %vm60_vm1, %v4413_v57 }
0x13f6   :  { %4414 = vst.msk [vmem:[#allocation3] sm:$0xff] %vm60_vm1, %v4412_v58  ;;  %4428 = vrot.lane.b32.xlu0 %v4424_v42, %s18736_s12 }
0x13f8   :  { %4440 = vrot.lane.b32.xlu1 %v4405_v56, %s18735_s11  ;;  %v4591_v60 = vpop.f32.mrb[54].mxu1 }
0x13f9   :  { %v15882_v61 = vpop.f32.mrb[55].mxu1 }
0x13fa   :  { %4430 = vrot.lane.b32.xlu0 %v4425_v59, %s18736_s12 }
0x13fd   :  { %v4446_v45 = vld [vmem:[#allocation3] sm:$0x1]  ;;  %v4680_v38 = vld [vmem:[#allocation3 + $0x1] sm:$0x1] }
0x13fe   :  { %v4517_v62 = vadd.f32 %v4513_v46, %v4446_v45 }
0x1400   :  { %v14227_v63 = vmul.f32 -1.442695, %v4517_v62 }
0x1402   :  { %18336 = vpow2.f32 %v14227_v63 }
0x140c   :  { %v18337_v0 = vpop.eup %18336 }
0x140d   :  { %v4521_v1 = vadd.f32 1.0, %v18337_v0 }
0x140f   :  { %18338 = vrcp.f32 %v4521_v1  ;;  %v4917_v1 = vld [vmem:[#allocation3 + $0x2] sm:$0x1] }
0x1419   :  { %v18339_v6 = vpop.eup %18338 }
0x141a   :  { %v4673_v8 = vmul.f32 %v18339_v6, %v4670_v5 }
0x1466   :  { %v4439_v9 = vpop.permute.xlu1 %4438 }
0x1467   :  { %4444 = vst.msk [vmem:[#allocation5] sm:$0xff] %vm60_vm1, %v4439_v9 }
0x1468   :  { %v4429_v10 = vpop.permute.xlu0 %4428 }
0x1469   :  { %4434 = vst.msk [vmem:[#allocation4] sm:$0xff] %vm60_vm1, %v4429_v10 }
0x146a   :  { %v4441_v11 = vpop.permute.xlu1 %4440 }
0x146b   :  { %4445 = vst.msk [vmem:[#allocation5 + $0x8] sm:$0xff] %vm60_vm1, %v4441_v11 }
0x146c   :  { %v4431_v13 = vpop.permute.xlu0 %4430 }
0x146d   :  { %4435 = vst.msk [vmem:[#allocation4 + $0x8] sm:$0xff] %vm60_vm1, %v4431_v13 }
0x146e   :  { %v4602_v22 = vld [vmem:[#allocation5] sm:$0x1]  ;;  %v4839_v42 = vld [vmem:[#allocation5 + $0x1] sm:$0x1] }
0x146f   :  { %v4674_v24 = vadd.f32 %v4673_v8, %v4602_v22 }
0x1470   :  { %v4524_v14 = vld [vmem:[#allocation4] sm:$0x1]  ;;  %v4761_v47 = vld [vmem:[#allocation4 + $0x1] sm:$0x1]  ;;  %v4998_v13 = vld [vmem:[#allocation4 + $0x2] sm:$0x1] }
0x1471   :  { %v4595_v39 = vadd.f32 %v4591_v60, %v4524_v14 }
0x1473   :  { %v14228_v21 = vmul.f32 -1.442695, %v4595_v39 }
0x1475   :  { %18340 = vpow2.f32 %v14228_v21 }
0x1476   :  { %18342 = vtanh.f32 %v4674_v24 }
0x147f   :  { %v18341_v26 = vpop.eup %18340 }
0x1480   :  { %v4599_v27 = vadd.f32 1.0, %v18341_v26  ;;  %v18343_v30 = vpop.eup %18342 }
0x1481   :  { %v4676_v31 = vsub.f32 0.0, %v18343_v30 }
0x1482   :  { %18344 = vrcp.f32 %v4599_v27 }
0x148c   :  { %v18345_v34 = vpop.eup %18344 }
0x148d   :  { %v4677_v35 = vmul.f32 %v18345_v34, %v4676_v31 }
0x148f   :  { %v4678_v37 = vadd.f32 %v18343_v30, %v4677_v35  ;;  %v5076_v35 = vld [vmem:[#allocation5 + $0x2] sm:$0x1] }
0x1491   :  { %4679 = vst.msk [vmem:[#allocation2] sm:$0x1] %vm631_vm8, %v4678_v37  ;;  %15903 = vmatmul.mubr.msk.f32.vlgmr.msra.gmra.mrb[56].mxu1 %vm60_vm1, %v4678_v37  ;;  %15914 = vmatmul.mubr.msk.f32.vlgmr.msra.gmra.mrb[56].mxu0 %vm60_vm1, %v4678_v37 }
0x1492   :  { %17458 = vmatpush3.bf16.msra.mxu1 %v19353_v25  ;;  %15924 = vmatprep.mubr.msk.f32.mxu1 %vm18734_vm7, %v18731_v15 }
0x1493   :  { %17459 = vmatprep.subr.bf16.mxu1 %v18732_v23  ;;  %17464 = vmatpush3.bf16.msra.mxu0 %v19332_v36 }
0x1494   :  { %17465 = vmatprep.subr.bf16.mxu0 %v18732_v23  ;;  %15935 = vmatprep.mubr.msk.f32.mxu0 %vm18734_vm7, %v18731_v15 }
0x1496   :  { %17461 = vmatpush3.bf16.msra.mxu1 %v19364_v28 }
0x1497   :  { %17468 = vmatprep.subr.bf16.mxu1 %v18732_v23  ;;  %17467 = vmatpush3.bf16.msra.mxu0 %v19339_v20 }
0x1498   :  { %17474 = vmatprep.subr.bf16.mxu0 %v18732_v23 }
0x1499   :  { %15925 = vmatmul.mubr.msk.f32.vlgmr.msra.gmra.mrb[58].mxu1 %vm60_vm1, %v4678_v37 }
0x149a   :  { %17470 = vmatpush3.bf16.msra.mxu1 %v19377_v32  ;;  %15946 = vmatprep.mubr.msk.f32.mxu1 %vm18734_vm7, %v18731_v15 }
0x149b   :  { %17471 = vmatprep.subr.bf16.mxu1 %v18732_v23 }
0x149e   :  { %17473 = vmatpush3.bf16.msra.mxu1 %v19390_v19 }
0x149f   :  { %17480 = vmatprep.subr.bf16.mxu1 %v18732_v23 }
0x1564   :  { %v4750_v40 = vpop.f32.mrb[56].mxu1  ;;  %v4828_v41 = vpop.f32.mrb[56].mxu0 }
0x1565   :  { %v4754_v43 = vadd.f32 %v4750_v40, %v4680_v38  ;;  %v15904_v44 = vpop.f32.mrb[57].mxu1  ;;  %v15915_v46 = vpop.f32.mrb[57].mxu0  ;;  %v4832_v49 = vadd.f32 %v4828_v41, %v4761_v47 }
0x1567   :  { %v14230_v29 = vmul.f32 -1.442695, %v4754_v43  ;;  %v14232_v51 = vmul.f32 -1.442695, %v4832_v49 }
0x1569   :  { %18346 = vpow2.f32 %v14230_v29  ;;  %v5154_v29 = vld [vmem:[#allocation3 + $0x3] sm:$0x1] }
0x156a   :  { %18348 = vpow2.f32 %v14232_v51 }
0x156c   :  { %v4906_v48 = vpop.f32.mrb[58].mxu1 }
0x156d   :  { %v15926_v50 = vpop.f32.mrb[59].mxu1  ;;  %v4907_v55 = vadd.f32 %v4906_v48, %v19428_v2 }
0x1573   :  { %v18347_v56 = vpop.eup %18346 }
0x1574   :  { %v4758_v33 = vadd.f32 1.0, %v18347_v56  ;;  %v18349_v52 = vpop.eup %18348 }
0x1575   :  { %v4836_v59 = vadd.f32 1.0, %v18349_v52 }
0x1576   :  { %18350 = vrcp.f32 %v4758_v33  ;;  %v5235_v33 = vld [vmem:[#allocation4 + $0x3] sm:$0x1] }
0x1580   :  { %v18351_v57 = vpop.eup %18350 }
0x1581   :  { %v4910_v58 = vmul.f32 %v18351_v57, %v4907_v55 }
0x1583   :  { %v4911_v60 = vadd.f32 %v4910_v58, %v4839_v42 }
0x1585   :  { %18352 = vtanh.f32 %v4911_v60 }
0x1586   :  { %18354 = vrcp.f32 %v4836_v59 }
0x158f   :  { %v18353_v61 = vpop.eup %18352 }
0x1590   :  { %v4913_v45 = vsub.f32 %v4678_v37, %v18353_v61  ;;  %v18355_v62 = vpop.eup %18354 }
0x1592   :  { %v4914_v63 = vmul.f32 %v18355_v62, %v4913_v45 }
0x1594   :  { %v4915_v0 = vadd.f32 %v18353_v61, %v4914_v63  ;;  %v5313_v63 = vld [vmem:[#allocation5 + $0x3] sm:$0x1] }
0x1596   :  { %4916 = vst.msk [vmem:[#allocation2 + $0x1] sm:$0x1] %vm631_vm8, %v4915_v0  ;;  %15936 = vmatmul.mubr.msk.f32.vlgmr.msra.gmra.mrb[58].mxu0 %vm60_vm1, %v4915_v0  ;;  %15947 = vmatmul.mubr.msk.f32.vlgmr.msra.gmra.mrb[60].mxu1 %vm60_vm1, %v4915_v0 }
0x1597   :  { %17476 = vmatpush3.bf16.msra.mxu0 %v19353_v25  ;;  %15957 = vmatprep.mubr.msk.f32.mxu0 %vm18734_vm7, %v18731_v15 }
0x1598   :  { %17477 = vmatprep.subr.bf16.mxu0 %v18732_v23  ;;  %17482 = vmatpush3.bf16.msra.mxu1 %v19332_v36 }
0x1599   :  { %17483 = vmatprep.subr.bf16.mxu1 %v18732_v23  ;;  %15968 = vmatprep.mubr.msk.f32.mxu1 %vm18734_vm7, %v18731_v15 }
0x159b   :  { %17479 = vmatpush3.bf16.msra.mxu0 %v19364_v28 }
0x159c   :  { %17486 = vmatprep.subr.bf16.mxu0 %v18732_v23  ;;  %17485 = vmatpush3.bf16.msra.mxu1 %v19339_v20 }
0x159d   :  { %17492 = vmatprep.subr.bf16.mxu1 %v18732_v23 }
0x159e   :  { %15958 = vmatmul.mubr.msk.f32.vlgmr.msra.gmra.mrb[60].mxu0 %vm60_vm1, %v4915_v0 }
0x159f   :  { %17488 = vmatpush3.bf16.msra.mxu0 %v19377_v32  ;;  %15979 = vmatprep.mubr.msk.f32.mxu0 %vm18734_vm7, %v18731_v15 }
0x15a0   :  { %17489 = vmatprep.subr.bf16.mxu0 %v18732_v23 }
0x15a3   :  { %17491 = vmatpush3.bf16.msra.mxu0 %v19390_v19 }
0x15a4   :  { %17498 = vmatprep.subr.bf16.mxu0 %v18732_v23 }
0x1669   :  { %v4987_v5 = vpop.f32.mrb[58].mxu0  ;;  %v5065_v6 = vpop.f32.mrb[60].mxu1 }
0x166a   :  { %v4991_v8 = vadd.f32 %v4987_v5, %v4917_v1  ;;  %v15937_v9 = vpop.f32.mrb[59].mxu0  ;;  %v15948_v10 = vpop.f32.mrb[61].mxu1  ;;  %v5069_v39 = vadd.f32 %v5065_v6, %v4998_v13 }
0x166c   :  { %v14235_v11 = vmul.f32 -1.442695, %v4991_v8  ;;  %v14237_v22 = vmul.f32 -1.442695, %v5069_v39 }
0x166e   :  { %18356 = vpow2.f32 %v14235_v11  ;;  %v5391_v11 = vld [vmem:[#allocation3 + $0x4] sm:$0x1] }
0x166f   :  { %18358 = vpow2.f32 %v14237_v22 }
0x1671   :  { %v5143_v14 = vpop.f32.mrb[60].mxu0 }
0x1672   :  { %v15959_v21 = vpop.f32.mrb[61].mxu0  ;;  %v5144_v30 = vadd.f32 %v5143_v14, %v19428_v2 }
0x1678   :  { %v18357_v24 = vpop.eup %18356 }
0x1679   :  { %v4995_v26 = vadd.f32 1.0, %v18357_v24  ;;  %v18359_v27 = vpop.eup %18358 }
0x167a   :  { %v5073_v37 = vadd.f32 1.0, %v18359_v27 }
0x167b   :  { %18360 = vrcp.f32 %v4995_v26  ;;  %v5472_v26 = vld [vmem:[#allocation4 + $0x4] sm:$0x1] }
0x1685   :  { %v18361_v31 = vpop.eup %18360 }
0x1686   :  { %v5147_v34 = vmul.f32 %v18361_v31, %v5144_v30 }
0x1688   :  { %v5148_v38 = vadd.f32 %v5147_v34, %v5076_v35 }
0x168a   :  { %18362 = vtanh.f32 %v5148_v38 }
0x168b   :  { %18364 = vrcp.f32 %v5073_v37 }
0x1694   :  { %v18363_v40 = vpop.eup %18362 }
0x1695   :  { %v5150_v41 = vsub.f32 %v4915_v0, %v18363_v40  ;;  %v18365_v43 = vpop.eup %18364 }
0x1697   :  { %v5151_v44 = vmul.f32 %v18365_v43, %v5150_v41 }
0x1699   :  { %v5152_v46 = vadd.f32 %v18363_v40, %v5151_v44  ;;  %v5550_v44 = vld [vmem:[#allocation5 + $0x4] sm:$0x1] }
0x169b   :  { %5153 = vst.msk [vmem:[#allocation2 + $0x2] sm:$0x1] %vm631_vm8, %v5152_v46  ;;  %15969 = vmatmul.mubr.msk.f32.vlgmr.msra.gmra.mrb[62].mxu1 %vm60_vm1, %v5152_v46  ;;  %15980 = vmatmul.mubr.msk.f32.vlgmr.msra.gmra.mrb[62].mxu0 %vm60_vm1, %v5152_v46 }
0x169c   :  { %17494 = vmatpush3.bf16.msra.mxu1 %v19353_v25  ;;  %15990 = vmatprep.mubr.msk.f32.mxu1 %vm18734_vm7, %v18731_v15 }
0x169d   :  { %17495 = vmatprep.subr.bf16.mxu1 %v18732_v23  ;;  %17500 = vmatpush3.bf16.msra.mxu0 %v19332_v36 }
0x169e   :  { %17501 = vmatprep.subr.bf16.mxu0 %v18732_v23  ;;  %16001 = vmatprep.mubr.msk.f32.mxu0 %vm18734_vm7, %v18731_v15 }
0x16a0   :  { %17497 = vmatpush3.bf16.msra.mxu1 %v19364_v28 }
0x16a1   :  { %17504 = vmatprep.subr.bf16.mxu1 %v18732_v23  ;;  %17503 = vmatpush3.bf16.msra.mxu0 %v19339_v20 }
0x16a2   :  { %17510 = vmatprep.subr.bf16.mxu0 %v18732_v23 }
0x16a3   :  { %15991 = vmatmul.mubr.msk.f32.vlgmr.msra.gmra.mrb[64].mxu1 %vm60_vm1, %v5152_v46 }
0x16a4   :  { %17506 = vmatpush3.bf16.msra.mxu1 %v19377_v32  ;;  %16012 = vmatprep.mubr.msk.f32.mxu1 %vm18734_vm7, %v18731_v15 }
0x16a5   :  { %17507 = vmatprep.subr.bf16.mxu1 %v18732_v23 }
0x16a8   :  { %17509 = vmatpush3.bf16.msra.mxu1 %v19390_v19 }
0x16a9   :  { %17516 = vmatprep.subr.bf16.mxu1 %v18732_v23 }
0x176e   :  { %v5224_v47 = vpop.f32.mrb[62].mxu1  ;;  %v5302_v48 = vpop.f32.mrb[62].mxu0 }
0x176f   :  { %v5228_v49 = vadd.f32 %v5224_v47, %v5154_v29  ;;  %v15970_v50 = vpop.f32.mrb[63].mxu1  ;;  %v15981_v51 = vpop.f32.mrb[63].mxu0  ;;  %v5306_v55 = vadd.f32 %v5302_v48, %v5235_v33 }
0x1771   :  { %v14240_v56 = vmul.f32 -1.442695, %v5228_v49  ;;  %v14242_v58 = vmul.f32 -1.442695, %v5306_v55 }
0x1773   :  { %18366 = vpow2.f32 %v14240_v56  ;;  %v5628_v56 = vld [vmem:[#allocation3 + $0x5] sm:$0x1] }
0x1774   :  { %18368 = vpow2.f32 %v14242_v58 }
0x1776   :  { %v5380_v52 = vpop.f32.mrb[64].mxu1 }
0x1777   :  { %v15992_v57 = vpop.f32.mrb[65].mxu1  ;;  %v5381_v61 = vadd.f32 %v5380_v52, %v19428_v2 }
0x177d   :  { %v18367_v42 = vpop.eup %18366 }
0x177e   :  { %v5232_v59 = vadd.f32 1.0, %v18367_v42  ;;  %v18369_v60 = vpop.eup %18368 }
0x177f   :  { %v5310_v0 = vadd.f32 1.0, %v18369_v60 }
0x1780   :  { %18370 = vrcp.f32 %v5232_v59  ;;  %v5709_v59 = vld [vmem:[#allocation4 + $0x5] sm:$0x1] }
0x178a   :  { %v18371_v45 = vpop.eup %18370 }
0x178b   :  { %v5384_v62 = vmul.f32 %v18371_v45, %v5381_v61 }
0x178d   :  { %v5385_v1 = vadd.f32 %v5384_v62, %v5313_v63 }
0x178f   :  { %18372 = vtanh.f32 %v5385_v1 }
0x1790   :  { %18374 = vrcp.f32 %v5310_v0 }
0x1799   :  { %v18373_v5 = vpop.eup %18372 }
0x179a   :  { %v5387_v6 = vsub.f32 %v5152_v46, %v18373_v5  ;;  %v18375_v8 = vpop.eup %18374 }
0x179c   :  { %v5388_v9 = vmul.f32 %v18375_v8, %v5387_v6 }
0x179e   :  { %v5389_v10 = vadd.f32 %v18373_v5, %v5388_v9  ;;  %v5787_v9 = vld [vmem:[#allocation5 + $0x5] sm:$0x1] }
0x17a0   :  { %5390 = vst.msk [vmem:[#allocation2 + $0x3] sm:$0x1] %vm631_vm8, %v5389_v10  ;;  %16002 = vmatmul.mubr.msk.f32.vlgmr.msra.gmra.mrb[64].mxu0 %vm60_vm1, %v5389_v10  ;;  %16013 = vmatmul.mubr.msk.f32.vlgmr.msra.gmra.mrb[66].mxu1 %vm60_vm1, %v5389_v10 }
0x17a1   :  { %17512 = vmatpush3.bf16.msra.mxu0 %v19353_v25  ;;  %16023 = vmatprep.mubr.msk.f32.mxu0 %vm18734_vm7, %v18731_v15 }
0x17a2   :  { %17513 = vmatprep.subr.bf16.mxu0 %v18732_v23  ;;  %17518 = vmatpush3.bf16.msra.mxu1 %v19332_v36 }
0x17a3   :  { %17519 = vmatprep.subr.bf16.mxu1 %v18732_v23  ;;  %16034 = vmatprep.mubr.msk.f32.mxu1 %vm18734_vm7, %v18731_v15 }
0x17a5   :  { %17515 = vmatpush3.bf16.msra.mxu0 %v19364_v28 }
0x17a6   :  { %17522 = vmatprep.subr.bf16.mxu0 %v18732_v23  ;;  %17521 = vmatpush3.bf16.msra.mxu1 %v19339_v20 }
0x17a7   :  { %17528 = vmatprep.subr.bf16.mxu1 %v18732_v23 }
0x17a8   :  { %16024 = vmatmul.mubr.msk.f32.vlgmr.msra.gmra.mrb[66].mxu0 %vm60_vm1, %v5389_v10 }
0x17a9   :  { %17524 = vmatpush3.bf16.msra.mxu0 %v19377_v32  ;;  %16045 = vmatprep.mubr.msk.f32.mxu0 %vm18734_vm7, %v18731_v15 }
0x17aa   :  { %17525 = vmatprep.subr.bf16.mxu0 %v18732_v23 }
0x17ad   :  { %17527 = vmatpush3.bf16.msra.mxu0 %v19390_v19 }
0x17ae   :  { %17534 = vmatprep.subr.bf16.mxu0 %v18732_v23 }
0x1873   :  { %v5461_v13 = vpop.f32.mrb[64].mxu0  ;;  %v5539_v14 = vpop.f32.mrb[66].mxu1 }
0x1874   :  { %v5465_v39 = vadd.f32 %v5461_v13, %v5391_v11  ;;  %v16003_v21 = vpop.f32.mrb[65].mxu0  ;;  %v16014_v22 = vpop.f32.mrb[67].mxu1  ;;  %v5543_v30 = vadd.f32 %v5539_v14, %v5472_v26 }
0x1876   :  { %v14245_v24 = vmul.f32 -1.442695, %v5465_v39  ;;  %v14247_v34 = vmul.f32 -1.442695, %v5543_v30 }
0x1878   :  { %18376 = vpow2.f32 %v14245_v24  ;;  %v5865_v24 = vld [vmem:[#allocation3 + $0x6] sm:$0x1] }
0x1879   :  { %18378 = vpow2.f32 %v14247_v34 }
0x187b   :  { %v5617_v27 = vpop.f32.mrb[66].mxu0 }
0x187c   :  { %v16025_v31 = vpop.f32.mrb[67].mxu0  ;;  %v5618_v40 = vadd.f32 %v5617_v27, %v19428_v2 }
0x1882   :  { %v18377_v35 = vpop.eup %18376 }
0x1883   :  { %v5469_v37 = vadd.f32 1.0, %v18377_v35  ;;  %v18379_v38 = vpop.eup %18378 }
0x1884   :  { %v5547_v46 = vadd.f32 1.0, %v18379_v38 }
0x1885   :  { %18380 = vrcp.f32 %v5469_v37  ;;  %v5946_v37 = vld [vmem:[#allocation4 + $0x6] sm:$0x1] }
0x188f   :  { %v18381_v41 = vpop.eup %18380 }
0x1890   :  { %v5621_v43 = vmul.f32 %v18381_v41, %v5618_v40 }
0x1892   :  { %v5622_v29 = vadd.f32 %v5621_v43, %v5550_v44 }
0x1894   :  { %18382 = vtanh.f32 %v5622_v29 }
0x1895   :  { %18384 = vrcp.f32 %v5547_v46 }
0x189e   :  { %v18383_v47 = vpop.eup %18382 }
0x189f   :  { %v5624_v48 = vsub.f32 %v5389_v10, %v18383_v47  ;;  %v18385_v49 = vpop.eup %18384 }
0x18a1   :  { %v5625_v50 = vmul.f32 %v18385_v49, %v5624_v48 }
0x18a3   :  { %v5626_v51 = vadd.f32 %v18383_v47, %v5625_v50  ;;  %v6024_v50 = vld [vmem:[#allocation5 + $0x6] sm:$0x1] }
0x18a5   :  { %5627 = vst.msk [vmem:[#allocation2 + $0x4] sm:$0x1] %vm631_vm8, %v5626_v51  ;;  %16035 = vmatmul.mubr.msk.f32.vlgmr.msra.gmra.mrb[68].mxu1 %vm60_vm1, %v5626_v51  ;;  %16046 = vmatmul.mubr.msk.f32.vlgmr.msra.gmra.mrb[68].mxu0 %vm60_vm1, %v5626_v51 }
0x18a6   :  { %17530 = vmatpush3.bf16.msra.mxu1 %v19353_v25  ;;  %16056 = vmatprep.mubr.msk.f32.mxu1 %vm18734_vm7, %v18731_v15 }
0x18a7   :  { %17531 = vmatprep.subr.bf16.mxu1 %v18732_v23  ;;  %17536 = vmatpush3.bf16.msra.mxu0 %v19332_v36 }
0x18a8   :  { %17537 = vmatprep.subr.bf16.mxu0 %v18732_v23  ;;  %16067 = vmatprep.mubr.msk.f32.mxu0 %vm18734_vm7, %v18731_v15 }
0x18aa   :  { %17533 = vmatpush3.bf16.msra.mxu1 %v19364_v28 }
0x18ab   :  { %17540 = vmatprep.subr.bf16.mxu1 %v18732_v23  ;;  %17539 = vmatpush3.bf16.msra.mxu0 %v19339_v20 }
0x18ac   :  { %17546 = vmatprep.subr.bf16.mxu0 %v18732_v23 }
0x18ad   :  { %16057 = vmatmul.mubr.msk.f32.vlgmr.msra.gmra.mrb[70].mxu1 %vm60_vm1, %v5626_v51 }
0x18ae   :  { %17542 = vmatpush3.bf16.msra.mxu1 %v19377_v32  ;;  %16078 = vmatprep.mubr.msk.f32.mxu1 %vm18734_vm7, %v18731_v15 }
0x18af   :  { %17543 = vmatprep.subr.bf16.mxu1 %v18732_v23 }
0x18b2   :  { %17545 = vmatpush3.bf16.msra.mxu1 %v19390_v19 }
0x18b3   :  { %17552 = vmatprep.subr.bf16.mxu1 %v18732_v23 }
0x1978   :  { %v5698_v33 = vpop.f32.mrb[68].mxu1  ;;  %v5776_v52 = vpop.f32.mrb[68].mxu0 }
0x1979   :  { %v5702_v55 = vadd.f32 %v5698_v33, %v5628_v56  ;;  %v16036_v57 = vpop.f32.mrb[69].mxu1  ;;  %v16047_v58 = vpop.f32.mrb[69].mxu0  ;;  %v5780_v61 = vadd.f32 %v5776_v52, %v5709_v59 }
0x197b   :  { %v14250_v42 = vmul.f32 -1.442695, %v5702_v55  ;;  %v14252_v62 = vmul.f32 -1.442695, %v5780_v61 }
0x197d   :  { %18386 = vpow2.f32 %v14250_v42  ;;  %v6102_v42 = vld [vmem:[#allocation3 + $0x7] sm:$0x1] }
0x197e   :  { %18388 = vpow2.f32 %v14252_v62 }
0x1980   :  { %v5854_v60 = vpop.f32.mrb[70].mxu1 }
0x1981   :  { %v16058_v45 = vpop.f32.mrb[71].mxu1  ;;  %v5855_v5 = vadd.f32 %v5854_v60, %v19428_v2 }
0x1987   :  { %v18387_v63 = vpop.eup %18386 }
0x1988   :  { %v5706_v0 = vadd.f32 1.0, %v18387_v63  ;;  %v18389_v1 = vpop.eup %18388 }
0x1989   :  { %v5784_v10 = vadd.f32 1.0, %v18389_v1 }
0x198a   :  { %18390 = vrcp.f32 %v5706_v0  ;;  %v6183_v0 = vld [vmem:[#allocation4 + $0x7] sm:$0x1] }
0x1994   :  { %v18391_v6 = vpop.eup %18390 }
0x1995   :  { %v5858_v8 = vmul.f32 %v18391_v6, %v5855_v5 }
0x1997   :  { %v5859_v11 = vadd.f32 %v5858_v8, %v5787_v9 }
0x1999   :  { %18392 = vtanh.f32 %v5859_v11 }
0x199a   :  { %18394 = vrcp.f32 %v5784_v10 }
0x19a3   :  { %v18393_v13 = vpop.eup %18392 }
0x19a4   :  { %v5861_v14 = vsub.f32 %v5626_v51, %v18393_v13  ;;  %v18395_v39 = vpop.eup %18394 }
0x19a6   :  { %v5862_v21 = vmul.f32 %v18395_v39, %v5861_v14 }
0x19a8   :  { %v5863_v22 = vadd.f32 %v18393_v13, %v5862_v21  ;;  %v6261_v21 = vld [vmem:[#allocation5 + $0x7] sm:$0x1] }
0x19aa   :  { %5864 = vst.msk [vmem:[#allocation2 + $0x5] sm:$0x1] %vm631_vm8, %v5863_v22  ;;  %16068 = vmatmul.mubr.msk.f32.vlgmr.msra.gmra.mrb[70].mxu0 %vm60_vm1, %v5863_v22  ;;  %16079 = vmatmul.mubr.msk.f32.vlgmr.msra.gmra.mrb[72].mxu1 %vm60_vm1, %v5863_v22 }
0x19ab   :  { %17548 = vmatpush3.bf16.msra.mxu0 %v19353_v25  ;;  %16089 = vmatprep.mubr.msk.f32.mxu0 %vm18734_vm7, %v18731_v15 }
0x19ac   :  { %17549 = vmatprep.subr.bf16.mxu0 %v18732_v23  ;;  %17554 = vmatpush3.bf16.msra.mxu1 %v19332_v36 }
0x19ad   :  { %17555 = vmatprep.subr.bf16.mxu1 %v18732_v23  ;;  %16100 = vmatprep.mubr.msk.f32.mxu1 %vm18734_vm7, %v18731_v15 }
0x19af   :  { %17551 = vmatpush3.bf16.msra.mxu0 %v19364_v28 }
0x19b0   :  { %17558 = vmatprep.subr.bf16.mxu0 %v18732_v23  ;;  %17557 = vmatpush3.bf16.msra.mxu1 %v19339_v20 }
0x19b1   :  { %17564 = vmatprep.subr.bf16.mxu1 %v18732_v23 }
0x19b2   :  { %16090 = vmatmul.mubr.msk.f32.vlgmr.msra.gmra.mrb[72].mxu0 %vm60_vm1, %v5863_v22 }
0x19b3   :  { %17560 = vmatpush3.bf16.msra.mxu0 %v19377_v32  ;;  %16111 = vmatprep.mubr.msk.f32.mxu0 %vm18734_vm7, %v18731_v15 }
0x19b4   :  { %17561 = vmatprep.subr.bf16.mxu0 %v18732_v23 }
0x19b7   :  { %17563 = vmatpush3.bf16.msra.mxu0 %v19390_v19 }
0x19b8   :  { %17570 = vmatprep.subr.bf16.mxu0 %v18732_v23 }
0x1a7d   :  { %v5935_v26 = vpop.f32.mrb[70].mxu0  ;;  %v6013_v27 = vpop.f32.mrb[72].mxu1 }
0x1a7e   :  { %v5939_v30 = vadd.f32 %v5935_v26, %v5865_v24  ;;  %v16069_v31 = vpop.f32.mrb[71].mxu0  ;;  %v16080_v34 = vpop.f32.mrb[73].mxu1  ;;  %v6017_v40 = vadd.f32 %v6013_v27, %v5946_v37 }
0x1a80   :  { %v14255_v35 = vmul.f32 -1.442695, %v5939_v30  ;;  %v14257_v43 = vmul.f32 -1.442695, %v6017_v40 }
0x1a82   :  { %18396 = vpow2.f32 %v14255_v35  ;;  %v6339_v35 = vld [vmem:[#allocation3 + $0x8] sm:$0x1] }
0x1a83   :  { %18398 = vpow2.f32 %v14257_v43 }
0x1a85   :  { %v6091_v38 = vpop.f32.mrb[72].mxu0 }
0x1a86   :  { %v16091_v41 = vpop.f32.mrb[73].mxu0  ;;  %v6092_v47 = vadd.f32 %v6091_v38, %v19428_v2 }
0x1a8c   :  { %v18397_v44 = vpop.eup %18396 }
0x1a8d   :  { %v5943_v46 = vadd.f32 1.0, %v18397_v44  ;;  %v18399_v29 = vpop.eup %18398 }
0x1a8e   :  { %v6021_v51 = vadd.f32 1.0, %v18399_v29 }
0x1a8f   :  { %18400 = vrcp.f32 %v5943_v46  ;;  %v6420_v46 = vld [vmem:[#allocation4 + $0x8] sm:$0x1] }
0x1a99   :  { %v18401_v48 = vpop.eup %18400 }
0x1a9a   :  { %v6095_v49 = vmul.f32 %v18401_v48, %v6092_v47 }
0x1a9c   :  { %v6096_v56 = vadd.f32 %v6095_v49, %v6024_v50 }
0x1a9e   :  { %18402 = vtanh.f32 %v6096_v56 }
0x1a9f   :  { %18404 = vrcp.f32 %v6021_v51 }
0x1aa8   :  { %v18403_v33 = vpop.eup %18402 }
0x1aa9   :  { %v6098_v52 = vsub.f32 %v5863_v22, %v18403_v33  ;;  %v18405_v55 = vpop.eup %18404 }
0x1aab   :  { %v6099_v57 = vmul.f32 %v18405_v55, %v6098_v52 }
0x1aad   :  { %v6100_v58 = vadd.f32 %v18403_v33, %v6099_v57  ;;  %v6498_v57 = vld [vmem:[#allocation5 + $0x8] sm:$0x1] }
0x1aaf   :  { %6101 = vst.msk [vmem:[#allocation2 + $0x6] sm:$0x1] %vm631_vm8, %v6100_v58  ;;  %16101 = vmatmul.mubr.msk.f32.vlgmr.msra.gmra.mrb[74].mxu1 %vm60_vm1, %v6100_v58  ;;  %16112 = vmatmul.mubr.msk.f32.vlgmr.msra.gmra.mrb[74].mxu0 %vm60_vm1, %v6100_v58 }
0x1ab0   :  { %17566 = vmatpush3.bf16.msra.mxu1 %v19353_v25  ;;  %16122 = vmatprep.mubr.msk.f32.mxu1 %vm18734_vm7, %v18731_v15 }
0x1ab1   :  { %17567 = vmatprep.subr.bf16.mxu1 %v18732_v23  ;;  %17572 = vmatpush3.bf16.msra.mxu0 %v19332_v36 }
0x1ab2   :  { %17573 = vmatprep.subr.bf16.mxu0 %v18732_v23  ;;  %16133 = vmatprep.mubr.msk.f32.mxu0 %vm18734_vm7, %v18731_v15 }
0x1ab4   :  { %17569 = vmatpush3.bf16.msra.mxu1 %v19364_v28 }
0x1ab5   :  { %17576 = vmatprep.subr.bf16.mxu1 %v18732_v23  ;;  %17575 = vmatpush3.bf16.msra.mxu0 %v19339_v20 }
0x1ab6   :  { %17582 = vmatprep.subr.bf16.mxu0 %v18732_v23 }
0x1ab7   :  { %16123 = vmatmul.mubr.msk.f32.vlgmr.msra.gmra.mrb[76].mxu1 %vm60_vm1, %v6100_v58 }
0x1ab8   :  { %17578 = vmatpush3.bf16.msra.mxu1 %v19377_v32  ;;  %16144 = vmatprep.mubr.msk.f32.mxu1 %vm18734_vm7, %v18731_v15 }
0x1ab9   :  { %17579 = vmatprep.subr.bf16.mxu1 %v18732_v23 }
0x1abc   :  { %17581 = vmatpush3.bf16.msra.mxu1 %v19390_v19 }
0x1abd   :  { %17588 = vmatprep.subr.bf16.mxu1 %v18732_v23 }
0x1b82   :  { %v6172_v59 = vpop.f32.mrb[74].mxu1  ;;  %v6250_v60 = vpop.f32.mrb[74].mxu0 }
0x1b83   :  { %v6176_v61 = vadd.f32 %v6172_v59, %v6102_v42  ;;  %v16102_v45 = vpop.f32.mrb[75].mxu1  ;;  %v16113_v62 = vpop.f32.mrb[75].mxu0  ;;  %v6254_v5 = vadd.f32 %v6250_v60, %v6183_v0 }
0x1b85   :  { %v14260_v63 = vmul.f32 -1.442695, %v6176_v61  ;;  %v14262_v8 = vmul.f32 -1.442695, %v6254_v5 }
0x1b87   :  { %18406 = vpow2.f32 %v14260_v63  ;;  %v6576_v63 = vld [vmem:[#allocation3 + $0x9] sm:$0x1] }
0x1b88   :  { %18408 = vpow2.f32 %v14262_v8 }
0x1b8a   :  { %v6328_v1 = vpop.f32.mrb[76].mxu1 }
0x1b8b   :  { %v16124_v6 = vpop.f32.mrb[77].mxu1  ;;  %v6329_v13 = vadd.f32 %v6328_v1, %v19428_v2 }
0x1b91   :  { %v18407_v9 = vpop.eup %18406 }
0x1b92   :  { %v6180_v10 = vadd.f32 1.0, %v18407_v9  ;;  %v18409_v11 = vpop.eup %18408 }
0x1b93   :  { %v6258_v22 = vadd.f32 1.0, %v18409_v11 }
0x1b94   :  { %18410 = vrcp.f32 %v6180_v10  ;;  %v6657_v10 = vld [vmem:[#allocation4 + $0x9] sm:$0x1] }
0x1b9e   :  { %v18411_v14 = vpop.eup %18410 }
0x1b9f   :  { %v6332_v39 = vmul.f32 %v18411_v14, %v6329_v13 }
0x1ba1   :  { %v6333_v24 = vadd.f32 %v6332_v39, %v6261_v21 }
0x1ba3   :  { %18412 = vtanh.f32 %v6333_v24 }
0x1ba4   :  { %18414 = vrcp.f32 %v6258_v22 }
0x1bad   :  { %v18413_v26 = vpop.eup %18412 }
0x1bae   :  { %v6335_v27 = vsub.f32 %v6100_v58, %v18413_v26  ;;  %v18415_v30 = vpop.eup %18414 }
0x1bb0   :  { %v6336_v31 = vmul.f32 %v18415_v30, %v6335_v27 }
0x1bb2   :  { %v6337_v34 = vadd.f32 %v18413_v26, %v6336_v31  ;;  %v6735_v31 = vld [vmem:[#allocation5 + $0x9] sm:$0x1] }
0x1bb4   :  { %6338 = vst.msk [vmem:[#allocation2 + $0x7] sm:$0x1] %vm631_vm8, %v6337_v34  ;;  %16134 = vmatmul.mubr.msk.f32.vlgmr.msra.gmra.mrb[76].mxu0 %vm60_vm1, %v6337_v34  ;;  %16145 = vmatmul.mubr.msk.f32.vlgmr.msra.gmra.mrb[78].mxu1 %vm60_vm1, %v6337_v34 }
0x1bb5   :  { %17584 = vmatpush3.bf16.msra.mxu0 %v19353_v25  ;;  %16155 = vmatprep.mubr.msk.f32.mxu0 %vm18734_vm7, %v18731_v15 }
0x1bb6   :  { %17585 = vmatprep.subr.bf16.mxu0 %v18732_v23  ;;  %17590 = vmatpush3.bf16.msra.mxu1 %v19332_v36 }
0x1bb7   :  { %17591 = vmatprep.subr.bf16.mxu1 %v18732_v23  ;;  %16166 = vmatprep.mubr.msk.f32.mxu1 %vm18734_vm7, %v18731_v15 }
0x1bb9   :  { %17587 = vmatpush3.bf16.msra.mxu0 %v19364_v28 }
0x1bba   :  { %17594 = vmatprep.subr.bf16.mxu0 %v18732_v23  ;;  %17593 = vmatpush3.bf16.msra.mxu1 %v19339_v20 }
0x1bbb   :  { %17600 = vmatprep.subr.bf16.mxu1 %v18732_v23 }
0x1bbc   :  { %16156 = vmatmul.mubr.msk.f32.vlgmr.msra.gmra.mrb[78].mxu0 %vm60_vm1, %v6337_v34 }
0x1bbd   :  { %17596 = vmatpush3.bf16.msra.mxu0 %v19377_v32  ;;  %16177 = vmatprep.mubr.msk.f32.mxu0 %vm18734_vm7, %v18731_v15 }
0x1bbe   :  { %17597 = vmatprep.subr.bf16.mxu0 %v18732_v23 }
0x1bc1   :  { %17599 = vmatpush3.bf16.msra.mxu0 %v19390_v19 }
0x1bc2   :  { %17606 = vmatprep.subr.bf16.mxu0 %v18732_v23 }
0x1c87   :  { %v6409_v37 = vpop.f32.mrb[76].mxu0  ;;  %v6487_v38 = vpop.f32.mrb[78].mxu1 }
0x1c88   :  { %v6413_v40 = vadd.f32 %v6409_v37, %v6339_v35  ;;  %v16135_v41 = vpop.f32.mrb[77].mxu0  ;;  %v16146_v43 = vpop.f32.mrb[79].mxu1  ;;  %v6491_v47 = vadd.f32 %v6487_v38, %v6420_v46 }
0x1c8a   :  { %v14265_v44 = vmul.f32 -1.442695, %v6413_v40  ;;  %v14267_v49 = vmul.f32 -1.442695, %v6491_v47 }
0x1c8c   :  { %18416 = vpow2.f32 %v14265_v44 }
0x1c8d   :  { %18418 = vpow2.f32 %v14267_v49 }
0x1c8f   :  { %v6565_v29 = vpop.f32.mrb[78].mxu0 }
0x1c90   :  { %v16157_v48 = vpop.f32.mrb[79].mxu0  ;;  %v6566_v33 = vadd.f32 %v6565_v29, %v19428_v2 }
0x1c96   :  { %v18417_v50 = vpop.eup %18416 }
0x1c97   :  { %v6417_v51 = vadd.f32 1.0, %v18417_v50  ;;  %v18419_v56 = vpop.eup %18418  ;;  %v6894_v50 = vld [vmem:[#allocation4 + $0xa] sm:$0x1] }
0x1c98   :  { %v6495_v58 = vadd.f32 1.0, %v18419_v56 }
0x1c99   :  { %18420 = vrcp.f32 %v6417_v51 }
0x1ca3   :  { %v18421_v52 = vpop.eup %18420 }
0x1ca4   :  { %v6569_v55 = vmul.f32 %v18421_v52, %v6566_v33 }
0x1ca6   :  { %v6570_v42 = vadd.f32 %v6569_v55, %v6498_v57 }
0x1ca8   :  { %18422 = vtanh.f32 %v6570_v42  ;;  %v19667_v42 = vld [vmem:[%s20537_s2 + $0xa] sm:$0x1] }
0x1ca9   :  { %18424 = vrcp.f32 %v6495_v58 }
0x1cb2   :  { %v18423_v59 = vpop.eup %18422 }
0x1cb3   :  { %v6572_v60 = vsub.f32 %v6337_v34, %v18423_v59  ;;  %v18425_v61 = vpop.eup %18424 }
0x1cb5   :  { %v6573_v45 = vmul.f32 %v18425_v61, %v6572_v60 }
0x1cb7   :  { %v6574_v62 = vadd.f32 %v18423_v59, %v6573_v45  ;;  %v6972_v45 = vld [vmem:[#allocation5 + $0xa] sm:$0x1] }
0x1cb9   :  { %6575 = vst.msk [vmem:[#allocation2 + $0x8] sm:$0x1] %vm631_vm8, %v6574_v62  ;;  %16167 = vmatmul.mubr.msk.f32.vlgmr.msra.gmra.mrb[80].mxu1 %vm60_vm1, %v6574_v62  ;;  %16178 = vmatmul.mubr.msk.f32.vlgmr.msra.gmra.mrb[80].mxu0 %vm60_vm1, %v6574_v62 }
0x1cba   :  { %17602 = vmatpush3.bf16.msra.mxu1 %v19353_v25  ;;  %16188 = vmatprep.mubr.msk.f32.mxu1 %vm18734_vm7, %v18731_v15 }
0x1cbb   :  { %17603 = vmatprep.subr.bf16.mxu1 %v18732_v23  ;;  %17608 = vmatpush3.bf16.msra.mxu0 %v19332_v36 }
0x1cbc   :  { %17609 = vmatprep.subr.bf16.mxu0 %v18732_v23  ;;  %16199 = vmatprep.mubr.msk.f32.mxu0 %vm18734_vm7, %v18731_v15 }
0x1cbe   :  { %17605 = vmatpush3.bf16.msra.mxu1 %v19364_v28 }
0x1cbf   :  { %17612 = vmatprep.subr.bf16.mxu1 %v18732_v23  ;;  %17611 = vmatpush3.bf16.msra.mxu0 %v19339_v20 }
0x1cc0   :  { %17618 = vmatprep.subr.bf16.mxu0 %v18732_v23 }
0x1cc1   :  { %16189 = vmatmul.mubr.msk.f32.vlgmr.msra.gmra.mrb[82].mxu1 %vm60_vm1, %v6574_v62 }
0x1cc2   :  { %17614 = vmatpush3.bf16.msra.mxu1 %v19377_v32  ;;  %16210 = vmatprep.mubr.msk.f32.mxu1 %vm18734_vm7, %v18731_v15 }
0x1cc3   :  { %17615 = vmatprep.subr.bf16.mxu1 %v18732_v23 }
0x1cc6   :  { %17617 = vmatpush3.bf16.msra.mxu1 %v19390_v19 }
0x1cc7   :  { %17624 = vmatprep.subr.bf16.mxu1 %v18732_v23 }
0x1d8c   :  { %v6646_v0 = vpop.f32.mrb[80].mxu1  ;;  %v6724_v1 = vpop.f32.mrb[80].mxu0 }
0x1d8d   :  { %v6650_v5 = vadd.f32 %v6646_v0, %v6576_v63  ;;  %v16168_v6 = vpop.f32.mrb[81].mxu1  ;;  %v16179_v8 = vpop.f32.mrb[81].mxu0  ;;  %v6728_v13 = vadd.f32 %v6724_v1, %v6657_v10 }
0x1d8f   :  { %v14270_v9 = vmul.f32 -1.442695, %v6650_v5  ;;  %v14272_v39 = vmul.f32 -1.442695, %v6728_v13 }
0x1d91   :  { %18426 = vpow2.f32 %v14270_v9  ;;  %v7050_v9 = vld [vmem:[#allocation3 + $0xb] sm:$0x1] }
0x1d92   :  { %18428 = vpow2.f32 %v14272_v39 }
0x1d94   :  { %v6802_v11 = vpop.f32.mrb[82].mxu1 }
0x1d95   :  { %v16190_v14 = vpop.f32.mrb[83].mxu1  ;;  %v6803_v26 = vadd.f32 %v6802_v11, %v19428_v2  ;;  %v6813_v2 = vld [vmem:[#allocation3 + $0xa] sm:$0x1] }
0x1d9b   :  { %v18427_v21 = vpop.eup %18426 }
0x1d9c   :  { %v6654_v22 = vadd.f32 1.0, %v18427_v21  ;;  %v18429_v24 = vpop.eup %18428 }
0x1d9d   :  { %v6732_v34 = vadd.f32 1.0, %v18429_v24 }
0x1d9e   :  { %18430 = vrcp.f32 %v6654_v22  ;;  %v7131_v22 = vld [vmem:[#allocation4 + $0xb] sm:$0x1] }
0x1da8   :  { %v18431_v27 = vpop.eup %18430 }
0x1da9   :  { %v6806_v30 = vmul.f32 %v18431_v27, %v6803_v26 }
0x1dab   :  { %v6807_v35 = vadd.f32 %v6806_v30, %v6735_v31 }
0x1dad   :  { %18432 = vtanh.f32 %v6807_v35 }
0x1dae   :  { %18434 = vrcp.f32 %v6732_v34 }
0x1db7   :  { %v18433_v37 = vpop.eup %18432 }
0x1db8   :  { %v6809_v38 = vsub.f32 %v6574_v62, %v18433_v37  ;;  %v18435_v40 = vpop.eup %18434 }
0x1dba   :  { %v6810_v41 = vmul.f32 %v18435_v40, %v6809_v38 }
0x1dbc   :  { %v6811_v43 = vadd.f32 %v18433_v37, %v6810_v41  ;;  %v7209_v41 = vld [vmem:[#allocation5 + $0xb] sm:$0x1] }
0x1dbe   :  { %6812 = vst.msk [vmem:[#allocation2 + $0x9] sm:$0x1] %vm631_vm8, %v6811_v43  ;;  %16200 = vmatmul.mubr.msk.f32.vlgmr.msra.gmra.mrb[82].mxu0 %vm60_vm1, %v6811_v43  ;;  %16211 = vmatmul.mubr.msk.f32.vlgmr.msra.gmra.mrb[84].mxu1 %vm60_vm1, %v6811_v43 }
0x1dbf   :  { %17620 = vmatpush3.bf16.msra.mxu0 %v19353_v25  ;;  %16221 = vmatprep.mubr.msk.f32.mxu0 %vm18734_vm7, %v18731_v15 }
0x1dc0   :  { %17621 = vmatprep.subr.bf16.mxu0 %v18732_v23  ;;  %17626 = vmatpush3.bf16.msra.mxu1 %v19332_v36 }
0x1dc1   :  { %17627 = vmatprep.subr.bf16.mxu1 %v18732_v23  ;;  %16232 = vmatprep.mubr.msk.f32.mxu1 %vm18734_vm7, %v18731_v15 }
0x1dc3   :  { %17623 = vmatpush3.bf16.msra.mxu0 %v19364_v28 }
0x1dc4   :  { %17630 = vmatprep.subr.bf16.mxu0 %v18732_v23  ;;  %17629 = vmatpush3.bf16.msra.mxu1 %v19339_v20 }
0x1dc5   :  { %17636 = vmatprep.subr.bf16.mxu1 %v18732_v23 }
0x1dc6   :  { %16222 = vmatmul.mubr.msk.f32.vlgmr.msra.gmra.mrb[84].mxu0 %vm60_vm1, %v6811_v43 }
0x1dc7   :  { %17632 = vmatpush3.bf16.msra.mxu0 %v19377_v32  ;;  %16243 = vmatprep.mubr.msk.f32.mxu0 %vm18734_vm7, %v18731_v15 }
0x1dc8   :  { %17633 = vmatprep.subr.bf16.mxu0 %v18732_v23 }
0x1dcb   :  { %17635 = vmatpush3.bf16.msra.mxu0 %v19390_v19 }
0x1dcc   :  { %17642 = vmatprep.subr.bf16.mxu0 %v18732_v23 }
0x1e91   :  { %v6883_v44 = vpop.f32.mrb[82].mxu0  ;;  %v6961_v46 = vpop.f32.mrb[84].mxu1 }
0x1e92   :  { %v6887_v29 = vadd.f32 %v6883_v44, %v6813_v2  ;;  %v16201_v47 = vpop.f32.mrb[83].mxu0  ;;  %v16212_v48 = vpop.f32.mrb[85].mxu1  ;;  %v6965_v56 = vadd.f32 %v6961_v46, %v6894_v50 }
0x1e94   :  { %v14275_v49 = vmul.f32 -1.442695, %v6887_v29  ;;  %v14277_v52 = vmul.f32 -1.442695, %v6965_v56 }
0x1e96   :  { %18436 = vpow2.f32 %v14275_v49  ;;  %v7287_v49 = vld [vmem:[#allocation3 + $0xc] sm:$0x1] }
0x1e97   :  { %18438 = vpow2.f32 %v14277_v52 }
0x1e99   :  { %v7039_v51 = vpop.f32.mrb[84].mxu0 }
0x1e9a   :  { %v16223_v33 = vpop.f32.mrb[85].mxu0  ;;  %v7040_v59 = vadd.f32 %v19667_v42, %v7039_v51 }
0x1ea0   :  { %v18437_v55 = vpop.eup %18436 }
0x1ea1   :  { %v6891_v57 = vadd.f32 1.0, %v18437_v55  ;;  %v18439_v58 = vpop.eup %18438 }
0x1ea2   :  { %v6969_v62 = vadd.f32 1.0, %v18439_v58 }
0x1ea3   :  { %18440 = vrcp.f32 %v6891_v57  ;;  %v7368_v57 = vld [vmem:[#allocation4 + $0xc] sm:$0x1] }
0x1ead   :  { %v18441_v60 = vpop.eup %18440 }
0x1eae   :  { %v7043_v61 = vmul.f32 %v18441_v60, %v7040_v59 }
0x1eb0   :  { %v7044_v63 = vadd.f32 %v7043_v61, %v6972_v45 }
0x1eb2   :  { %18442 = vtanh.f32 %v7044_v63 }
0x1eb3   :  { %18444 = vrcp.f32 %v6969_v62 }
0x1ebc   :  { %v18443_v0 = vpop.eup %18442 }
0x1ebd   :  { %v7046_v1 = vsub.f32 %v6811_v43, %v18443_v0  ;;  %v18445_v5 = vpop.eup %18444 }
0x1ebf   :  { %v7047_v6 = vmul.f32 %v18445_v5, %v7046_v1 }
0x1ec1   :  { %v7048_v8 = vadd.f32 %v18443_v0, %v7047_v6  ;;  %v7446_v6 = vld [vmem:[#allocation5 + $0xc] sm:$0x1] }
0x1ec3   :  { %7049 = vst.msk [vmem:[#allocation2 + $0xa] sm:$0x1] %vm631_vm8, %v7048_v8  ;;  %16233 = vmatmul.mubr.msk.f32.vlgmr.msra.gmra.mrb[86].mxu1 %vm60_vm1, %v7048_v8  ;;  %16244 = vmatmul.mubr.msk.f32.vlgmr.msra.gmra.mrb[86].mxu0 %vm60_vm1, %v7048_v8 }
0x1ec4   :  { %17638 = vmatpush3.bf16.msra.mxu1 %v19353_v25  ;;  %16254 = vmatprep.mubr.msk.f32.mxu1 %vm18734_vm7, %v18731_v15 }
0x1ec5   :  { %17639 = vmatprep.subr.bf16.mxu1 %v18732_v23  ;;  %17644 = vmatpush3.bf16.msra.mxu0 %v19332_v36 }
0x1ec6   :  { %17645 = vmatprep.subr.bf16.mxu0 %v18732_v23  ;;  %16265 = vmatprep.mubr.msk.f32.mxu0 %vm18734_vm7, %v18731_v15 }
0x1ec8   :  { %17641 = vmatpush3.bf16.msra.mxu1 %v19364_v28 }
0x1ec9   :  { %17648 = vmatprep.subr.bf16.mxu1 %v18732_v23  ;;  %17647 = vmatpush3.bf16.msra.mxu0 %v19339_v20 }
0x1eca   :  { %17654 = vmatprep.subr.bf16.mxu0 %v18732_v23 }
0x1ecb   :  { %16255 = vmatmul.mubr.msk.f32.vlgmr.msra.gmra.mrb[88].mxu1 %vm60_vm1, %v7048_v8 }
0x1ecc   :  { %17650 = vmatpush3.bf16.msra.mxu1 %v19377_v32  ;;  %16276 = vmatprep.mubr.msk.f32.mxu1 %vm18734_vm7, %v18731_v15 }
0x1ecd   :  { %17651 = vmatprep.subr.bf16.mxu1 %v18732_v23 }
0x1ed0   :  { %17653 = vmatpush3.bf16.msra.mxu1 %v19390_v19 }
0x1ed1   :  { %17660 = vmatprep.subr.bf16.mxu1 %v18732_v23 }
0x1f96   :  { %v7120_v10 = vpop.f32.mrb[86].mxu1  ;;  %v7198_v11 = vpop.f32.mrb[86].mxu0 }
0x1f97   :  { %v7124_v13 = vadd.f32 %v7120_v10, %v7050_v9  ;;  %v16234_v14 = vpop.f32.mrb[87].mxu1  ;;  %v16245_v39 = vpop.f32.mrb[87].mxu0  ;;  %v7202_v26 = vadd.f32 %v7198_v11, %v7131_v22 }
0x1f99   :  { %v14280_v21 = vmul.f32 -1.442695, %v7124_v13  ;;  %v14282_v30 = vmul.f32 -1.442695, %v7202_v26 }
0x1f9b   :  { %18446 = vpow2.f32 %v14280_v21  ;;  %v7524_v21 = vld [vmem:[#allocation3 + $0xd] sm:$0x1] }
0x1f9c   :  { %18448 = vpow2.f32 %v14282_v30 }
0x1f9e   :  { %v7276_v24 = vpop.f32.mrb[88].mxu1 }
0x1f9f   :  { %v16256_v27 = vpop.f32.mrb[89].mxu1  ;;  %v7277_v37 = vadd.f32 %v19667_v42, %v7276_v24 }
0x1fa5   :  { %v18447_v31 = vpop.eup %18446 }
0x1fa6   :  { %v7128_v34 = vadd.f32 1.0, %v18447_v31  ;;  %v18449_v35 = vpop.eup %18448 }
0x1fa7   :  { %v7206_v43 = vadd.f32 1.0, %v18449_v35 }
0x1fa8   :  { %18450 = vrcp.f32 %v7128_v34  ;;  %v7605_v34 = vld [vmem:[#allocation4 + $0xd] sm:$0x1] }
0x1fb2   :  { %v18451_v38 = vpop.eup %18450 }
0x1fb3   :  { %v7280_v40 = vmul.f32 %v18451_v38, %v7277_v37 }
0x1fb5   :  { %v7281_v2 = vadd.f32 %v7280_v40, %v7209_v41 }
0x1fb7   :  { %18452 = vtanh.f32 %v7281_v2 }
0x1fb8   :  { %18454 = vrcp.f32 %v7206_v43 }
0x1fc1   :  { %v18453_v44 = vpop.eup %18452 }
0x1fc2   :  { %v7283_v46 = vsub.f32 %v7048_v8, %v18453_v44  ;;  %v18455_v29 = vpop.eup %18454 }
0x1fc4   :  { %v7284_v47 = vmul.f32 %v18455_v29, %v7283_v46 }
0x1fc6   :  { %v7285_v48 = vadd.f32 %v18453_v44, %v7284_v47  ;;  %v7683_v47 = vld [vmem:[#allocation5 + $0xd] sm:$0x1] }
0x1fc8   :  { %7286 = vst.msk [vmem:[#allocation2 + $0xb] sm:$0x1] %vm631_vm8, %v7285_v48  ;;  %16266 = vmatmul.mubr.msk.f32.vlgmr.msra.gmra.mrb[88].mxu0 %vm60_vm1, %v7285_v48  ;;  %16277 = vmatmul.mubr.msk.f32.vlgmr.msra.gmra.mrb[90].mxu1 %vm60_vm1, %v7285_v48 }
0x1fc9   :  { %17656 = vmatpush3.bf16.msra.mxu0 %v19353_v25  ;;  %16287 = vmatprep.mubr.msk.f32.mxu0 %vm18734_vm7, %v18731_v15 }
0x1fca   :  { %17657 = vmatprep.subr.bf16.mxu0 %v18732_v23  ;;  %17662 = vmatpush3.bf16.msra.mxu1 %v19332_v36 }
0x1fcb   :  { %17663 = vmatprep.subr.bf16.mxu1 %v18732_v23  ;;  %16298 = vmatprep.mubr.msk.f32.mxu1 %vm18734_vm7, %v18731_v15 }
0x1fcd   :  { %17659 = vmatpush3.bf16.msra.mxu0 %v19364_v28 }
0x1fce   :  { %17666 = vmatprep.subr.bf16.mxu0 %v18732_v23  ;;  %17665 = vmatpush3.bf16.msra.mxu1 %v19339_v20 }
0x1fcf   :  { %17672 = vmatprep.subr.bf16.mxu1 %v18732_v23 }
0x1fd0   :  { %16288 = vmatmul.mubr.msk.f32.vlgmr.msra.gmra.mrb[90].mxu0 %vm60_vm1, %v7285_v48 }
0x1fd1   :  { %17668 = vmatpush3.bf16.msra.mxu0 %v19377_v32  ;;  %16309 = vmatprep.mubr.msk.f32.mxu0 %vm18734_vm7, %v18731_v15 }
0x1fd2   :  { %17669 = vmatprep.subr.bf16.mxu0 %v18732_v23 }
0x1fd5   :  { %17671 = vmatpush3.bf16.msra.mxu0 %v19390_v19 }
0x1fd6   :  { %17678 = vmatprep.subr.bf16.mxu0 %v18732_v23 }
0x209b   :  { %v7357_v50 = vpop.f32.mrb[88].mxu0  ;;  %v7435_v51 = vpop.f32.mrb[90].mxu1 }
0x209c   :  { %v7361_v56 = vadd.f32 %v7357_v50, %v7287_v49  ;;  %v16267_v33 = vpop.f32.mrb[89].mxu0  ;;  %v16278_v52 = vpop.f32.mrb[91].mxu1  ;;  %v7439_v59 = vadd.f32 %v7435_v51, %v7368_v57 }
0x209e   :  { %v14285_v55 = vmul.f32 -1.442695, %v7361_v56  ;;  %v14287_v61 = vmul.f32 -1.442695, %v7439_v59 }
0x20a0   :  { %18456 = vpow2.f32 %v14285_v55 }
0x20a1   :  { %18458 = vpow2.f32 %v14287_v61  ;;  %v7842_v61 = vld [vmem:[#allocation4 + $0xe] sm:$0x1] }
0x20a3   :  { %v7513_v58 = vpop.f32.mrb[90].mxu0 }
0x20a4   :  { %v16289_v60 = vpop.f32.mrb[91].mxu0  ;;  %v7514_v0 = vadd.f32 %v19667_v42, %v7513_v58 }
0x20aa   :  { %v18457_v45 = vpop.eup %18456 }
0x20ab   :  { %v7365_v62 = vadd.f32 1.0, %v18457_v45  ;;  %v18459_v63 = vpop.eup %18458 }
0x20ac   :  { %v7443_v8 = vadd.f32 1.0, %v18459_v63 }
0x20ad   :  { %18460 = vrcp.f32 %v7365_v62 }
0x20b7   :  { %v18461_v1 = vpop.eup %18460 }
0x20b8   :  { %v7517_v5 = vmul.f32 %v18461_v1, %v7514_v0 }
0x20ba   :  { %v7518_v9 = vadd.f32 %v7517_v5, %v7446_v6 }
0x20bc   :  { %18462 = vtanh.f32 %v7518_v9  ;;  %v7920_v9 = vld [vmem:[#allocation5 + $0xe] sm:$0x1] }
0x20bd   :  { %18464 = vrcp.f32 %v7443_v8 }
0x20c6   :  { %v18463_v10 = vpop.eup %18462 }
0x20c7   :  { %v7520_v11 = vsub.f32 %v7285_v48, %v18463_v10  ;;  %v18465_v13 = vpop.eup %18464 }
0x20c9   :  { %v7521_v14 = vmul.f32 %v18465_v13, %v7520_v11 }
0x20cb   :  { %v7522_v39 = vadd.f32 %v18463_v10, %v7521_v14 }
0x20cd   :  { %7523 = vst.msk [vmem:[#allocation2 + $0xc] sm:$0x1] %vm631_vm8, %v7522_v39  ;;  %16299 = vmatmul.mubr.msk.f32.vlgmr.msra.gmra.mrb[92].mxu1 %vm60_vm1, %v7522_v39  ;;  %16310 = vmatmul.mubr.msk.f32.vlgmr.msra.gmra.mrb[92].mxu0 %vm60_vm1, %v7522_v39 }
0x20ce   :  { %17674 = vmatpush3.bf16.msra.mxu1 %v19353_v25  ;;  %16320 = vmatprep.mubr.msk.f32.mxu1 %vm18734_vm7, %v18731_v15 }
0x20cf   :  { %17675 = vmatprep.subr.bf16.mxu1 %v18732_v23  ;;  %17680 = vmatpush3.bf16.msra.mxu0 %v19332_v36 }
0x20d0   :  { %17681 = vmatprep.subr.bf16.mxu0 %v18732_v23  ;;  %16331 = vmatprep.mubr.msk.f32.mxu0 %vm18734_vm7, %v18731_v15 }
0x20d2   :  { %17677 = vmatpush3.bf16.msra.mxu1 %v19364_v28 }
0x20d3   :  { %17684 = vmatprep.subr.bf16.mxu1 %v18732_v23  ;;  %17683 = vmatpush3.bf16.msra.mxu0 %v19339_v20 }
0x20d4   :  { %17690 = vmatprep.subr.bf16.mxu0 %v18732_v23 }
0x20d5   :  { %16321 = vmatmul.mubr.msk.f32.vlgmr.msra.gmra.mrb[94].mxu1 %vm60_vm1, %v7522_v39 }
0x20d6   :  { %17686 = vmatpush3.bf16.msra.mxu1 %v19377_v32  ;;  %16342 = vmatprep.mubr.msk.f32.mxu1 %vm18734_vm7, %v18731_v15 }
0x20d7   :  { %17687 = vmatprep.subr.bf16.mxu1 %v18732_v23 }
0x20da   :  { %17689 = vmatpush3.bf16.msra.mxu1 %v19390_v19 }
0x20db   :  { %17696 = vmatprep.subr.bf16.mxu1 %v18732_v23 }
0x21a0   :  { %v7594_v22 = vpop.f32.mrb[92].mxu1  ;;  %v7672_v24 = vpop.f32.mrb[92].mxu0 }
0x21a1   :  { %v7598_v26 = vadd.f32 %v7594_v22, %v7524_v21  ;;  %v16300_v27 = vpop.f32.mrb[93].mxu1  ;;  %v16311_v30 = vpop.f32.mrb[93].mxu0  ;;  %v7676_v37 = vadd.f32 %v7672_v24, %v7605_v34  ;;  %v8235_v24 = vld [vmem:[#allocation2] sm:$0xff] }
0x21a3   :  { %v14290_v31 = vmul.f32 -1.442695, %v7598_v26  ;;  %v14292_v40 = vmul.f32 -1.442695, %v7676_v37  ;;  %v8079_v37 = vld [vmem:[#allocation4 + $0xf] sm:$0x1] }
0x21a5   :  { %18466 = vpow2.f32 %v14290_v31 }
0x21a6   :  { %18468 = vpow2.f32 %v14292_v40 }
0x21a8   :  { %v7750_v35 = vpop.f32.mrb[94].mxu1 }
0x21a9   :  { %v16322_v38 = vpop.f32.mrb[95].mxu1  ;;  %v7751_v44 = vadd.f32 %v19667_v42, %v7750_v35 }
0x21af   :  { %v18467_v41 = vpop.eup %18466 }
0x21b0   :  { %v7602_v43 = vadd.f32 1.0, %v18467_v41  ;;  %v18469_v2 = vpop.eup %18468 }
0x21b1   :  { %v7680_v48 = vadd.f32 1.0, %v18469_v2 }
0x21b2   :  { %18470 = vrcp.f32 %v7602_v43 }
0x21bc   :  { %v18471_v46 = vpop.eup %18470 }
0x21bd   :  { %v7754_v29 = vmul.f32 %v18471_v46, %v7751_v44 }
0x21bf   :  { %v7755_v49 = vadd.f32 %v7754_v29, %v7683_v47 }
0x21c1   :  { %18472 = vtanh.f32 %v7755_v49 }
0x21c2   :  { %18474 = vrcp.f32 %v7680_v48  ;;  %v8157_v48 = vld [vmem:[#allocation5 + $0xf] sm:$0x1] }
0x21cb   :  { %v18473_v50 = vpop.eup %18472 }
0x21cc   :  { %v7757_v51 = vsub.f32 %v7522_v39, %v18473_v50  ;;  %v18475_v56 = vpop.eup %18474 }
0x21ce   :  { %v7758_v33 = vmul.f32 %v18475_v56, %v7757_v51 }
0x21d0   :  { %v7759_v52 = vadd.f32 %v18473_v50, %v7758_v33 }
0x21d2   :  { %7760 = vst.msk [vmem:[#allocation2 + $0xd] sm:$0x1] %vm631_vm8, %v7759_v52  ;;  %16332 = vmatmul.mubr.msk.f32.vlgmr.msra.gmra.mrb[94].mxu0 %vm60_vm1, %v7759_v52  ;;  %16343 = vmatmul.mubr.msk.f32.vlgmr.msra.gmra.mrb[96].mxu1 %vm60_vm1, %v7759_v52 }
0x21d3   :  { %17692 = vmatpush3.bf16.msra.mxu0 %v19353_v25  ;;  %16353 = vmatprep.mubr.msk.f32.mxu0 %vm18734_vm7, %v18731_v15 }
0x21d4   :  { %17693 = vmatprep.subr.bf16.mxu0 %v18732_v23  ;;  %17698 = vmatpush3.bf16.msra.mxu1 %v19332_v36  ;;  %v7761_v36 = vld [vmem:[#allocation3 + $0xe] sm:$0x1] }
0x21d5   :  { %17699 = vmatprep.subr.bf16.mxu1 %v18732_v23  ;;  %16364 = vmatprep.mubr.msk.f32.mxu1 %vm18734_vm7, %v18731_v15 }
0x21d7   :  { %17695 = vmatpush3.bf16.msra.mxu0 %v19364_v28 }
0x21d8   :  { %17702 = vmatprep.subr.bf16.mxu0 %v18732_v23  ;;  %17701 = vmatpush3.bf16.msra.mxu1 %v19339_v20 }
0x21d9   :  { %17708 = vmatprep.subr.bf16.mxu1 %v18732_v23 }
0x21da   :  { %16354 = vmatmul.mubr.msk.f32.vlgmr.msra.gmra.mrb[96].mxu0 %vm60_vm1, %v7759_v52 }
0x21db   :  { %17704 = vmatpush3.bf16.msra.mxu0 %v19377_v32  ;;  %16375 = vmatprep.mubr.msk.f32.mxu0 %vm18734_vm7, %v18731_v15 }
0x21dc   :  { %17705 = vmatprep.subr.bf16.mxu0 %v18732_v23 }
0x21df   :  { %17707 = vmatpush3.bf16.msra.mxu0 %v19390_v19 }
0x21e0   :  { %17715 = vmatprep.subr.bf16.mxu0 %v19281_v16 }
0x22a5   :  { %v7831_v55 = vpop.f32.mrb[94].mxu0  ;;  %v7909_v57 = vpop.f32.mrb[96].mxu1 }
0x22a6   :  { %v7835_v58 = vadd.f32 %v7831_v55, %v7761_v36  ;;  %v16333_v20 = vpop.f32.mrb[95].mxu0  ;;  %v16344_v59 = vpop.f32.mrb[97].mxu1  ;;  %v7913_v32 = vadd.f32 %v7909_v57, %v7842_v61  ;;  %v18704_v57 = vld [vmem:[%s20537_s2 + $0x1] ss:$0 sm:$0xff] }
0x22a8   :  { %v14295_v60 = vmul.f32 -1.442695, %v7835_v58  ;;  %v14297_v63 = vmul.f32 -1.442695, %v7913_v32 }
0x22aa   :  { %18476 = vpow2.f32 %v14295_v60 }
0x22ab   :  { %18478 = vpow2.f32 %v14297_v63 }
0x22ad   :  { %v7987_v45 = vpop.f32.mrb[96].mxu0 }
0x22ae   :  { %v16355_v62 = vpop.f32.mrb[97].mxu0  ;;  %v7988_v5 = vadd.f32 %v19667_v42, %v7987_v45 }
0x22b4   :  { %v18477_v0 = vpop.eup %18476 }
0x22b5   :  { %v7839_v1 = vadd.f32 1.0, %v18477_v0  ;;  %v18479_v19 = vpop.eup %18478  ;;  %v8361_v0 = vld [vmem:[%s20536_s1 + $0x68] sm:$0xff] }
0x22b6   :  { %v7917_v10 = vadd.f32 1.0, %v18479_v19  ;;  %v8363_v19 = vld [vmem:[%s20536_s1 + $0x78] sm:$0xff] }
0x22b7   :  { %18480 = vrcp.f32 %v7839_v1  ;;  %v8362_v1 = vld [vmem:[%s20536_s1 + $0x70] sm:$0xff] }
0x22c1   :  { %v18481_v6 = vpop.eup %18480 }
0x22c2   :  { %v7991_v8 = vmul.f32 %v18481_v6, %v7988_v5  ;;  %v17722_v5 = vpack.c.bf16 %v8362_v1, %v8361_v0  ;;  %v8364_v6 = vld [vmem:[%s20536_s1 + $0x80] sm:$0xff] }
0x22c4   :  { %v7992_v11 = vadd.f32 %v7991_v8, %v7920_v9  ;;  %v17726_v8 = vpack.c.bf16 %v8364_v6, %v8363_v19  ;;  %v19911_v6 = vld [vmem:[%s20537_s2 + $0xd] sm:$0x1] }
0x22c6   :  { %18482 = vtanh.f32 %v7992_v11 }
0x22c7   :  { %18484 = vrcp.f32 %v7917_v10 }
0x22d0   :  { %v18483_v13 = vpop.eup %18482 }
0x22d1   :  { %v7994_v14 = vsub.f32 %v7759_v52, %v18483_v13  ;;  %v18485_v39 = vpop.eup %18484 }
0x22d3   :  { %v7995_v21 = vmul.f32 %v18485_v39, %v7994_v14  ;;  %v8344_v14 = vld [vmem:[%s20536_s1 + $0x148] sm:$0xff]  ;;  %v8345_v39 = vld [vmem:[%s20536_s1 + $0x150] sm:$0xff] }
0x22d5   :  { %v7996_v22 = vadd.f32 %v18483_v13, %v7995_v21  ;;  %v8346_v21 = vld [vmem:[%s20536_s1 + $0x158] sm:$0xff] }
0x22d7   :  { %7997 = vst.msk [vmem:[#allocation2 + $0xe] sm:$0x1] %vm631_vm8, %v7996_v22  ;;  %16365 = vmatmul.mubr.msk.f32.vlgmr.msra.gmra.mrb[98].mxu1 %vm60_vm1, %v7996_v22  ;;  %16376 = vmatmul.mubr.msk.f32.vlgmr.msra.gmra.mrb[98].mxu0 %vm60_vm1, %v7996_v22 }
0x22d8   :  { %17710 = vmatpush3.bf16.msra.mxu1 %v19353_v25  ;;  %16397 = vmatprep.mubr.msk.f32.mxu0 %vm60_vm1, %v8235_v24  ;;  %v7998_v25 = vld [vmem:[#allocation3 + $0xf] sm:$0x1]  ;;  %v8347_v24 = vld [vmem:[%s20536_s1 + $0x160] sm:$0xff] }
0x22d9   :  { %17711 = vmatprep.subr.bf16.mxu1 %v18732_v23  ;;  %16386 = vmatprep.mubr.msk.f32.mxu1 %vm18734_vm7, %v18731_v15 }
0x22da   :  { %17717 = vmatpush3.bf16.msra.mxu0 %v19281_v16 }
0x22db   :  { %17719 = vmatprep.subr.bf16.mxu0 %v19286_v17 }
0x22dc   :  { %17713 = vmatpush3.bf16.msra.mxu1 %v19364_v28 }
0x22dd   :  { %17723 = vmatprep.subr.bf16.mxu1 %v17722_v5 }
0x22de   :  { %17721 = vmatpush3.bf16.msra.mxu0 %v19286_v17 }
0x22df   :  { %16387 = vmatmul.mubr.msk.f32.vlgmr.msra.gmra.mrb[100].mxu1 %vm60_vm1, %v7996_v22  ;;  %17730 = vmatprep.subr.bf16.mxu0 %v18732_v23 }
0x22e0   :  { %17725 = vmatpush3.bf16.msra.mxu1 %v17722_v5 }
0x22e1   :  { %17727 = vmatprep.subr.bf16.mxu1 %v17726_v8 }
0x22e4   :  { %17729 = vmatpush3.bf16.msra.mxu1 %v17726_v8 }
0x22e5   :  { %17736 = vmatprep.subr.bf16.mxu1 %v18732_v23 }
0x23aa   :  { %v8068_v26 = vpop.f32.mrb[98].mxu1  ;;  %v8146_v27 = vpop.f32.mrb[98].mxu0 }
0x23ab   :  { %v8072_v30 = vadd.f32 %v8068_v26, %v7998_v25  ;;  %v16366_v31 = vpop.f32.mrb[99].mxu1  ;;  %v16377_v34 = vpop.f32.mrb[99].mxu0  ;;  %v8150_v40 = vadd.f32 %v8146_v27, %v8079_v37  ;;  %v19822_v25 = vpack.c.bf16 %v8347_v24, %v8346_v21  ;;  %v14312_v26 = vld [vmem:[%s20537_s2 + $0xc] ss:$0 sm:$0xff] }
0x23ac   :  { %v8352_v27 = vld [vmem:[%s20536_s1 + $0x188] sm:$0xff]  ;;  %v8354_v34 = vld [vmem:[%s20536_s1 + $0x198] sm:$0xff] }
0x23ad   :  { %v14300_v35 = vmul.f32 -1.442695, %v8072_v30  ;;  %v14302_v43 = vmul.f32 -1.442695, %v8150_v40  ;;  %v8353_v30 = vld [vmem:[%s20536_s1 + $0x190] sm:$0xff] }
0x23ae   :  { %v19836_v31 = vpack.c.bf16 %v8353_v30, %v8352_v27  ;;  %v8349_v40 = vld [vmem:[%s20536_s1 + $0x170] sm:$0xff] }
0x23af   :  { %18486 = vpow2.f32 %v14300_v35  ;;  %v8355_v35 = vld [vmem:[%s20536_s1 + $0x1a0] sm:$0xff] }
0x23b0   :  { %18488 = vpow2.f32 %v14302_v43  ;;  %v19847_v37 = vpack.c.bf16 %v8355_v35, %v8354_v34  ;;  %v8350_v43 = vld [vmem:[%s20536_s1 + $0x178] sm:$0xff] }
0x23b2   :  { %v8224_v38 = vpop.f32.mrb[100].mxu1 }
0x23b3   :  { %v16388_v41 = vpop.f32.mrb[101].mxu1  ;;  %v8225_v46 = vadd.f32 %v19667_v42, %v8224_v38  ;;  %v8348_v38 = vld [vmem:[%s20536_s1 + $0x168] sm:$0xff] }
0x23b4   :  { %v19860_v41 = vpack.c.bf16 %v8349_v40, %v8348_v38 }
0x23b9   :  { %v18487_v28 = vpop.eup %18486 }
0x23ba   :  { %v8076_v2 = vadd.f32 1.0, %v18487_v28  ;;  %v18489_v44 = vpop.eup %18488  ;;  %v8351_v28 = vld [vmem:[%s20536_s1 + $0x180] sm:$0xff] }
0x23bb   :  { %v8154_v49 = vadd.f32 1.0, %v18489_v44 }
0x23bc   :  { %18490 = vrcp.f32 %v8076_v2  ;;  %v19873_v2 = vpack.c.bf16 %v8351_v28, %v8350_v43 }
0x23c6   :  { %v18491_v29 = vpop.eup %18490 }
0x23c7   :  { %v8228_v47 = vmul.f32 %v18491_v29, %v8225_v46 }
0x23c9   :  { %v8229_v50 = vadd.f32 %v8228_v47, %v8157_v48 }
0x23cb   :  { %18492 = vtanh.f32 %v8229_v50 }
0x23cc   :  { %18494 = vrcp.f32 %v8154_v49 }
0x23d5   :  { %v18493_v51 = vpop.eup %18492 }
0x23d6   :  { %v8231_v56 = vsub.f32 %v7996_v22, %v18493_v51  ;;  %v18495_v33 = vpop.eup %18494  ;;  %v19815_v22 = vpack.c.bf16 %v8345_v39, %v8344_v14 }
0x23d8   :  { %v8232_v52 = vmul.f32 %v18495_v33, %v8231_v56 }
0x23da   :  { %v8233_v36 = vadd.f32 %v18493_v51, %v8232_v52  ;;  %v14308_v52 = vld [vmem:[%s20537_s2 + $0x4] ss:$0 sm:$0xff] }
0x23dc   :  { %8234 = vst.msk [vmem:[#allocation2 + $0xf] sm:$0x1] %vm631_vm8, %v8233_v36  ;;  %v14311_v36 = vld [vmem:[%s20537_s2 + $0xb] ss:$0 sm:$0xff] }
0x23e3   :  { %v8236_v55 = vld [vmem:[#allocation2 + $0x8] sm:$0xff] }
0x23e4   :  { %16398 = vmatmul.mubr.msk.f32.vlgmr.msra.gmra.mrb[100].mxu0 %vm60_vm1, %v8236_v55 }
0x23e5   :  { %16419 = vmatprep.mubr.msk.f32.mxu0 %vm18734_vm7, %v18731_v15  ;;  %17732 = vmatpush3.bf16.msra.mxu0 %v19815_v22 }
0x23e6   :  { %17733 = vmatprep.subr.bf16.mxu0 %v18732_v23 }
0x23e9   :  { %17735 = vmatpush3.bf16.msra.mxu0 %v19822_v25 }
0x23ea   :  { %17742 = vmatprep.subr.bf16.mxu0 %v18732_v23 }
0x23ec   :  { %16420 = vmatmul.mubr.f32.vlgmr.msra.gmra.mrb[102].mxu0 %v18731_v15 }
0x23ed   :  { %17744 = vmatpush3.bf16.msra.mxu0 %v19836_v31  ;;  %16441 = vmatprep.mubr.msk.f32.mxu0 %vm18734_vm7, %v18731_v15 }
0x23ee   :  { %17745 = vmatprep.subr.bf16.mxu0 %v18732_v23 }
0x23f1   :  { %17747 = vmatpush3.bf16.msra.mxu0 %v19847_v37 }
0x23f2   :  { %17754 = vmatprep.subr.bf16.mxu0 %v18732_v23 }
0x23f4   :  { %16442 = vmatmul.mubr.f32.vlgmr.msra.gmra.mrb[104].mxu0 %v18731_v15 }
0x23f5   :  { %17756 = vmatpush3.bf16.msra.mxu0 %v19860_v41  ;;  %16463 = vmatprep.mubr.msk.f32.mxu0 %vm18734_vm7, %v18731_v15 }
0x23f6   :  { %17757 = vmatprep.subr.bf16.mxu0 %v18732_v23 }
0x23f9   :  { %17759 = vmatpush3.bf16.msra.mxu0 %v19873_v2 }
0x23fa   :  { %17766 = vmatprep.subr.bf16.mxu0 %v18732_v23 }
0x24b7   :  { %v16399_v42 = vpop.f32.mrb[100].mxu0 }
0x24b8   :  { %v19784_v58 = vadd.f32 %v18704_v57, %v16399_v42  ;;  %v8309_v20 = vpop.f32.mrb[101].mxu0 }
0x24b9   :  { %v19786_v59 = vadd.f32 %v18704_v57, %v8309_v20 }
0x24ba   :  { %v14307_v60 = vmul.f32 -1.442695, %v19784_v58 }
0x24bb   :  { %v14306_v61 = vmul.f32 -1.442695, %v19786_v59 }
0x24bc   :  { %18496 = vpow2.f32 %v14307_v60 }
0x24bd   :  { %18498 = vpow2.f32 %v14306_v61 }
0x24bf   :  { %v8556_v50 = vpop.f32.mrb[102].mxu0 }
0x24c0   :  { %v16421_v51 = vpop.f32.mrb[103].mxu0 }
0x24c6   :  { %v18497_v45 = vpop.eup %18496 }
0x24c7   :  { %v18499_v32 = vpop.eup %18498  ;;  %v8325_v62 = vadd.f32 1.0, %v18497_v45  ;;  %v8712_v56 = vpop.f32.mrb[104].mxu0 }
0x24c8   :  { %v8324_v63 = vadd.f32 1.0, %v18499_v32  ;;  %v16443_v33 = vpop.f32.mrb[105].mxu0  ;;  %v8713_v8 = vadd.f32 %v8712_v56, %v19911_v6 }
0x24c9   :  { %18500 = vrcp.f32 %v8325_v62 }
0x24ca   :  { %18502 = vrcp.f32 %v8324_v63 }
0x24d3   :  { %v18501_v9 = vpop.eup %18500 }
0x24d4   :  { %v18503_v10 = vpop.eup %18502  ;;  %v8331_v11 = vmul.f32 %v18501_v9, %v19784_v58 }
0x24d5   :  { %v8330_v13 = vmul.f32 %v18503_v10, %v19786_v59 }
0x24d6   :  { %8336 = vrot.lane.b32.xlu1 %v8331_v11, %s18736_s12 }
0x24d7   :  { %8334 = vrot.lane.b32.xlu0 %v8330_v13, %s18736_s12 }
0x24db   :  { %8464 = vrot.lane.b32.xlu0 %v14312_v26, %s18733_s15 }
0x2548   :  { %v8337_v44 = vpop.permute.xlu1 %8336 }
0x2549   :  { %v8341_v46 = vmul.f32 %v8337_v44, %v19784_v58  ;;  %v8335_v29 = vpop.permute.xlu0 %8334 }
0x254a   :  { %v8340_v47 = vmul.f32 %v8335_v29, %v19786_v59 }
0x254b   :  { %8343 = vst.msk [vmem:[#allocation2 + $0x8] sm:$0xff] %vm60_vm1, %v8341_v46 }
0x254c   :  { %8342 = vst.msk [vmem:[#allocation2] sm:$0xff] %vm60_vm1, %v8340_v47 }
0x254d   :  { %v8465_v58 = vpop.permute.xlu0 %8464 }
0x2552   :  { %v8360_v49 = vld [vmem:[#allocation2 + $0x8] sm:$0xff] }
0x2553   :  { %v8359_v48 = vld [vmem:[#allocation2] sm:$0xff] }
0x2554   :  { %16408 = vmatprep.mubr.msk.f32.mxu1 %vm60_vm1, %v8359_v48 }
0x2555   :  { %16409 = vmatmul.mubr.msk.f32.vlgmr.msra.gmra.mrb[102].mxu1 %vm60_vm1, %v8360_v49 }
0x2556   :  { %17738 = vmatpush3.bf16.msra.mxu1 %v19860_v41  ;;  %16430 = vmatprep.mubr.msk.f32.mxu1 %vm18734_vm7, %v18731_v15 }
0x2557   :  { %17739 = vmatprep.subr.bf16.mxu1 %v18732_v23 }
0x255a   :  { %17741 = vmatpush3.bf16.msra.mxu1 %v19873_v2 }
0x255b   :  { %17748 = vmatprep.subr.bf16.mxu1 %v18732_v23 }
0x255d   :  { %16431 = vmatmul.mubr.f32.vlgmr.msra.gmra.mrb[104].mxu1 %v18731_v15 }
0x255e   :  { %17750 = vmatpush3.bf16.msra.mxu1 %v19815_v22  ;;  %16452 = vmatprep.mubr.msk.f32.mxu1 %vm18734_vm7, %v18731_v15 }
0x255f   :  { %17751 = vmatprep.subr.bf16.mxu1 %v18732_v23 }
0x2562   :  { %17753 = vmatpush3.bf16.msra.mxu1 %v19822_v25 }
0x2563   :  { %17760 = vmatprep.subr.bf16.mxu1 %v18732_v23 }
0x2628   :  { %v16410_v55 = vpop.f32.mrb[102].mxu1 }
0x2629   :  { %v8448_v42 = vadd.f32 %v16410_v55, %v14308_v52  ;;  %v8442_v57 = vpop.f32.mrb[103].mxu1 }
0x262a   :  { %v8443_v20 = vadd.f32 %v14308_v52, %v8442_v57 }
0x262b   :  { %v8456_v59 = vadd.f32 %v14311_v36, %v8448_v42  ;;  %v8468_v45 = vadd.f32 %v8465_v58, %v8448_v42 }
0x262c   :  { %v8455_v60 = vadd.f32 %v14311_v36, %v8443_v20  ;;  %v8467_v61 = vadd.f32 %v8465_v58, %v8443_v20  ;;  %8481 = vrot.lane.b32.xlu0 %v8443_v20, %s18735_s11 }
0x262d   :  { %8458 = vst.msk [vmem:[#allocation3 + $0x8] sm:$0xff] %vm60_vm1, %v8456_v59 }
0x262e   :  { %8457 = vst.msk [vmem:[#allocation3] sm:$0xff] %vm60_vm1, %v8455_v60  ;;  %8471 = vrot.lane.b32.xlu1 %v8467_v61, %s18736_s12 }
0x2630   :  { %8483 = vrot.lane.b32.xlu0 %v8448_v42, %s18735_s11  ;;  %v8634_v32 = vpop.f32.mrb[104].mxu1 }
0x2631   :  { %v16432_v62 = vpop.f32.mrb[105].mxu1 }
0x2632   :  { %8473 = vrot.lane.b32.xlu1 %v8468_v45, %s18736_s12 }
0x2635   :  { %v8489_v63 = vld [vmem:[#allocation3] sm:$0x1]  ;;  %v8723_v46 = vld [vmem:[#allocation3 + $0x1] sm:$0x1] }
0x2636   :  { %v8560_v0 = vadd.f32 %v8556_v50, %v8489_v63 }
0x2638   :  { %v14313_v1 = vmul.f32 -1.442695, %v8560_v0 }
0x263a   :  { %18504 = vpow2.f32 %v14313_v1 }
0x2644   :  { %v18505_v19 = vpop.eup %18504 }
0x2645   :  { %v8564_v5 = vadd.f32 1.0, %v18505_v19 }
0x2647   :  { %18506 = vrcp.f32 %v8564_v5  ;;  %v8960_v5 = vld [vmem:[#allocation3 + $0x2] sm:$0x1] }
0x2651   :  { %v18507_v9 = vpop.eup %18506 }
0x2652   :  { %v8716_v10 = vmul.f32 %v18507_v9, %v8713_v8 }
0x269e   :  { %v8482_v11 = vpop.permute.xlu0 %8481 }
0x269f   :  { %8487 = vst.msk [vmem:[#allocation5] sm:$0xff] %vm60_vm1, %v8482_v11 }
0x26a0   :  { %v8472_v13 = vpop.permute.xlu1 %8471 }
0x26a1   :  { %8477 = vst.msk [vmem:[#allocation4] sm:$0xff] %vm60_vm1, %v8472_v13 }
0x26a2   :  { %v8484_v14 = vpop.permute.xlu0 %8483 }
0x26a3   :  { %8488 = vst.msk [vmem:[#allocation5 + $0x8] sm:$0xff] %vm60_vm1, %v8484_v14 }
0x26a4   :  { %v8474_v39 = vpop.permute.xlu1 %8473 }
0x26a5   :  { %8478 = vst.msk [vmem:[#allocation4 + $0x8] sm:$0xff] %vm60_vm1, %v8474_v39 }
0x26a6   :  { %v8645_v27 = vld [vmem:[#allocation5] sm:$0x1]  ;;  %v8882_v61 = vld [vmem:[#allocation5 + $0x1] sm:$0x1] }
0x26a7   :  { %v8717_v30 = vadd.f32 %v8716_v10, %v8645_v27 }
0x26a8   :  { %v8567_v21 = vld [vmem:[#allocation4] sm:$0x1]  ;;  %v8804_v56 = vld [vmem:[#allocation4 + $0x1] sm:$0x1]  ;;  %v9041_v39 = vld [vmem:[#allocation4 + $0x2] sm:$0x1] }
0x26a9   :  { %v8638_v24 = vadd.f32 %v8634_v32, %v8567_v21 }
0x26ab   :  { %v14314_v26 = vmul.f32 -1.442695, %v8638_v24 }
0x26ad   :  { %18508 = vpow2.f32 %v14314_v26 }
0x26ae   :  { %18510 = vtanh.f32 %v8717_v30 }
0x26b7   :  { %v18509_v34 = vpop.eup %18508 }
0x26b8   :  { %v8642_v35 = vadd.f32 1.0, %v18509_v34  ;;  %v18511_v38 = vpop.eup %18510 }
0x26b9   :  { %v8719_v40 = vsub.f32 0.0, %v18511_v38 }
0x26ba   :  { %18512 = vrcp.f32 %v8642_v35 }
0x26c4   :  { %v18513_v43 = vpop.eup %18512 }
0x26c5   :  { %v8720_v28 = vmul.f32 %v18513_v43, %v8719_v40 }
0x26c7   :  { %v8721_v44 = vadd.f32 %v18511_v38, %v8720_v28  ;;  %v9119_v28 = vld [vmem:[#allocation5 + $0x2] sm:$0x1] }
0x26c9   :  { %8722 = vst.msk [vmem:[#allocation2] sm:$0x1] %vm631_vm8, %v8721_v44  ;;  %16453 = vmatmul.mubr.msk.f32.vlgmr.msra.gmra.mrb[106].mxu1 %vm60_vm1, %v8721_v44  ;;  %16464 = vmatmul.mubr.msk.f32.vlgmr.msra.gmra.mrb[106].mxu0 %vm60_vm1, %v8721_v44 }
0x26ca   :  { %17762 = vmatpush3.bf16.msra.mxu1 %v19836_v31  ;;  %16474 = vmatprep.mubr.msk.f32.mxu1 %vm18734_vm7, %v18731_v15 }
0x26cb   :  { %17763 = vmatprep.subr.bf16.mxu1 %v18732_v23  ;;  %17768 = vmatpush3.bf16.msra.mxu0 %v19815_v22 }
0x26cc   :  { %17769 = vmatprep.subr.bf16.mxu0 %v18732_v23  ;;  %16485 = vmatprep.mubr.msk.f32.mxu0 %vm18734_vm7, %v18731_v15 }
0x26ce   :  { %17765 = vmatpush3.bf16.msra.mxu1 %v19847_v37 }
0x26cf   :  { %17772 = vmatprep.subr.bf16.mxu1 %v18732_v23  ;;  %17771 = vmatpush3.bf16.msra.mxu0 %v19822_v25 }
0x26d0   :  { %17778 = vmatprep.subr.bf16.mxu0 %v18732_v23 }
0x26d1   :  { %16475 = vmatmul.mubr.msk.f32.vlgmr.msra.gmra.mrb[108].mxu1 %vm60_vm1, %v8721_v44 }
0x26d2   :  { %17774 = vmatpush3.bf16.msra.mxu1 %v19860_v41  ;;  %16496 = vmatprep.mubr.msk.f32.mxu1 %vm18734_vm7, %v18731_v15 }
0x26d3   :  { %17775 = vmatprep.subr.bf16.mxu1 %v18732_v23 }
0x26d6   :  { %17777 = vmatpush3.bf16.msra.mxu1 %v19873_v2 }
0x26d7   :  { %17784 = vmatprep.subr.bf16.mxu1 %v18732_v23 }
0x279c   :  { %v8793_v29 = vpop.f32.mrb[106].mxu1  ;;  %v8871_v47 = vpop.f32.mrb[106].mxu0 }
0x279d   :  { %v8797_v48 = vadd.f32 %v8793_v29, %v8723_v46  ;;  %v16454_v49 = vpop.f32.mrb[107].mxu1  ;;  %v16465_v50 = vpop.f32.mrb[107].mxu0  ;;  %v8875_v52 = vadd.f32 %v8871_v47, %v8804_v56 }
0x279f   :  { %v14316_v51 = vmul.f32 -1.442695, %v8797_v48  ;;  %v14318_v55 = vmul.f32 -1.442695, %v8875_v52 }
0x27a1   :  { %18514 = vpow2.f32 %v14316_v51  ;;  %v9197_v51 = vld [vmem:[#allocation3 + $0x3] sm:$0x1] }
0x27a2   :  { %18516 = vpow2.f32 %v14318_v55 }
0x27a4   :  { %v8949_v33 = vpop.f32.mrb[108].mxu1 }
0x27a5   :  { %v16476_v36 = vpop.f32.mrb[109].mxu1  ;;  %v8950_v20 = vadd.f32 %v8949_v33, %v19911_v6 }
0x27ab   :  { %v18515_v42 = vpop.eup %18514 }
0x27ac   :  { %v8801_v57 = vadd.f32 1.0, %v18515_v42  ;;  %v18517_v58 = vpop.eup %18516 }
0x27ad   :  { %v8879_v45 = vadd.f32 1.0, %v18517_v58 }
0x27ae   :  { %18518 = vrcp.f32 %v8801_v57  ;;  %v9278_v57 = vld [vmem:[#allocation4 + $0x3] sm:$0x1] }
0x27b8   :  { %v18519_v59 = vpop.eup %18518 }
0x27b9   :  { %v8953_v60 = vmul.f32 %v18519_v59, %v8950_v20 }
0x27bb   :  { %v8954_v32 = vadd.f32 %v8953_v60, %v8882_v61 }
0x27bd   :  { %18520 = vtanh.f32 %v8954_v32 }
0x27be   :  { %18522 = vrcp.f32 %v8879_v45 }
0x27c7   :  { %v18521_v62 = vpop.eup %18520 }
0x27c8   :  { %v8956_v63 = vsub.f32 %v8721_v44, %v18521_v62  ;;  %v18523_v0 = vpop.eup %18522 }
0x27ca   :  { %v8957_v1 = vmul.f32 %v18523_v0, %v8956_v63 }
0x27cc   :  { %v8958_v19 = vadd.f32 %v18521_v62, %v8957_v1  ;;  %v9356_v1 = vld [vmem:[#allocation5 + $0x3] sm:$0x1] }
0x27ce   :  { %8959 = vst.msk [vmem:[#allocation2 + $0x1] sm:$0x1] %vm631_vm8, %v8958_v19  ;;  %16486 = vmatmul.mubr.msk.f32.vlgmr.msra.gmra.mrb[108].mxu0 %vm60_vm1, %v8958_v19  ;;  %16497 = vmatmul.mubr.msk.f32.vlgmr.msra.gmra.mrb[110].mxu1 %vm60_vm1, %v8958_v19 }
0x27cf   :  { %17780 = vmatpush3.bf16.msra.mxu0 %v19836_v31  ;;  %16507 = vmatprep.mubr.msk.f32.mxu0 %vm18734_vm7, %v18731_v15 }
0x27d0   :  { %17781 = vmatprep.subr.bf16.mxu0 %v18732_v23  ;;  %17786 = vmatpush3.bf16.msra.mxu1 %v19815_v22 }
0x27d1   :  { %17787 = vmatprep.subr.bf16.mxu1 %v18732_v23  ;;  %16518 = vmatprep.mubr.msk.f32.mxu1 %vm18734_vm7, %v18731_v15 }
0x27d3   :  { %17783 = vmatpush3.bf16.msra.mxu0 %v19847_v37 }
0x27d4   :  { %17790 = vmatprep.subr.bf16.mxu0 %v18732_v23  ;;  %17789 = vmatpush3.bf16.msra.mxu1 %v19822_v25 }
0x27d5   :  { %17796 = vmatprep.subr.bf16.mxu1 %v18732_v23 }
0x27d6   :  { %16508 = vmatmul.mubr.msk.f32.vlgmr.msra.gmra.mrb[110].mxu0 %vm60_vm1, %v8958_v19 }
0x27d7   :  { %17792 = vmatpush3.bf16.msra.mxu0 %v19860_v41  ;;  %16529 = vmatprep.mubr.msk.f32.mxu0 %vm18734_vm7, %v18731_v15 }
0x27d8   :  { %17793 = vmatprep.subr.bf16.mxu0 %v18732_v23 }
0x27db   :  { %17795 = vmatpush3.bf16.msra.mxu0 %v19873_v2 }
0x27dc   :  { %17802 = vmatprep.subr.bf16.mxu0 %v18732_v23 }
0x28a1   :  { %v9030_v8 = vpop.f32.mrb[108].mxu0  ;;  %v9108_v9 = vpop.f32.mrb[110].mxu1 }
0x28a2   :  { %v9034_v10 = vadd.f32 %v9030_v8, %v8960_v5  ;;  %v16487_v11 = vpop.f32.mrb[109].mxu0  ;;  %v16498_v13 = vpop.f32.mrb[111].mxu1  ;;  %v9112_v24 = vadd.f32 %v9108_v9, %v9041_v39 }
0x28a4   :  { %v14321_v14 = vmul.f32 -1.442695, %v9034_v10  ;;  %v14323_v27 = vmul.f32 -1.442695, %v9112_v24 }
0x28a6   :  { %18524 = vpow2.f32 %v14321_v14  ;;  %v9434_v14 = vld [vmem:[#allocation3 + $0x4] sm:$0x1] }
0x28a7   :  { %18526 = vpow2.f32 %v14323_v27 }
0x28a9   :  { %v9186_v21 = vpop.f32.mrb[110].mxu0 }
0x28aa   :  { %v16509_v26 = vpop.f32.mrb[111].mxu0  ;;  %v9187_v38 = vadd.f32 %v9186_v21, %v19911_v6 }
0x28b0   :  { %v18525_v30 = vpop.eup %18524 }
0x28b1   :  { %v9038_v34 = vadd.f32 1.0, %v18525_v30  ;;  %v18527_v35 = vpop.eup %18526 }
0x28b2   :  { %v9116_v44 = vadd.f32 1.0, %v18527_v35 }
0x28b3   :  { %18528 = vrcp.f32 %v9038_v34  ;;  %v9515_v34 = vld [vmem:[#allocation4 + $0x4] sm:$0x1] }
0x28bd   :  { %v18529_v40 = vpop.eup %18528 }
0x28be   :  { %v9190_v43 = vmul.f32 %v18529_v40, %v9187_v38 }
0x28c0   :  { %v9191_v46 = vadd.f32 %v9190_v43, %v9119_v28 }
0x28c2   :  { %18530 = vtanh.f32 %v9191_v46 }
0x28c3   :  { %18532 = vrcp.f32 %v9116_v44 }
0x28cc   :  { %v18531_v29 = vpop.eup %18530 }
0x28cd   :  { %v9193_v47 = vsub.f32 %v8958_v19, %v18531_v29  ;;  %v18533_v48 = vpop.eup %18532 }
0x28cf   :  { %v9194_v49 = vmul.f32 %v18533_v48, %v9193_v47 }
0x28d1   :  { %v9195_v50 = vadd.f32 %v18531_v29, %v9194_v49  ;;  %v9593_v49 = vld [vmem:[#allocation5 + $0x4] sm:$0x1] }
0x28d3   :  { %9196 = vst.msk [vmem:[#allocation2 + $0x2] sm:$0x1] %vm631_vm8, %v9195_v50  ;;  %16519 = vmatmul.mubr.msk.f32.vlgmr.msra.gmra.mrb[112].mxu1 %vm60_vm1, %v9195_v50  ;;  %16530 = vmatmul.mubr.msk.f32.vlgmr.msra.gmra.mrb[112].mxu0 %vm60_vm1, %v9195_v50 }
0x28d4   :  { %17798 = vmatpush3.bf16.msra.mxu1 %v19836_v31  ;;  %16540 = vmatprep.mubr.msk.f32.mxu1 %vm18734_vm7, %v18731_v15 }
0x28d5   :  { %17799 = vmatprep.subr.bf16.mxu1 %v18732_v23  ;;  %17804 = vmatpush3.bf16.msra.mxu0 %v19815_v22 }
0x28d6   :  { %17805 = vmatprep.subr.bf16.mxu0 %v18732_v23  ;;  %16551 = vmatprep.mubr.msk.f32.mxu0 %vm18734_vm7, %v18731_v15 }
0x28d8   :  { %17801 = vmatpush3.bf16.msra.mxu1 %v19847_v37 }
0x28d9   :  { %17808 = vmatprep.subr.bf16.mxu1 %v18732_v23  ;;  %17807 = vmatpush3.bf16.msra.mxu0 %v19822_v25 }
0x28da   :  { %17814 = vmatprep.subr.bf16.mxu0 %v18732_v23 }
0x28db   :  { %16541 = vmatmul.mubr.msk.f32.vlgmr.msra.gmra.mrb[114].mxu1 %vm60_vm1, %v9195_v50 }
0x28dc   :  { %17810 = vmatpush3.bf16.msra.mxu1 %v19860_v41  ;;  %16562 = vmatprep.mubr.msk.f32.mxu1 %vm18734_vm7, %v18731_v15 }
0x28dd   :  { %17811 = vmatprep.subr.bf16.mxu1 %v18732_v23 }
0x28e0   :  { %17813 = vmatpush3.bf16.msra.mxu1 %v19873_v2 }
0x28e1   :  { %17820 = vmatprep.subr.bf16.mxu1 %v18732_v23 }
0x29a6   :  { %v9267_v56 = vpop.f32.mrb[112].mxu1  ;;  %v9345_v33 = vpop.f32.mrb[112].mxu0 }
0x29a7   :  { %v9271_v52 = vadd.f32 %v9267_v56, %v9197_v51  ;;  %v16520_v36 = vpop.f32.mrb[113].mxu1  ;;  %v16531_v55 = vpop.f32.mrb[113].mxu0  ;;  %v9349_v20 = vadd.f32 %v9345_v33, %v9278_v57 }
0x29a9   :  { %v14326_v42 = vmul.f32 -1.442695, %v9271_v52  ;;  %v14328_v60 = vmul.f32 -1.442695, %v9349_v20 }
0x29ab   :  { %18534 = vpow2.f32 %v14326_v42  ;;  %v9671_v42 = vld [vmem:[#allocation3 + $0x5] sm:$0x1] }
0x29ac   :  { %18536 = vpow2.f32 %v14328_v60 }
0x29ae   :  { %v9423_v58 = vpop.f32.mrb[114].mxu1 }
0x29af   :  { %v16542_v59 = vpop.f32.mrb[115].mxu1  ;;  %v9424_v62 = vadd.f32 %v9423_v58, %v19911_v6 }
0x29b5   :  { %v18535_v61 = vpop.eup %18534 }
0x29b6   :  { %v9275_v45 = vadd.f32 1.0, %v18535_v61  ;;  %v18537_v32 = vpop.eup %18536 }
0x29b7   :  { %v9353_v19 = vadd.f32 1.0, %v18537_v32 }
0x29b8   :  { %18538 = vrcp.f32 %v9275_v45  ;;  %v9752_v45 = vld [vmem:[#allocation4 + $0x5] sm:$0x1] }
0x29c2   :  { %v18539_v63 = vpop.eup %18538 }
0x29c3   :  { %v9427_v0 = vmul.f32 %v18539_v63, %v9424_v62 }
0x29c5   :  { %v9428_v5 = vadd.f32 %v9427_v0, %v9356_v1 }
0x29c7   :  { %18540 = vtanh.f32 %v9428_v5 }
0x29c8   :  { %18542 = vrcp.f32 %v9353_v19 }
0x29d1   :  { %v18541_v8 = vpop.eup %18540 }
0x29d2   :  { %v9430_v9 = vsub.f32 %v9195_v50, %v18541_v8  ;;  %v18543_v10 = vpop.eup %18542 }
0x29d4   :  { %v9431_v11 = vmul.f32 %v18543_v10, %v9430_v9 }
0x29d6   :  { %v9432_v13 = vadd.f32 %v18541_v8, %v9431_v11  ;;  %v9830_v11 = vld [vmem:[#allocation5 + $0x5] sm:$0x1] }
0x29d8   :  { %9433 = vst.msk [vmem:[#allocation2 + $0x3] sm:$0x1] %vm631_vm8, %v9432_v13  ;;  %16552 = vmatmul.mubr.msk.f32.vlgmr.msra.gmra.mrb[114].mxu0 %vm60_vm1, %v9432_v13  ;;  %16563 = vmatmul.mubr.msk.f32.vlgmr.msra.gmra.mrb[116].mxu1 %vm60_vm1, %v9432_v13 }
0x29d9   :  { %17816 = vmatpush3.bf16.msra.mxu0 %v19836_v31  ;;  %16573 = vmatprep.mubr.msk.f32.mxu0 %vm18734_vm7, %v18731_v15 }
0x29da   :  { %17817 = vmatprep.subr.bf16.mxu0 %v18732_v23  ;;  %17822 = vmatpush3.bf16.msra.mxu1 %v19815_v22 }
0x29db   :  { %17823 = vmatprep.subr.bf16.mxu1 %v18732_v23  ;;  %16584 = vmatprep.mubr.msk.f32.mxu1 %vm18734_vm7, %v18731_v15 }
0x29dd   :  { %17819 = vmatpush3.bf16.msra.mxu0 %v19847_v37 }
0x29de   :  { %17826 = vmatprep.subr.bf16.mxu0 %v18732_v23  ;;  %17825 = vmatpush3.bf16.msra.mxu1 %v19822_v25 }
0x29df   :  { %17832 = vmatprep.subr.bf16.mxu1 %v18732_v23 }
0x29e0   :  { %16574 = vmatmul.mubr.msk.f32.vlgmr.msra.gmra.mrb[116].mxu0 %vm60_vm1, %v9432_v13 }
0x29e1   :  { %17828 = vmatpush3.bf16.msra.mxu0 %v19860_v41  ;;  %16595 = vmatprep.mubr.msk.f32.mxu0 %vm18734_vm7, %v18731_v15 }
0x29e2   :  { %17829 = vmatprep.subr.bf16.mxu0 %v18732_v23 }
0x29e5   :  { %17831 = vmatpush3.bf16.msra.mxu0 %v19873_v2 }
0x29e6   :  { %17838 = vmatprep.subr.bf16.mxu0 %v18732_v23 }
0x2aab   :  { %v9504_v39 = vpop.f32.mrb[114].mxu0  ;;  %v9582_v21 = vpop.f32.mrb[116].mxu1 }
0x2aac   :  { %v9508_v24 = vadd.f32 %v9504_v39, %v9434_v14  ;;  %v16553_v26 = vpop.f32.mrb[115].mxu0  ;;  %v16564_v27 = vpop.f32.mrb[117].mxu1  ;;  %v9586_v38 = vadd.f32 %v9582_v21, %v9515_v34 }
0x2aae   :  { %v14331_v30 = vmul.f32 -1.442695, %v9508_v24  ;;  %v14333_v43 = vmul.f32 -1.442695, %v9586_v38 }
0x2ab0   :  { %18544 = vpow2.f32 %v14331_v30  ;;  %v9908_v30 = vld [vmem:[#allocation3 + $0x6] sm:$0x1] }
0x2ab1   :  { %18546 = vpow2.f32 %v14333_v43 }
0x2ab3   :  { %v9660_v35 = vpop.f32.mrb[116].mxu0 }
0x2ab4   :  { %v16575_v40 = vpop.f32.mrb[117].mxu0  ;;  %v9661_v29 = vadd.f32 %v9660_v35, %v19911_v6 }
0x2aba   :  { %v18545_v28 = vpop.eup %18544 }
0x2abb   :  { %v9512_v44 = vadd.f32 1.0, %v18545_v28  ;;  %v18547_v46 = vpop.eup %18546 }
0x2abc   :  { %v9590_v50 = vadd.f32 1.0, %v18547_v46 }
0x2abd   :  { %18548 = vrcp.f32 %v9512_v44  ;;  %v9989_v44 = vld [vmem:[#allocation4 + $0x6] sm:$0x1] }
0x2ac7   :  { %v18549_v47 = vpop.eup %18548 }
0x2ac8   :  { %v9664_v48 = vmul.f32 %v18549_v47, %v9661_v29 }
0x2aca   :  { %v9665_v51 = vadd.f32 %v9664_v48, %v9593_v49 }
0x2acc   :  { %18550 = vtanh.f32 %v9665_v51 }
0x2acd   :  { %18552 = vrcp.f32 %v9590_v50 }
0x2ad6   :  { %v18551_v56 = vpop.eup %18550 }
0x2ad7   :  { %v9667_v33 = vsub.f32 %v9432_v13, %v18551_v56  ;;  %v18553_v52 = vpop.eup %18552 }
0x2ad9   :  { %v9668_v36 = vmul.f32 %v18553_v52, %v9667_v33 }
0x2adb   :  { %v9669_v55 = vadd.f32 %v18551_v56, %v9668_v36  ;;  %v10067_v36 = vld [vmem:[#allocation5 + $0x6] sm:$0x1] }
0x2add   :  { %9670 = vst.msk [vmem:[#allocation2 + $0x4] sm:$0x1] %vm631_vm8, %v9669_v55  ;;  %16585 = vmatmul.mubr.msk.f32.vlgmr.msra.gmra.mrb[118].mxu1 %vm60_vm1, %v9669_v55  ;;  %16596 = vmatmul.mubr.msk.f32.vlgmr.msra.gmra.mrb[118].mxu0 %vm60_vm1, %v9669_v55 }
0x2ade   :  { %17834 = vmatpush3.bf16.msra.mxu1 %v19836_v31  ;;  %16606 = vmatprep.mubr.msk.f32.mxu1 %vm18734_vm7, %v18731_v15 }
0x2adf   :  { %17835 = vmatprep.subr.bf16.mxu1 %v18732_v23  ;;  %17840 = vmatpush3.bf16.msra.mxu0 %v19815_v22 }
0x2ae0   :  { %17841 = vmatprep.subr.bf16.mxu0 %v18732_v23  ;;  %16617 = vmatprep.mubr.msk.f32.mxu0 %vm18734_vm7, %v18731_v15 }
0x2ae2   :  { %17837 = vmatpush3.bf16.msra.mxu1 %v19847_v37 }
0x2ae3   :  { %17844 = vmatprep.subr.bf16.mxu1 %v18732_v23  ;;  %17843 = vmatpush3.bf16.msra.mxu0 %v19822_v25 }
0x2ae4   :  { %17850 = vmatprep.subr.bf16.mxu0 %v18732_v23 }
0x2ae5   :  { %16607 = vmatmul.mubr.msk.f32.vlgmr.msra.gmra.mrb[120].mxu1 %vm60_vm1, %v9669_v55 }
0x2ae6   :  { %17846 = vmatpush3.bf16.msra.mxu1 %v19860_v41  ;;  %16628 = vmatprep.mubr.msk.f32.mxu1 %vm18734_vm7, %v18731_v15 }
0x2ae7   :  { %17847 = vmatprep.subr.bf16.mxu1 %v18732_v23 }
0x2aea   :  { %17849 = vmatpush3.bf16.msra.mxu1 %v19873_v2 }
0x2aeb   :  { %17856 = vmatprep.subr.bf16.mxu1 %v18732_v23 }
0x2bb0   :  { %v9741_v57 = vpop.f32.mrb[118].mxu1  ;;  %v9819_v58 = vpop.f32.mrb[118].mxu0 }
0x2bb1   :  { %v9745_v20 = vadd.f32 %v9741_v57, %v9671_v42  ;;  %v16586_v59 = vpop.f32.mrb[119].mxu1  ;;  %v16597_v60 = vpop.f32.mrb[119].mxu0  ;;  %v9823_v62 = vadd.f32 %v9819_v58, %v9752_v45 }
0x2bb3   :  { %v14336_v61 = vmul.f32 -1.442695, %v9745_v20  ;;  %v14338_v0 = vmul.f32 -1.442695, %v9823_v62 }
0x2bb5   :  { %18554 = vpow2.f32 %v14336_v61  ;;  %v10145_v61 = vld [vmem:[#allocation3 + $0x7] sm:$0x1] }
0x2bb6   :  { %18556 = vpow2.f32 %v14338_v0 }
0x2bb8   :  { %v9897_v32 = vpop.f32.mrb[120].mxu1 }
0x2bb9   :  { %v16608_v63 = vpop.f32.mrb[121].mxu1  ;;  %v9898_v8 = vadd.f32 %v9897_v32, %v19911_v6 }
0x2bbf   :  { %v18555_v1 = vpop.eup %18554 }
0x2bc0   :  { %v9749_v19 = vadd.f32 1.0, %v18555_v1  ;;  %v18557_v5 = vpop.eup %18556 }
0x2bc1   :  { %v9827_v13 = vadd.f32 1.0, %v18557_v5 }
0x2bc2   :  { %18558 = vrcp.f32 %v9749_v19  ;;  %v10226_v19 = vld [vmem:[#allocation4 + $0x7] sm:$0x1] }
0x2bcc   :  { %v18559_v9 = vpop.eup %18558 }
0x2bcd   :  { %v9901_v10 = vmul.f32 %v18559_v9, %v9898_v8 }
0x2bcf   :  { %v9902_v14 = vadd.f32 %v9901_v10, %v9830_v11 }
0x2bd1   :  { %18560 = vtanh.f32 %v9902_v14 }
0x2bd2   :  { %18562 = vrcp.f32 %v9827_v13 }
0x2bdb   :  { %v18561_v39 = vpop.eup %18560 }
0x2bdc   :  { %v9904_v21 = vsub.f32 %v9669_v55, %v18561_v39  ;;  %v18563_v24 = vpop.eup %18562 }
0x2bde   :  { %v9905_v26 = vmul.f32 %v18563_v24, %v9904_v21 }
0x2be0   :  { %v9906_v27 = vadd.f32 %v18561_v39, %v9905_v26  ;;  %v10304_v26 = vld [vmem:[#allocation5 + $0x7] sm:$0x1] }
0x2be2   :  { %9907 = vst.msk [vmem:[#allocation2 + $0x5] sm:$0x1] %vm631_vm8, %v9906_v27  ;;  %16618 = vmatmul.mubr.msk.f32.vlgmr.msra.gmra.mrb[120].mxu0 %vm60_vm1, %v9906_v27  ;;  %16629 = vmatmul.mubr.msk.f32.vlgmr.msra.gmra.mrb[122].mxu1 %vm60_vm1, %v9906_v27 }
0x2be3   :  { %17852 = vmatpush3.bf16.msra.mxu0 %v19836_v31  ;;  %16639 = vmatprep.mubr.msk.f32.mxu0 %vm18734_vm7, %v18731_v15 }
0x2be4   :  { %17853 = vmatprep.subr.bf16.mxu0 %v18732_v23  ;;  %17858 = vmatpush3.bf16.msra.mxu1 %v19815_v22 }
0x2be5   :  { %17859 = vmatprep.subr.bf16.mxu1 %v18732_v23  ;;  %16650 = vmatprep.mubr.msk.f32.mxu1 %vm18734_vm7, %v18731_v15 }
0x2be7   :  { %17855 = vmatpush3.bf16.msra.mxu0 %v19847_v37 }
0x2be8   :  { %17862 = vmatprep.subr.bf16.mxu0 %v18732_v23  ;;  %17861 = vmatpush3.bf16.msra.mxu1 %v19822_v25 }
0x2be9   :  { %17868 = vmatprep.subr.bf16.mxu1 %v18732_v23 }
0x2bea   :  { %16640 = vmatmul.mubr.msk.f32.vlgmr.msra.gmra.mrb[122].mxu0 %vm60_vm1, %v9906_v27 }
0x2beb   :  { %17864 = vmatpush3.bf16.msra.mxu0 %v19860_v41  ;;  %16661 = vmatprep.mubr.msk.f32.mxu0 %vm18734_vm7, %v18731_v15 }
0x2bec   :  { %17865 = vmatprep.subr.bf16.mxu0 %v18732_v23 }
0x2bef   :  { %17867 = vmatpush3.bf16.msra.mxu0 %v19873_v2 }
0x2bf0   :  { %17874 = vmatprep.subr.bf16.mxu0 %v18732_v23 }
0x2cb5   :  { %v9978_v34 = vpop.f32.mrb[120].mxu0  ;;  %v10056_v35 = vpop.f32.mrb[122].mxu1 }
0x2cb6   :  { %v9982_v38 = vadd.f32 %v9978_v34, %v9908_v30  ;;  %v16619_v40 = vpop.f32.mrb[121].mxu0  ;;  %v16630_v43 = vpop.f32.mrb[123].mxu1  ;;  %v10060_v29 = vadd.f32 %v10056_v35, %v9989_v44 }
0x2cb8   :  { %v14341_v28 = vmul.f32 -1.442695, %v9982_v38  ;;  %v14343_v48 = vmul.f32 -1.442695, %v10060_v29 }
0x2cba   :  { %18564 = vpow2.f32 %v14341_v28  ;;  %v10382_v28 = vld [vmem:[#allocation3 + $0x8] sm:$0x1] }
0x2cbb   :  { %18566 = vpow2.f32 %v14343_v48 }
0x2cbd   :  { %v10134_v46 = vpop.f32.mrb[122].mxu0 }
0x2cbe   :  { %v16641_v47 = vpop.f32.mrb[123].mxu0  ;;  %v10135_v56 = vadd.f32 %v10134_v46, %v19911_v6 }
0x2cc4   :  { %v18565_v49 = vpop.eup %18564 }
0x2cc5   :  { %v9986_v50 = vadd.f32 1.0, %v18565_v49  ;;  %v18567_v51 = vpop.eup %18566 }
0x2cc6   :  { %v10064_v55 = vadd.f32 1.0, %v18567_v51 }
0x2cc7   :  { %18568 = vrcp.f32 %v9986_v50  ;;  %v10463_v50 = vld [vmem:[#allocation4 + $0x8] sm:$0x1] }
0x2cd1   :  { %v18569_v33 = vpop.eup %18568 }
0x2cd2   :  { %v10138_v52 = vmul.f32 %v18569_v33, %v10135_v56 }
0x2cd4   :  { %v10139_v42 = vadd.f32 %v10138_v52, %v10067_v36 }
0x2cd6   :  { %18570 = vtanh.f32 %v10139_v42 }
0x2cd7   :  { %18572 = vrcp.f32 %v10064_v55 }
0x2ce0   :  { %v18571_v57 = vpop.eup %18570 }
0x2ce1   :  { %v10141_v58 = vsub.f32 %v9906_v27, %v18571_v57  ;;  %v18573_v20 = vpop.eup %18572 }
0x2ce3   :  { %v10142_v59 = vmul.f32 %v18573_v20, %v10141_v58 }
0x2ce5   :  { %v10143_v60 = vadd.f32 %v18571_v57, %v10142_v59  ;;  %v10541_v59 = vld [vmem:[#allocation5 + $0x8] sm:$0x1] }
0x2ce7   :  { %10144 = vst.msk [vmem:[#allocation2 + $0x6] sm:$0x1] %vm631_vm8, %v10143_v60  ;;  %16651 = vmatmul.mubr.msk.f32.vlgmr.msra.gmra.mrb[124].mxu1 %vm60_vm1, %v10143_v60  ;;  %16662 = vmatmul.mubr.msk.f32.vlgmr.msra.gmra.mrb[124].mxu0 %vm60_vm1, %v10143_v60 }
0x2ce8   :  { %17870 = vmatpush3.bf16.msra.mxu1 %v19836_v31  ;;  %16672 = vmatprep.mubr.msk.f32.mxu1 %vm18734_vm7, %v18731_v15 }
0x2ce9   :  { %17871 = vmatprep.subr.bf16.mxu1 %v18732_v23  ;;  %17876 = vmatpush3.bf16.msra.mxu0 %v19815_v22 }
0x2cea   :  { %17877 = vmatprep.subr.bf16.mxu0 %v18732_v23  ;;  %16683 = vmatprep.mubr.msk.f32.mxu0 %vm18734_vm7, %v18731_v15 }
0x2cec   :  { %17873 = vmatpush3.bf16.msra.mxu1 %v19847_v37 }
0x2ced   :  { %17880 = vmatprep.subr.bf16.mxu1 %v18732_v23  ;;  %17879 = vmatpush3.bf16.msra.mxu0 %v19822_v25 }
0x2cee   :  { %17886 = vmatprep.subr.bf16.mxu0 %v18732_v23 }
0x2cef   :  { %16673 = vmatmul.mubr.msk.f32.vlgmr.msra.gmra.mrb[126].mxu1 %vm60_vm1, %v10143_v60 }
0x2cf0   :  { %17882 = vmatpush3.bf16.msra.mxu1 %v19860_v41  ;;  %16694 = vmatprep.mubr.msk.f32.mxu1 %vm18734_vm7, %v18731_v15 }
0x2cf1   :  { %17883 = vmatprep.subr.bf16.mxu1 %v18732_v23 }
0x2cf4   :  { %17885 = vmatpush3.bf16.msra.mxu1 %v19873_v2 }
0x2cf5   :  { %17892 = vmatprep.subr.bf16.mxu1 %v18732_v23 }
0x2dba   :  { %v10215_v45 = vpop.f32.mrb[124].mxu1  ;;  %v10293_v32 = vpop.f32.mrb[124].mxu0 }
0x2dbb   :  { %v10219_v62 = vadd.f32 %v10215_v45, %v10145_v61  ;;  %v16652_v63 = vpop.f32.mrb[125].mxu1  ;;  %v16663_v0 = vpop.f32.mrb[125].mxu0  ;;  %v10297_v8 = vadd.f32 %v10293_v32, %v10226_v19 }
0x2dbd   :  { %v14346_v1 = vmul.f32 -1.442695, %v10219_v62  ;;  %v14348_v10 = vmul.f32 -1.442695, %v10297_v8 }
0x2dbf   :  { %18574 = vpow2.f32 %v14346_v1  ;;  %v10619_v1 = vld [vmem:[#allocation3 + $0x9] sm:$0x1] }
0x2dc0   :  { %18576 = vpow2.f32 %v14348_v10 }
0x2dc2   :  { %v10371_v5 = vpop.f32.mrb[126].mxu1 }
0x2dc3   :  { %v16674_v9 = vpop.f32.mrb[127].mxu1  ;;  %v10372_v39 = vadd.f32 %v10371_v5, %v19911_v6 }
0x2dc9   :  { %v18575_v11 = vpop.eup %18574 }
0x2dca   :  { %v10223_v13 = vadd.f32 1.0, %v18575_v11  ;;  %v18577_v14 = vpop.eup %18576 }
0x2dcb   :  { %v10301_v27 = vadd.f32 1.0, %v18577_v14 }
0x2dcc   :  { %18578 = vrcp.f32 %v10223_v13  ;;  %v10700_v13 = vld [vmem:[#allocation4 + $0x9] sm:$0x1] }
0x2dd6   :  { %v18579_v21 = vpop.eup %18578 }
0x2dd7   :  { %v10375_v24 = vmul.f32 %v18579_v21, %v10372_v39 }
0x2dd9   :  { %v10376_v30 = vadd.f32 %v10375_v24, %v10304_v26 }
0x2ddb   :  { %18580 = vtanh.f32 %v10376_v30 }
0x2ddc   :  { %18582 = vrcp.f32 %v10301_v27 }
0x2de5   :  { %v18581_v34 = vpop.eup %18580 }
0x2de6   :  { %v10378_v35 = vsub.f32 %v10143_v60, %v18581_v34  ;;  %v18583_v38 = vpop.eup %18582 }
0x2de8   :  { %v10379_v40 = vmul.f32 %v18583_v38, %v10378_v35 }
0x2dea   :  { %v10380_v43 = vadd.f32 %v18581_v34, %v10379_v40  ;;  %v10778_v40 = vld [vmem:[#allocation5 + $0x9] sm:$0x1] }
0x2dec   :  { %10381 = vst.msk [vmem:[#allocation2 + $0x7] sm:$0x1] %vm631_vm8, %v10380_v43  ;;  %16684 = vmatmul.mubr.msk.f32.vlgmr.msra.gmra.mrb[126].mxu0 %vm60_vm1, %v10380_v43  ;;  %16695 = vmatmul.mubr.msk.f32.vlgmr.msra.gmra.mrb[128].mxu1 %vm60_vm1, %v10380_v43 }
0x2ded   :  { %17888 = vmatpush3.bf16.msra.mxu0 %v19836_v31  ;;  %16705 = vmatprep.mubr.msk.f32.mxu0 %vm18734_vm7, %v18731_v15 }
0x2dee   :  { %17889 = vmatprep.subr.bf16.mxu0 %v18732_v23  ;;  %17894 = vmatpush3.bf16.msra.mxu1 %v19815_v22 }
0x2def   :  { %17895 = vmatprep.subr.bf16.mxu1 %v18732_v23  ;;  %16716 = vmatprep.mubr.msk.f32.mxu1 %vm18734_vm7, %v18731_v15 }
0x2df1   :  { %17891 = vmatpush3.bf16.msra.mxu0 %v19847_v37 }
0x2df2   :  { %17898 = vmatprep.subr.bf16.mxu0 %v18732_v23  ;;  %17897 = vmatpush3.bf16.msra.mxu1 %v19822_v25 }
0x2df3   :  { %17904 = vmatprep.subr.bf16.mxu1 %v18732_v23 }
0x2df4   :  { %16706 = vmatmul.mubr.msk.f32.vlgmr.msra.gmra.mrb[128].mxu0 %vm60_vm1, %v10380_v43 }
0x2df5   :  { %17900 = vmatpush3.bf16.msra.mxu0 %v19860_v41  ;;  %16727 = vmatprep.mubr.msk.f32.mxu0 %vm18734_vm7, %v18731_v15 }
0x2df6   :  { %17901 = vmatprep.subr.bf16.mxu0 %v18732_v23 }
0x2df9   :  { %17903 = vmatpush3.bf16.msra.mxu0 %v19873_v2 }
0x2dfa   :  { %17910 = vmatprep.subr.bf16.mxu0 %v18732_v23 }
0x2ebf   :  { %v10452_v44 = vpop.f32.mrb[126].mxu0  ;;  %v10530_v46 = vpop.f32.mrb[128].mxu1 }
0x2ec0   :  { %v10456_v29 = vadd.f32 %v10452_v44, %v10382_v28  ;;  %v16685_v47 = vpop.f32.mrb[127].mxu0  ;;  %v16696_v48 = vpop.f32.mrb[129].mxu1  ;;  %v10534_v56 = vadd.f32 %v10530_v46, %v10463_v50 }
0x2ec2   :  { %v14351_v49 = vmul.f32 -1.442695, %v10456_v29  ;;  %v14353_v52 = vmul.f32 -1.442695, %v10534_v56 }
0x2ec4   :  { %18584 = vpow2.f32 %v14351_v49 }
0x2ec5   :  { %18586 = vpow2.f32 %v14353_v52 }
0x2ec7   :  { %v10608_v51 = vpop.f32.mrb[128].mxu0 }
0x2ec8   :  { %v16707_v33 = vpop.f32.mrb[129].mxu0  ;;  %v10609_v57 = vadd.f32 %v10608_v51, %v19911_v6 }
0x2ece   :  { %v18585_v36 = vpop.eup %18584 }
0x2ecf   :  { %v10460_v55 = vadd.f32 1.0, %v18585_v36  ;;  %v18587_v42 = vpop.eup %18586  ;;  %v10937_v36 = vld [vmem:[#allocation4 + $0xa] sm:$0x1] }
0x2ed0   :  { %v10538_v60 = vadd.f32 1.0, %v18587_v42 }
0x2ed1   :  { %18588 = vrcp.f32 %v10460_v55 }
0x2edb   :  { %v18589_v58 = vpop.eup %18588 }
0x2edc   :  { %v10612_v20 = vmul.f32 %v18589_v58, %v10609_v57 }
0x2ede   :  { %v10613_v61 = vadd.f32 %v10612_v20, %v10541_v59 }
0x2ee0   :  { %18590 = vtanh.f32 %v10613_v61  ;;  %v20150_v61 = vld [vmem:[%s20537_s2 + $0xd] sm:$0x1] }
0x2ee1   :  { %18592 = vrcp.f32 %v10538_v60 }
0x2eea   :  { %v18591_v45 = vpop.eup %18590 }
0x2eeb   :  { %v10615_v32 = vsub.f32 %v10380_v43, %v18591_v45  ;;  %v18593_v62 = vpop.eup %18592 }
0x2eed   :  { %v10616_v63 = vmul.f32 %v18593_v62, %v10615_v32 }
0x2eef   :  { %v10617_v0 = vadd.f32 %v18591_v45, %v10616_v63  ;;  %v11015_v63 = vld [vmem:[#allocation5 + $0xa] sm:$0x1] }
0x2ef1   :  { %10618 = vst.msk [vmem:[#allocation2 + $0x8] sm:$0x1] %vm631_vm8, %v10617_v0  ;;  %16717 = vmatmul.mubr.msk.f32.vlgmr.msra.gmra.mrb[130].mxu1 %vm60_vm1, %v10617_v0  ;;  %16728 = vmatmul.mubr.msk.f32.vlgmr.msra.gmra.mrb[130].mxu0 %vm60_vm1, %v10617_v0 }
0x2ef2   :  { %17906 = vmatpush3.bf16.msra.mxu1 %v19836_v31  ;;  %16738 = vmatprep.mubr.msk.f32.mxu1 %vm18734_vm7, %v18731_v15 }
0x2ef3   :  { %17907 = vmatprep.subr.bf16.mxu1 %v18732_v23  ;;  %17912 = vmatpush3.bf16.msra.mxu0 %v19815_v22 }
0x2ef4   :  { %17913 = vmatprep.subr.bf16.mxu0 %v18732_v23  ;;  %16749 = vmatprep.mubr.msk.f32.mxu0 %vm18734_vm7, %v18731_v15 }
0x2ef6   :  { %17909 = vmatpush3.bf16.msra.mxu1 %v19847_v37 }
0x2ef7   :  { %17916 = vmatprep.subr.bf16.mxu1 %v18732_v23  ;;  %17915 = vmatpush3.bf16.msra.mxu0 %v19822_v25 }
0x2ef8   :  { %17922 = vmatprep.subr.bf16.mxu0 %v18732_v23 }
0x2ef9   :  { %16739 = vmatmul.mubr.msk.f32.vlgmr.msra.gmra.mrb[132].mxu1 %vm60_vm1, %v10617_v0 }
0x2efa   :  { %17918 = vmatpush3.bf16.msra.mxu1 %v19860_v41  ;;  %16760 = vmatprep.mubr.msk.f32.mxu1 %vm18734_vm7, %v18731_v15 }
0x2efb   :  { %17919 = vmatprep.subr.bf16.mxu1 %v18732_v23 }
0x2efe   :  { %17921 = vmatpush3.bf16.msra.mxu1 %v19873_v2 }
0x2eff   :  { %17928 = vmatprep.subr.bf16.mxu1 %v18732_v23 }
0x2fc4   :  { %v10689_v19 = vpop.f32.mrb[130].mxu1  ;;  %v10767_v5 = vpop.f32.mrb[130].mxu0 }
0x2fc5   :  { %v10693_v8 = vadd.f32 %v10689_v19, %v10619_v1  ;;  %v16718_v9 = vpop.f32.mrb[131].mxu1  ;;  %v16729_v10 = vpop.f32.mrb[131].mxu0  ;;  %v10771_v39 = vadd.f32 %v10767_v5, %v10700_v13 }
0x2fc7   :  { %v14356_v11 = vmul.f32 -1.442695, %v10693_v8  ;;  %v14358_v24 = vmul.f32 -1.442695, %v10771_v39 }
0x2fc9   :  { %18594 = vpow2.f32 %v14356_v11  ;;  %v11093_v11 = vld [vmem:[#allocation3 + $0xb] sm:$0x1] }
0x2fca   :  { %18596 = vpow2.f32 %v14358_v24 }
0x2fcc   :  { %v10845_v14 = vpop.f32.mrb[132].mxu1 }
0x2fcd   :  { %v16740_v21 = vpop.f32.mrb[133].mxu1  ;;  %v10846_v34 = vadd.f32 %v10845_v14, %v19911_v6  ;;  %v10856_v6 = vld [vmem:[#allocation3 + $0xa] sm:$0x1] }
0x2fd3   :  { %v18595_v26 = vpop.eup %18594 }
0x2fd4   :  { %v10697_v27 = vadd.f32 1.0, %v18595_v26  ;;  %v18597_v30 = vpop.eup %18596 }
0x2fd5   :  { %v10775_v43 = vadd.f32 1.0, %v18597_v30 }
0x2fd6   :  { %18598 = vrcp.f32 %v10697_v27  ;;  %v11174_v27 = vld [vmem:[#allocation4 + $0xb] sm:$0x1] }
0x2fe0   :  { %v18599_v35 = vpop.eup %18598 }
0x2fe1   :  { %v10849_v38 = vmul.f32 %v18599_v35, %v10846_v34 }
0x2fe3   :  { %v10850_v28 = vadd.f32 %v10849_v38, %v10778_v40 }
0x2fe5   :  { %18600 = vtanh.f32 %v10850_v28 }
0x2fe6   :  { %18602 = vrcp.f32 %v10775_v43 }
0x2fef   :  { %v18601_v44 = vpop.eup %18600 }
0x2ff0   :  { %v10852_v46 = vsub.f32 %v10617_v0, %v18601_v44  ;;  %v18603_v29 = vpop.eup %18602 }
0x2ff2   :  { %v10853_v47 = vmul.f32 %v18603_v29, %v10852_v46 }
0x2ff4   :  { %v10854_v48 = vadd.f32 %v18601_v44, %v10853_v47  ;;  %v11252_v47 = vld [vmem:[#allocation5 + $0xb] sm:$0x1] }
0x2ff6   :  { %10855 = vst.msk [vmem:[#allocation2 + $0x9] sm:$0x1] %vm631_vm8, %v10854_v48  ;;  %16750 = vmatmul.mubr.msk.f32.vlgmr.msra.gmra.mrb[132].mxu0 %vm60_vm1, %v10854_v48  ;;  %16761 = vmatmul.mubr.msk.f32.vlgmr.msra.gmra.mrb[134].mxu1 %vm60_vm1, %v10854_v48 }
0x2ff7   :  { %17924 = vmatpush3.bf16.msra.mxu0 %v19836_v31  ;;  %16771 = vmatprep.mubr.msk.f32.mxu0 %vm18734_vm7, %v18731_v15 }
0x2ff8   :  { %17925 = vmatprep.subr.bf16.mxu0 %v18732_v23  ;;  %17930 = vmatpush3.bf16.msra.mxu1 %v19815_v22 }
0x2ff9   :  { %17931 = vmatprep.subr.bf16.mxu1 %v18732_v23  ;;  %16782 = vmatprep.mubr.msk.f32.mxu1 %vm18734_vm7, %v18731_v15 }
0x2ffb   :  { %17927 = vmatpush3.bf16.msra.mxu0 %v19847_v37 }
0x2ffc   :  { %17934 = vmatprep.subr.bf16.mxu0 %v18732_v23  ;;  %17933 = vmatpush3.bf16.msra.mxu1 %v19822_v25 }
0x2ffd   :  { %17940 = vmatprep.subr.bf16.mxu1 %v18732_v23 }
0x2ffe   :  { %16772 = vmatmul.mubr.msk.f32.vlgmr.msra.gmra.mrb[134].mxu0 %vm60_vm1, %v10854_v48 }
0x2fff   :  { %17936 = vmatpush3.bf16.msra.mxu0 %v19860_v41  ;;  %16793 = vmatprep.mubr.msk.f32.mxu0 %vm18734_vm7, %v18731_v15 }
0x3000   :  { %17937 = vmatprep.subr.bf16.mxu0 %v18732_v23 }
0x3003   :  { %17939 = vmatpush3.bf16.msra.mxu0 %v19873_v2 }
0x3004   :  { %17946 = vmatprep.subr.bf16.mxu0 %v18732_v23 }
0x30c9   :  { %v10926_v49 = vpop.f32.mrb[132].mxu0  ;;  %v11004_v50 = vpop.f32.mrb[134].mxu1 }
0x30ca   :  { %v10930_v51 = vadd.f32 %v10926_v49, %v10856_v6  ;;  %v16751_v56 = vpop.f32.mrb[133].mxu0  ;;  %v16762_v33 = vpop.f32.mrb[135].mxu1  ;;  %v11008_v42 = vadd.f32 %v11004_v50, %v10937_v36 }
0x30cc   :  { %v14361_v52 = vmul.f32 -1.442695, %v10930_v51  ;;  %v14363_v58 = vmul.f32 -1.442695, %v11008_v42 }
0x30ce   :  { %18604 = vpow2.f32 %v14361_v52  ;;  %v11330_v52 = vld [vmem:[#allocation3 + $0xc] sm:$0x1] }
0x30cf   :  { %18606 = vpow2.f32 %v14363_v58 }
0x30d1   :  { %v11082_v55 = vpop.f32.mrb[134].mxu0 }
0x30d2   :  { %v16773_v57 = vpop.f32.mrb[135].mxu0  ;;  %v11083_v45 = vadd.f32 %v20150_v61, %v11082_v55 }
0x30d8   :  { %v18605_v20 = vpop.eup %18604 }
0x30d9   :  { %v10934_v59 = vadd.f32 1.0, %v18605_v20  ;;  %v18607_v60 = vpop.eup %18606 }
0x30da   :  { %v11012_v0 = vadd.f32 1.0, %v18607_v60 }
0x30db   :  { %18608 = vrcp.f32 %v10934_v59  ;;  %v11411_v59 = vld [vmem:[#allocation4 + $0xc] sm:$0x1] }
0x30e5   :  { %v18609_v32 = vpop.eup %18608 }
0x30e6   :  { %v11086_v62 = vmul.f32 %v18609_v32, %v11083_v45 }
0x30e8   :  { %v11087_v1 = vadd.f32 %v11086_v62, %v11015_v63 }
0x30ea   :  { %18610 = vtanh.f32 %v11087_v1 }
0x30eb   :  { %18612 = vrcp.f32 %v11012_v0 }
0x30f4   :  { %v18611_v19 = vpop.eup %18610 }
0x30f5   :  { %v11089_v5 = vsub.f32 %v10854_v48, %v18611_v19  ;;  %v18613_v8 = vpop.eup %18612 }
0x30f7   :  { %v11090_v9 = vmul.f32 %v18613_v8, %v11089_v5 }
0x30f9   :  { %v11091_v10 = vadd.f32 %v18611_v19, %v11090_v9  ;;  %v11489_v9 = vld [vmem:[#allocation5 + $0xc] sm:$0x1] }
0x30fb   :  { %11092 = vst.msk [vmem:[#allocation2 + $0xa] sm:$0x1] %vm631_vm8, %v11091_v10  ;;  %16783 = vmatmul.mubr.msk.f32.vlgmr.msra.gmra.mrb[136].mxu1 %vm60_vm1, %v11091_v10  ;;  %16794 = vmatmul.mubr.msk.f32.vlgmr.msra.gmra.mrb[136].mxu0 %vm60_vm1, %v11091_v10 }
0x30fc   :  { %17942 = vmatpush3.bf16.msra.mxu1 %v19836_v31  ;;  %16804 = vmatprep.mubr.msk.f32.mxu1 %vm18734_vm7, %v18731_v15 }
0x30fd   :  { %17943 = vmatprep.subr.bf16.mxu1 %v18732_v23  ;;  %17948 = vmatpush3.bf16.msra.mxu0 %v19815_v22 }
0x30fe   :  { %17949 = vmatprep.subr.bf16.mxu0 %v18732_v23  ;;  %16815 = vmatprep.mubr.msk.f32.mxu0 %vm18734_vm7, %v18731_v15 }
0x3100   :  { %17945 = vmatpush3.bf16.msra.mxu1 %v19847_v37 }
0x3101   :  { %17952 = vmatprep.subr.bf16.mxu1 %v18732_v23  ;;  %17951 = vmatpush3.bf16.msra.mxu0 %v19822_v25 }
0x3102   :  { %17958 = vmatprep.subr.bf16.mxu0 %v18732_v23 }
0x3103   :  { %16805 = vmatmul.mubr.msk.f32.vlgmr.msra.gmra.mrb[138].mxu1 %vm60_vm1, %v11091_v10 }
0x3104   :  { %17954 = vmatpush3.bf16.msra.mxu1 %v19860_v41  ;;  %16826 = vmatprep.mubr.msk.f32.mxu1 %vm18734_vm7, %v18731_v15 }
0x3105   :  { %17955 = vmatprep.subr.bf16.mxu1 %v18732_v23 }
0x3108   :  { %17957 = vmatpush3.bf16.msra.mxu1 %v19873_v2 }
0x3109   :  { %17964 = vmatprep.subr.bf16.mxu1 %v18732_v23 }
0x31ce   :  { %v11163_v13 = vpop.f32.mrb[136].mxu1  ;;  %v11241_v14 = vpop.f32.mrb[136].mxu0 }
0x31cf   :  { %v11167_v39 = vadd.f32 %v11163_v13, %v11093_v11  ;;  %v16784_v21 = vpop.f32.mrb[137].mxu1  ;;  %v16795_v24 = vpop.f32.mrb[137].mxu0  ;;  %v11245_v34 = vadd.f32 %v11241_v14, %v11174_v27 }
0x31d1   :  { %v14366_v26 = vmul.f32 -1.442695, %v11167_v39  ;;  %v14368_v38 = vmul.f32 -1.442695, %v11245_v34 }
0x31d3   :  { %18614 = vpow2.f32 %v14366_v26  ;;  %v11567_v26 = vld [vmem:[#allocation3 + $0xd] sm:$0x1] }
0x31d4   :  { %18616 = vpow2.f32 %v14368_v38 }
0x31d6   :  { %v11319_v30 = vpop.f32.mrb[138].mxu1 }
0x31d7   :  { %v16806_v35 = vpop.f32.mrb[139].mxu1  ;;  %v11320_v44 = vadd.f32 %v20150_v61, %v11319_v30 }
0x31dd   :  { %v18615_v40 = vpop.eup %18614 }
0x31de   :  { %v11171_v43 = vadd.f32 1.0, %v18615_v40  ;;  %v18617_v28 = vpop.eup %18616 }
0x31df   :  { %v11249_v48 = vadd.f32 1.0, %v18617_v28 }
0x31e0   :  { %18618 = vrcp.f32 %v11171_v43  ;;  %v11648_v43 = vld [vmem:[#allocation4 + $0xd] sm:$0x1] }
0x31ea   :  { %v18619_v46 = vpop.eup %18618 }
0x31eb   :  { %v11323_v29 = vmul.f32 %v18619_v46, %v11320_v44 }
0x31ed   :  { %v11324_v6 = vadd.f32 %v11323_v29, %v11252_v47 }
0x31ef   :  { %18620 = vtanh.f32 %v11324_v6 }
0x31f0   :  { %18622 = vrcp.f32 %v11249_v48 }
0x31f9   :  { %v18621_v49 = vpop.eup %18620 }
0x31fa   :  { %v11326_v50 = vsub.f32 %v11091_v10, %v18621_v49  ;;  %v18623_v51 = vpop.eup %18622 }
0x31fc   :  { %v11327_v56 = vmul.f32 %v18623_v51, %v11326_v50 }
0x31fe   :  { %v11328_v33 = vadd.f32 %v18621_v49, %v11327_v56  ;;  %v11726_v56 = vld [vmem:[#allocation5 + $0xd] sm:$0x1] }
0x3200   :  { %11329 = vst.msk [vmem:[#allocation2 + $0xb] sm:$0x1] %vm631_vm8, %v11328_v33  ;;  %16816 = vmatmul.mubr.msk.f32.vlgmr.msra.gmra.mrb[138].mxu0 %vm60_vm1, %v11328_v33  ;;  %16827 = vmatmul.mubr.msk.f32.vlgmr.msra.gmra.mrb[140].mxu1 %vm60_vm1, %v11328_v33 }
0x3201   :  { %17960 = vmatpush3.bf16.msra.mxu0 %v19836_v31  ;;  %16837 = vmatprep.mubr.msk.f32.mxu0 %vm18734_vm7, %v18731_v15 }
0x3202   :  { %17961 = vmatprep.subr.bf16.mxu0 %v18732_v23  ;;  %17966 = vmatpush3.bf16.msra.mxu1 %v19815_v22 }
0x3203   :  { %17967 = vmatprep.subr.bf16.mxu1 %v18732_v23  ;;  %16848 = vmatprep.mubr.msk.f32.mxu1 %vm18734_vm7, %v18731_v15 }
0x3205   :  { %17963 = vmatpush3.bf16.msra.mxu0 %v19847_v37 }
0x3206   :  { %17970 = vmatprep.subr.bf16.mxu0 %v18732_v23  ;;  %17969 = vmatpush3.bf16.msra.mxu1 %v19822_v25 }
0x3207   :  { %17976 = vmatprep.subr.bf16.mxu1 %v18732_v23 }
0x3208   :  { %16838 = vmatmul.mubr.msk.f32.vlgmr.msra.gmra.mrb[140].mxu0 %vm60_vm1, %v11328_v33 }
0x3209   :  { %17972 = vmatpush3.bf16.msra.mxu0 %v19860_v41  ;;  %16859 = vmatprep.mubr.msk.f32.mxu0 %vm18734_vm7, %v18731_v15 }
0x320a   :  { %17973 = vmatprep.subr.bf16.mxu0 %v18732_v23 }
0x320d   :  { %17975 = vmatpush3.bf16.msra.mxu0 %v19873_v2 }
0x320e   :  { %17982 = vmatprep.subr.bf16.mxu0 %v18732_v23 }
0x32d3   :  { %v11400_v36 = vpop.f32.mrb[138].mxu0  ;;  %v11478_v55 = vpop.f32.mrb[140].mxu1 }
0x32d4   :  { %v11404_v42 = vadd.f32 %v11400_v36, %v11330_v52  ;;  %v16817_v57 = vpop.f32.mrb[139].mxu0  ;;  %v16828_v58 = vpop.f32.mrb[141].mxu1  ;;  %v11482_v45 = vadd.f32 %v11478_v55, %v11411_v59 }
0x32d6   :  { %v14371_v20 = vmul.f32 -1.442695, %v11404_v42  ;;  %v14373_v62 = vmul.f32 -1.442695, %v11482_v45 }
0x32d8   :  { %18624 = vpow2.f32 %v14371_v20 }
0x32d9   :  { %18626 = vpow2.f32 %v14373_v62  ;;  %v11885_v62 = vld [vmem:[#allocation4 + $0xe] sm:$0x1] }
0x32db   :  { %v11556_v60 = vpop.f32.mrb[140].mxu0 }
0x32dc   :  { %v16839_v32 = vpop.f32.mrb[141].mxu0  ;;  %v11557_v19 = vadd.f32 %v20150_v61, %v11556_v60 }
0x32e2   :  { %v18625_v63 = vpop.eup %18624 }
0x32e3   :  { %v11408_v0 = vadd.f32 1.0, %v18625_v63  ;;  %v18627_v1 = vpop.eup %18626 }
0x32e4   :  { %v11486_v10 = vadd.f32 1.0, %v18627_v1 }
0x32e5   :  { %18628 = vrcp.f32 %v11408_v0 }
0x32ef   :  { %v18629_v5 = vpop.eup %18628 }
0x32f0   :  { %v11560_v8 = vmul.f32 %v18629_v5, %v11557_v19 }
0x32f2   :  { %v11561_v11 = vadd.f32 %v11560_v8, %v11489_v9 }
0x32f4   :  { %18630 = vtanh.f32 %v11561_v11  ;;  %v11963_v11 = vld [vmem:[#allocation5 + $0xe] sm:$0x1] }
0x32f5   :  { %18632 = vrcp.f32 %v11486_v10 }
0x32fe   :  { %v18631_v13 = vpop.eup %18630 }
0x32ff   :  { %v11563_v14 = vsub.f32 %v11328_v33, %v18631_v13  ;;  %v18633_v39 = vpop.eup %18632 }
0x3301   :  { %v11564_v21 = vmul.f32 %v18633_v39, %v11563_v14 }
0x3303   :  { %v11565_v24 = vadd.f32 %v18631_v13, %v11564_v21 }
0x3305   :  { %11566 = vst.msk [vmem:[#allocation2 + $0xc] sm:$0x1] %vm631_vm8, %v11565_v24  ;;  %16849 = vmatmul.mubr.msk.f32.vlgmr.msra.gmra.mrb[142].mxu1 %vm60_vm1, %v11565_v24  ;;  %16860 = vmatmul.mubr.msk.f32.vlgmr.msra.gmra.mrb[142].mxu0 %vm60_vm1, %v11565_v24 }
0x3306   :  { %17978 = vmatpush3.bf16.msra.mxu1 %v19836_v31  ;;  %16870 = vmatprep.mubr.msk.f32.mxu1 %vm18734_vm7, %v18731_v15 }
0x3307   :  { %17979 = vmatprep.subr.bf16.mxu1 %v18732_v23  ;;  %17984 = vmatpush3.bf16.msra.mxu0 %v19815_v22 }
0x3308   :  { %17985 = vmatprep.subr.bf16.mxu0 %v18732_v23  ;;  %16881 = vmatprep.mubr.msk.f32.mxu0 %vm18734_vm7, %v18731_v15 }
0x330a   :  { %17981 = vmatpush3.bf16.msra.mxu1 %v19847_v37 }
0x330b   :  { %17988 = vmatprep.subr.bf16.mxu1 %v18732_v23  ;;  %17987 = vmatpush3.bf16.msra.mxu0 %v19822_v25 }
0x330c   :  { %17994 = vmatprep.subr.bf16.mxu0 %v18732_v23 }
0x330d   :  { %16871 = vmatmul.mubr.msk.f32.vlgmr.msra.gmra.mrb[144].mxu1 %vm60_vm1, %v11565_v24 }
0x330e   :  { %17990 = vmatpush3.bf16.msra.mxu1 %v19860_v41  ;;  %16892 = vmatprep.mubr.msk.f32.mxu1 %vm18734_vm7, %v18731_v15 }
0x330f   :  { %17991 = vmatprep.subr.bf16.mxu1 %v18732_v23 }
0x3312   :  { %17993 = vmatpush3.bf16.msra.mxu1 %v19873_v2 }
0x3313   :  { %18000 = vmatprep.subr.bf16.mxu1 %v18732_v23 }
0x33d8   :  { %v11637_v27 = vpop.f32.mrb[142].mxu1  ;;  %v11715_v30 = vpop.f32.mrb[142].mxu0 }
0x33d9   :  { %v11641_v34 = vadd.f32 %v11637_v27, %v11567_v26  ;;  %v16850_v35 = vpop.f32.mrb[143].mxu1  ;;  %v16861_v38 = vpop.f32.mrb[143].mxu0  ;;  %v11719_v44 = vadd.f32 %v11715_v30, %v11648_v43  ;;  %v12278_v30 = vld [vmem:[#allocation2] sm:$0xff] }
0x33db   :  { %v14376_v40 = vmul.f32 -1.442695, %v11641_v34  ;;  %v14378_v29 = vmul.f32 -1.442695, %v11719_v44  ;;  %v12041_v34 = vld [vmem:[#allocation3 + $0xf] sm:$0x1] }
0x33dc   :  { %v12122_v44 = vld [vmem:[#allocation4 + $0xf] sm:$0x1] }
0x33dd   :  { %18634 = vpow2.f32 %v14376_v40 }
0x33de   :  { %18636 = vpow2.f32 %v14378_v29 }
0x33e0   :  { %v11793_v28 = vpop.f32.mrb[144].mxu1 }
0x33e1   :  { %v16872_v46 = vpop.f32.mrb[145].mxu1  ;;  %v11794_v49 = vadd.f32 %v20150_v61, %v11793_v28 }
0x33e7   :  { %v18635_v47 = vpop.eup %18634 }
0x33e8   :  { %v11645_v48 = vadd.f32 1.0, %v18635_v47  ;;  %v18637_v6 = vpop.eup %18636 }
0x33e9   :  { %v11723_v33 = vadd.f32 1.0, %v18637_v6 }
0x33ea   :  { %18638 = vrcp.f32 %v11645_v48 }
0x33f4   :  { %v18639_v50 = vpop.eup %18638 }
0x33f5   :  { %v11797_v51 = vmul.f32 %v18639_v50, %v11794_v49 }
0x33f7   :  { %v11798_v52 = vadd.f32 %v11797_v51, %v11726_v56  ;;  %v12200_v51 = vld [vmem:[#allocation5 + $0xf] sm:$0x1] }
0x33f9   :  { %18640 = vtanh.f32 %v11798_v52 }
0x33fa   :  { %18642 = vrcp.f32 %v11723_v33 }
0x3403   :  { %v18641_v36 = vpop.eup %18640 }
0x3404   :  { %v11800_v55 = vsub.f32 %v11565_v24, %v18641_v36  ;;  %v18643_v42 = vpop.eup %18642 }
0x3406   :  { %v11801_v57 = vmul.f32 %v18643_v42, %v11800_v55 }
0x3408   :  { %v11802_v58 = vadd.f32 %v18641_v36, %v11801_v57 }
0x340a   :  { %11803 = vst.msk [vmem:[#allocation2 + $0xd] sm:$0x1] %vm631_vm8, %v11802_v58  ;;  %16882 = vmatmul.mubr.msk.f32.vlgmr.msra.gmra.mrb[144].mxu0 %vm60_vm1, %v11802_v58  ;;  %16893 = vmatmul.mubr.msk.f32.vlgmr.msra.gmra.mrb[146].mxu1 %vm60_vm1, %v11802_v58 }
0x340b   :  { %17996 = vmatpush3.bf16.msra.mxu0 %v19836_v31  ;;  %16903 = vmatprep.mubr.msk.f32.mxu0 %vm18734_vm7, %v18731_v15 }
0x340c   :  { %17997 = vmatprep.subr.bf16.mxu0 %v18732_v23  ;;  %18002 = vmatpush3.bf16.msra.mxu1 %v19815_v22  ;;  %v11804_v22 = vld [vmem:[#allocation3 + $0xe] sm:$0x1] }
0x340d   :  { %18003 = vmatprep.subr.bf16.mxu1 %v18732_v23  ;;  %16914 = vmatprep.mubr.msk.f32.mxu1 %vm18734_vm7, %v18731_v15 }
0x340f   :  { %17999 = vmatpush3.bf16.msra.mxu0 %v19847_v37 }
0x3410   :  { %18006 = vmatprep.subr.bf16.mxu0 %v18732_v23  ;;  %18005 = vmatpush3.bf16.msra.mxu1 %v19822_v25 }
0x3411   :  { %18012 = vmatprep.subr.bf16.mxu1 %v18732_v23 }
0x3412   :  { %16904 = vmatmul.mubr.msk.f32.vlgmr.msra.gmra.mrb[146].mxu0 %vm60_vm1, %v11802_v58 }
0x3413   :  { %18008 = vmatpush3.bf16.msra.mxu0 %v19860_v41  ;;  %16925 = vmatprep.mubr.msk.f32.mxu0 %vm18734_vm7, %v18731_v15 }
0x3414   :  { %18009 = vmatprep.subr.bf16.mxu0 %v18732_v23 }
0x3417   :  { %18011 = vmatpush3.bf16.msra.mxu0 %v19873_v2 }
0x3418   :  { %18019 = vmatprep.subr.bf16.mxu0 %v19281_v16 }
0x34dd   :  { %v11874_v20 = vpop.f32.mrb[144].mxu0  ;;  %v11952_v59 = vpop.f32.mrb[146].mxu1 }
0x34de   :  { %v11878_v60 = vadd.f32 %v11874_v20, %v11804_v22  ;;  %v16883_v25 = vpop.f32.mrb[145].mxu0  ;;  %v16894_v45 = vpop.f32.mrb[147].mxu1  ;;  %v11956_v41 = vadd.f32 %v11952_v59, %v11885_v62 }
0x34e0   :  { %v14381_v32 = vmul.f32 -1.442695, %v11878_v60  ;;  %v14383_v1 = vmul.f32 -1.442695, %v11956_v41 }
0x34e2   :  { %18644 = vpow2.f32 %v14381_v32 }
0x34e3   :  { %18646 = vpow2.f32 %v14383_v1  ;;  %v12403_v1 = vld [vmem:[%s20536_s1 + $0x1b0] sm:$0xff] }
0x34e5   :  { %v12030_v63 = vpop.f32.mrb[146].mxu0 }
0x34e6   :  { %v16905_v0 = vpop.f32.mrb[147].mxu0  ;;  %v12031_v8 = vadd.f32 %v20150_v61, %v12030_v63 }
0x34e7   :  { %v12402_v0 = vld [vmem:[%s20536_s1 + $0x1a8] sm:$0xff] }
0x34ec   :  { %v18645_v19 = vpop.eup %18644 }
0x34ed   :  { %v11882_v5 = vadd.f32 1.0, %v18645_v19  ;;  %v18647_v2 = vpop.eup %18646  ;;  %v12404_v19 = vld [vmem:[%s20536_s1 + $0x1b8] sm:$0xff] }
0x34ee   :  { %v11960_v13 = vadd.f32 1.0, %v18647_v2  ;;  %v12405_v2 = vld [vmem:[%s20536_s1 + $0x1c0] sm:$0xff] }
0x34ef   :  { %18648 = vrcp.f32 %v11882_v5  ;;  %v18026_v5 = vpack.c.bf16 %v12403_v1, %v12402_v0 }
0x34f9   :  { %v18649_v9 = vpop.eup %18648 }
0x34fa   :  { %v12034_v10 = vmul.f32 %v18649_v9, %v12031_v8  ;;  %v18030_v8 = vpack.c.bf16 %v12405_v2, %v12404_v19 }
0x34fc   :  { %v12035_v14 = vadd.f32 %v12034_v10, %v11963_v11 }
0x34fe   :  { %18650 = vtanh.f32 %v12035_v14 }
0x34ff   :  { %18652 = vrcp.f32 %v11960_v13 }
0x3508   :  { %v18651_v39 = vpop.eup %18650 }
0x3509   :  { %v12037_v21 = vsub.f32 %v11802_v58, %v18651_v39  ;;  %v18653_v24 = vpop.eup %18652 }
0x350b   :  { %v12038_v26 = vmul.f32 %v18653_v24, %v12037_v21 }
0x350d   :  { %v12039_v27 = vadd.f32 %v18651_v39, %v12038_v26 }
0x350f   :  { %12040 = vst.msk [vmem:[#allocation2 + $0xe] sm:$0x1] %vm631_vm8, %v12039_v27  ;;  %16915 = vmatmul.mubr.msk.f32.vlgmr.msra.gmra.mrb[148].mxu1 %vm60_vm1, %v12039_v27  ;;  %16926 = vmatmul.mubr.msk.f32.vlgmr.msra.gmra.mrb[148].mxu0 %vm60_vm1, %v12039_v27 }
0x3510   :  { %18014 = vmatpush3.bf16.msra.mxu1 %v19836_v31  ;;  %16947 = vmatprep.mubr.msk.f32.mxu0 %vm60_vm1, %v12278_v30  ;;  %v14394_v30 = vld [vmem:[%s20537_s2 + $0xe] ss:$0 sm:$0xff] }
0x3511   :  { %18015 = vmatprep.subr.bf16.mxu1 %v18732_v23  ;;  %16936 = vmatprep.mubr.msk.f32.mxu1 %vm18734_vm7, %v18731_v15 }
0x3512   :  { %18021 = vmatpush3.bf16.msra.mxu0 %v19281_v16 }
0x3513   :  { %18023 = vmatprep.subr.bf16.mxu0 %v19286_v17 }
0x3514   :  { %18017 = vmatpush3.bf16.msra.mxu1 %v19847_v37 }
0x3515   :  { %18027 = vmatprep.subr.bf16.mxu1 %v18026_v5 }
0x3516   :  { %18025 = vmatpush3.bf16.msra.mxu0 %v19286_v17 }
0x3517   :  { %16937 = vmatmul.mubr.msk.f32.vlgmr.msra.gmra.mrb[150].mxu1 %vm60_vm1, %v12039_v27 }
0x3518   :  { %18029 = vmatpush3.bf16.msra.mxu1 %v18026_v5 }
0x3519   :  { %18031 = vmatprep.subr.bf16.mxu1 %v18030_v8 }
0x351c   :  { %18033 = vmatpush3.bf16.msra.mxu1 %v18030_v8 }
0x35e2   :  { %v12111_v35 = vpop.f32.mrb[148].mxu1  ;;  %v12189_v31 = vpop.f32.mrb[148].mxu0 }
0x35e3   :  { %v12115_v38 = vadd.f32 %v12111_v35, %v12041_v34  ;;  %v16916_v40 = vpop.f32.mrb[149].mxu1  ;;  %v16927_v43 = vpop.f32.mrb[149].mxu0  ;;  %v12193_v29 = vadd.f32 %v12189_v31, %v12122_v44 }
0x35e5   :  { %v14386_v28 = vmul.f32 -1.442695, %v12115_v38  ;;  %v14388_v47 = vmul.f32 -1.442695, %v12193_v29  ;;  %v53_v29 = vand.u32 127, %v21_v3 }
0x35e7   :  { %18654 = vpow2.f32 %v14386_v28  ;;  %vm55_vm9 = vcmp.eq.s32.totalorder %v18777_v7, %v53_v29  ;;  %vm54_vm10 = vcmp.eq.s32.totalorder %v18768_v4, %v53_v29 }
0x35e8   :  { %18656 = vpow2.f32 %v14388_v47  ;;  %v14124_v47 = vsel %vm54_vm10, 1.0, %v18731_v15 }
0x35ea   :  { %v12267_v46 = vpop.f32.mrb[150].mxu1 }
0x35eb   :  { %v16938_v16 = vpop.f32.mrb[151].mxu1  ;;  %v12268_v37 = vadd.f32 %v20150_v61, %v12267_v46  ;;  %v18706_v61 = vld [vmem:[%s20537_s2 + $0x1] ss:$0 sm:$0xff] }
0x35ec   :  { %v14125_v16 = vsel %vm55_vm9, 1.0, %v18731_v15 }
0x35f1   :  { %v18655_v48 = vpop.eup %18654 }
0x35f2   :  { %v12119_v6 = vadd.f32 1.0, %v18655_v48  ;;  %v18657_v17 = vpop.eup %18656  ;;  %v20298_v48 = vadd.f32 %v18910_v53, %v14125_v16  ;;  %v14405_v16 = vld [vmem:[%s20537_s2 + $0x11] ss:$0 sm:$0xff] }
0x35f3   :  { %v12197_v56 = vadd.f32 1.0, %v18657_v17 }
0x35f4   :  { %18658 = vrcp.f32 %v12119_v6  ;;  %v20301_v6 = vadd.f32 %v14124_v47, %v18912_v54  ;;  %vm12388_vm11 = vcmp.gt.f32.partialorder %v20298_v48, 0.0 }
0x35f6   :  { %vm12387_vm13 = vcmp.gt.f32.partialorder %v20301_v6, 0.0 }
0x35fe   :  { %v18659_v49 = vpop.eup %18658 }
0x35ff   :  { %v12271_v50 = vmul.f32 %v18659_v49, %v12268_v37 }
0x3601   :  { %v12272_v33 = vadd.f32 %v12271_v50, %v12200_v51 }
0x3603   :  { %18660 = vtanh.f32 %v12272_v33 }
0x3604   :  { %18662 = vrcp.f32 %v12197_v56 }
0x360d   :  { %v18661_v52 = vpop.eup %18660 }
0x360e   :  { %v12274_v36 = vsub.f32 %v12039_v27, %v18661_v52  ;;  %v18663_v55 = vpop.eup %18662 }
0x3610   :  { %v12275_v42 = vmul.f32 %v18663_v55, %v12274_v36 }
0x3612   :  { %v12276_v57 = vadd.f32 %v18661_v52, %v12275_v42 }
0x3614   :  { %12277 = vst.msk [vmem:[#allocation2 + $0xf] sm:$0x1] %vm631_vm8, %v12276_v57 }
0x361b   :  { %v12279_v58 = vld [vmem:[#allocation2 + $0x8] sm:$0xff] }
0x361c   :  { %16948 = vmatmul.mubr.msk.f32.vlgmr.msra.gmra.mrb[150].mxu0 %vm60_vm1, %v12279_v58 }
0x36ef   :  { %v16949_v22 = vpop.f32.mrb[150].mxu0 }
0x36f0   :  { %v12358_v20 = vadd.f32 %v18706_v61, %v16949_v22  ;;  %v12352_v59 = vpop.f32.mrb[151].mxu0 }
0x36f1   :  { %v12353_v60 = vadd.f32 %v18706_v61, %v12352_v59 }
0x36f2   :  { %v14393_v25 = vmul.f32 -1.442695, %v12358_v20 }
0x36f3   :  { %v14392_v45 = vmul.f32 -1.442695, %v12353_v60 }
0x36f4   :  { %18664 = vpow2.f32 %v14393_v25 }
0x36f5   :  { %18666 = vpow2.f32 %v14392_v45 }
0x36fe   :  { %v18665_v32 = vpop.eup %18664 }
0x36ff   :  { %v18667_v62 = vpop.eup %18666  ;;  %v12368_v63 = vadd.f32 1.0, %v18665_v32  ;;  %v12390_v32 = vsel %vm12389_vm12, %v20301_v6, 0.0 }
0x3700   :  { %v12367_v41 = vadd.f32 1.0, %v18667_v62  ;;  %v12393_v62 = vsel %vm12389_vm12, %v20298_v48, 0.0 }
0x3701   :  { %18668 = vrcp.f32 %v12368_v63 }
0x3702   :  { %18670 = vrcp.f32 %v12367_v41 }
0x370b   :  { %v18669_v9 = vpop.eup %18668 }
0x370c   :  { %v18671_v10 = vpop.eup %18670  ;;  %v12374_v11 = vmul.f32 %v18669_v9, %v12358_v20 }
0x370d   :  { %v12373_v13 = vmul.f32 %v18671_v10, %v12353_v60  ;;  %v12777_v10 = vld [vmem:[%s20536_s1 + $0x208] sm:$0xff] }
0x370e   :  { %12379 = vrot.lane.b32.xlu0 %v12374_v11, %s18736_s12  ;;  %v12778_v11 = vld [vmem:[%s20536_s1 + $0x210] sm:$0xff] }
0x370f   :  { %12377 = vrot.lane.b32.xlu1 %v12373_v13, %s18736_s12  ;;  %v12779_v13 = vld [vmem:[%s20536_s1 + $0x218] sm:$0xff] }
0x3780   :  { %v12380_v14 = vpop.permute.xlu0 %12379 }
0x3781   :  { %v12384_v39 = vmul.f32 %v12380_v14, %v12358_v20  ;;  %v12378_v21 = vpop.permute.xlu1 %12377  ;;  %v18048_v14 = vpack.c.bf16 %v12778_v11, %v12777_v10 }
0x3782   :  { %v12383_v24 = vmul.f32 %v12378_v21, %v12353_v60 }
0x3783   :  { %12386 = vst.msk [vmem:[#allocation2 + $0x8] sm:$0xff] %vm60_vm1, %v12384_v39  ;;  %v12780_v39 = vld [vmem:[%s20536_s1 + $0x220] sm:$0xff] }
0x3784   :  { %12385 = vst.msk [vmem:[#allocation2] sm:$0xff] %vm60_vm1, %v12383_v24  ;;  %v18052_v21 = vpack.c.bf16 %v12780_v39, %v12779_v13 }
0x378a   :  { %v12401_v27 = vld [vmem:[#allocation2 + $0x8] sm:$0xff] }
0x378b   :  { %v12400_v26 = vld [vmem:[#allocation2] sm:$0xff] }
0x378c   :  { %16958 = vmatprep.mubr.msk.f32.mxu1 %vm60_vm1, %v12400_v26 }
0x378d   :  { %16959 = vmatmul.mubr.msk.f32.vlgmr.msra.gmra.mrb[152].mxu1 %vm60_vm1, %v12401_v27 }
0x3860   :  { %v16960_v34 = vpop.f32.mrb[152].mxu1 }
0x3861   :  { %v12489_v35 = vadd.f32 %v16960_v34, %v14394_v30  ;;  %v12483_v31 = vpop.f32.mrb[153].mxu1 }
0x3862   :  { %v12484_v38 = vadd.f32 %v14394_v30, %v12483_v31 }
0x3864   :  { %16965 = vmatprep.mubr.msk.f32.mxu0 %vm60_vm1, %v12484_v38  ;;  %v18138_v40 = vpack.i.bf16 %v12489_v35, %v12484_v38 }
0x3866   :  { %18139 = vrot.lane.b32.xlu1 %v18138_v40, %s18736_s12 }
0x38d8   :  { %v18140_v43 = vpop.permute.xlu1 %18139 }
0x38d9   :  { %v18142_v28 = vunpack.i.h.bf16 %v18140_v43  ;;  %v18141_v44 = vunpack.i.l.bf16 %v18140_v43  ;;  %v12874_v43 = vld [vmem:[%s20536_s1 + $0x1d0] sm:$0xff] }
0x38db   :  { %v18034_v46 = vpack.c.bf16 %v18142_v28, %v18141_v44  ;;  %v12875_v28 = vld [vmem:[%s20536_s1 + $0x1d8] sm:$0xff] }
0x38dd   :  { %18036 = vmatprep.subr.msk.bf16.mxu0 %vm18797_vm4, %v18034_v46 }
0x38de   :  { %18039 = vmatpush3.bf16.xpose.msk.msra.mxu0 %vm18797_vm4, %v18034_v46  ;;  %v12876_v46 = vld [vmem:[%s20536_s1 + $0x1e0] sm:$0xff] }
0x38df   :  { %18049 = vmatprep.subr.bf16.mxu0 %v18048_v14  ;;  %v18060_v29 = vpack.c.bf16 %v12876_v46, %v12875_v28  ;;  %v13244_v28 = vld [vmem:[%s20536_s1 + $0x238] sm:$0xff]  ;;  %v13245_v46 = vld [vmem:[%s20536_s1 + $0x240] sm:$0xff] }
0x38e5   :  { %16966 = vmatmul.mubr.msk.f32.vlgmr.msra.gmra.mrb[152].mxu0 %vm60_vm1, %v12489_v35 }
0x38e6   :  { %18051 = vmatpush3.bf16.msra.mxu0 %v18048_v14 }
0x38e7   :  { %18053 = vmatprep.subr.bf16.mxu0 %v18052_v21 }
0x38ea   :  { %18055 = vmatpush3.bf16.msra.mxu0 %v18052_v21 }
0x39b8   :  { %v16967_v17 = vpop.f32.mrb[152].mxu0 }
0x39b9   :  { %v12582_v37 = vmul.f32 0.17677669, %v16967_v17  ;;  %v12572_v49 = vpop.f32.mrb[153].mxu0 }
0x39ba   :  { %v12581_v50 = vmul.f32 0.17677669, %v12572_v49 }
0x39bb   :  { %v12584_v3 = vsel %vm12388_vm11, %v12582_v37, -1e+30 }
0x39bc   :  { %v12588_v7 = vsel %vm12389_vm12, %v12584_v3, -inf  ;;  %v12583_v53 = vsel %vm12387_vm13, %v12581_v50, -1e+30 }
0x39bd   :  { %12589 = vmax.xlane.f32.xlu1 %v12588_v7  ;;  %v12585_v54 = vsel %vm12389_vm12, %v12583_v53, -inf }
0x39be   :  { %12586 = vmax.xlane.f32.xlu0 %v12585_v54  ;;  %v14408_v54 = vld [vmem:[%s20537_s2 + $0xf] ss:$0 sm:$0xff] }
0x39ce   :  { %18144 = vrot.lane.b32.xlu1 %v18138_v40, %s18735_s11  ;;  %v12873_v40 = vld [vmem:[%s20536_s1 + $0x1c8] sm:$0xff] }
0x39cf   :  { %v18056_v44 = vpack.c.bf16 %v12874_v43, %v12873_v40  ;;  %v13242_v40 = vld [vmem:[%s20536_s1 + $0x228] sm:$0xff]  ;;  %v13243_v43 = vld [vmem:[%s20536_s1 + $0x230] sm:$0xff] }
0x3a4a   :  { %v12590_v51 = vpop.xlane.xlu1 %12589 }
0x3a4b   :  { %v12592_v56 = vsub.f32 %v12584_v3, %v12590_v51  ;;  %v12587_v33 = vpop.xlane.xlu0 %12586 }
0x3a4c   :  { %v12591_v52 = vsub.f32 %v12583_v53, %v12587_v33 }
0x3a4d   :  { %v12595_v36 = vmul.f32 1.442695, %v12592_v56 }
0x3a4e   :  { %v12593_v55 = vmul.f32 1.442695, %v12591_v52  ;;  %v18145_v42 = vpop.permute.xlu1 %18144 }
0x3a4f   :  { %18672 = vpow2.f32 %v12595_v36  ;;  %v18147_v57 = vunpack.i.h.bf16 %v18145_v42  ;;  %v18146_v58 = vunpack.i.l.bf16 %v18145_v42 }
0x3a50   :  { %18674 = vpow2.f32 %v12593_v55 }
0x3a51   :  { %v18040_v22 = vpack.c.bf16 %v18147_v57, %v18146_v58 }
0x3a53   :  { %18041 = vmatprep.subr.bf16.mxu1 %v18040_v22 }
0x3a54   :  { %18043 = vmatpush3.bf16.msra.mxu1 %v18040_v22 }
0x3a59   :  { %v18673_v61 = vpop.eup %18672 }
0x3a5a   :  { %v18675_v20 = vpop.eup %18674  ;;  %v12598_v25 = vmul.f32 %v18673_v61, %v20298_v48 }
0x3a5b   :  { %v12597_v59 = vmul.f32 %v18675_v20, %v20301_v6 }
0x3a5c   :  { %v12602_v45 = vsel %vm12389_vm12, %v12598_v25, 0.0 }
0x3a5d   :  { %v12599_v60 = vsel %vm12389_vm12, %v12597_v59, 0.0 }
0x3a5e   :  { %12600 = vadd.xlane.f32.xlu0 %v12599_v60 }
0x3a62   :  { %12603 = vadd.xlane.f32.xlu0 %v12602_v45 }
0x3a66   :  { %12391 = vadd.xlane.f32.xlu0 %v12390_v32 }
0x3a6a   :  { %12394 = vadd.xlane.f32.xlu0 %v12393_v62 }
0x3aeb   :  { %v12601_v63 = vpop.xlane.xlu0 %12600 }
0x3aec   :  { %18676 = vrcp.f32 %v12601_v63 }
0x3aef   :  { %v12604_v41 = vpop.xlane.xlu0 %12603 }
0x3af0   :  { %18678 = vrcp.f32 %v12604_v41 }
0x3af3   :  { %v12392_v0 = vpop.xlane.xlu0 %12391 }
0x3af4   :  { %18680 = vrcp.f32 %v12392_v0 }
0x3af6   :  { %v18677_v1 = vpop.eup %18676 }
0x3af7   :  { %v12606_v19 = vmul.f32 %v18677_v1, %v12597_v59  ;;  %v12395_v24 = vpop.xlane.xlu0 %12394 }
0x3af8   :  { %18682 = vrcp.f32 %v12395_v24 }
0x3af9   :  { %16972 = vmatprep.mubr.msk.f32.mxu1 %vm12389_vm12, %v12606_v19 }
0x3afa   :  { %v18679_v5 = vpop.eup %18678 }
0x3afb   :  { %v12608_v2 = vmul.f32 %v18679_v5, %v12598_v25 }
0x3afd   :  { %16973 = vmatmul.mubr.msk.f32.vlgmr.msra.gmra.mrb[154].mxu1 %vm12389_vm12, %v12608_v2 }
0x3afe   :  { %v18681_v8 = vpop.eup %18680 }
0x3aff   :  { %v20323_v9 = vmul.f32 %v18681_v8, %v20301_v6 }
0x3b01   :  { %16979 = vmatprep.mubr.msk.f32.mxu1 %vm12389_vm12, %v20323_v9 }
0x3b02   :  { %v18683_v34 = vpop.eup %18682 }
0x3b03   :  { %v20340_v35 = vmul.f32 %v18683_v34, %v20298_v48 }
0x3bd0   :  { %v16974_v26 = vpop.f32.mrb[154].mxu1 }
0x3bd1   :  { %v12687_v27 = vpop.f32.mrb[155].mxu1 }
0x3bd2   :  { %v18044_v30 = vpack.c.bf16 %v16974_v26, %v12687_v27 }
0x3bd4   :  { %18045 = vmatprep.subr.bf16.mxu1 %v18044_v30 }
0x3bd5   :  { %18047 = vmatpush3.bf16.msra.mxu1 %v18044_v30 }
0x3bd6   :  { %18057 = vmatprep.subr.bf16.mxu1 %v18056_v44 }
0x3bd8   :  { %16980 = vmatmul.mubr.msk.f32.vlgmr.msra.gmra.mrb[156].mxu1 %vm12389_vm12, %v20340_v35 }
0x3bd9   :  { %18059 = vmatpush3.bf16.msra.mxu1 %v18056_v44  ;;  %v18078_v44 = vpack.c.bf16 %v13243_v43, %v13242_v40 }
0x3bda   :  { %18061 = vmatprep.subr.bf16.mxu1 %v18060_v29 }
0x3bdd   :  { %18063 = vmatpush3.bf16.msra.mxu1 %v18060_v29  ;;  %v18082_v29 = vpack.c.bf16 %v13245_v46, %v13244_v28 }
0x3cab   :  { %v16981_v31 = vpop.f32.mrb[156].mxu1 }
0x3cac   :  { %v12768_v38 = vpop.f32.mrb[157].mxu1 }
0x3cad   :  { %16990 = vmatprep.mubr.msk.f32.mxu0 %vm60_vm1, %v12768_v38 }
0x3cae   :  { %16991 = vmatmul.mubr.msk.f32.vlgmr.msra.gmra.mrb[154].mxu0 %vm60_vm1, %v16981_v31 }
0x3d81   :  { %v16992_v47 = vpop.f32.mrb[154].mxu0 }
0x3d82   :  { %v12864_v17 = vadd.f32 %v16992_v47, %v14405_v16  ;;  %v12858_v37 = vpop.f32.mrb[155].mxu0 }
0x3d83   :  { %v12859_v49 = vadd.f32 %v14405_v16, %v12858_v37 }
0x3d84   :  { %v12868_v50 = vmax.f32 %v12864_v17, 0.0 }
0x3d85   :  { %v12867_v3 = vmax.f32 %v12859_v49, 0.0 }
0x3d86   :  { %12870 = vst.msk [vmem:[#allocation2 + $0x8] sm:$0xff] %vm60_vm1, %v12868_v50  ;;  %v13338_v50 = vld [vmem:[%s20536_s1 + $0x1e8] sm:$0xff] }
0x3d87   :  { %12869 = vst.msk [vmem:[#allocation2] sm:$0xff] %vm60_vm1, %v12867_v3  ;;  %v13339_v3 = vld [vmem:[%s20536_s1 + $0x1f0] sm:$0xff] }
0x3d8d   :  { %v12872_v53 = vld [vmem:[#allocation2 + $0x8] sm:$0xff] }
0x3d8e   :  { %v12871_v7 = vld [vmem:[#allocation2] sm:$0xff] }
0x3d8f   :  { %17001 = vmatprep.mubr.msk.f32.mxu1 %vm60_vm1, %v12871_v7  ;;  %v13340_v7 = vld [vmem:[%s20536_s1 + $0x1f8] sm:$0xff] }
0x3d90   :  { %17002 = vmatmul.mubr.msk.f32.vlgmr.msra.gmra.mrb[158].mxu1 %vm60_vm1, %v12872_v53  ;;  %v18086_v53 = vpack.c.bf16 %v13339_v3, %v13338_v50  ;;  %v13710_v3 = vld [vmem:[%s20536_s1 + $0x260] sm:$0xff] }
0x3e63   :  { %v17003_v51 = vpop.f32.mrb[158].mxu1 }
0x3e64   :  { %v12960_v56 = vadd.f32 %v17003_v51, %v14408_v54  ;;  %v12954_v33 = vpop.f32.mrb[159].mxu1 }
0x3e65   :  { %v12955_v52 = vadd.f32 %v14408_v54, %v12954_v33  ;;  %v13341_v54 = vld [vmem:[%s20536_s1 + $0x200] sm:$0xff] }
0x3e66   :  { %v18090_v51 = vpack.c.bf16 %v13341_v54, %v13340_v7 }
0x3e67   :  { %17008 = vmatprep.mubr.msk.f32.mxu0 %vm60_vm1, %v12955_v52  ;;  %v18148_v36 = vpack.i.bf16 %v12960_v56, %v12955_v52 }
0x3e69   :  { %18149 = vrot.lane.b32.xlu0 %v18148_v36, %s18736_s12 }
0x3edb   :  { %v18150_v55 = vpop.permute.xlu0 %18149 }
0x3edc   :  { %v18152_v42 = vunpack.i.h.bf16 %v18150_v55  ;;  %v18151_v57 = vunpack.i.l.bf16 %v18150_v55 }
0x3ede   :  { %v18064_v58 = vpack.c.bf16 %v18152_v42, %v18151_v57 }
0x3ee0   :  { %18066 = vmatprep.subr.msk.bf16.mxu0 %vm18797_vm4, %v18064_v58 }
0x3ee1   :  { %18069 = vmatpush3.bf16.xpose.msk.msra.mxu0 %vm18797_vm4, %v18064_v58 }
0x3ee2   :  { %18079 = vmatprep.subr.bf16.mxu0 %v18078_v44 }
0x3ee8   :  { %17009 = vmatmul.mubr.msk.f32.vlgmr.msra.gmra.mrb[156].mxu0 %vm60_vm1, %v12960_v56  ;;  %v14419_v56 = vld [vmem:[%s20537_s2 + $0x12] ss:$0 sm:$0xff] }
0x3ee9   :  { %18081 = vmatpush3.bf16.msra.mxu0 %v18078_v44 }
0x3eea   :  { %18083 = vmatprep.subr.bf16.mxu0 %v18082_v29 }
0x3eed   :  { %18085 = vmatpush3.bf16.msra.mxu0 %v18082_v29 }
0x3fbb   :  { %v17010_v22 = vpop.f32.mrb[156].mxu0 }
0x3fbc   :  { %v13053_v61 = vmul.f32 0.17677669, %v17010_v22  ;;  %v13043_v20 = vpop.f32.mrb[157].mxu0 }
0x3fbd   :  { %v13052_v59 = vmul.f32 0.17677669, %v13043_v20 }
0x3fbe   :  { %v13055_v60 = vsel %vm12388_vm11, %v13053_v61, -1e+30  ;;  %v14422_v61 = vld [vmem:[%s20537_s2 + $0x10] ss:$0 sm:$0xff] }
0x3fbf   :  { %v13059_v25 = vsel %vm12389_vm12, %v13055_v60, -inf  ;;  %v13054_v45 = vsel %vm12387_vm13, %v13052_v59, -1e+30 }
0x3fc0   :  { %13060 = vmax.xlane.f32.xlu0 %v13059_v25  ;;  %v13056_v32 = vsel %vm12389_vm12, %v13054_v45, -inf }
0x3fc1   :  { %13057 = vmax.xlane.f32.xlu1 %v13056_v32 }
0x404d   :  { %v13061_v62 = vpop.xlane.xlu0 %13060 }
0x404e   :  { %v13063_v63 = vsub.f32 %v13055_v60, %v13061_v62  ;;  %v13058_v41 = vpop.xlane.xlu1 %13057 }
0x404f   :  { %v13062_v0 = vsub.f32 %v13054_v45, %v13058_v41 }
0x4050   :  { %v13066_v1 = vmul.f32 1.442695, %v13063_v63 }
0x4051   :  { %v13064_v19 = vmul.f32 1.442695, %v13062_v0 }
0x4052   :  { %18684 = vpow2.f32 %v13066_v1 }
0x4053   :  { %18686 = vpow2.f32 %v13064_v19 }
0x405c   :  { %v18685_v5 = vpop.eup %18684 }
0x405d   :  { %v18687_v2 = vpop.eup %18686  ;;  %v13069_v8 = vmul.f32 %v18685_v5, %v20298_v48 }
0x405e   :  { %v13068_v11 = vmul.f32 %v18687_v2, %v20301_v6 }
0x405f   :  { %v13073_v10 = vsel %vm12389_vm12, %v13069_v8, 0.0 }
0x4060   :  { %13074 = vadd.xlane.f32.xlu1 %v13073_v10  ;;  %v13070_v13 = vsel %vm12389_vm12, %v13068_v11, 0.0 }
0x4064   :  { %13071 = vadd.xlane.f32.xlu1 %v13070_v13 }
0x4075   :  { %18154 = vrot.lane.b32.xlu1 %v18148_v36, %s18735_s11 }
0x40ed   :  { %v13075_v14 = vpop.xlane.xlu1 %13074 }
0x40ee   :  { %18688 = vrcp.f32 %v13075_v14 }
0x40f1   :  { %v13072_v39 = vpop.xlane.xlu1 %13071 }
0x40f2   :  { %18690 = vrcp.f32 %v13072_v39 }
0x40f5   :  { %v18155_v21 = vpop.permute.xlu1 %18154 }
0x40f6   :  { %v18157_v24 = vunpack.i.h.bf16 %v18155_v21  ;;  %v18156_v26 = vunpack.i.l.bf16 %v18155_v21 }
0x40f8   :  { %v18070_v27 = vpack.c.bf16 %v18157_v24, %v18156_v26  ;;  %v18689_v30 = vpop.eup %18688 }
0x40f9   :  { %v13079_v38 = vmul.f32 %v18689_v30, %v13069_v8 }
0x40fa   :  { %18071 = vmatprep.subr.bf16.mxu1 %v18070_v27 }
0x40fb   :  { %18073 = vmatpush3.bf16.msra.mxu1 %v18070_v27 }
0x40fc   :  { %v18691_v34 = vpop.eup %18690 }
0x40fd   :  { %v13077_v31 = vmul.f32 %v18691_v34, %v13068_v11 }
0x40ff   :  { %17015 = vmatprep.mubr.msk.f32.mxu1 %vm12389_vm12, %v13077_v31 }
0x4100   :  { %17016 = vmatmul.mubr.msk.f32.vlgmr.msra.gmra.mrb[160].mxu1 %vm12389_vm12, %v13079_v38 }
0x4101   :  { %17022 = vmatprep.mubr.msk.f32.mxu1 %vm12389_vm12, %v20323_v9 }
0x41d3   :  { %v17017_v16 = vpop.f32.mrb[160].mxu1 }
0x41d4   :  { %v13158_v47 = vpop.f32.mrb[161].mxu1 }
0x41d5   :  { %v18074_v17 = vpack.c.bf16 %v17017_v16, %v13158_v47 }
0x41d7   :  { %18075 = vmatprep.subr.bf16.mxu1 %v18074_v17 }
0x41d8   :  { %18077 = vmatpush3.bf16.msra.mxu1 %v18074_v17  ;;  %v13707_v17 = vld [vmem:[%s20536_s1 + $0x248] sm:$0xff] }
0x41d9   :  { %18087 = vmatprep.subr.bf16.mxu1 %v18086_v53 }
0x41db   :  { %17023 = vmatmul.mubr.msk.f32.vlgmr.msra.gmra.mrb[162].mxu1 %vm12389_vm12, %v20340_v35 }
0x41dc   :  { %18089 = vmatpush3.bf16.msra.mxu1 %v18086_v53 }
0x41dd   :  { %18091 = vmatprep.subr.bf16.mxu1 %v18090_v51 }
0x41e0   :  { %18093 = vmatpush3.bf16.msra.mxu1 %v18090_v51  ;;  %v14130_v51 = vld [vmem:[%s20535_s0 + $0x13] ss:$0 sm:$0xff] }
0x41e1   :  { %vm152_vm15 = vcmp.eq.f32.partialorder %v18789_v12, %v14130_v51  ;;  %v13939_v12 = vld [vmem:[%s20536_s1 + $0x270] sm:$0xff] }
0x42ae   :  { %v17024_v37 = vpop.f32.mrb[162].mxu1 }
0x42af   :  { %v13233_v49 = vpop.f32.mrb[163].mxu1 }
0x42b0   :  { %17033 = vmatprep.mubr.msk.f32.mxu0 %vm60_vm1, %v13233_v49  ;;  %v13709_v49 = vld [vmem:[%s20536_s1 + $0x258] sm:$0xff] }
0x42b1   :  { %17034 = vmatmul.mubr.msk.f32.vlgmr.msra.gmra.mrb[158].mxu0 %vm60_vm1, %v17024_v37  ;;  %v13708_v37 = vld [vmem:[%s20536_s1 + $0x250] sm:$0xff]  ;;  %v18112_v7 = vpack.c.bf16 %v13710_v3, %v13709_v49 }
0x42b2   :  { %v18108_v50 = vpack.c.bf16 %v13708_v37, %v13707_v17 }
0x4384   :  { %v17035_v33 = vpop.f32.mrb[158].mxu0 }
0x4385   :  { %v13329_v52 = vadd.f32 %v17035_v33, %v14419_v56  ;;  %v13323_v36 = vpop.f32.mrb[159].mxu0  ;;  %v13895_v33 = vsub.s32 1, %v18768_v4 }
0x4386   :  { %v13324_v55 = vadd.f32 %v14419_v56, %v13323_v36  ;;  %v13884_v56 = vsub.s32 0, %v18768_v4  ;;  %v13938_v4 = vld [vmem:[%s20536_s1 + $0x268] sm:$0xff] }
0x4387   :  { %v13333_v42 = vmax.f32 %v13329_v52, 0.0  ;;  %v14131_v52 = vsel %vm152_vm15, 1.0, %v18731_v15 }
0x4388   :  { %v13332_v57 = vmax.f32 %v13324_v55, 0.0  ;;  %v13804_v36 = vsel %vm13803_vm14, %v14131_v52, 0.0  ;;  %v13885_v55 = vrot.slane %v14131_v52, %v13884_v56 }
0x4389   :  { %13335 = vst.msk [vmem:[#allocation2 + $0x8] sm:$0xff] %vm60_vm1, %v13333_v42 }
0x438a   :  { %13334 = vst.msk [vmem:[#allocation2] sm:$0xff] %vm60_vm1, %v13332_v57 }
0x4390   :  { %v13337_v22 = vld [vmem:[#allocation2 + $0x8] sm:$0xff] }
0x4391   :  { %v13336_v58 = vld [vmem:[#allocation2] sm:$0xff] }
0x4392   :  { %17044 = vmatprep.mubr.msk.f32.mxu1 %vm60_vm1, %v13336_v58  ;;  %v18126_v58 = vpack.c.bf16 %v13939_v12, %v13938_v4 }
0x4393   :  { %17045 = vmatmul.mubr.msk.f32.vlgmr.msra.gmra.mrb[164].mxu1 %vm60_vm1, %v13337_v22 }
0x4466   :  { %v17046_v20 = vpop.f32.mrb[164].mxu1 }
0x4467   :  { %v13425_v59 = vadd.f32 %v17046_v20, %v14422_v61  ;;  %v13419_v60 = vpop.f32.mrb[165].mxu1 }
0x4468   :  { %v13420_v25 = vadd.f32 %v14422_v61, %v13419_v60  ;;  %v14433_v61 = vld [vmem:[%s20537_s2 + $0x13] ss:$0 sm:$0xff] }
0x446a   :  { %17051 = vmatprep.mubr.msk.f32.mxu0 %vm60_vm1, %v13420_v25  ;;  %v18158_v45 = vpack.i.bf16 %v13425_v59, %v13420_v25 }
0x446c   :  { %18159 = vrot.lane.b32.xlu0 %v18158_v45, %s18736_s12 }
0x44de   :  { %v18160_v32 = vpop.permute.xlu0 %18159 }
0x44df   :  { %v18162_v62 = vunpack.i.h.bf16 %v18160_v32  ;;  %v18161_v63 = vunpack.i.l.bf16 %v18160_v32 }
0x44e1   :  { %v18094_v41 = vpack.c.bf16 %v18162_v62, %v18161_v63 }
0x44e3   :  { %18096 = vmatprep.subr.msk.bf16.mxu0 %vm18797_vm4, %v18094_v41 }
0x44e4   :  { %18099 = vmatpush3.bf16.xpose.msk.msra.mxu0 %vm18797_vm4, %v18094_v41 }
0x44e5   :  { %18109 = vmatprep.subr.bf16.mxu0 %v18108_v50 }
0x44eb   :  { %17052 = vmatmul.mubr.msk.f32.vlgmr.msra.gmra.mrb[160].mxu0 %vm60_vm1, %v13425_v59 }
0x44ec   :  { %18111 = vmatpush3.bf16.msra.mxu0 %v18108_v50 }
0x44ed   :  { %18113 = vmatprep.subr.bf16.mxu0 %v18112_v7 }
0x44f0   :  { %18115 = vmatpush3.bf16.msra.mxu0 %v18112_v7 }
0x44f1   :  { %18125 = vmatprep.subr.bf16.mxu0 %v18732_v23 }
0x45be   :  { %v17053_v0 = vpop.f32.mrb[160].mxu0 }
0x45bf   :  { %v13518_v1 = vmul.f32 0.17677669, %v17053_v0  ;;  %v13508_v19 = vpop.f32.mrb[161].mxu0 }
0x45c0   :  { %v13517_v5 = vmul.f32 0.17677669, %v13508_v19  ;;  %v13942_v19 = vld [vmem:[%s20536_s1 + $0x288] sm:$0xff] }
0x45c1   :  { %v13520_v2 = vsel %vm12388_vm11, %v13518_v1, -1e+30 }
0x45c2   :  { %v13524_v8 = vsel %vm12389_vm12, %v13520_v2, -inf  ;;  %v13519_v10 = vsel %vm12387_vm13, %v13517_v5, -1e+30 }
0x45c3   :  { %13525 = vmax.xlane.f32.xlu0 %v13524_v8  ;;  %v13521_v11 = vsel %vm12389_vm12, %v13519_v10, -inf }
0x45c4   :  { %13522 = vmax.xlane.f32.xlu1 %v13521_v11 }
0x4650   :  { %v13526_v18 = vpop.xlane.xlu0 %13525 }
0x4651   :  { %v13528_v13 = vsub.f32 %v13520_v2, %v13526_v18  ;;  %v13523_v14 = vpop.xlane.xlu1 %13522 }
0x4652   :  { %v13527_v39 = vsub.f32 %v13519_v10, %v13523_v14  ;;  %v13943_v10 = vld [vmem:[%s20536_s1 + $0x290] sm:$0xff] }
0x4653   :  { %v13531_v21 = vmul.f32 1.442695, %v13528_v13 }
0x4654   :  { %v13529_v24 = vmul.f32 1.442695, %v13527_v39 }
0x4655   :  { %18692 = vpow2.f32 %v13531_v21 }
0x4656   :  { %18694 = vpow2.f32 %v13529_v24 }
0x465f   :  { %v18693_v26 = vpop.eup %18692 }
0x4660   :  { %v18695_v27 = vpop.eup %18694  ;;  %v13534_v30 = vmul.f32 %v18693_v26, %v20298_v48 }
0x4661   :  { %v13533_v34 = vmul.f32 %v18695_v27, %v20301_v6  ;;  %v18120_v27 = vpack.c.bf16 %v13943_v10, %v13942_v19 }
0x4662   :  { %v13538_v31 = vsel %vm12389_vm12, %v13534_v30, 0.0 }
0x4663   :  { %13539 = vadd.xlane.f32.xlu0 %v13538_v31  ;;  %v13535_v38 = vsel %vm12389_vm12, %v13533_v34, 0.0  ;;  %v13945_v31 = vld [vmem:[%s20536_s1 + $0x2a0] sm:$0xff] }
0x4664   :  { %13536 = vadd.xlane.f32.xlu1 %v13535_v38 }
0x4667   :  { %13805 = vadd.xlane.f32.xlu0 %v13804_v36 }
0x4675   :  { %18164 = vrot.lane.b32.xlu1 %v18158_v45, %s18735_s11 }
0x4679   :  { %13891 = vbcast.lane.b32.xlu1 %v13885_v55, 264 }
0x467d   :  { %13887 = vbcast.lane.b32.xlu0 %v13885_v55, 256 }
0x46f0   :  { %v13540_v40 = vpop.xlane.xlu0 %13539 }
0x46f1   :  { %18696 = vrcp.f32 %v13540_v40  ;;  %v13537_v43 = vpop.xlane.xlu1 %13536 }
0x46f2   :  { %18698 = vrcp.f32 %v13537_v43 }
0x46f4   :  { %v13806_v62 = vpop.xlane.xlu0 %13805 }
0x46f5   :  { %v18165_v28 = vpop.permute.xlu1 %18164  ;;  %18700 = vrcp.f32 %v13806_v62 }
0x46f6   :  { %v18167_v44 = vunpack.i.h.bf16 %v18165_v28  ;;  %v18166_v46 = vunpack.i.l.bf16 %v18165_v28 }
0x46f8   :  { %v18100_v29 = vpack.c.bf16 %v18167_v44, %v18166_v46  ;;  %v13888_v0 = vpop.permute.xlu0 %13887 }
0x46f9   :  { %v13892_v22 = vpop.permute.xlu1 %13891  ;;  %vm13904_vm4 = vcmp.gt.f32.partialorder %v13888_v0, 0.5 }
0x46fa   :  { %18101 = vmatprep.subr.bf16.mxu1 %v18100_v29  ;;  %vm13905_vm0 = vcmp.gt.f32.partialorder %v13892_v22, 0.5 }
0x46fb   :  { %v18697_v48 = vpop.eup %18696  ;;  %18103 = vmatpush3.bf16.msra.mxu1 %v18100_v29 }
0x46fc   :  { %v18699_v6 = vpop.eup %18698  ;;  %v13544_v47 = vmul.f32 %v18697_v48, %v13534_v30 }
0x46fd   :  { %v13542_v16 = vmul.f32 %v18699_v6, %v13533_v34  ;;  %v13944_v34 = vld [vmem:[%s20536_s1 + $0x298] sm:$0xff] }
0x46fe   :  { %v18123_v28 = vpack.c.bf16 %v13945_v31, %v13944_v34 }
0x46ff   :  { %17058 = vmatprep.mubr.msk.f32.mxu1 %vm12389_vm12, %v13542_v16  ;;  %v18701_v3 = vpop.eup %18700 }
0x4700   :  { %17059 = vmatmul.mubr.msk.f32.vlgmr.msra.gmra.mrb[166].mxu1 %vm12389_vm12, %v13544_v47 }
0x4701   :  { %17065 = vmatprep.mubr.msk.f32.mxu1 %vm12389_vm12, %v20323_v9 }
0x47d3   :  { %v17060_v9 = vpop.f32.mrb[166].mxu1 }
0x47d4   :  { %v13623_v53 = vpop.f32.mrb[167].mxu1 }
0x47d5   :  { %v18104_v54 = vpack.c.bf16 %v17060_v9, %v13623_v53 }
0x47d7   :  { %18105 = vmatprep.subr.bf16.mxu1 %v18104_v54 }
0x47d8   :  { %18107 = vmatpush3.bf16.msra.mxu1 %v18104_v54 }
0x47d9   :  { %18116 = vmatprep.subr.bf16.mxu1 %v18732_v23 }
0x47db   :  { %17066 = vmatmul.mubr.msk.f32.vlgmr.msra.gmra.mrb[168].mxu1 %vm12389_vm12, %v20340_v35  ;;  %v13896_v35 = vrot.slane %v14131_v52, %v13895_v33  ;;  %v14439_v33 = vld [vmem:[%s20537_s2 + $0x14] ss:$0 sm:$0xff] }
0x47dc   :  { %17083 = vmatprep.mubr.msk.f32.mxu1 %vm18734_vm7, %v18731_v15 }
0x47dd   :  { %13898 = vbcast.lane.b32.xlu1 %v13896_v35, 256 }
0x47e1   :  { %13902 = vbcast.lane.b32.xlu1 %v13896_v35, 264 }
0x484f   :  { %v13899_v25 = vpop.permute.xlu1 %13898 }
0x4850   :  { %vm13906_vm3 = vcmp.gt.f32.partialorder %v13899_v25, 0.5 }
0x4853   :  { %v13903_v41 = vpop.permute.xlu1 %13902 }
0x4854   :  { %vm13907_vm2 = vcmp.gt.f32.partialorder %v13903_v41, 0.5 }
0x48ae   :  { %v17067_v42 = vpop.f32.mrb[168].mxu1 }
0x48af   :  { %v13698_v57 = vpop.f32.mrb[169].mxu1 }
0x48b0   :  { %17076 = vmatprep.mubr.msk.f32.mxu0 %vm60_vm1, %v13698_v57 }
0x48b1   :  { %17077 = vmatmul.mubr.msk.f32.vlgmr.msra.gmra.mrb[162].mxu0 %vm60_vm1, %v17067_v42 }
0x48b2   :  { %17105 = vmatprep.mubr.msk.f32.mxu0 %vm18734_vm7, %v18731_v15  ;;  %18127 = vmatpush3.bf16.msra.mxu0 %v18126_v58 }
0x48b3   :  { %18128 = vmatprep.subr.bf16.mxu0 %v18732_v23 }
0x4984   :  { %v17078_v20 = vpop.f32.mrb[162].mxu0 }
0x4985   :  { %v13794_v59 = vadd.f32 %v17078_v20, %v14433_v61  ;;  %v13788_v60 = vpop.f32.mrb[163].mxu0 }
0x4986   :  { %v13789_v45 = vadd.f32 %v14433_v61, %v13788_v60 }
0x4987   :  { %v13798_v32 = vmax.f32 %v13794_v59, 0.0 }
0x4988   :  { %v13797_v63 = vmax.f32 %v13789_v45, 0.0 }
0x4989   :  { %13800 = vst.msk [vmem:[#allocation2 + $0x8] sm:$0xff] %vm60_vm1, %v13798_v32 }
0x498a   :  { %13799 = vst.msk [vmem:[#allocation2] sm:$0xff] %vm60_vm1, %v13797_v63 }
0x4990   :  { %v13802_v1 = vld [vmem:[#allocation2 + $0x8] sm:$0xff] }
0x4991   :  { %v13917_v5 = vsel %vm13905_vm0, %v13802_v1, -1e+30  ;;  %v13801_v2 = vld [vmem:[#allocation2] sm:$0xff]  ;;  %v13919_v8 = vsel %vm13907_vm2, %v13802_v1, -1e+30 }
0x4992   :  { %v13921_v11 = vsel %vm60_vm1, %v13917_v5, -inf  ;;  %v18117_v18 = vpack.c.bf16 %v13802_v1, %v13801_v2  ;;  %v13918_v13 = vsel %vm13906_vm3, %v13801_v2, -1e+30  ;;  %v13930_v14 = vsel %vm60_vm1, %v13919_v8, -inf }
0x4993   :  { %v13929_v39 = vsel %vm60_vm1, %v13918_v13, -inf  ;;  %v13916_v21 = vsel %vm13904_vm4, %v13801_v2, -1e+30 }
0x4994   :  { %v13931_v24 = vmax.f32 %v13929_v39, %v13930_v14  ;;  %v13920_v26 = vsel %vm60_vm1, %v13916_v21, -inf  ;;  %18118 = vmatpush3.bf16.msra.mxu1 %v18117_v18 }
0x4995   :  { %v13922_v30 = vmax.f32 %v13920_v26, %v13921_v11  ;;  %18119 = vmatprep.subr.bf16.mxu1 %v18732_v23 }
0x4996   :  { %v13932_v38 = vrot.slane %v13931_v24, 4 }
0x4997   :  { %v13923_v40 = vrot.slane %v13922_v30, 4  ;;  %17084 = vmatmul.mubr.msk.f32.vlgmr.msra.gmra.mrb[170].mxu1 %vm12389_vm12, %v14131_v52 }
0x4998   :  { %v13933_v43 = vmax.f32 %v13931_v24, %v13932_v38  ;;  %18121 = vmatpush3.bf16.msra.mxu1 %v18120_v27  ;;  %17094 = vmatprep.mubr.msk.f32.mxu1 %vm18734_vm7, %v18731_v15  ;;  %v13940_v15 = vld [vmem:[%s20536_s1 + $0x278] sm:$0xff] }
0x4999   :  { %v13924_v44 = vmax.f32 %v13922_v30, %v13923_v40  ;;  %18122 = vmatprep.subr.bf16.mxu1 %v18732_v23  ;;  %v13941_v23 = vld [vmem:[%s20536_s1 + $0x280] sm:$0xff]  ;;  %s18707_s1 = scalar_lea.vmem %s14110_s20, 32 }
0x499a   :  { %v13934_v46 = vrot.slane %v13933_v43, 2  ;;  %v18129_v50 = vpack.c.bf16 %v13941_v23, %v13940_v15  ;;  %p18708_p0 = scmp.ne.s32.totalorder %s14110_s20, %s18707_s1  ;;  %p18713_p2 = scmp.lt.s32.totalorder %s18707_s1, %s18707_s1 }
0x499b   :  { %v13925_v29 = vrot.slane %v13924_v44, 2 }
0x499c   :  { %v13935_v48 = vmax.f32 %v13933_v43, %v13934_v46  ;;  %18124 = vmatpush3.bf16.msra.mxu1 %v18123_v28  ;;  %18130 = vmatpush3.bf16.msra.mxu0 %v18129_v50  ;;  %p18714_p3 = por %p18713_p2, %p18712_p1 }
0x499d   :  { %v13926_v6 = vmax.f32 %v13924_v44, %v13925_v29 }
0x499e   :  { %v13936_v16 = vrot.slane %v13935_v48, 1  ;;  %p18715_p4 = pnand %p18714_p3, %p18708_p0 }
0x499f   :  { %v13927_v47 = vrot.slane %v13926_v6, 1 }
0x49a0   :  { %v13937_v17 = vmax.f32 %v13935_v48, %v13936_v16 }
0x49a1   :  { %v13928_v37 = vmax.f32 %v13926_v6, %v13927_v47 }
0x49a3   :  { %v13949_v49 = vsel %vm13948_vm5, %v13937_v17, %v13928_v37 }
0x49a4   :  { %17095 = vmatmul.mubr.msk.f32.vlgmr.msra.gmra.mrb[172].mxu1 %vm60_vm1, %v13949_v49 }
0x4a6a   :  { %v13876_v7 = vpop.f32.mrb[170].mxu1 }
0x4a6b   :  { %v13881_v9 = vmul.f32 %v18701_v3, %v13876_v7  ;;  %v17085_v53 = vpop.f32.mrb[171].mxu1 }
0x4a6d   :  { %17106 = vmatmul.mubr.msk.f32.vlgmr.msra.gmra.mrb[164].mxu0 %vm60_vm1, %v13881_v9 }
0x4a77   :  { %v14018_v54 = vpop.f32.mrb[172].mxu1 }
0x4a78   :  { %v17096_v51 = vpop.f32.mrb[173].mxu1 }
0x4b40   :  { %v14091_v56 = vpop.f32.mrb[164].mxu0 }
0x4b41   :  { %v14092_v52 = vadd.f32 %v14091_v56, %v14018_v54  ;;  %v17107_v36 = vpop.f32.mrb[165].mxu0 }
0x4b43   :  { %v14100_v55 = vadd.f32 %v14439_v33, %v14092_v52 }
0x4b45   :  { %14102 = vst.msk [vmem:[#allocation6] sm:$0x3] %vm14101_vm6, %v14100_v55 }
0x4b46   :  { %18718 = shalt.err (!%p18715_p4)
}
0x4b47   :  { %s18719_s23 = scalar_lea.hbm %s20538_s3, 32 }
0x4b48   :  { %p18720_p5 = scmp.ne.s32.totalorder %s20538_s3, %s18719_s23  ;;  %p18723_p6 = scmp.lt.u32.totalorder %s18719_s23, %s20538_s3 }
0x4b4a   :  { %p18725_p7 = pnand %p18723_p6, %p18720_p5 }
0x4b4c   :  { %18728 = shalt.err (!%p18725_p7)
}
0x4b4d   :  { %14112 = dma.vmem_to_hbm [thread:$0]  %s14110_s20, 32, %s20538_s3, [#allocation7]  }
0x4b4e   :  { %18729 = dma.done.wait [#allocation7], 32  }
0x4b4f   :  { %18730 = vsyncadd [#allocation7], 4294967264 }
0x4b50   :  { %14116 = vsyncpa [#allocation7], 1 }

</bundles_post_ra>
